<compile_context>
chip_gen: v6e
topology: v6e:2x2x1
jax: 0.10.0
libtpu: 0.0.40
codegen_flags: <defaults>
</compile_context>

<pallas_src>
import functools

import jax
import jax.numpy as jnp
from jax.experimental import pallas as pl
from jax.experimental.pallas import tpu as pltpu


def _round_up(x, m):
    return ((x + m - 1) // m) * m


def _vmem_limit_bytes():
    """Chip-aware VMEM limit: ~75% of physical, capped at 100 MiB.

    v5e/v6e (128 MiB) -> 96 MiB, v7x (64 MiB per TC) -> 48 MiB,
    unknown -> conservative 48 MiB."""
    try:
        phys = int(pltpu.get_tpu_info().vmem_capacity_bytes)
    except Exception:
        phys = 64 * 1024 * 1024
    return min(phys * 3 // 4, 100 * 1024 * 1024)


# --------------------------------------------------------------------------
# Kernel 1: ReLU + chunk-wide input projection + serial LSTM recurrence.
# --------------------------------------------------------------------------
def _lstm_chunk_kernel(x_ref,       # (Tt, Bp, Hp)  f32  time-major pre-ReLU embeddings
                       h0_ref,      # (Bp, Hp)      f32
                       c0_ref,      # (Bp, Hp)      f32
                       wih_ref,     # (Hp, 4Hp)     bf16 padded weight_ih.T (i,f,g,o)
                       whh_ref,     # (Hp, 4Hp)     bf16 padded weight_hh.T
                       b_ref,       # (1, 4Hp)      f32  b_ih + b_hh
                       hseq_ref,    # out (Bp, Tt, Hp) f32 per-step hidden states
                       hT_ref,      # out (Bp, Hp)  f32  resident carry across chunks
                       cT_ref,      # out (Bp, Hp)  f32  resident carry across chunks
                       gates_ref,   # scratch (Tt, Bp, 4Hp) f32
                       *, seq_len, chunk, masked_tail):
    tc = pl.program_id(0)
    Tt, Bp, Hp = x_ref.shape

    # Seed the carried state on the first chunk; hT/cT stay VMEM-resident
    # afterwards (constant output index_map).
    @pl.when(tc == 0)
    def _():
        hT_ref[...] = h0_ref[...]
        cT_ref[...] = c0_ref[...]

    # ---- chunk-wide input projection (ReLU fused): one bf16 MXU matmul ----
    # (Tt*Bp, Hp) @ (Hp, 4Hp), f32 accumulation, bias folded once.  Result is
    # stored TIME-MAJOR so gates_ref[t] is a full-tile load in the recurrence.
    x = jnp.maximum(x_ref[...], 0.0).reshape(Tt * Bp, Hp).astype(jnp.bfloat16)
    gin = jnp.dot(x, wih_ref[...], preferred_element_type=jnp.float32) + b_ref[...]
    gates_ref[...] = gin.reshape(Tt, Bp, 4 * Hp)

    whh = whh_ref[...]
    h = hT_ref[...]
    c = cT_ref[...]

    # ---- serial recurrence: only h @ W_hh left inside; statically unrolled --
    # TODO(synk): keep W_hh stationary in the MXU across the Tt steps
    #             (pltpu.matmul_push_rhs / matmul_acc_lhs / matmul_pop).
    for t in range(Tt):
        g = gates_ref[t] + jnp.dot(h.astype(jnp.bfloat16), whh,
                                   preferred_element_type=jnp.float32)
        i_g = jax.nn.sigmoid(g[:, 0 * Hp:1 * Hp])
        f_g = jax.nn.sigmoid(g[:, 1 * Hp:2 * Hp])
        g_g = jnp.tanh(g[:, 2 * Hp:3 * Hp])
        o_g = jax.nn.sigmoid(g[:, 3 * Hp:4 * Hp])
        c_new = f_g * c + i_g * g_g
        h_new = o_g * jnp.tanh(c_new)
        if masked_tail:
            # Freeze h/c on padded tail steps so the returned state is exact.
            keep = (tc * chunk + t < seq_len).astype(jnp.float32)
            c = keep * c_new + (1.0 - keep) * c
            h = keep * h_new + (1.0 - keep) * h
        else:
            c, h = c_new, h_new
        # This store is off the recurrence dependency chain (it feeds only the
        # output projection), so it hides under the next step's matmul/EUP
        # latency.  TODO(synk): time-major hbuf scratch + one sublane
        # transpose (pltpu.einshape "tbh->bth") instead of strided stores.
        hseq_ref[:, t, :] = h

    hT_ref[...] = h
    cT_ref[...] = c


# --------------------------------------------------------------------------
# Kernel 2: vocab-tiled output projection (pure tiled matmul, fully parallel).
# --------------------------------------------------------------------------
def _output_proj_kernel(h_ref,    # (Bp, Tt, Hp) f32
                        w_ref,    # (Hp, Tv)     bf16
                        b_ref,    # (1, Tv)      f32
                        o_ref):   # (Bp, Tt, Tv) f32
    Bp, Tt, Hp = h_ref.shape
    Tv = o_ref.shape[-1]
    h = h_ref[...].reshape(Bp * Tt, Hp).astype(jnp.bfloat16)
    y = jnp.dot(h, w_ref[...], preferred_element_type=jnp.float32) + b_ref[...]
    o_ref[...] = y.reshape(Bp, Tt, Tv)


class PallasDecoder:
    """JAX/Pallas equivalent of the PyTorch Decoder module."""

    def __init__(self, vocab_size, embed_size, hidden_size, key,
                 max_time_chunk=64, max_vocab_tile=2048):
        assert embed_size == hidden_size, \
            "PyTorch module feeds embedding output straight into LSTM(hidden_size, ...)"
        self.vocab_size = vocab_size
        self.hidden_size = hidden_size
        self.max_time_chunk = max_time_chunk
        self.max_vocab_tile = max_vocab_tile

        H, V = hidden_size, vocab_size
        Hp, Vp = _round_up(H, 128), _round_up(V, 128)
        self.Hp, self.Vp = Hp, Vp

        ks = jax.random.split(key, 6)
        # Unpadded f32 parameters (PyTorch layouts) -- kept for the reference.
        self.emb = jax.random.normal(ks[0], (V, H), jnp.float32) * 0.1
        self.w_ih = jax.random.normal(ks[1], (4 * H, H), jnp.float32) * 0.1
        self.w_hh = jax.random.normal(ks[2], (4 * H, H), jnp.float32) * 0.1
        self.b_ih = jax.random.normal(ks[3], (4 * H,), jnp.float32) * 0.1
        self.b_hh = jax.random.normal(ks[4], (4 * H,), jnp.float32) * 0.1
        self.w_out = jax.random.normal(ks[5], (V, H), jnp.float32) * 0.1
        self.b_out = jnp.zeros((V,), jnp.float32)

        # Padded / pre-transposed kernel parameters.  Weights are bf16 (MXU
        # native); biases stay f32 and are added after the f32 accumulation.
        self.emb_p = jnp.pad(self.emb, ((0, 0), (0, Hp - H)))        # (V, Hp) f32

        def pad_gate_weight(w):
            # (4H, H) -> (Hp, 4Hp): pad each gate block to Hp in both dims and
            # transpose for row-major (M, Hp) @ (Hp, 4Hp) matmuls.  Keeps every
            # gate slice lane-aligned (128-lane blocks).
            w4 = w.reshape(4, H, H)
            w4 = jnp.pad(w4, ((0, 0), (0, Hp - H), (0, Hp - H)))
            return jnp.transpose(w4, (2, 0, 1)).reshape(Hp, 4 * Hp)

        def pad_gate_bias(b):
            b4 = jnp.pad(b.reshape(4, H), ((0, 0), (0, Hp - H)))
            return b4.reshape(1, 4 * Hp)

        self.w_ih_tp = pad_gate_weight(self.w_ih).astype(jnp.bfloat16)   # (Hp, 4Hp)
        self.w_hh_tp = pad_gate_weight(self.w_hh).astype(jnp.bfloat16)   # (Hp, 4Hp)
        self.b_p = pad_gate_bias(self.b_ih + self.b_hh)                  # (1, 4Hp) f32
        self.w_out_tp = jnp.pad(self.w_out, ((0, Vp - V), (0, Hp - H))
                                ).T.astype(jnp.bfloat16)                 # (Hp, Vp)
        self.b_out_p = jnp.pad(self.b_out, (0, Vp - V))[None, :]         # (1, Vp) f32

    # ---------------- VMEM-budget-driven tiling ----------------
    def _pick_time_chunk(self, T, Bp, budget):
        """Largest 16-aligned time chunk whose recurrence-kernel blocks fit."""
        Hp = self.Hp
        cap = min(self.max_time_chunk, _round_up(T, 16))
        cap = max(16, (cap // 16) * 16)
        weights = 2 * (2 * Hp * 4 * Hp * 2 + 4 * Hp * 4)   # worst case: 2x buffered
        tt, cand = 16, 16
        while cand <= cap:
            need = (2 * cand * Bp * Hp * 4        # x_emb blocks (f32, 2x)
                    + 2 * Bp * cand * Hp * 4      # hseq blocks (f32, 2x)
                    + cand * Bp * 4 * Hp * 4      # gates scratch
                    + weights + 8 * Bp * Hp * 4)  # weights + h/c state
            if need <= budget:
                tt = cand
            cand += 16
        return tt

    def _pick_vocab_tile(self, Bp, Tt, budget):
        """Largest 128-aligned vocab tile (dividing Vp) that fits the budget."""
        Hp, Vp = self.Hp, self.Vp
        tv, cand = 128, 128
        cap = min(Vp, self.max_vocab_tile)
        while cand <= cap:
            if Vp % cand == 0:
                need = (2 * Bp * Tt * Hp * 4      # hseq blocks
                        + 2 * Hp * cand * 2       # W_out tiles (bf16)
                        + 2 * Bp * Tt * cand * 4  # logits blocks
                        + 2 * cand * 4)
                if need <= budget:
                    tv = cand
            cand += 128
        return tv

    # ---------------- pallas_call plumbing ----------------
    def _run(self, x_emb, h0_p, c0_p, B, T, Bp, Tp, Tt, Tv, vmem_limit,
             single_buffer):
        Hp, Vp = self.Hp, self.Vp
        n_chunks = Tp // Tt
        n_vtiles = Vp // Tv

        def invariant(shape):
            # Grid-invariant input: constant index_map; single-buffer if asked.
            kw = {"pipeline_mode": pl.Buffered(1)} if single_buffer else {}
            return pl.BlockSpec(shape, lambda *_, n=len(shape): (0,) * n, **kw)

        lstm_kernel = functools.partial(
            _lstm_chunk_kernel, seq_len=T, chunk=Tt, masked_tail=(Tp != T))

        cost1 = pl.CostEstimate(
            flops=int(16 * Tp * Bp * Hp * Hp),
            transcendentals=int(5 * Tp * Bp * Hp),
            bytes_accessed=int(4 * (2 * Tp * Bp * Hp + 6 * Bp * Hp)
                               + 2 * (8 * Hp * Hp)),
        )

        hseq, h_fin, c_fin = pl.pallas_call(
            lstm_kernel,
            grid=(n_chunks,),
            in_specs=[
                pl.BlockSpec((Tt, Bp, Hp), lambda tc: (tc, 0, 0)),   # x chunk
                invariant((Bp, Hp)),                                 # h0
                invariant((Bp, Hp)),                                 # c0
                invariant((Hp, 4 * Hp)),                             # W_ih^T (bf16)
                invariant((Hp, 4 * Hp)),                             # W_hh^T (bf16)
                invariant((1, 4 * Hp)),                              # gate bias
            ],
            out_shape=(
                jax.ShapeDtypeStruct((Bp, Tp, Hp), jnp.float32),     # hidden seq
                jax.ShapeDtypeStruct((Bp, Hp), jnp.float32),         # hT
                jax.ShapeDtypeStruct((Bp, Hp), jnp.float32),         # cT
            ),
            out_specs=(
                pl.BlockSpec((Bp, Tt, Hp), lambda tc: (0, tc, 0)),
                pl.BlockSpec((Bp, Hp), lambda tc: (0, 0)),           # resident carry
                pl.BlockSpec((Bp, Hp), lambda tc: (0, 0)),           # resident carry
            ),
            scratch_shapes=[pltpu.VMEM((Tt, Bp, 4 * Hp), jnp.float32)],
            compiler_params=pltpu.CompilerParams(
                dimension_semantics=("arbitrary",),    # serial recurrence over T
                vmem_limit_bytes=vmem_limit,
            ),
            cost_estimate=cost1,
        )(x_emb, h0_p, c0_p, self.w_ih_tp, self.w_hh_tp, self.b_p)

        cost2 = pl.CostEstimate(
            flops=int(2 * Bp * Tp * Hp * Vp),
            transcendentals=0,
            bytes_accessed=int(4 * Bp * Tp * Hp + 2 * Hp * Vp + 4 * Bp * Tp * Vp),
        )

        logits_p = pl.pallas_call(
            _output_proj_kernel,
            grid=(n_chunks, n_vtiles),
            in_specs=[
                pl.BlockSpec((Bp, Tt, Hp), lambda tc, v: (0, tc, 0)),  # hidden chunk
                pl.BlockSpec((Hp, Tv), lambda tc, v: (0, v)),          # W_out tile
                pl.BlockSpec((1, Tv), lambda tc, v: (0, v)),           # bias tile
            ],
            out_shape=jax.ShapeDtypeStruct((Bp, Tp, Vp), jnp.float32),
            out_specs=pl.BlockSpec((Bp, Tt, Tv), lambda tc, v: (0, tc, v)),
            compiler_params=pltpu.CompilerParams(
                dimension_semantics=("parallel", "parallel"),  # 2 TCs on v7x
                vmem_limit_bytes=vmem_limit,
            ),
            cost_estimate=cost2,
        )(hseq, self.w_out_tp, self.b_out_p)

        return logits_p, h_fin, c_fin

    def __call__(self, x, hs):
        """x: (B, T) int32 token ids; hs = (h0, c0), each (1, B, H)."""
        h0, c0 = hs
        B, T = x.shape
        H, V = self.hidden_size, self.vocab_size
        Hp, Vp = self.Hp, self.Vp
        Bp = _round_up(B, 8)

        vmem_limit = _vmem_limit_bytes()
        budget = int(vmem_limit * 0.8)
        Tt = self._pick_time_chunk(T, Bp, budget)
        Tp = _round_up(T, Tt)
        Tv = self._pick_vocab_tile(Bp, Tt, budget)

        # Wrapper glue: embedding gather in TIME-MAJOR layout + padding to
        # TPU-friendly shapes.  Padded batch rows / tail steps are inert and
        # sliced off below (keep this invariant if layouts change).
        # TODO(synk): fuse the gather via scalar prefetch + pl.Element rows.
        x_emb = jnp.take(self.emb_p, x.T, axis=0)                     # (T, B, Hp)
        x_emb = jnp.pad(x_emb, ((0, Tp - T), (0, Bp - B), (0, 0)))    # (Tp, Bp, Hp)
        h0_p = jnp.pad(h0[0], ((0, Bp - B), (0, Hp - H)))             # (Bp, Hp)
        c0_p = jnp.pad(c0[0], ((0, Bp - B), (0, Hp - H)))             # (Bp, Hp)

        try:
            outs = self._run(x_emb, h0_p, c0_p, B, T, Bp, Tp, Tt, Tv,
                             vmem_limit, single_buffer=True)
            outs = jax.block_until_ready(outs)
        except Exception:
            # pl.Buffered(1) unsupported on this JAX build -> default buffering.
            outs = self._run(x_emb, h0_p, c0_p, B, T, Bp, Tp, Tt, Tv,
                             vmem_limit, single_buffer=False)
        logits_p, h_fin, c_fin = outs

        logits = logits_p[:B, :T, :V]                                 # (B, T, V)
        hT = h_fin[:B, :H][None]                                      # (1, B, H)
        cT = c_fin[:B, :H][None]                                      # (1, B, H)
        return logits, (hT, cT)


def _reference(dec, x, hs):
    """Pure-JAX f32 reference of the PyTorch forward (unpadded parameters)."""
    h, c = hs[0][0], hs[1][0]
    H = dec.hidden_size
    w_ih_t, w_hh_t = dec.w_ih.T, dec.w_hh.T
    b = (dec.b_ih + dec.b_hh)[None, :]
    x_emb = jnp.maximum(jnp.take(dec.emb, x, axis=0), 0.0)           # (B, T, H)
    outs = []
    for t in range(x.shape[1]):
        g = x_emb[:, t] @ w_ih_t + h @ w_hh_t + b
        i = jax.nn.sigmoid(g[:, 0 * H:1 * H])
        f = jax.nn.sigmoid(g[:, 1 * H:2 * H])
        gg = jnp.tanh(g[:, 2 * H:3 * H])
        o = jax.nn.sigmoid(g[:, 3 * H:4 * H])
        c = f * c + i * gg
        h = o * jnp.tanh(c)
        outs.append(h @ dec.w_out.T + dec.b_out[None, :])
    return jnp.stack(outs, axis=1), (h[None], c[None])


if __name__ == "__main__":
    vocab_size, embed_size, hidden_size = 64, 32, 32
    # T=40 with max_time_chunk=16 -> Tt=16, Tp=48, 3 grid chunks: exercises the
    # resident h/c carry across chunks AND the masked padded tail.
    B, T = 2, 40

    key = jax.random.PRNGKey(0)
    k_par, k_tok, k_h, k_c = jax.random.split(key, 4)

    dec = PallasDecoder(vocab_size, embed_size, hidden_size, k_par,
                        max_time_chunk=16)

    x = jax.random.randint(k_tok, (B, T), 0, vocab_size, dtype=jnp.int32)
    h0 = jax.random.normal(k_h, (1, B, hidden_size), jnp.float32)
    c0 = jax.random.normal(k_c, (1, B, hidden_size), jnp.float32)

    logits, (hT, cT) = dec(x, (h0, c0))
    jax.block_until_ready((logits, hT, cT))

    ref_logits, (ref_h, ref_c) = _reference(dec, x, (h0, c0))
    assert logits.shape == (B, T, vocab_size)
    assert hT.shape == (1, B, hidden_size) and cT.shape == (1, B, hidden_size)
    # Tolerances are loosened vs. the pure-f32 version because the MXU matmuls
    # now use bf16 operands (f32 accumulation), as recommended by the review.
    assert jnp.allclose(logits, ref_logits, atol=1e-1, rtol=5e-2)
    assert jnp.allclose(hT, ref_h, atol=5e-2, rtol=5e-2)
    assert jnp.allclose(cT, ref_c, atol=5e-2, rtol=5e-2)

    print("KERNEL_OK")
</pallas_src>

<mosaic_0001>
module attributes {stable_mosaic.version = 11 : i64} {
  func.func @_lstm_chunk_kernel(%arg0: i32, %arg1: memref<16x8x128xf32, #tpu.memory_space<vmem>>, %arg2: memref<8x128xf32, #tpu.memory_space<vmem>>, %arg3: memref<8x128xf32, #tpu.memory_space<vmem>>, %arg4: memref<128x512xbf16, #tpu.memory_space<vmem>>, %arg5: memref<128x512xbf16, #tpu.memory_space<vmem>>, %arg6: memref<1x512xf32, #tpu.memory_space<vmem>>, %arg7: memref<8x16x128xf32, #tpu.memory_space<vmem>>, %arg8: memref<8x128xf32, #tpu.memory_space<vmem>>, %arg9: memref<8x128xf32, #tpu.memory_space<vmem>>, %arg10: memref<16x8x512xf32, #tpu.memory_space<vmem>>) attributes {dimension_semantics = [#tpu.dimension_semantics<arbitrary>], iteration_bounds = array<i64: 3>, scalar_prefetch = 0 : i64, scratch_operands = 1 : i64, tpu.core_type = #tpu.core_type<tc>, window_params = [{transform_indices = @transform_0, window_bounds = array<i64: 16, 8, 128>}, {pipeline_mode = #tpu.pipeline_mode<synchronous>, transform_indices = @transform_1, window_bounds = array<i64: 8, 128>}, {pipeline_mode = #tpu.pipeline_mode<synchronous>, transform_indices = @transform_2, window_bounds = array<i64: 8, 128>}, {pipeline_mode = #tpu.pipeline_mode<synchronous>, transform_indices = @transform_3, window_bounds = array<i64: 128, 512>}, {pipeline_mode = #tpu.pipeline_mode<synchronous>, transform_indices = @transform_4, window_bounds = array<i64: 128, 512>}, {pipeline_mode = #tpu.pipeline_mode<synchronous>, transform_indices = @transform_5, window_bounds = array<i64: 1, 512>}, {transform_indices = @transform_6, window_bounds = array<i64: 8, 16, 128>}, {pipeline_mode = #tpu.pipeline_mode<synchronous>, transform_indices = @transform_7, window_bounds = array<i64: 8, 128>}, {pipeline_mode = #tpu.pipeline_mode<synchronous>, transform_indices = @transform_8, window_bounds = array<i64: 8, 128>}]} {
    %c0_i32 = arith.constant 0 : i32
    %0 = arith.cmpi eq, %arg0, %c0_i32 : i32
    %1 = arith.extui %0 : i1 to i32
    %c0_i32_0 = arith.constant 0 : i32
    %2 = arith.cmpi ne, %1, %c0_i32_0 : i32
    scf.if %2 {
      %c0_229 = arith.constant 0 : index
      %c0_230 = arith.constant 0 : index
      %820 = vector.load %arg2[%c0_229, %c0_230] : memref<8x128xf32, #tpu.memory_space<vmem>>, vector<8x128xf32>
      %c0_231 = arith.constant 0 : index
      %c0_232 = arith.constant 0 : index
      %821 = vector.load %arg8[%c0_231, %c0_232] : memref<8x128xf32, #tpu.memory_space<vmem>>, vector<8x128xf32>
      tpu.vector_store %arg8[%c0_231, %c0_232], %820 {strides = array<i32>} : memref<8x128xf32, #tpu.memory_space<vmem>>, vector<8x128xf32>,
      %c0_233 = arith.constant 0 : index
      %c0_234 = arith.constant 0 : index
      %822 = vector.load %arg3[%c0_233, %c0_234] : memref<8x128xf32, #tpu.memory_space<vmem>>, vector<8x128xf32>
      %c0_235 = arith.constant 0 : index
      %c0_236 = arith.constant 0 : index
      %823 = vector.load %arg9[%c0_235, %c0_236] : memref<8x128xf32, #tpu.memory_space<vmem>>, vector<8x128xf32>
      tpu.vector_store %arg9[%c0_235, %c0_236], %822 {strides = array<i32>} : memref<8x128xf32, #tpu.memory_space<vmem>>, vector<8x128xf32>,
    } else {
    }
    %c0 = arith.constant 0 : index
    %c0_1 = arith.constant 0 : index
    %c0_2 = arith.constant 0 : index
    %3 = vector.load %arg1[%c0, %c0_1, %c0_2] : memref<16x8x128xf32, #tpu.memory_space<vmem>>, vector<16x8x128xf32>
    %cst = arith.constant 0.000000e+00 : f32
    %4 = vector.broadcast %cst : f32 to vector<16x8x128xf32>
    %5 = arith.maximumf %3, %4 : vector<16x8x128xf32>
    %6 = vector.shape_cast %5 : vector<16x8x128xf32> to vector<128x128xf32>
    %7 = arith.truncf %6 : vector<128x128xf32> to vector<128x128xbf16>
    %c0_3 = arith.constant 0 : index
    %c0_4 = arith.constant 0 : index
    %8 = vector.load %arg4[%c0_3, %c0_4] : memref<128x512xbf16, #tpu.memory_space<vmem>>, vector<128x512xbf16>
    %cst_5 = arith.constant dense<0.000000e+00> : vector<128x512xf32>
    %9 = tpu.matmul %7, %8, %cst_5 {dimension_numbers = #tpu.dot_dimension_numbers<[1], [0], [0], [1], [0, 0, 1, 1], [], []>} : vector<128x128xbf16>, vector<128x512xbf16>, vector<128x512xf32> -> vector<128x512xf32>
    %c0_6 = arith.constant 0 : index
    %c0_7 = arith.constant 0 : index
    %10 = vector.load %arg6[%c0_6, %c0_7] : memref<1x512xf32, #tpu.memory_space<vmem>>, vector<1x512xf32>
    %11 = vector.broadcast %10 : vector<1x512xf32> to vector<128x512xf32>
    %12 = arith.addf %9, %11 : vector<128x512xf32>
    %13 = vector.shape_cast %12 : vector<128x512xf32> to vector<16x8x512xf32>
    %c0_8 = arith.constant 0 : index
    %c0_9 = arith.constant 0 : index
    %c0_10 = arith.constant 0 : index
    %14 = vector.load %arg10[%c0_8, %c0_9, %c0_10] : memref<16x8x512xf32, #tpu.memory_space<vmem>>, vector<16x8x512xf32>
    tpu.vector_store %arg10[%c0_8, %c0_9, %c0_10], %13 {strides = array<i32>} : memref<16x8x512xf32, #tpu.memory_space<vmem>>, vector<16x8x512xf32>,
    %c0_11 = arith.constant 0 : index
    %c0_12 = arith.constant 0 : index
    %15 = vector.load %arg5[%c0_11, %c0_12] : memref<128x512xbf16, #tpu.memory_space<vmem>>, vector<128x512xbf16>
    %c0_13 = arith.constant 0 : index
    %c0_14 = arith.constant 0 : index
    %16 = vector.load %arg8[%c0_13, %c0_14] : memref<8x128xf32, #tpu.memory_space<vmem>>, vector<8x128xf32>
    %c0_15 = arith.constant 0 : index
    %c0_16 = arith.constant 0 : index
    %17 = vector.load %arg9[%c0_15, %c0_16] : memref<8x128xf32, #tpu.memory_space<vmem>>, vector<8x128xf32>
    %c0_17 = arith.constant 0 : index
    %c0_18 = arith.constant 0 : index
    %c0_19 = arith.constant 0 : index
    %18 = vector.load %arg10[%c0_17, %c0_18, %c0_19] : memref<16x8x512xf32, #tpu.memory_space<vmem>>, vector<1x8x512xf32>
    %19 = vector.shape_cast %18 : vector<1x8x512xf32> to vector<8x512xf32>
    %20 = arith.truncf %16 : vector<8x128xf32> to vector<8x128xbf16>
    %cst_20 = arith.constant dense<0.000000e+00> : vector<8x512xf32>
    %21 = tpu.matmul %20, %15, %cst_20 {dimension_numbers = #tpu.dot_dimension_numbers<[1], [0], [0], [1], [0, 0, 1, 1], [], []>} : vector<8x128xbf16>, vector<128x512xbf16>, vector<8x512xf32> -> vector<8x512xf32>
    %22 = arith.addf %19, %21 : vector<8x512xf32>
    %23 = vector.extract_strided_slice %22 {offsets = [0, 0], sizes = [8, 128], strides = [1, 1]} : vector<8x512xf32> to vector<8x128xf32>
    %24 = arith.negf %23 : vector<8x128xf32>
    %25 = math.exp %24 : vector<8x128xf32>
    %cst_21 = arith.constant 1.000000e+00 : f32
    %26 = vector.broadcast %cst_21 : f32 to vector<8x128xf32>
    %27 = arith.addf %26, %25 : vector<8x128xf32>
    %28 = arith.divf %26, %27 : vector<8x128xf32>
    %29 = vector.extract_strided_slice %22 {offsets = [0, 128], sizes = [8, 128], strides = [1, 1]} : vector<8x512xf32> to vector<8x128xf32>
    %30 = arith.negf %29 : vector<8x128xf32>
    %31 = math.exp %30 : vector<8x128xf32>
    %cst_22 = arith.constant 1.000000e+00 : f32
    %32 = vector.broadcast %cst_22 : f32 to vector<8x128xf32>
    %33 = arith.addf %32, %31 : vector<8x128xf32>
    %34 = arith.divf %32, %33 : vector<8x128xf32>
    %35 = vector.extract_strided_slice %22 {offsets = [0, 256], sizes = [8, 128], strides = [1, 1]} : vector<8x512xf32> to vector<8x128xf32>
    %36 = math.tanh %35 : vector<8x128xf32>
    %37 = vector.extract_strided_slice %22 {offsets = [0, 384], sizes = [8, 128], strides = [1, 1]} : vector<8x512xf32> to vector<8x128xf32>
    %38 = arith.negf %37 : vector<8x128xf32>
    %39 = math.exp %38 : vector<8x128xf32>
    %cst_23 = arith.constant 1.000000e+00 : f32
    %40 = vector.broadcast %cst_23 : f32 to vector<8x128xf32>
    %41 = arith.addf %40, %39 : vector<8x128xf32>
    %42 = arith.divf %40, %41 : vector<8x128xf32>
    %43 = arith.mulf %34, %17 : vector<8x128xf32>
    %44 = arith.mulf %28, %36 : vector<8x128xf32>
    %45 = arith.addf %43, %44 : vector<8x128xf32>
    %46 = math.tanh %45 : vector<8x128xf32>
    %47 = arith.mulf %42, %46 : vector<8x128xf32>
    %c16_i32 = arith.constant 16 : i32
    %48 = arith.muli %arg0, %c16_i32 : i32
    %c0_i32_24 = arith.constant 0 : i32
    %49 = arith.addi %48, %c0_i32_24 : i32
    %c40_i32 = arith.constant 40 : i32
    %50 = arith.cmpi slt, %49, %c40_i32 : i32
    %51 = arith.extui %50 : i1 to i32
    %52 = arith.sitofp %51 : i32 to f32
    %53 = vector.broadcast %52 : f32 to vector<8x128xf32>
    %54 = arith.mulf %53, %45 : vector<8x128xf32>
    %cst_25 = arith.constant 1.000000e+00 : f32
    %55 = arith.subf %cst_25, %52 : f32
    %56 = vector.broadcast %55 : f32 to vector<8x128xf32>
    %57 = arith.mulf %56, %17 : vector<8x128xf32>
    %58 = arith.addf %54, %57 : vector<8x128xf32>
    %59 = vector.broadcast %52 : f32 to vector<8x128xf32>
    %60 = arith.mulf %59, %47 : vector<8x128xf32>
    %cst_26 = arith.constant 1.000000e+00 : f32
    %61 = arith.subf %cst_26, %52 : f32
    %62 = vector.broadcast %61 : f32 to vector<8x128xf32>
    %63 = arith.mulf %62, %16 : vector<8x128xf32>
    %64 = arith.addf %60, %63 : vector<8x128xf32>
    %c0_27 = arith.constant 0 : index
    %c0_28 = arith.constant 0 : index
    %c0_29 = arith.constant 0 : index
    %65 = vector.load %arg7[%c0_27, %c0_28, %c0_29] : memref<8x16x128xf32, #tpu.memory_space<vmem>>, vector<8x1x128xf32>
    %66 = vector.shape_cast %65 : vector<8x1x128xf32> to vector<8x128xf32>
    %67 = vector.shape_cast %64 : vector<8x128xf32> to vector<8x1x128xf32>
    tpu.vector_store %arg7[%c0_27, %c0_28, %c0_29], %67 {strides = array<i32>} : memref<8x16x128xf32, #tpu.memory_space<vmem>>, vector<8x1x128xf32>,
    %c1 = arith.constant 1 : index
    %c0_30 = arith.constant 0 : index
    %c0_31 = arith.constant 0 : index
    %68 = vector.load %arg10[%c1, %c0_30, %c0_31] : memref<16x8x512xf32, #tpu.memory_space<vmem>>, vector<1x8x512xf32>
    %69 = vector.shape_cast %68 : vector<1x8x512xf32> to vector<8x512xf32>
    %70 = arith.truncf %64 : vector<8x128xf32> to vector<8x128xbf16>
    %cst_32 = arith.constant dense<0.000000e+00> : vector<8x512xf32>
    %71 = tpu.matmul %70, %15, %cst_32 {dimension_numbers = #tpu.dot_dimension_numbers<[1], [0], [0], [1], [0, 0, 1, 1], [], []>} : vector<8x128xbf16>, vector<128x512xbf16>, vector<8x512xf32> -> vector<8x512xf32>
    %72 = arith.addf %69, %71 : vector<8x512xf32>
    %73 = vector.extract_strided_slice %72 {offsets = [0, 0], sizes = [8, 128], strides = [1, 1]} : vector<8x512xf32> to vector<8x128xf32>
    %74 = arith.negf %73 : vector<8x128xf32>
    %75 = math.exp %74 : vector<8x128xf32>
    %cst_33 = arith.constant 1.000000e+00 : f32
    %76 = vector.broadcast %cst_33 : f32 to vector<8x128xf32>
    %77 = arith.addf %76, %75 : vector<8x128xf32>
    %78 = arith.divf %76, %77 : vector<8x128xf32>
    %79 = vector.extract_strided_slice %72 {offsets = [0, 128], sizes = [8, 128], strides = [1, 1]} : vector<8x512xf32> to vector<8x128xf32>
    %80 = arith.negf %79 : vector<8x128xf32>
    %81 = math.exp %80 : vector<8x128xf32>
    %cst_34 = arith.constant 1.000000e+00 : f32
    %82 = vector.broadcast %cst_34 : f32 to vector<8x128xf32>
    %83 = arith.addf %82, %81 : vector<8x128xf32>
    %84 = arith.divf %82, %83 : vector<8x128xf32>
    %85 = vector.extract_strided_slice %72 {offsets = [0, 256], sizes = [8, 128], strides = [1, 1]} : vector<8x512xf32> to vector<8x128xf32>
    %86 = math.tanh %85 : vector<8x128xf32>
    %87 = vector.extract_strided_slice %72 {offsets = [0, 384], sizes = [8, 128], strides = [1, 1]} : vector<8x512xf32> to vector<8x128xf32>
    %88 = arith.negf %87 : vector<8x128xf32>
    %89 = math.exp %88 : vector<8x128xf32>
    %cst_35 = arith.constant 1.000000e+00 : f32
    %90 = vector.broadcast %cst_35 : f32 to vector<8x128xf32>
    %91 = arith.addf %90, %89 : vector<8x128xf32>
    %92 = arith.divf %90, %91 : vector<8x128xf32>
    %93 = arith.mulf %84, %58 : vector<8x128xf32>
    %94 = arith.mulf %78, %86 : vector<8x128xf32>
    %95 = arith.addf %93, %94 : vector<8x128xf32>
    %96 = math.tanh %95 : vector<8x128xf32>
    %97 = arith.mulf %92, %96 : vector<8x128xf32>
    %c16_i32_36 = arith.constant 16 : i32
    %98 = arith.muli %arg0, %c16_i32_36 : i32
    %c1_i32 = arith.constant 1 : i32
    %99 = arith.addi %98, %c1_i32 : i32
    %c40_i32_37 = arith.constant 40 : i32
    %100 = arith.cmpi slt, %99, %c40_i32_37 : i32
    %101 = arith.extui %100 : i1 to i32
    %102 = arith.sitofp %101 : i32 to f32
    %103 = vector.broadcast %102 : f32 to vector<8x128xf32>
    %104 = arith.mulf %103, %95 : vector<8x128xf32>
    %cst_38 = arith.constant 1.000000e+00 : f32
    %105 = arith.subf %cst_38, %102 : f32
    %106 = vector.broadcast %105 : f32 to vector<8x128xf32>
    %107 = arith.mulf %106, %58 : vector<8x128xf32>
    %108 = arith.addf %104, %107 : vector<8x128xf32>
    %109 = vector.broadcast %102 : f32 to vector<8x128xf32>
    %110 = arith.mulf %109, %97 : vector<8x128xf32>
    %cst_39 = arith.constant 1.000000e+00 : f32
    %111 = arith.subf %cst_39, %102 : f32
    %112 = vector.broadcast %111 : f32 to vector<8x128xf32>
    %113 = arith.mulf %112, %64 : vector<8x128xf32>
    %114 = arith.addf %110, %113 : vector<8x128xf32>
    %c0_40 = arith.constant 0 : index
    %c1_41 = arith.constant 1 : index
    %c0_42 = arith.constant 0 : index
    %115 = vector.load %arg7[%c0_40, %c1_41, %c0_42] : memref<8x16x128xf32, #tpu.memory_space<vmem>>, vector<8x1x128xf32>
    %116 = vector.shape_cast %115 : vector<8x1x128xf32> to vector<8x128xf32>
    %117 = vector.shape_cast %114 : vector<8x128xf32> to vector<8x1x128xf32>
    tpu.vector_store %arg7[%c0_40, %c1_41, %c0_42], %117 {strides = array<i32>} : memref<8x16x128xf32, #tpu.memory_space<vmem>>, vector<8x1x128xf32>,
    %c2 = arith.constant 2 : index
    %c0_43 = arith.constant 0 : index
    %c0_44 = arith.constant 0 : index
    %118 = vector.load %arg10[%c2, %c0_43, %c0_44] : memref<16x8x512xf32, #tpu.memory_space<vmem>>, vector<1x8x512xf32>
    %119 = vector.shape_cast %118 : vector<1x8x512xf32> to vector<8x512xf32>
    %120 = arith.truncf %114 : vector<8x128xf32> to vector<8x128xbf16>
    %cst_45 = arith.constant dense<0.000000e+00> : vector<8x512xf32>
    %121 = tpu.matmul %120, %15, %cst_45 {dimension_numbers = #tpu.dot_dimension_numbers<[1], [0], [0], [1], [0, 0, 1, 1], [], []>} : vector<8x128xbf16>, vector<128x512xbf16>, vector<8x512xf32> -> vector<8x512xf32>
    %122 = arith.addf %119, %121 : vector<8x512xf32>
    %123 = vector.extract_strided_slice %122 {offsets = [0, 0], sizes = [8, 128], strides = [1, 1]} : vector<8x512xf32> to vector<8x128xf32>
    %124 = arith.negf %123 : vector<8x128xf32>
    %125 = math.exp %124 : vector<8x128xf32>
    %cst_46 = arith.constant 1.000000e+00 : f32
    %126 = vector.broadcast %cst_46 : f32 to vector<8x128xf32>
    %127 = arith.addf %126, %125 : vector<8x128xf32>
    %128 = arith.divf %126, %127 : vector<8x128xf32>
    %129 = vector.extract_strided_slice %122 {offsets = [0, 128], sizes = [8, 128], strides = [1, 1]} : vector<8x512xf32> to vector<8x128xf32>
    %130 = arith.negf %129 : vector<8x128xf32>
    %131 = math.exp %130 : vector<8x128xf32>
    %cst_47 = arith.constant 1.000000e+00 : f32
    %132 = vector.broadcast %cst_47 : f32 to vector<8x128xf32>
    %133 = arith.addf %132, %131 : vector<8x128xf32>
    %134 = arith.divf %132, %133 : vector<8x128xf32>
    %135 = vector.extract_strided_slice %122 {offsets = [0, 256], sizes = [8, 128], strides = [1, 1]} : vector<8x512xf32> to vector<8x128xf32>
    %136 = math.tanh %135 : vector<8x128xf32>
    %137 = vector.extract_strided_slice %122 {offsets = [0, 384], sizes = [8, 128], strides = [1, 1]} : vector<8x512xf32> to vector<8x128xf32>
    %138 = arith.negf %137 : vector<8x128xf32>
    %139 = math.exp %138 : vector<8x128xf32>
    %cst_48 = arith.constant 1.000000e+00 : f32
    %140 = vector.broadcast %cst_48 : f32 to vector<8x128xf32>
    %141 = arith.addf %140, %139 : vector<8x128xf32>
    %142 = arith.divf %140, %141 : vector<8x128xf32>
    %143 = arith.mulf %134, %108 : vector<8x128xf32>
    %144 = arith.mulf %128, %136 : vector<8x128xf32>
    %145 = arith.addf %143, %144 : vector<8x128xf32>
    %146 = math.tanh %145 : vector<8x128xf32>
    %147 = arith.mulf %142, %146 : vector<8x128xf32>
    %c16_i32_49 = arith.constant 16 : i32
    %148 = arith.muli %arg0, %c16_i32_49 : i32
    %c2_i32 = arith.constant 2 : i32
    %149 = arith.addi %148, %c2_i32 : i32
    %c40_i32_50 = arith.constant 40 : i32
    %150 = arith.cmpi slt, %149, %c40_i32_50 : i32
    %151 = arith.extui %150 : i1 to i32
    %152 = arith.sitofp %151 : i32 to f32
    %153 = vector.broadcast %152 : f32 to vector<8x128xf32>
    %154 = arith.mulf %153, %145 : vector<8x128xf32>
    %cst_51 = arith.constant 1.000000e+00 : f32
    %155 = arith.subf %cst_51, %152 : f32
    %156 = vector.broadcast %155 : f32 to vector<8x128xf32>
    %157 = arith.mulf %156, %108 : vector<8x128xf32>
    %158 = arith.addf %154, %157 : vector<8x128xf32>
    %159 = vector.broadcast %152 : f32 to vector<8x128xf32>
    %160 = arith.mulf %159, %147 : vector<8x128xf32>
    %cst_52 = arith.constant 1.000000e+00 : f32
    %161 = arith.subf %cst_52, %152 : f32
    %162 = vector.broadcast %161 : f32 to vector<8x128xf32>
    %163 = arith.mulf %162, %114 : vector<8x128xf32>
    %164 = arith.addf %160, %163 : vector<8x128xf32>
    %c0_53 = arith.constant 0 : index
    %c2_54 = arith.constant 2 : index
    %c0_55 = arith.constant 0 : index
    %165 = vector.load %arg7[%c0_53, %c2_54, %c0_55] : memref<8x16x128xf32, #tpu.memory_space<vmem>>, vector<8x1x128xf32>
    %166 = vector.shape_cast %165 : vector<8x1x128xf32> to vector<8x128xf32>
    %167 = vector.shape_cast %164 : vector<8x128xf32> to vector<8x1x128xf32>
    tpu.vector_store %arg7[%c0_53, %c2_54, %c0_55], %167 {strides = array<i32>} : memref<8x16x128xf32, #tpu.memory_space<vmem>>, vector<8x1x128xf32>,
    %c3 = arith.constant 3 : index
    %c0_56 = arith.constant 0 : index
    %c0_57 = arith.constant 0 : index
    %168 = vector.load %arg10[%c3, %c0_56, %c0_57] : memref<16x8x512xf32, #tpu.memory_space<vmem>>, vector<1x8x512xf32>
    %169 = vector.shape_cast %168 : vector<1x8x512xf32> to vector<8x512xf32>
    %170 = arith.truncf %164 : vector<8x128xf32> to vector<8x128xbf16>
    %cst_58 = arith.constant dense<0.000000e+00> : vector<8x512xf32>
    %171 = tpu.matmul %170, %15, %cst_58 {dimension_numbers = #tpu.dot_dimension_numbers<[1], [0], [0], [1], [0, 0, 1, 1], [], []>} : vector<8x128xbf16>, vector<128x512xbf16>, vector<8x512xf32> -> vector<8x512xf32>
    %172 = arith.addf %169, %171 : vector<8x512xf32>
    %173 = vector.extract_strided_slice %172 {offsets = [0, 0], sizes = [8, 128], strides = [1, 1]} : vector<8x512xf32> to vector<8x128xf32>
    %174 = arith.negf %173 : vector<8x128xf32>
    %175 = math.exp %174 : vector<8x128xf32>
    %cst_59 = arith.constant 1.000000e+00 : f32
    %176 = vector.broadcast %cst_59 : f32 to vector<8x128xf32>
    %177 = arith.addf %176, %175 : vector<8x128xf32>
    %178 = arith.divf %176, %177 : vector<8x128xf32>
    %179 = vector.extract_strided_slice %172 {offsets = [0, 128], sizes = [8, 128], strides = [1, 1]} : vector<8x512xf32> to vector<8x128xf32>
    %180 = arith.negf %179 : vector<8x128xf32>
    %181 = math.exp %180 : vector<8x128xf32>
    %cst_60 = arith.constant 1.000000e+00 : f32
    %182 = vector.broadcast %cst_60 : f32 to vector<8x128xf32>
    %183 = arith.addf %182, %181 : vector<8x128xf32>
    %184 = arith.divf %182, %183 : vector<8x128xf32>
    %185 = vector.extract_strided_slice %172 {offsets = [0, 256], sizes = [8, 128], strides = [1, 1]} : vector<8x512xf32> to vector<8x128xf32>
    %186 = math.tanh %185 : vector<8x128xf32>
    %187 = vector.extract_strided_slice %172 {offsets = [0, 384], sizes = [8, 128], strides = [1, 1]} : vector<8x512xf32> to vector<8x128xf32>
    %188 = arith.negf %187 : vector<8x128xf32>
    %189 = math.exp %188 : vector<8x128xf32>
    %cst_61 = arith.constant 1.000000e+00 : f32
    %190 = vector.broadcast %cst_61 : f32 to vector<8x128xf32>
    %191 = arith.addf %190, %189 : vector<8x128xf32>
    %192 = arith.divf %190, %191 : vector<8x128xf32>
    %193 = arith.mulf %184, %158 : vector<8x128xf32>
    %194 = arith.mulf %178, %186 : vector<8x128xf32>
    %195 = arith.addf %193, %194 : vector<8x128xf32>
    %196 = math.tanh %195 : vector<8x128xf32>
    %197 = arith.mulf %192, %196 : vector<8x128xf32>
    %c16_i32_62 = arith.constant 16 : i32
    %198 = arith.muli %arg0, %c16_i32_62 : i32
    %c3_i32 = arith.constant 3 : i32
    %199 = arith.addi %198, %c3_i32 : i32
    %c40_i32_63 = arith.constant 40 : i32
    %200 = arith.cmpi slt, %199, %c40_i32_63 : i32
    %201 = arith.extui %200 : i1 to i32
    %202 = arith.sitofp %201 : i32 to f32
    %203 = vector.broadcast %202 : f32 to vector<8x128xf32>
    %204 = arith.mulf %203, %195 : vector<8x128xf32>
    %cst_64 = arith.constant 1.000000e+00 : f32
    %205 = arith.subf %cst_64, %202 : f32
    %206 = vector.broadcast %205 : f32 to vector<8x128xf32>
    %207 = arith.mulf %206, %158 : vector<8x128xf32>
    %208 = arith.addf %204, %207 : vector<8x128xf32>
    %209 = vector.broadcast %202 : f32 to vector<8x128xf32>
    %210 = arith.mulf %209, %197 : vector<8x128xf32>
    %cst_65 = arith.constant 1.000000e+00 : f32
    %211 = arith.subf %cst_65, %202 : f32
    %212 = vector.broadcast %211 : f32 to vector<8x128xf32>
    %213 = arith.mulf %212, %164 : vector<8x128xf32>
    %214 = arith.addf %210, %213 : vector<8x128xf32>
    %c0_66 = arith.constant 0 : index
    %c3_67 = arith.constant 3 : index
    %c0_68 = arith.constant 0 : index
    %215 = vector.load %arg7[%c0_66, %c3_67, %c0_68] : memref<8x16x128xf32, #tpu.memory_space<vmem>>, vector<8x1x128xf32>
    %216 = vector.shape_cast %215 : vector<8x1x128xf32> to vector<8x128xf32>
    %217 = vector.shape_cast %214 : vector<8x128xf32> to vector<8x1x128xf32>
    tpu.vector_store %arg7[%c0_66, %c3_67, %c0_68], %217 {strides = array<i32>} : memref<8x16x128xf32, #tpu.memory_space<vmem>>, vector<8x1x128xf32>,
    %c4 = arith.constant 4 : index
    %c0_69 = arith.constant 0 : index
    %c0_70 = arith.constant 0 : index
    %218 = vector.load %arg10[%c4, %c0_69, %c0_70] : memref<16x8x512xf32, #tpu.memory_space<vmem>>, vector<1x8x512xf32>
    %219 = vector.shape_cast %218 : vector<1x8x512xf32> to vector<8x512xf32>
    %220 = arith.truncf %214 : vector<8x128xf32> to vector<8x128xbf16>
    %cst_71 = arith.constant dense<0.000000e+00> : vector<8x512xf32>
    %221 = tpu.matmul %220, %15, %cst_71 {dimension_numbers = #tpu.dot_dimension_numbers<[1], [0], [0], [1], [0, 0, 1, 1], [], []>} : vector<8x128xbf16>, vector<128x512xbf16>, vector<8x512xf32> -> vector<8x512xf32>
    %222 = arith.addf %219, %221 : vector<8x512xf32>
    %223 = vector.extract_strided_slice %222 {offsets = [0, 0], sizes = [8, 128], strides = [1, 1]} : vector<8x512xf32> to vector<8x128xf32>
    %224 = arith.negf %223 : vector<8x128xf32>
    %225 = math.exp %224 : vector<8x128xf32>
    %cst_72 = arith.constant 1.000000e+00 : f32
    %226 = vector.broadcast %cst_72 : f32 to vector<8x128xf32>
    %227 = arith.addf %226, %225 : vector<8x128xf32>
    %228 = arith.divf %226, %227 : vector<8x128xf32>
    %229 = vector.extract_strided_slice %222 {offsets = [0, 128], sizes = [8, 128], strides = [1, 1]} : vector<8x512xf32> to vector<8x128xf32>
    %230 = arith.negf %229 : vector<8x128xf32>
    %231 = math.exp %230 : vector<8x128xf32>
    %cst_73 = arith.constant 1.000000e+00 : f32
    %232 = vector.broadcast %cst_73 : f32 to vector<8x128xf32>
    %233 = arith.addf %232, %231 : vector<8x128xf32>
    %234 = arith.divf %232, %233 : vector<8x128xf32>
    %235 = vector.extract_strided_slice %222 {offsets = [0, 256], sizes = [8, 128], strides = [1, 1]} : vector<8x512xf32> to vector<8x128xf32>
    %236 = math.tanh %235 : vector<8x128xf32>
    %237 = vector.extract_strided_slice %222 {offsets = [0, 384], sizes = [8, 128], strides = [1, 1]} : vector<8x512xf32> to vector<8x128xf32>
    %238 = arith.negf %237 : vector<8x128xf32>
    %239 = math.exp %238 : vector<8x128xf32>
    %cst_74 = arith.constant 1.000000e+00 : f32
    %240 = vector.broadcast %cst_74 : f32 to vector<8x128xf32>
    %241 = arith.addf %240, %239 : vector<8x128xf32>
    %242 = arith.divf %240, %241 : vector<8x128xf32>
    %243 = arith.mulf %234, %208 : vector<8x128xf32>
    %244 = arith.mulf %228, %236 : vector<8x128xf32>
    %245 = arith.addf %243, %244 : vector<8x128xf32>
    %246 = math.tanh %245 : vector<8x128xf32>
    %247 = arith.mulf %242, %246 : vector<8x128xf32>
    %c16_i32_75 = arith.constant 16 : i32
    %248 = arith.muli %arg0, %c16_i32_75 : i32
    %c4_i32 = arith.constant 4 : i32
    %249 = arith.addi %248, %c4_i32 : i32
    %c40_i32_76 = arith.constant 40 : i32
    %250 = arith.cmpi slt, %249, %c40_i32_76 : i32
    %251 = arith.extui %250 : i1 to i32
    %252 = arith.sitofp %251 : i32 to f32
    %253 = vector.broadcast %252 : f32 to vector<8x128xf32>
    %254 = arith.mulf %253, %245 : vector<8x128xf32>
    %cst_77 = arith.constant 1.000000e+00 : f32
    %255 = arith.subf %cst_77, %252 : f32
    %256 = vector.broadcast %255 : f32 to vector<8x128xf32>
    %257 = arith.mulf %256, %208 : vector<8x128xf32>
    %258 = arith.addf %254, %257 : vector<8x128xf32>
    %259 = vector.broadcast %252 : f32 to vector<8x128xf32>
    %260 = arith.mulf %259, %247 : vector<8x128xf32>
    %cst_78 = arith.constant 1.000000e+00 : f32
    %261 = arith.subf %cst_78, %252 : f32
    %262 = vector.broadcast %261 : f32 to vector<8x128xf32>
    %263 = arith.mulf %262, %214 : vector<8x128xf32>
    %264 = arith.addf %260, %263 : vector<8x128xf32>
    %c0_79 = arith.constant 0 : index
    %c4_80 = arith.constant 4 : index
    %c0_81 = arith.constant 0 : index
    %265 = vector.load %arg7[%c0_79, %c4_80, %c0_81] : memref<8x16x128xf32, #tpu.memory_space<vmem>>, vector<8x1x128xf32>
    %266 = vector.shape_cast %265 : vector<8x1x128xf32> to vector<8x128xf32>
    %267 = vector.shape_cast %264 : vector<8x128xf32> to vector<8x1x128xf32>
    tpu.vector_store %arg7[%c0_79, %c4_80, %c0_81], %267 {strides = array<i32>} : memref<8x16x128xf32, #tpu.memory_space<vmem>>, vector<8x1x128xf32>,
    %c5 = arith.constant 5 : index
    %c0_82 = arith.constant 0 : index
    %c0_83 = arith.constant 0 : index
    %268 = vector.load %arg10[%c5, %c0_82, %c0_83] : memref<16x8x512xf32, #tpu.memory_space<vmem>>, vector<1x8x512xf32>
    %269 = vector.shape_cast %268 : vector<1x8x512xf32> to vector<8x512xf32>
    %270 = arith.truncf %264 : vector<8x128xf32> to vector<8x128xbf16>
    %cst_84 = arith.constant dense<0.000000e+00> : vector<8x512xf32>
    %271 = tpu.matmul %270, %15, %cst_84 {dimension_numbers = #tpu.dot_dimension_numbers<[1], [0], [0], [1], [0, 0, 1, 1], [], []>} : vector<8x128xbf16>, vector<128x512xbf16>, vector<8x512xf32> -> vector<8x512xf32>
    %272 = arith.addf %269, %271 : vector<8x512xf32>
    %273 = vector.extract_strided_slice %272 {offsets = [0, 0], sizes = [8, 128], strides = [1, 1]} : vector<8x512xf32> to vector<8x128xf32>
    %274 = arith.negf %273 : vector<8x128xf32>
    %275 = math.exp %274 : vector<8x128xf32>
    %cst_85 = arith.constant 1.000000e+00 : f32
    %276 = vector.broadcast %cst_85 : f32 to vector<8x128xf32>
    %277 = arith.addf %276, %275 : vector<8x128xf32>
    %278 = arith.divf %276, %277 : vector<8x128xf32>
    %279 = vector.extract_strided_slice %272 {offsets = [0, 128], sizes = [8, 128], strides = [1, 1]} : vector<8x512xf32> to vector<8x128xf32>
    %280 = arith.negf %279 : vector<8x128xf32>
    %281 = math.exp %280 : vector<8x128xf32>
    %cst_86 = arith.constant 1.000000e+00 : f32
    %282 = vector.broadcast %cst_86 : f32 to vector<8x128xf32>
    %283 = arith.addf %282, %281 : vector<8x128xf32>
    %284 = arith.divf %282, %283 : vector<8x128xf32>
    %285 = vector.extract_strided_slice %272 {offsets = [0, 256], sizes = [8, 128], strides = [1, 1]} : vector<8x512xf32> to vector<8x128xf32>
    %286 = math.tanh %285 : vector<8x128xf32>
    %287 = vector.extract_strided_slice %272 {offsets = [0, 384], sizes = [8, 128], strides = [1, 1]} : vector<8x512xf32> to vector<8x128xf32>
    %288 = arith.negf %287 : vector<8x128xf32>
    %289 = math.exp %288 : vector<8x128xf32>
    %cst_87 = arith.constant 1.000000e+00 : f32
    %290 = vector.broadcast %cst_87 : f32 to vector<8x128xf32>
    %291 = arith.addf %290, %289 : vector<8x128xf32>
    %292 = arith.divf %290, %291 : vector<8x128xf32>
    %293 = arith.mulf %284, %258 : vector<8x128xf32>
    %294 = arith.mulf %278, %286 : vector<8x128xf32>
    %295 = arith.addf %293, %294 : vector<8x128xf32>
    %296 = math.tanh %295 : vector<8x128xf32>
    %297 = arith.mulf %292, %296 : vector<8x128xf32>
    %c16_i32_88 = arith.constant 16 : i32
    %298 = arith.muli %arg0, %c16_i32_88 : i32
    %c5_i32 = arith.constant 5 : i32
    %299 = arith.addi %298, %c5_i32 : i32
    %c40_i32_89 = arith.constant 40 : i32
    %300 = arith.cmpi slt, %299, %c40_i32_89 : i32
    %301 = arith.extui %300 : i1 to i32
    %302 = arith.sitofp %301 : i32 to f32
    %303 = vector.broadcast %302 : f32 to vector<8x128xf32>
    %304 = arith.mulf %303, %295 : vector<8x128xf32>
    %cst_90 = arith.constant 1.000000e+00 : f32
    %305 = arith.subf %cst_90, %302 : f32
    %306 = vector.broadcast %305 : f32 to vector<8x128xf32>
    %307 = arith.mulf %306, %258 : vector<8x128xf32>
    %308 = arith.addf %304, %307 : vector<8x128xf32>
    %309 = vector.broadcast %302 : f32 to vector<8x128xf32>
    %310 = arith.mulf %309, %297 : vector<8x128xf32>
    %cst_91 = arith.constant 1.000000e+00 : f32
    %311 = arith.subf %cst_91, %302 : f32
    %312 = vector.broadcast %311 : f32 to vector<8x128xf32>
    %313 = arith.mulf %312, %264 : vector<8x128xf32>
    %314 = arith.addf %310, %313 : vector<8x128xf32>
    %c0_92 = arith.constant 0 : index
    %c5_93 = arith.constant 5 : index
    %c0_94 = arith.constant 0 : index
    %315 = vector.load %arg7[%c0_92, %c5_93, %c0_94] : memref<8x16x128xf32, #tpu.memory_space<vmem>>, vector<8x1x128xf32>
    %316 = vector.shape_cast %315 : vector<8x1x128xf32> to vector<8x128xf32>
    %317 = vector.shape_cast %314 : vector<8x128xf32> to vector<8x1x128xf32>
    tpu.vector_store %arg7[%c0_92, %c5_93, %c0_94], %317 {strides = array<i32>} : memref<8x16x128xf32, #tpu.memory_space<vmem>>, vector<8x1x128xf32>,
    %c6 = arith.constant 6 : index
    %c0_95 = arith.constant 0 : index
    %c0_96 = arith.constant 0 : index
    %318 = vector.load %arg10[%c6, %c0_95, %c0_96] : memref<16x8x512xf32, #tpu.memory_space<vmem>>, vector<1x8x512xf32>
    %319 = vector.shape_cast %318 : vector<1x8x512xf32> to vector<8x512xf32>
    %320 = arith.truncf %314 : vector<8x128xf32> to vector<8x128xbf16>
    %cst_97 = arith.constant dense<0.000000e+00> : vector<8x512xf32>
    %321 = tpu.matmul %320, %15, %cst_97 {dimension_numbers = #tpu.dot_dimension_numbers<[1], [0], [0], [1], [0, 0, 1, 1], [], []>} : vector<8x128xbf16>, vector<128x512xbf16>, vector<8x512xf32> -> vector<8x512xf32>
    %322 = arith.addf %319, %321 : vector<8x512xf32>
    %323 = vector.extract_strided_slice %322 {offsets = [0, 0], sizes = [8, 128], strides = [1, 1]} : vector<8x512xf32> to vector<8x128xf32>
    %324 = arith.negf %323 : vector<8x128xf32>
    %325 = math.exp %324 : vector<8x128xf32>
    %cst_98 = arith.constant 1.000000e+00 : f32
    %326 = vector.broadcast %cst_98 : f32 to vector<8x128xf32>
    %327 = arith.addf %326, %325 : vector<8x128xf32>
    %328 = arith.divf %326, %327 : vector<8x128xf32>
    %329 = vector.extract_strided_slice %322 {offsets = [0, 128], sizes = [8, 128], strides = [1, 1]} : vector<8x512xf32> to vector<8x128xf32>
    %330 = arith.negf %329 : vector<8x128xf32>
    %331 = math.exp %330 : vector<8x128xf32>
    %cst_99 = arith.constant 1.000000e+00 : f32
    %332 = vector.broadcast %cst_99 : f32 to vector<8x128xf32>
    %333 = arith.addf %332, %331 : vector<8x128xf32>
    %334 = arith.divf %332, %333 : vector<8x128xf32>
    %335 = vector.extract_strided_slice %322 {offsets = [0, 256], sizes = [8, 128], strides = [1, 1]} : vector<8x512xf32> to vector<8x128xf32>
    %336 = math.tanh %335 : vector<8x128xf32>
    %337 = vector.extract_strided_slice %322 {offsets = [0, 384], sizes = [8, 128], strides = [1, 1]} : vector<8x512xf32> to vector<8x128xf32>
    %338 = arith.negf %337 : vector<8x128xf32>
    %339 = math.exp %338 : vector<8x128xf32>
    %cst_100 = arith.constant 1.000000e+00 : f32
    %340 = vector.broadcast %cst_100 : f32 to vector<8x128xf32>
    %341 = arith.addf %340, %339 : vector<8x128xf32>
    %342 = arith.divf %340, %341 : vector<8x128xf32>
    %343 = arith.mulf %334, %308 : vector<8x128xf32>
    %344 = arith.mulf %328, %336 : vector<8x128xf32>
    %345 = arith.addf %343, %344 : vector<8x128xf32>
    %346 = math.tanh %345 : vector<8x128xf32>
    %347 = arith.mulf %342, %346 : vector<8x128xf32>
    %c16_i32_101 = arith.constant 16 : i32
    %348 = arith.muli %arg0, %c16_i32_101 : i32
    %c6_i32 = arith.constant 6 : i32
    %349 = arith.addi %348, %c6_i32 : i32
    %c40_i32_102 = arith.constant 40 : i32
    %350 = arith.cmpi slt, %349, %c40_i32_102 : i32
    %351 = arith.extui %350 : i1 to i32
    %352 = arith.sitofp %351 : i32 to f32
    %353 = vector.broadcast %352 : f32 to vector<8x128xf32>
    %354 = arith.mulf %353, %345 : vector<8x128xf32>
    %cst_103 = arith.constant 1.000000e+00 : f32
    %355 = arith.subf %cst_103, %352 : f32
    %356 = vector.broadcast %355 : f32 to vector<8x128xf32>
    %357 = arith.mulf %356, %308 : vector<8x128xf32>
    %358 = arith.addf %354, %357 : vector<8x128xf32>
    %359 = vector.broadcast %352 : f32 to vector<8x128xf32>
    %360 = arith.mulf %359, %347 : vector<8x128xf32>
    %cst_104 = arith.constant 1.000000e+00 : f32
    %361 = arith.subf %cst_104, %352 : f32
    %362 = vector.broadcast %361 : f32 to vector<8x128xf32>
    %363 = arith.mulf %362, %314 : vector<8x128xf32>
    %364 = arith.addf %360, %363 : vector<8x128xf32>
    %c0_105 = arith.constant 0 : index
    %c6_106 = arith.constant 6 : index
    %c0_107 = arith.constant 0 : index
    %365 = vector.load %arg7[%c0_105, %c6_106, %c0_107] : memref<8x16x128xf32, #tpu.memory_space<vmem>>, vector<8x1x128xf32>
    %366 = vector.shape_cast %365 : vector<8x1x128xf32> to vector<8x128xf32>
    %367 = vector.shape_cast %364 : vector<8x128xf32> to vector<8x1x128xf32>
    tpu.vector_store %arg7[%c0_105, %c6_106, %c0_107], %367 {strides = array<i32>} : memref<8x16x128xf32, #tpu.memory_space<vmem>>, vector<8x1x128xf32>,
    %c7 = arith.constant 7 : index
    %c0_108 = arith.constant 0 : index
    %c0_109 = arith.constant 0 : index
    %368 = vector.load %arg10[%c7, %c0_108, %c0_109] : memref<16x8x512xf32, #tpu.memory_space<vmem>>, vector<1x8x512xf32>
    %369 = vector.shape_cast %368 : vector<1x8x512xf32> to vector<8x512xf32>
    %370 = arith.truncf %364 : vector<8x128xf32> to vector<8x128xbf16>
    %cst_110 = arith.constant dense<0.000000e+00> : vector<8x512xf32>
    %371 = tpu.matmul %370, %15, %cst_110 {dimension_numbers = #tpu.dot_dimension_numbers<[1], [0], [0], [1], [0, 0, 1, 1], [], []>} : vector<8x128xbf16>, vector<128x512xbf16>, vector<8x512xf32> -> vector<8x512xf32>
    %372 = arith.addf %369, %371 : vector<8x512xf32>
    %373 = vector.extract_strided_slice %372 {offsets = [0, 0], sizes = [8, 128], strides = [1, 1]} : vector<8x512xf32> to vector<8x128xf32>
    %374 = arith.negf %373 : vector<8x128xf32>
    %375 = math.exp %374 : vector<8x128xf32>
    %cst_111 = arith.constant 1.000000e+00 : f32
    %376 = vector.broadcast %cst_111 : f32 to vector<8x128xf32>
    %377 = arith.addf %376, %375 : vector<8x128xf32>
    %378 = arith.divf %376, %377 : vector<8x128xf32>
    %379 = vector.extract_strided_slice %372 {offsets = [0, 128], sizes = [8, 128], strides = [1, 1]} : vector<8x512xf32> to vector<8x128xf32>
    %380 = arith.negf %379 : vector<8x128xf32>
    %381 = math.exp %380 : vector<8x128xf32>
    %cst_112 = arith.constant 1.000000e+00 : f32
    %382 = vector.broadcast %cst_112 : f32 to vector<8x128xf32>
    %383 = arith.addf %382, %381 : vector<8x128xf32>
    %384 = arith.divf %382, %383 : vector<8x128xf32>
    %385 = vector.extract_strided_slice %372 {offsets = [0, 256], sizes = [8, 128], strides = [1, 1]} : vector<8x512xf32> to vector<8x128xf32>
    %386 = math.tanh %385 : vector<8x128xf32>
    %387 = vector.extract_strided_slice %372 {offsets = [0, 384], sizes = [8, 128], strides = [1, 1]} : vector<8x512xf32> to vector<8x128xf32>
    %388 = arith.negf %387 : vector<8x128xf32>
    %389 = math.exp %388 : vector<8x128xf32>
    %cst_113 = arith.constant 1.000000e+00 : f32
    %390 = vector.broadcast %cst_113 : f32 to vector<8x128xf32>
    %391 = arith.addf %390, %389 : vector<8x128xf32>
    %392 = arith.divf %390, %391 : vector<8x128xf32>
    %393 = arith.mulf %384, %358 : vector<8x128xf32>
    %394 = arith.mulf %378, %386 : vector<8x128xf32>
    %395 = arith.addf %393, %394 : vector<8x128xf32>
    %396 = math.tanh %395 : vector<8x128xf32>
    %397 = arith.mulf %392, %396 : vector<8x128xf32>
    %c16_i32_114 = arith.constant 16 : i32
    %398 = arith.muli %arg0, %c16_i32_114 : i32
    %c7_i32 = arith.constant 7 : i32
    %399 = arith.addi %398, %c7_i32 : i32
    %c40_i32_115 = arith.constant 40 : i32
    %400 = arith.cmpi slt, %399, %c40_i32_115 : i32
    %401 = arith.extui %400 : i1 to i32
    %402 = arith.sitofp %401 : i32 to f32
    %403 = vector.broadcast %402 : f32 to vector<8x128xf32>
    %404 = arith.mulf %403, %395 : vector<8x128xf32>
    %cst_116 = arith.constant 1.000000e+00 : f32
    %405 = arith.subf %cst_116, %402 : f32
    %406 = vector.broadcast %405 : f32 to vector<8x128xf32>
    %407 = arith.mulf %406, %358 : vector<8x128xf32>
    %408 = arith.addf %404, %407 : vector<8x128xf32>
    %409 = vector.broadcast %402 : f32 to vector<8x128xf32>
    %410 = arith.mulf %409, %397 : vector<8x128xf32>
    %cst_117 = arith.constant 1.000000e+00 : f32
    %411 = arith.subf %cst_117, %402 : f32
    %412 = vector.broadcast %411 : f32 to vector<8x128xf32>
    %413 = arith.mulf %412, %364 : vector<8x128xf32>
    %414 = arith.addf %410, %413 : vector<8x128xf32>
    %c0_118 = arith.constant 0 : index
    %c7_119 = arith.constant 7 : index
    %c0_120 = arith.constant 0 : index
    %415 = vector.load %arg7[%c0_118, %c7_119, %c0_120] : memref<8x16x128xf32, #tpu.memory_space<vmem>>, vector<8x1x128xf32>
    %416 = vector.shape_cast %415 : vector<8x1x128xf32> to vector<8x128xf32>
    %417 = vector.shape_cast %414 : vector<8x128xf32> to vector<8x1x128xf32>
    tpu.vector_store %arg7[%c0_118, %c7_119, %c0_120], %417 {strides = array<i32>} : memref<8x16x128xf32, #tpu.memory_space<vmem>>, vector<8x1x128xf32>,
    %c8 = arith.constant 8 : index
    %c0_121 = arith.constant 0 : index
    %c0_122 = arith.constant 0 : index
    %418 = vector.load %arg10[%c8, %c0_121, %c0_122] : memref<16x8x512xf32, #tpu.memory_space<vmem>>, vector<1x8x512xf32>
    %419 = vector.shape_cast %418 : vector<1x8x512xf32> to vector<8x512xf32>
    %420 = arith.truncf %414 : vector<8x128xf32> to vector<8x128xbf16>
    %cst_123 = arith.constant dense<0.000000e+00> : vector<8x512xf32>
    %421 = tpu.matmul %420, %15, %cst_123 {dimension_numbers = #tpu.dot_dimension_numbers<[1], [0], [0], [1], [0, 0, 1, 1], [], []>} : vector<8x128xbf16>, vector<128x512xbf16>, vector<8x512xf32> -> vector<8x512xf32>
    %422 = arith.addf %419, %421 : vector<8x512xf32>
    %423 = vector.extract_strided_slice %422 {offsets = [0, 0], sizes = [8, 128], strides = [1, 1]} : vector<8x512xf32> to vector<8x128xf32>
    %424 = arith.negf %423 : vector<8x128xf32>
    %425 = math.exp %424 : vector<8x128xf32>
    %cst_124 = arith.constant 1.000000e+00 : f32
    %426 = vector.broadcast %cst_124 : f32 to vector<8x128xf32>
    %427 = arith.addf %426, %425 : vector<8x128xf32>
    %428 = arith.divf %426, %427 : vector<8x128xf32>
    %429 = vector.extract_strided_slice %422 {offsets = [0, 128], sizes = [8, 128], strides = [1, 1]} : vector<8x512xf32> to vector<8x128xf32>
    %430 = arith.negf %429 : vector<8x128xf32>
    %431 = math.exp %430 : vector<8x128xf32>
    %cst_125 = arith.constant 1.000000e+00 : f32
    %432 = vector.broadcast %cst_125 : f32 to vector<8x128xf32>
    %433 = arith.addf %432, %431 : vector<8x128xf32>
    %434 = arith.divf %432, %433 : vector<8x128xf32>
    %435 = vector.extract_strided_slice %422 {offsets = [0, 256], sizes = [8, 128], strides = [1, 1]} : vector<8x512xf32> to vector<8x128xf32>
    %436 = math.tanh %435 : vector<8x128xf32>
    %437 = vector.extract_strided_slice %422 {offsets = [0, 384], sizes = [8, 128], strides = [1, 1]} : vector<8x512xf32> to vector<8x128xf32>
    %438 = arith.negf %437 : vector<8x128xf32>
    %439 = math.exp %438 : vector<8x128xf32>
    %cst_126 = arith.constant 1.000000e+00 : f32
    %440 = vector.broadcast %cst_126 : f32 to vector<8x128xf32>
    %441 = arith.addf %440, %439 : vector<8x128xf32>
    %442 = arith.divf %440, %441 : vector<8x128xf32>
    %443 = arith.mulf %434, %408 : vector<8x128xf32>
    %444 = arith.mulf %428, %436 : vector<8x128xf32>
    %445 = arith.addf %443, %444 : vector<8x128xf32>
    %446 = math.tanh %445 : vector<8x128xf32>
    %447 = arith.mulf %442, %446 : vector<8x128xf32>
    %c16_i32_127 = arith.constant 16 : i32
    %448 = arith.muli %arg0, %c16_i32_127 : i32
    %c8_i32 = arith.constant 8 : i32
    %449 = arith.addi %448, %c8_i32 : i32
    %c40_i32_128 = arith.constant 40 : i32
    %450 = arith.cmpi slt, %449, %c40_i32_128 : i32
    %451 = arith.extui %450 : i1 to i32
    %452 = arith.sitofp %451 : i32 to f32
    %453 = vector.broadcast %452 : f32 to vector<8x128xf32>
    %454 = arith.mulf %453, %445 : vector<8x128xf32>
    %cst_129 = arith.constant 1.000000e+00 : f32
    %455 = arith.subf %cst_129, %452 : f32
    %456 = vector.broadcast %455 : f32 to vector<8x128xf32>
    %457 = arith.mulf %456, %408 : vector<8x128xf32>
    %458 = arith.addf %454, %457 : vector<8x128xf32>
    %459 = vector.broadcast %452 : f32 to vector<8x128xf32>
    %460 = arith.mulf %459, %447 : vector<8x128xf32>
    %cst_130 = arith.constant 1.000000e+00 : f32
    %461 = arith.subf %cst_130, %452 : f32
    %462 = vector.broadcast %461 : f32 to vector<8x128xf32>
    %463 = arith.mulf %462, %414 : vector<8x128xf32>
    %464 = arith.addf %460, %463 : vector<8x128xf32>
    %c0_131 = arith.constant 0 : index
    %c8_132 = arith.constant 8 : index
    %c0_133 = arith.constant 0 : index
    %465 = vector.load %arg7[%c0_131, %c8_132, %c0_133] : memref<8x16x128xf32, #tpu.memory_space<vmem>>, vector<8x1x128xf32>
    %466 = vector.shape_cast %465 : vector<8x1x128xf32> to vector<8x128xf32>
    %467 = vector.shape_cast %464 : vector<8x128xf32> to vector<8x1x128xf32>
    tpu.vector_store %arg7[%c0_131, %c8_132, %c0_133], %467 {strides = array<i32>} : memref<8x16x128xf32, #tpu.memory_space<vmem>>, vector<8x1x128xf32>,
    %c9 = arith.constant 9 : index
    %c0_134 = arith.constant 0 : index
    %c0_135 = arith.constant 0 : index
    %468 = vector.load %arg10[%c9, %c0_134, %c0_135] : memref<16x8x512xf32, #tpu.memory_space<vmem>>, vector<1x8x512xf32>
    %469 = vector.shape_cast %468 : vector<1x8x512xf32> to vector<8x512xf32>
    %470 = arith.truncf %464 : vector<8x128xf32> to vector<8x128xbf16>
    %cst_136 = arith.constant dense<0.000000e+00> : vector<8x512xf32>
    %471 = tpu.matmul %470, %15, %cst_136 {dimension_numbers = #tpu.dot_dimension_numbers<[1], [0], [0], [1], [0, 0, 1, 1], [], []>} : vector<8x128xbf16>, vector<128x512xbf16>, vector<8x512xf32> -> vector<8x512xf32>
    %472 = arith.addf %469, %471 : vector<8x512xf32>
    %473 = vector.extract_strided_slice %472 {offsets = [0, 0], sizes = [8, 128], strides = [1, 1]} : vector<8x512xf32> to vector<8x128xf32>
    %474 = arith.negf %473 : vector<8x128xf32>
    %475 = math.exp %474 : vector<8x128xf32>
    %cst_137 = arith.constant 1.000000e+00 : f32
    %476 = vector.broadcast %cst_137 : f32 to vector<8x128xf32>
    %477 = arith.addf %476, %475 : vector<8x128xf32>
    %478 = arith.divf %476, %477 : vector<8x128xf32>
    %479 = vector.extract_strided_slice %472 {offsets = [0, 128], sizes = [8, 128], strides = [1, 1]} : vector<8x512xf32> to vector<8x128xf32>
    %480 = arith.negf %479 : vector<8x128xf32>
    %481 = math.exp %480 : vector<8x128xf32>
    %cst_138 = arith.constant 1.000000e+00 : f32
    %482 = vector.broadcast %cst_138 : f32 to vector<8x128xf32>
    %483 = arith.addf %482, %481 : vector<8x128xf32>
    %484 = arith.divf %482, %483 : vector<8x128xf32>
    %485 = vector.extract_strided_slice %472 {offsets = [0, 256], sizes = [8, 128], strides = [1, 1]} : vector<8x512xf32> to vector<8x128xf32>
    %486 = math.tanh %485 : vector<8x128xf32>
    %487 = vector.extract_strided_slice %472 {offsets = [0, 384], sizes = [8, 128], strides = [1, 1]} : vector<8x512xf32> to vector<8x128xf32>
    %488 = arith.negf %487 : vector<8x128xf32>
    %489 = math.exp %488 : vector<8x128xf32>
    %cst_139 = arith.constant 1.000000e+00 : f32
    %490 = vector.broadcast %cst_139 : f32 to vector<8x128xf32>
    %491 = arith.addf %490, %489 : vector<8x128xf32>
    %492 = arith.divf %490, %491 : vector<8x128xf32>
    %493 = arith.mulf %484, %458 : vector<8x128xf32>
    %494 = arith.mulf %478, %486 : vector<8x128xf32>
    %495 = arith.addf %493, %494 : vector<8x128xf32>
    %496 = math.tanh %495 : vector<8x128xf32>
    %497 = arith.mulf %492, %496 : vector<8x128xf32>
    %c16_i32_140 = arith.constant 16 : i32
    %498 = arith.muli %arg0, %c16_i32_140 : i32
    %c9_i32 = arith.constant 9 : i32
    %499 = arith.addi %498, %c9_i32 : i32
    %c40_i32_141 = arith.constant 40 : i32
    %500 = arith.cmpi slt, %499, %c40_i32_141 : i32
    %501 = arith.extui %500 : i1 to i32
    %502 = arith.sitofp %501 : i32 to f32
    %503 = vector.broadcast %502 : f32 to vector<8x128xf32>
    %504 = arith.mulf %503, %495 : vector<8x128xf32>
    %cst_142 = arith.constant 1.000000e+00 : f32
    %505 = arith.subf %cst_142, %502 : f32
    %506 = vector.broadcast %505 : f32 to vector<8x128xf32>
    %507 = arith.mulf %506, %458 : vector<8x128xf32>
    %508 = arith.addf %504, %507 : vector<8x128xf32>
    %509 = vector.broadcast %502 : f32 to vector<8x128xf32>
    %510 = arith.mulf %509, %497 : vector<8x128xf32>
    %cst_143 = arith.constant 1.000000e+00 : f32
    %511 = arith.subf %cst_143, %502 : f32
    %512 = vector.broadcast %511 : f32 to vector<8x128xf32>
    %513 = arith.mulf %512, %464 : vector<8x128xf32>
    %514 = arith.addf %510, %513 : vector<8x128xf32>
    %c0_144 = arith.constant 0 : index
    %c9_145 = arith.constant 9 : index
    %c0_146 = arith.constant 0 : index
    %515 = vector.load %arg7[%c0_144, %c9_145, %c0_146] : memref<8x16x128xf32, #tpu.memory_space<vmem>>, vector<8x1x128xf32>
    %516 = vector.shape_cast %515 : vector<8x1x128xf32> to vector<8x128xf32>
    %517 = vector.shape_cast %514 : vector<8x128xf32> to vector<8x1x128xf32>
    tpu.vector_store %arg7[%c0_144, %c9_145, %c0_146], %517 {strides = array<i32>} : memref<8x16x128xf32, #tpu.memory_space<vmem>>, vector<8x1x128xf32>,
    %c10 = arith.constant 10 : index
    %c0_147 = arith.constant 0 : index
    %c0_148 = arith.constant 0 : index
    %518 = vector.load %arg10[%c10, %c0_147, %c0_148] : memref<16x8x512xf32, #tpu.memory_space<vmem>>, vector<1x8x512xf32>
    %519 = vector.shape_cast %518 : vector<1x8x512xf32> to vector<8x512xf32>
    %520 = arith.truncf %514 : vector<8x128xf32> to vector<8x128xbf16>
    %cst_149 = arith.constant dense<0.000000e+00> : vector<8x512xf32>
    %521 = tpu.matmul %520, %15, %cst_149 {dimension_numbers = #tpu.dot_dimension_numbers<[1], [0], [0], [1], [0, 0, 1, 1], [], []>} : vector<8x128xbf16>, vector<128x512xbf16>, vector<8x512xf32> -> vector<8x512xf32>
    %522 = arith.addf %519, %521 : vector<8x512xf32>
    %523 = vector.extract_strided_slice %522 {offsets = [0, 0], sizes = [8, 128], strides = [1, 1]} : vector<8x512xf32> to vector<8x128xf32>
    %524 = arith.negf %523 : vector<8x128xf32>
    %525 = math.exp %524 : vector<8x128xf32>
    %cst_150 = arith.constant 1.000000e+00 : f32
    %526 = vector.broadcast %cst_150 : f32 to vector<8x128xf32>
    %527 = arith.addf %526, %525 : vector<8x128xf32>
    %528 = arith.divf %526, %527 : vector<8x128xf32>
    %529 = vector.extract_strided_slice %522 {offsets = [0, 128], sizes = [8, 128], strides = [1, 1]} : vector<8x512xf32> to vector<8x128xf32>
    %530 = arith.negf %529 : vector<8x128xf32>
    %531 = math.exp %530 : vector<8x128xf32>
    %cst_151 = arith.constant 1.000000e+00 : f32
    %532 = vector.broadcast %cst_151 : f32 to vector<8x128xf32>
    %533 = arith.addf %532, %531 : vector<8x128xf32>
    %534 = arith.divf %532, %533 : vector<8x128xf32>
    %535 = vector.extract_strided_slice %522 {offsets = [0, 256], sizes = [8, 128], strides = [1, 1]} : vector<8x512xf32> to vector<8x128xf32>
    %536 = math.tanh %535 : vector<8x128xf32>
    %537 = vector.extract_strided_slice %522 {offsets = [0, 384], sizes = [8, 128], strides = [1, 1]} : vector<8x512xf32> to vector<8x128xf32>
    %538 = arith.negf %537 : vector<8x128xf32>
    %539 = math.exp %538 : vector<8x128xf32>
    %cst_152 = arith.constant 1.000000e+00 : f32
    %540 = vector.broadcast %cst_152 : f32 to vector<8x128xf32>
    %541 = arith.addf %540, %539 : vector<8x128xf32>
    %542 = arith.divf %540, %541 : vector<8x128xf32>
    %543 = arith.mulf %534, %508 : vector<8x128xf32>
    %544 = arith.mulf %528, %536 : vector<8x128xf32>
    %545 = arith.addf %543, %544 : vector<8x128xf32>
    %546 = math.tanh %545 : vector<8x128xf32>
    %547 = arith.mulf %542, %546 : vector<8x128xf32>
    %c16_i32_153 = arith.constant 16 : i32
    %548 = arith.muli %arg0, %c16_i32_153 : i32
    %c10_i32 = arith.constant 10 : i32
    %549 = arith.addi %548, %c10_i32 : i32
    %c40_i32_154 = arith.constant 40 : i32
    %550 = arith.cmpi slt, %549, %c40_i32_154 : i32
    %551 = arith.extui %550 : i1 to i32
    %552 = arith.sitofp %551 : i32 to f32
    %553 = vector.broadcast %552 : f32 to vector<8x128xf32>
    %554 = arith.mulf %553, %545 : vector<8x128xf32>
    %cst_155 = arith.constant 1.000000e+00 : f32
    %555 = arith.subf %cst_155, %552 : f32
    %556 = vector.broadcast %555 : f32 to vector<8x128xf32>
    %557 = arith.mulf %556, %508 : vector<8x128xf32>
    %558 = arith.addf %554, %557 : vector<8x128xf32>
    %559 = vector.broadcast %552 : f32 to vector<8x128xf32>
    %560 = arith.mulf %559, %547 : vector<8x128xf32>
    %cst_156 = arith.constant 1.000000e+00 : f32
    %561 = arith.subf %cst_156, %552 : f32
    %562 = vector.broadcast %561 : f32 to vector<8x128xf32>
    %563 = arith.mulf %562, %514 : vector<8x128xf32>
    %564 = arith.addf %560, %563 : vector<8x128xf32>
    %c0_157 = arith.constant 0 : index
    %c10_158 = arith.constant 10 : index
    %c0_159 = arith.constant 0 : index
    %565 = vector.load %arg7[%c0_157, %c10_158, %c0_159] : memref<8x16x128xf32, #tpu.memory_space<vmem>>, vector<8x1x128xf32>
    %566 = vector.shape_cast %565 : vector<8x1x128xf32> to vector<8x128xf32>
    %567 = vector.shape_cast %564 : vector<8x128xf32> to vector<8x1x128xf32>
    tpu.vector_store %arg7[%c0_157, %c10_158, %c0_159], %567 {strides = array<i32>} : memref<8x16x128xf32, #tpu.memory_space<vmem>>, vector<8x1x128xf32>,
    %c11 = arith.constant 11 : index
    %c0_160 = arith.constant 0 : index
    %c0_161 = arith.constant 0 : index
    %568 = vector.load %arg10[%c11, %c0_160, %c0_161] : memref<16x8x512xf32, #tpu.memory_space<vmem>>, vector<1x8x512xf32>
    %569 = vector.shape_cast %568 : vector<1x8x512xf32> to vector<8x512xf32>
    %570 = arith.truncf %564 : vector<8x128xf32> to vector<8x128xbf16>
    %cst_162 = arith.constant dense<0.000000e+00> : vector<8x512xf32>
    %571 = tpu.matmul %570, %15, %cst_162 {dimension_numbers = #tpu.dot_dimension_numbers<[1], [0], [0], [1], [0, 0, 1, 1], [], []>} : vector<8x128xbf16>, vector<128x512xbf16>, vector<8x512xf32> -> vector<8x512xf32>
    %572 = arith.addf %569, %571 : vector<8x512xf32>
    %573 = vector.extract_strided_slice %572 {offsets = [0, 0], sizes = [8, 128], strides = [1, 1]} : vector<8x512xf32> to vector<8x128xf32>
    %574 = arith.negf %573 : vector<8x128xf32>
    %575 = math.exp %574 : vector<8x128xf32>
    %cst_163 = arith.constant 1.000000e+00 : f32
    %576 = vector.broadcast %cst_163 : f32 to vector<8x128xf32>
    %577 = arith.addf %576, %575 : vector<8x128xf32>
    %578 = arith.divf %576, %577 : vector<8x128xf32>
    %579 = vector.extract_strided_slice %572 {offsets = [0, 128], sizes = [8, 128], strides = [1, 1]} : vector<8x512xf32> to vector<8x128xf32>
    %580 = arith.negf %579 : vector<8x128xf32>
    %581 = math.exp %580 : vector<8x128xf32>
    %cst_164 = arith.constant 1.000000e+00 : f32
    %582 = vector.broadcast %cst_164 : f32 to vector<8x128xf32>
    %583 = arith.addf %582, %581 : vector<8x128xf32>
    %584 = arith.divf %582, %583 : vector<8x128xf32>
    %585 = vector.extract_strided_slice %572 {offsets = [0, 256], sizes = [8, 128], strides = [1, 1]} : vector<8x512xf32> to vector<8x128xf32>
    %586 = math.tanh %585 : vector<8x128xf32>
    %587 = vector.extract_strided_slice %572 {offsets = [0, 384], sizes = [8, 128], strides = [1, 1]} : vector<8x512xf32> to vector<8x128xf32>
    %588 = arith.negf %587 : vector<8x128xf32>
    %589 = math.exp %588 : vector<8x128xf32>
    %cst_165 = arith.constant 1.000000e+00 : f32
    %590 = vector.broadcast %cst_165 : f32 to vector<8x128xf32>
    %591 = arith.addf %590, %589 : vector<8x128xf32>
    %592 = arith.divf %590, %591 : vector<8x128xf32>
    %593 = arith.mulf %584, %558 : vector<8x128xf32>
    %594 = arith.mulf %578, %586 : vector<8x128xf32>
    %595 = arith.addf %593, %594 : vector<8x128xf32>
    %596 = math.tanh %595 : vector<8x128xf32>
    %597 = arith.mulf %592, %596 : vector<8x128xf32>
    %c16_i32_166 = arith.constant 16 : i32
    %598 = arith.muli %arg0, %c16_i32_166 : i32
    %c11_i32 = arith.constant 11 : i32
    %599 = arith.addi %598, %c11_i32 : i32
    %c40_i32_167 = arith.constant 40 : i32
    %600 = arith.cmpi slt, %599, %c40_i32_167 : i32
    %601 = arith.extui %600 : i1 to i32
    %602 = arith.sitofp %601 : i32 to f32
    %603 = vector.broadcast %602 : f32 to vector<8x128xf32>
    %604 = arith.mulf %603, %595 : vector<8x128xf32>
    %cst_168 = arith.constant 1.000000e+00 : f32
    %605 = arith.subf %cst_168, %602 : f32
    %606 = vector.broadcast %605 : f32 to vector<8x128xf32>
    %607 = arith.mulf %606, %558 : vector<8x128xf32>
    %608 = arith.addf %604, %607 : vector<8x128xf32>
    %609 = vector.broadcast %602 : f32 to vector<8x128xf32>
    %610 = arith.mulf %609, %597 : vector<8x128xf32>
    %cst_169 = arith.constant 1.000000e+00 : f32
    %611 = arith.subf %cst_169, %602 : f32
    %612 = vector.broadcast %611 : f32 to vector<8x128xf32>
    %613 = arith.mulf %612, %564 : vector<8x128xf32>
    %614 = arith.addf %610, %613 : vector<8x128xf32>
    %c0_170 = arith.constant 0 : index
    %c11_171 = arith.constant 11 : index
    %c0_172 = arith.constant 0 : index
    %615 = vector.load %arg7[%c0_170, %c11_171, %c0_172] : memref<8x16x128xf32, #tpu.memory_space<vmem>>, vector<8x1x128xf32>
    %616 = vector.shape_cast %615 : vector<8x1x128xf32> to vector<8x128xf32>
    %617 = vector.shape_cast %614 : vector<8x128xf32> to vector<8x1x128xf32>
    tpu.vector_store %arg7[%c0_170, %c11_171, %c0_172], %617 {strides = array<i32>} : memref<8x16x128xf32, #tpu.memory_space<vmem>>, vector<8x1x128xf32>,
    %c12 = arith.constant 12 : index
    %c0_173 = arith.constant 0 : index
    %c0_174 = arith.constant 0 : index
    %618 = vector.load %arg10[%c12, %c0_173, %c0_174] : memref<16x8x512xf32, #tpu.memory_space<vmem>>, vector<1x8x512xf32>
    %619 = vector.shape_cast %618 : vector<1x8x512xf32> to vector<8x512xf32>
    %620 = arith.truncf %614 : vector<8x128xf32> to vector<8x128xbf16>
    %cst_175 = arith.constant dense<0.000000e+00> : vector<8x512xf32>
    %621 = tpu.matmul %620, %15, %cst_175 {dimension_numbers = #tpu.dot_dimension_numbers<[1], [0], [0], [1], [0, 0, 1, 1], [], []>} : vector<8x128xbf16>, vector<128x512xbf16>, vector<8x512xf32> -> vector<8x512xf32>
    %622 = arith.addf %619, %621 : vector<8x512xf32>
    %623 = vector.extract_strided_slice %622 {offsets = [0, 0], sizes = [8, 128], strides = [1, 1]} : vector<8x512xf32> to vector<8x128xf32>
    %624 = arith.negf %623 : vector<8x128xf32>
    %625 = math.exp %624 : vector<8x128xf32>
    %cst_176 = arith.constant 1.000000e+00 : f32
    %626 = vector.broadcast %cst_176 : f32 to vector<8x128xf32>
    %627 = arith.addf %626, %625 : vector<8x128xf32>
    %628 = arith.divf %626, %627 : vector<8x128xf32>
    %629 = vector.extract_strided_slice %622 {offsets = [0, 128], sizes = [8, 128], strides = [1, 1]} : vector<8x512xf32> to vector<8x128xf32>
    %630 = arith.negf %629 : vector<8x128xf32>
    %631 = math.exp %630 : vector<8x128xf32>
    %cst_177 = arith.constant 1.000000e+00 : f32
    %632 = vector.broadcast %cst_177 : f32 to vector<8x128xf32>
    %633 = arith.addf %632, %631 : vector<8x128xf32>
    %634 = arith.divf %632, %633 : vector<8x128xf32>
    %635 = vector.extract_strided_slice %622 {offsets = [0, 256], sizes = [8, 128], strides = [1, 1]} : vector<8x512xf32> to vector<8x128xf32>
    %636 = math.tanh %635 : vector<8x128xf32>
    %637 = vector.extract_strided_slice %622 {offsets = [0, 384], sizes = [8, 128], strides = [1, 1]} : vector<8x512xf32> to vector<8x128xf32>
    %638 = arith.negf %637 : vector<8x128xf32>
    %639 = math.exp %638 : vector<8x128xf32>
    %cst_178 = arith.constant 1.000000e+00 : f32
    %640 = vector.broadcast %cst_178 : f32 to vector<8x128xf32>
    %641 = arith.addf %640, %639 : vector<8x128xf32>
    %642 = arith.divf %640, %641 : vector<8x128xf32>
    %643 = arith.mulf %634, %608 : vector<8x128xf32>
    %644 = arith.mulf %628, %636 : vector<8x128xf32>
    %645 = arith.addf %643, %644 : vector<8x128xf32>
    %646 = math.tanh %645 : vector<8x128xf32>
    %647 = arith.mulf %642, %646 : vector<8x128xf32>
    %c16_i32_179 = arith.constant 16 : i32
    %648 = arith.muli %arg0, %c16_i32_179 : i32
    %c12_i32 = arith.constant 12 : i32
    %649 = arith.addi %648, %c12_i32 : i32
    %c40_i32_180 = arith.constant 40 : i32
    %650 = arith.cmpi slt, %649, %c40_i32_180 : i32
    %651 = arith.extui %650 : i1 to i32
    %652 = arith.sitofp %651 : i32 to f32
    %653 = vector.broadcast %652 : f32 to vector<8x128xf32>
    %654 = arith.mulf %653, %645 : vector<8x128xf32>
    %cst_181 = arith.constant 1.000000e+00 : f32
    %655 = arith.subf %cst_181, %652 : f32
    %656 = vector.broadcast %655 : f32 to vector<8x128xf32>
    %657 = arith.mulf %656, %608 : vector<8x128xf32>
    %658 = arith.addf %654, %657 : vector<8x128xf32>
    %659 = vector.broadcast %652 : f32 to vector<8x128xf32>
    %660 = arith.mulf %659, %647 : vector<8x128xf32>
    %cst_182 = arith.constant 1.000000e+00 : f32
    %661 = arith.subf %cst_182, %652 : f32
    %662 = vector.broadcast %661 : f32 to vector<8x128xf32>
    %663 = arith.mulf %662, %614 : vector<8x128xf32>
    %664 = arith.addf %660, %663 : vector<8x128xf32>
    %c0_183 = arith.constant 0 : index
    %c12_184 = arith.constant 12 : index
    %c0_185 = arith.constant 0 : index
    %665 = vector.load %arg7[%c0_183, %c12_184, %c0_185] : memref<8x16x128xf32, #tpu.memory_space<vmem>>, vector<8x1x128xf32>
    %666 = vector.shape_cast %665 : vector<8x1x128xf32> to vector<8x128xf32>
    %667 = vector.shape_cast %664 : vector<8x128xf32> to vector<8x1x128xf32>
    tpu.vector_store %arg7[%c0_183, %c12_184, %c0_185], %667 {strides = array<i32>} : memref<8x16x128xf32, #tpu.memory_space<vmem>>, vector<8x1x128xf32>,
    %c13 = arith.constant 13 : index
    %c0_186 = arith.constant 0 : index
    %c0_187 = arith.constant 0 : index
    %668 = vector.load %arg10[%c13, %c0_186, %c0_187] : memref<16x8x512xf32, #tpu.memory_space<vmem>>, vector<1x8x512xf32>
    %669 = vector.shape_cast %668 : vector<1x8x512xf32> to vector<8x512xf32>
    %670 = arith.truncf %664 : vector<8x128xf32> to vector<8x128xbf16>
    %cst_188 = arith.constant dense<0.000000e+00> : vector<8x512xf32>
    %671 = tpu.matmul %670, %15, %cst_188 {dimension_numbers = #tpu.dot_dimension_numbers<[1], [0], [0], [1], [0, 0, 1, 1], [], []>} : vector<8x128xbf16>, vector<128x512xbf16>, vector<8x512xf32> -> vector<8x512xf32>
    %672 = arith.addf %669, %671 : vector<8x512xf32>
    %673 = vector.extract_strided_slice %672 {offsets = [0, 0], sizes = [8, 128], strides = [1, 1]} : vector<8x512xf32> to vector<8x128xf32>
    %674 = arith.negf %673 : vector<8x128xf32>
    %675 = math.exp %674 : vector<8x128xf32>
    %cst_189 = arith.constant 1.000000e+00 : f32
    %676 = vector.broadcast %cst_189 : f32 to vector<8x128xf32>
    %677 = arith.addf %676, %675 : vector<8x128xf32>
    %678 = arith.divf %676, %677 : vector<8x128xf32>
    %679 = vector.extract_strided_slice %672 {offsets = [0, 128], sizes = [8, 128], strides = [1, 1]} : vector<8x512xf32> to vector<8x128xf32>
    %680 = arith.negf %679 : vector<8x128xf32>
    %681 = math.exp %680 : vector<8x128xf32>
    %cst_190 = arith.constant 1.000000e+00 : f32
    %682 = vector.broadcast %cst_190 : f32 to vector<8x128xf32>
    %683 = arith.addf %682, %681 : vector<8x128xf32>
    %684 = arith.divf %682, %683 : vector<8x128xf32>
    %685 = vector.extract_strided_slice %672 {offsets = [0, 256], sizes = [8, 128], strides = [1, 1]} : vector<8x512xf32> to vector<8x128xf32>
    %686 = math.tanh %685 : vector<8x128xf32>
    %687 = vector.extract_strided_slice %672 {offsets = [0, 384], sizes = [8, 128], strides = [1, 1]} : vector<8x512xf32> to vector<8x128xf32>
    %688 = arith.negf %687 : vector<8x128xf32>
    %689 = math.exp %688 : vector<8x128xf32>
    %cst_191 = arith.constant 1.000000e+00 : f32
    %690 = vector.broadcast %cst_191 : f32 to vector<8x128xf32>
    %691 = arith.addf %690, %689 : vector<8x128xf32>
    %692 = arith.divf %690, %691 : vector<8x128xf32>
    %693 = arith.mulf %684, %658 : vector<8x128xf32>
    %694 = arith.mulf %678, %686 : vector<8x128xf32>
    %695 = arith.addf %693, %694 : vector<8x128xf32>
    %696 = math.tanh %695 : vector<8x128xf32>
    %697 = arith.mulf %692, %696 : vector<8x128xf32>
    %c16_i32_192 = arith.constant 16 : i32
    %698 = arith.muli %arg0, %c16_i32_192 : i32
    %c13_i32 = arith.constant 13 : i32
    %699 = arith.addi %698, %c13_i32 : i32
    %c40_i32_193 = arith.constant 40 : i32
    %700 = arith.cmpi slt, %699, %c40_i32_193 : i32
    %701 = arith.extui %700 : i1 to i32
    %702 = arith.sitofp %701 : i32 to f32
    %703 = vector.broadcast %702 : f32 to vector<8x128xf32>
    %704 = arith.mulf %703, %695 : vector<8x128xf32>
    %cst_194 = arith.constant 1.000000e+00 : f32
    %705 = arith.subf %cst_194, %702 : f32
    %706 = vector.broadcast %705 : f32 to vector<8x128xf32>
    %707 = arith.mulf %706, %658 : vector<8x128xf32>
    %708 = arith.addf %704, %707 : vector<8x128xf32>
    %709 = vector.broadcast %702 : f32 to vector<8x128xf32>
    %710 = arith.mulf %709, %697 : vector<8x128xf32>
    %cst_195 = arith.constant 1.000000e+00 : f32
    %711 = arith.subf %cst_195, %702 : f32
    %712 = vector.broadcast %711 : f32 to vector<8x128xf32>
    %713 = arith.mulf %712, %664 : vector<8x128xf32>
    %714 = arith.addf %710, %713 : vector<8x128xf32>
    %c0_196 = arith.constant 0 : index
    %c13_197 = arith.constant 13 : index
    %c0_198 = arith.constant 0 : index
    %715 = vector.load %arg7[%c0_196, %c13_197, %c0_198] : memref<8x16x128xf32, #tpu.memory_space<vmem>>, vector<8x1x128xf32>
    %716 = vector.shape_cast %715 : vector<8x1x128xf32> to vector<8x128xf32>
    %717 = vector.shape_cast %714 : vector<8x128xf32> to vector<8x1x128xf32>
    tpu.vector_store %arg7[%c0_196, %c13_197, %c0_198], %717 {strides = array<i32>} : memref<8x16x128xf32, #tpu.memory_space<vmem>>, vector<8x1x128xf32>,
    %c14 = arith.constant 14 : index
    %c0_199 = arith.constant 0 : index
    %c0_200 = arith.constant 0 : index
    %718 = vector.load %arg10[%c14, %c0_199, %c0_200] : memref<16x8x512xf32, #tpu.memory_space<vmem>>, vector<1x8x512xf32>
    %719 = vector.shape_cast %718 : vector<1x8x512xf32> to vector<8x512xf32>
    %720 = arith.truncf %714 : vector<8x128xf32> to vector<8x128xbf16>
    %cst_201 = arith.constant dense<0.000000e+00> : vector<8x512xf32>
    %721 = tpu.matmul %720, %15, %cst_201 {dimension_numbers = #tpu.dot_dimension_numbers<[1], [0], [0], [1], [0, 0, 1, 1], [], []>} : vector<8x128xbf16>, vector<128x512xbf16>, vector<8x512xf32> -> vector<8x512xf32>
    %722 = arith.addf %719, %721 : vector<8x512xf32>
    %723 = vector.extract_strided_slice %722 {offsets = [0, 0], sizes = [8, 128], strides = [1, 1]} : vector<8x512xf32> to vector<8x128xf32>
    %724 = arith.negf %723 : vector<8x128xf32>
    %725 = math.exp %724 : vector<8x128xf32>
    %cst_202 = arith.constant 1.000000e+00 : f32
    %726 = vector.broadcast %cst_202 : f32 to vector<8x128xf32>
    %727 = arith.addf %726, %725 : vector<8x128xf32>
    %728 = arith.divf %726, %727 : vector<8x128xf32>
    %729 = vector.extract_strided_slice %722 {offsets = [0, 128], sizes = [8, 128], strides = [1, 1]} : vector<8x512xf32> to vector<8x128xf32>
    %730 = arith.negf %729 : vector<8x128xf32>
    %731 = math.exp %730 : vector<8x128xf32>
    %cst_203 = arith.constant 1.000000e+00 : f32
    %732 = vector.broadcast %cst_203 : f32 to vector<8x128xf32>
    %733 = arith.addf %732, %731 : vector<8x128xf32>
    %734 = arith.divf %732, %733 : vector<8x128xf32>
    %735 = vector.extract_strided_slice %722 {offsets = [0, 256], sizes = [8, 128], strides = [1, 1]} : vector<8x512xf32> to vector<8x128xf32>
    %736 = math.tanh %735 : vector<8x128xf32>
    %737 = vector.extract_strided_slice %722 {offsets = [0, 384], sizes = [8, 128], strides = [1, 1]} : vector<8x512xf32> to vector<8x128xf32>
    %738 = arith.negf %737 : vector<8x128xf32>
    %739 = math.exp %738 : vector<8x128xf32>
    %cst_204 = arith.constant 1.000000e+00 : f32
    %740 = vector.broadcast %cst_204 : f32 to vector<8x128xf32>
    %741 = arith.addf %740, %739 : vector<8x128xf32>
    %742 = arith.divf %740, %741 : vector<8x128xf32>
    %743 = arith.mulf %734, %708 : vector<8x128xf32>
    %744 = arith.mulf %728, %736 : vector<8x128xf32>
    %745 = arith.addf %743, %744 : vector<8x128xf32>
    %746 = math.tanh %745 : vector<8x128xf32>
    %747 = arith.mulf %742, %746 : vector<8x128xf32>
    %c16_i32_205 = arith.constant 16 : i32
    %748 = arith.muli %arg0, %c16_i32_205 : i32
    %c14_i32 = arith.constant 14 : i32
    %749 = arith.addi %748, %c14_i32 : i32
    %c40_i32_206 = arith.constant 40 : i32
    %750 = arith.cmpi slt, %749, %c40_i32_206 : i32
    %751 = arith.extui %750 : i1 to i32
    %752 = arith.sitofp %751 : i32 to f32
    %753 = vector.broadcast %752 : f32 to vector<8x128xf32>
    %754 = arith.mulf %753, %745 : vector<8x128xf32>
    %cst_207 = arith.constant 1.000000e+00 : f32
    %755 = arith.subf %cst_207, %752 : f32
    %756 = vector.broadcast %755 : f32 to vector<8x128xf32>
    %757 = arith.mulf %756, %708 : vector<8x128xf32>
    %758 = arith.addf %754, %757 : vector<8x128xf32>
    %759 = vector.broadcast %752 : f32 to vector<8x128xf32>
    %760 = arith.mulf %759, %747 : vector<8x128xf32>
    %cst_208 = arith.constant 1.000000e+00 : f32
    %761 = arith.subf %cst_208, %752 : f32
    %762 = vector.broadcast %761 : f32 to vector<8x128xf32>
    %763 = arith.mulf %762, %714 : vector<8x128xf32>
    %764 = arith.addf %760, %763 : vector<8x128xf32>
    %c0_209 = arith.constant 0 : index
    %c14_210 = arith.constant 14 : index
    %c0_211 = arith.constant 0 : index
    %765 = vector.load %arg7[%c0_209, %c14_210, %c0_211] : memref<8x16x128xf32, #tpu.memory_space<vmem>>, vector<8x1x128xf32>
    %766 = vector.shape_cast %765 : vector<8x1x128xf32> to vector<8x128xf32>
    %767 = vector.shape_cast %764 : vector<8x128xf32> to vector<8x1x128xf32>
    tpu.vector_store %arg7[%c0_209, %c14_210, %c0_211], %767 {strides = array<i32>} : memref<8x16x128xf32, #tpu.memory_space<vmem>>, vector<8x1x128xf32>,
    %c15 = arith.constant 15 : index
    %c0_212 = arith.constant 0 : index
    %c0_213 = arith.constant 0 : index
    %768 = vector.load %arg10[%c15, %c0_212, %c0_213] : memref<16x8x512xf32, #tpu.memory_space<vmem>>, vector<1x8x512xf32>
    %769 = vector.shape_cast %768 : vector<1x8x512xf32> to vector<8x512xf32>
    %770 = arith.truncf %764 : vector<8x128xf32> to vector<8x128xbf16>
    %cst_214 = arith.constant dense<0.000000e+00> : vector<8x512xf32>
    %771 = tpu.matmul %770, %15, %cst_214 {dimension_numbers = #tpu.dot_dimension_numbers<[1], [0], [0], [1], [0, 0, 1, 1], [], []>} : vector<8x128xbf16>, vector<128x512xbf16>, vector<8x512xf32> -> vector<8x512xf32>
    %772 = arith.addf %769, %771 : vector<8x512xf32>
    %773 = vector.extract_strided_slice %772 {offsets = [0, 0], sizes = [8, 128], strides = [1, 1]} : vector<8x512xf32> to vector<8x128xf32>
    %774 = arith.negf %773 : vector<8x128xf32>
    %775 = math.exp %774 : vector<8x128xf32>
    %cst_215 = arith.constant 1.000000e+00 : f32
    %776 = vector.broadcast %cst_215 : f32 to vector<8x128xf32>
    %777 = arith.addf %776, %775 : vector<8x128xf32>
    %778 = arith.divf %776, %777 : vector<8x128xf32>
    %779 = vector.extract_strided_slice %772 {offsets = [0, 128], sizes = [8, 128], strides = [1, 1]} : vector<8x512xf32> to vector<8x128xf32>
    %780 = arith.negf %779 : vector<8x128xf32>
    %781 = math.exp %780 : vector<8x128xf32>
    %cst_216 = arith.constant 1.000000e+00 : f32
    %782 = vector.broadcast %cst_216 : f32 to vector<8x128xf32>
    %783 = arith.addf %782, %781 : vector<8x128xf32>
    %784 = arith.divf %782, %783 : vector<8x128xf32>
    %785 = vector.extract_strided_slice %772 {offsets = [0, 256], sizes = [8, 128], strides = [1, 1]} : vector<8x512xf32> to vector<8x128xf32>
    %786 = math.tanh %785 : vector<8x128xf32>
    %787 = vector.extract_strided_slice %772 {offsets = [0, 384], sizes = [8, 128], strides = [1, 1]} : vector<8x512xf32> to vector<8x128xf32>
    %788 = arith.negf %787 : vector<8x128xf32>
    %789 = math.exp %788 : vector<8x128xf32>
    %cst_217 = arith.constant 1.000000e+00 : f32
    %790 = vector.broadcast %cst_217 : f32 to vector<8x128xf32>
    %791 = arith.addf %790, %789 : vector<8x128xf32>
    %792 = arith.divf %790, %791 : vector<8x128xf32>
    %793 = arith.mulf %784, %758 : vector<8x128xf32>
    %794 = arith.mulf %778, %786 : vector<8x128xf32>
    %795 = arith.addf %793, %794 : vector<8x128xf32>
    %796 = math.tanh %795 : vector<8x128xf32>
    %797 = arith.mulf %792, %796 : vector<8x128xf32>
    %c16_i32_218 = arith.constant 16 : i32
    %798 = arith.muli %arg0, %c16_i32_218 : i32
    %c15_i32 = arith.constant 15 : i32
    %799 = arith.addi %798, %c15_i32 : i32
    %c40_i32_219 = arith.constant 40 : i32
    %800 = arith.cmpi slt, %799, %c40_i32_219 : i32
    %801 = arith.extui %800 : i1 to i32
    %802 = arith.sitofp %801 : i32 to f32
    %803 = vector.broadcast %802 : f32 to vector<8x128xf32>
    %804 = arith.mulf %803, %795 : vector<8x128xf32>
    %cst_220 = arith.constant 1.000000e+00 : f32
    %805 = arith.subf %cst_220, %802 : f32
    %806 = vector.broadcast %805 : f32 to vector<8x128xf32>
    %807 = arith.mulf %806, %758 : vector<8x128xf32>
    %808 = arith.addf %804, %807 : vector<8x128xf32>
    %809 = vector.broadcast %802 : f32 to vector<8x128xf32>
    %810 = arith.mulf %809, %797 : vector<8x128xf32>
    %cst_221 = arith.constant 1.000000e+00 : f32
    %811 = arith.subf %cst_221, %802 : f32
    %812 = vector.broadcast %811 : f32 to vector<8x128xf32>
    %813 = arith.mulf %812, %764 : vector<8x128xf32>
    %814 = arith.addf %810, %813 : vector<8x128xf32>
    %c0_222 = arith.constant 0 : index
    %c15_223 = arith.constant 15 : index
    %c0_224 = arith.constant 0 : index
    %815 = vector.load %arg7[%c0_222, %c15_223, %c0_224] : memref<8x16x128xf32, #tpu.memory_space<vmem>>, vector<8x1x128xf32>
    %816 = vector.shape_cast %815 : vector<8x1x128xf32> to vector<8x128xf32>
    %817 = vector.shape_cast %814 : vector<8x128xf32> to vector<8x1x128xf32>
    tpu.vector_store %arg7[%c0_222, %c15_223, %c0_224], %817 {strides = array<i32>} : memref<8x16x128xf32, #tpu.memory_space<vmem>>, vector<8x1x128xf32>,
    %c0_225 = arith.constant 0 : index
    %c0_226 = arith.constant 0 : index
    %818 = vector.load %arg8[%c0_225, %c0_226] : memref<8x128xf32, #tpu.memory_space<vmem>>, vector<8x128xf32>
    tpu.vector_store %arg8[%c0_225, %c0_226], %814 {strides = array<i32>} : memref<8x128xf32, #tpu.memory_space<vmem>>, vector<8x128xf32>,
    %c0_227 = arith.constant 0 : index
    %c0_228 = arith.constant 0 : index
    %819 = vector.load %arg9[%c0_227, %c0_228] : memref<8x128xf32, #tpu.memory_space<vmem>>, vector<8x128xf32>
    tpu.vector_store %arg9[%c0_227, %c0_228], %808 {strides = array<i32>} : memref<8x128xf32, #tpu.memory_space<vmem>>, vector<8x128xf32>,
    return
  }
  func.func @transform_0(%arg0: i32) -> (i32, i32, i32) {
    %c0_i32 = arith.constant 0 : i32
    %c0_i32_0 = arith.constant 0 : i32
    %c0_i32_1 = arith.constant 0 : i32
    return %arg0, %c0_i32, %c0_i32_0 : i32, i32, i32
  }
  func.func @transform_1(%arg0: i32) -> (i32, i32) {
    %c0_i32 = arith.constant 0 : i32
    %c0_i32_0 = arith.constant 0 : i32
    %c0_i32_1 = arith.constant 0 : i32
    return %c0_i32, %c0_i32_0 : i32, i32
  }
  func.func @transform_2(%arg0: i32) -> (i32, i32) {
    %c0_i32 = arith.constant 0 : i32
    %c0_i32_0 = arith.constant 0 : i32
    %c0_i32_1 = arith.constant 0 : i32
    return %c0_i32, %c0_i32_0 : i32, i32
  }
  func.func @transform_3(%arg0: i32) -> (i32, i32) {
    %c0_i32 = arith.constant 0 : i32
    %c0_i32_0 = arith.constant 0 : i32
    %c0_i32_1 = arith.constant 0 : i32
    return %c0_i32, %c0_i32_0 : i32, i32
  }
  func.func @transform_4(%arg0: i32) -> (i32, i32) {
    %c0_i32 = arith.constant 0 : i32
    %c0_i32_0 = arith.constant 0 : i32
    %c0_i32_1 = arith.constant 0 : i32
    return %c0_i32, %c0_i32_0 : i32, i32
  }
  func.func @transform_5(%arg0: i32) -> (i32, i32) {
    %c0_i32 = arith.constant 0 : i32
    %c0_i32_0 = arith.constant 0 : i32
    %c0_i32_1 = arith.constant 0 : i32
    return %c0_i32, %c0_i32_0 : i32, i32
  }
  func.func @transform_6(%arg0: i32) -> (i32, i32, i32) {
    %c0_i32 = arith.constant 0 : i32
    %c0_i32_0 = arith.constant 0 : i32
    %c0_i32_1 = arith.constant 0 : i32
    return %c0_i32, %arg0, %c0_i32_0 : i32, i32, i32
  }
  func.func @transform_7(%arg0: i32) -> (i32, i32) {
    %c0_i32 = arith.constant 0 : i32
    %c0_i32_0 = arith.constant 0 : i32
    %c0_i32_1 = arith.constant 0 : i32
    return %c0_i32, %c0_i32_0 : i32, i32
  }
  func.func @transform_8(%arg0: i32) -> (i32, i32) {
    %c0_i32 = arith.constant 0 : i32
    %c0_i32_0 = arith.constant 0 : i32
    %c0_i32_1 = arith.constant 0 : i32
    return %c0_i32, %c0_i32_0 : i32, i32
  }
}

module attributes {stable_mosaic.version = 11 : i64} {
  func.func @_lstm_chunk_kernel(%arg0: i32, %arg1: memref<16x8x128xf32, #tpu.memory_space<vmem>>, %arg2: memref<8x128xf32, #tpu.memory_space<vmem>>, %arg3: memref<8x128xf32, #tpu.memory_space<vmem>>, %arg4: memref<128x512xbf16, #tpu.memory_space<vmem>>, %arg5: memref<128x512xbf16, #tpu.memory_space<vmem>>, %arg6: memref<1x512xf32, #tpu.memory_space<vmem>>, %arg7: memref<8x16x128xf32, #tpu.memory_space<vmem>>, %arg8: memref<8x128xf32, #tpu.memory_space<vmem>>, %arg9: memref<8x128xf32, #tpu.memory_space<vmem>>, %arg10: memref<16x8x512xf32, #tpu.memory_space<vmem>>) attributes {dimension_semantics = [#tpu.dimension_semantics<arbitrary>], iteration_bounds = array<i64: 3>, scalar_prefetch = 0 : i64, scratch_operands = 1 : i64, tpu.core_type = #tpu.core_type<tc>, window_params = [{transform_indices = @transform_0, window_bounds = array<i64: 16, 8, 128>}, {pipeline_mode = #tpu.pipeline_mode<synchronous>, transform_indices = @transform_1, window_bounds = array<i64: 8, 128>}, {pipeline_mode = #tpu.pipeline_mode<synchronous>, transform_indices = @transform_2, window_bounds = array<i64: 8, 128>}, {pipeline_mode = #tpu.pipeline_mode<synchronous>, transform_indices = @transform_3, window_bounds = array<i64: 128, 512>}, {pipeline_mode = #tpu.pipeline_mode<synchronous>, transform_indices = @transform_4, window_bounds = array<i64: 128, 512>}, {pipeline_mode = #tpu.pipeline_mode<synchronous>, transform_indices = @transform_5, window_bounds = array<i64: 1, 512>}, {transform_indices = @transform_6, window_bounds = array<i64: 8, 16, 128>}, {pipeline_mode = #tpu.pipeline_mode<synchronous>, transform_indices = @transform_7, window_bounds = array<i64: 8, 128>}, {pipeline_mode = #tpu.pipeline_mode<synchronous>, transform_indices = @transform_8, window_bounds = array<i64: 8, 128>}]} {
    %c0_i32 = arith.constant 0 : i32
    %0 = arith.cmpi eq, %arg0, %c0_i32 : i32
    %1 = arith.extui %0 : i1 to i32
    %c0_i32_0 = arith.constant 0 : i32
    %2 = arith.cmpi ne, %1, %c0_i32_0 : i32
    scf.if %2 {
      %c0_229 = arith.constant 0 : index
      %c0_230 = arith.constant 0 : index
      %820 = vector.load %arg2[%c0_229, %c0_230] : memref<8x128xf32, #tpu.memory_space<vmem>>, vector<8x128xf32>
      %c0_231 = arith.constant 0 : index
      %c0_232 = arith.constant 0 : index
      %821 = vector.load %arg8[%c0_231, %c0_232] : memref<8x128xf32, #tpu.memory_space<vmem>>, vector<8x128xf32>
      tpu.vector_store %arg8[%c0_231, %c0_232], %820 {strides = array<i32>} : memref<8x128xf32, #tpu.memory_space<vmem>>, vector<8x128xf32>,
      %c0_233 = arith.constant 0 : index
      %c0_234 = arith.constant 0 : index
      %822 = vector.load %arg3[%c0_233, %c0_234] : memref<8x128xf32, #tpu.memory_space<vmem>>, vector<8x128xf32>
      %c0_235 = arith.constant 0 : index
      %c0_236 = arith.constant 0 : index
      %823 = vector.load %arg9[%c0_235, %c0_236] : memref<8x128xf32, #tpu.memory_space<vmem>>, vector<8x128xf32>
      tpu.vector_store %arg9[%c0_235, %c0_236], %822 {strides = array<i32>} : memref<8x128xf32, #tpu.memory_space<vmem>>, vector<8x128xf32>,
    } else {
    }
    %c0 = arith.constant 0 : index
    %c0_1 = arith.constant 0 : index
    %c0_2 = arith.constant 0 : index
    %3 = vector.load %arg1[%c0, %c0_1, %c0_2] : memref<16x8x128xf32, #tpu.memory_space<vmem>>, vector<16x8x128xf32>
    %cst = arith.constant 0.000000e+00 : f32
    %4 = vector.broadcast %cst : f32 to vector<16x8x128xf32>
    %5 = arith.maximumf %3, %4 : vector<16x8x128xf32>
    %6 = vector.shape_cast %5 : vector<16x8x128xf32> to vector<128x128xf32>
    %7 = arith.truncf %6 : vector<128x128xf32> to vector<128x128xbf16>
    %c0_3 = arith.constant 0 : index
    %c0_4 = arith.constant 0 : index
    %8 = vector.load %arg4[%c0_3, %c0_4] : memref<128x512xbf16, #tpu.memory_space<vmem>>, vector<128x512xbf16>
    %cst_5 = arith.constant dense<0.000000e+00> : vector<128x512xf32>
    %9 = tpu.matmul %7, %8, %cst_5 {dimension_numbers = #tpu.dot_dimension_numbers<[1], [0], [0], [1], [0, 0, 1, 1], [], []>} : vector<128x128xbf16>, vector<128x512xbf16>, vector<128x512xf32> -> vector<128x512xf32>
    %c0_6 = arith.constant 0 : index
    %c0_7 = arith.constant 0 : index
    %10 = vector.load %arg6[%c0_6, %c0_7] : memref<1x512xf32, #tpu.memory_space<vmem>>, vector<1x512xf32>
    %11 = vector.broadcast %10 : vector<1x512xf32> to vector<128x512xf32>
    %12 = arith.addf %9, %11 : vector<128x512xf32>
    %13 = vector.shape_cast %12 : vector<128x512xf32> to vector<16x8x512xf32>
    %c0_8 = arith.constant 0 : index
    %c0_9 = arith.constant 0 : index
    %c0_10 = arith.constant 0 : index
    %14 = vector.load %arg10[%c0_8, %c0_9, %c0_10] : memref<16x8x512xf32, #tpu.memory_space<vmem>>, vector<16x8x512xf32>
    tpu.vector_store %arg10[%c0_8, %c0_9, %c0_10], %13 {strides = array<i32>} : memref<16x8x512xf32, #tpu.memory_space<vmem>>, vector<16x8x512xf32>,
    %c0_11 = arith.constant 0 : index
    %c0_12 = arith.constant 0 : index
    %15 = vector.load %arg5[%c0_11, %c0_12] : memref<128x512xbf16, #tpu.memory_space<vmem>>, vector<128x512xbf16>
    %c0_13 = arith.constant 0 : index
    %c0_14 = arith.constant 0 : index
    %16 = vector.load %arg8[%c0_13, %c0_14] : memref<8x128xf32, #tpu.memory_space<vmem>>, vector<8x128xf32>
    %c0_15 = arith.constant 0 : index
    %c0_16 = arith.constant 0 : index
    %17 = vector.load %arg9[%c0_15, %c0_16] : memref<8x128xf32, #tpu.memory_space<vmem>>, vector<8x128xf32>
    %c0_17 = arith.constant 0 : index
    %c0_18 = arith.constant 0 : index
    %c0_19 = arith.constant 0 : index
    %18 = vector.load %arg10[%c0_17, %c0_18, %c0_19] : memref<16x8x512xf32, #tpu.memory_space<vmem>>, vector<1x8x512xf32>
    %19 = vector.shape_cast %18 : vector<1x8x512xf32> to vector<8x512xf32>
    %20 = arith.truncf %16 : vector<8x128xf32> to vector<8x128xbf16>
    %cst_20 = arith.constant dense<0.000000e+00> : vector<8x512xf32>
    %21 = tpu.matmul %20, %15, %cst_20 {dimension_numbers = #tpu.dot_dimension_numbers<[1], [0], [0], [1], [0, 0, 1, 1], [], []>} : vector<8x128xbf16>, vector<128x512xbf16>, vector<8x512xf32> -> vector<8x512xf32>
    %22 = arith.addf %19, %21 : vector<8x512xf32>
    %23 = vector.extract_strided_slice %22 {offsets = [0, 0], sizes = [8, 128], strides = [1, 1]} : vector<8x512xf32> to vector<8x128xf32>
    %24 = arith.negf %23 : vector<8x128xf32>
    %25 = math.exp %24 : vector<8x128xf32>
    %cst_21 = arith.constant 1.000000e+00 : f32
    %26 = vector.broadcast %cst_21 : f32 to vector<8x128xf32>
    %27 = arith.addf %26, %25 : vector<8x128xf32>
    %28 = arith.divf %26, %27 : vector<8x128xf32>
    %29 = vector.extract_strided_slice %22 {offsets = [0, 128], sizes = [8, 128], strides = [1, 1]} : vector<8x512xf32> to vector<8x128xf32>
    %30 = arith.negf %29 : vector<8x128xf32>
    %31 = math.exp %30 : vector<8x128xf32>
    %cst_22 = arith.constant 1.000000e+00 : f32
    %32 = vector.broadcast %cst_22 : f32 to vector<8x128xf32>
    %33 = arith.addf %32, %31 : vector<8x128xf32>
    %34 = arith.divf %32, %33 : vector<8x128xf32>
    %35 = vector.extract_strided_slice %22 {offsets = [0, 256], sizes = [8, 128], strides = [1, 1]} : vector<8x512xf32> to vector<8x128xf32>
    %36 = math.tanh %35 : vector<8x128xf32>
    %37 = vector.extract_strided_slice %22 {offsets = [0, 384], sizes = [8, 128], strides = [1, 1]} : vector<8x512xf32> to vector<8x128xf32>
    %38 = arith.negf %37 : vector<8x128xf32>
    %39 = math.exp %38 : vector<8x128xf32>
    %cst_23 = arith.constant 1.000000e+00 : f32
    %40 = vector.broadcast %cst_23 : f32 to vector<8x128xf32>
    %41 = arith.addf %40, %39 : vector<8x128xf32>
    %42 = arith.divf %40, %41 : vector<8x128xf32>
    %43 = arith.mulf %34, %17 : vector<8x128xf32>
    %44 = arith.mulf %28, %36 : vector<8x128xf32>
    %45 = arith.addf %43, %44 : vector<8x128xf32>
    %46 = math.tanh %45 : vector<8x128xf32>
    %47 = arith.mulf %42, %46 : vector<8x128xf32>
    %c16_i32 = arith.constant 16 : i32
    %48 = arith.muli %arg0, %c16_i32 : i32
    %c0_i32_24 = arith.constant 0 : i32
    %49 = arith.addi %48, %c0_i32_24 : i32
    %c40_i32 = arith.constant 40 : i32
    %50 = arith.cmpi slt, %49, %c40_i32 : i32
    %51 = arith.extui %50 : i1 to i32
    %52 = arith.sitofp %51 : i32 to f32
    %53 = vector.broadcast %52 : f32 to vector<8x128xf32>
    %54 = arith.mulf %53, %45 : vector<8x128xf32>
    %cst_25 = arith.constant 1.000000e+00 : f32
    %55 = arith.subf %cst_25, %52 : f32
    %56 = vector.broadcast %55 : f32 to vector<8x128xf32>
    %57 = arith.mulf %56, %17 : vector<8x128xf32>
    %58 = arith.addf %54, %57 : vector<8x128xf32>
    %59 = vector.broadcast %52 : f32 to vector<8x128xf32>
    %60 = arith.mulf %59, %47 : vector<8x128xf32>
    %cst_26 = arith.constant 1.000000e+00 : f32
    %61 = arith.subf %cst_26, %52 : f32
    %62 = vector.broadcast %61 : f32 to vector<8x128xf32>
    %63 = arith.mulf %62, %16 : vector<8x128xf32>
    %64 = arith.addf %60, %63 : vector<8x128xf32>
    %c0_27 = arith.constant 0 : index
    %c0_28 = arith.constant 0 : index
    %c0_29 = arith.constant 0 : index
    %65 = vector.load %arg7[%c0_27, %c0_28, %c0_29] : memref<8x16x128xf32, #tpu.memory_space<vmem>>, vector<8x1x128xf32>
    %66 = vector.shape_cast %65 : vector<8x1x128xf32> to vector<8x128xf32>
    %67 = vector.shape_cast %64 : vector<8x128xf32> to vector<8x1x128xf32>
    tpu.vector_store %arg7[%c0_27, %c0_28, %c0_29], %67 {strides = array<i32>} : memref<8x16x128xf32, #tpu.memory_space<vmem>>, vector<8x1x128xf32>,
    %c1 = arith.constant 1 : index
    %c0_30 = arith.constant 0 : index
    %c0_31 = arith.constant 0 : index
    %68 = vector.load %arg10[%c1, %c0_30, %c0_31] : memref<16x8x512xf32, #tpu.memory_space<vmem>>, vector<1x8x512xf32>
    %69 = vector.shape_cast %68 : vector<1x8x512xf32> to vector<8x512xf32>
    %70 = arith.truncf %64 : vector<8x128xf32> to vector<8x128xbf16>
    %cst_32 = arith.constant dense<0.000000e+00> : vector<8x512xf32>
    %71 = tpu.matmul %70, %15, %cst_32 {dimension_numbers = #tpu.dot_dimension_numbers<[1], [0], [0], [1], [0, 0, 1, 1], [], []>} : vector<8x128xbf16>, vector<128x512xbf16>, vector<8x512xf32> -> vector<8x512xf32>
    %72 = arith.addf %69, %71 : vector<8x512xf32>
    %73 = vector.extract_strided_slice %72 {offsets = [0, 0], sizes = [8, 128], strides = [1, 1]} : vector<8x512xf32> to vector<8x128xf32>
    %74 = arith.negf %73 : vector<8x128xf32>
    %75 = math.exp %74 : vector<8x128xf32>
    %cst_33 = arith.constant 1.000000e+00 : f32
    %76 = vector.broadcast %cst_33 : f32 to vector<8x128xf32>
    %77 = arith.addf %76, %75 : vector<8x128xf32>
    %78 = arith.divf %76, %77 : vector<8x128xf32>
    %79 = vector.extract_strided_slice %72 {offsets = [0, 128], sizes = [8, 128], strides = [1, 1]} : vector<8x512xf32> to vector<8x128xf32>
    %80 = arith.negf %79 : vector<8x128xf32>
    %81 = math.exp %80 : vector<8x128xf32>
    %cst_34 = arith.constant 1.000000e+00 : f32
    %82 = vector.broadcast %cst_34 : f32 to vector<8x128xf32>
    %83 = arith.addf %82, %81 : vector<8x128xf32>
    %84 = arith.divf %82, %83 : vector<8x128xf32>
    %85 = vector.extract_strided_slice %72 {offsets = [0, 256], sizes = [8, 128], strides = [1, 1]} : vector<8x512xf32> to vector<8x128xf32>
    %86 = math.tanh %85 : vector<8x128xf32>
    %87 = vector.extract_strided_slice %72 {offsets = [0, 384], sizes = [8, 128], strides = [1, 1]} : vector<8x512xf32> to vector<8x128xf32>
    %88 = arith.negf %87 : vector<8x128xf32>
    %89 = math.exp %88 : vector<8x128xf32>
    %cst_35 = arith.constant 1.000000e+00 : f32
    %90 = vector.broadcast %cst_35 : f32 to vector<8x128xf32>
    %91 = arith.addf %90, %89 : vector<8x128xf32>
    %92 = arith.divf %90, %91 : vector<8x128xf32>
    %93 = arith.mulf %84, %58 : vector<8x128xf32>
    %94 = arith.mulf %78, %86 : vector<8x128xf32>
    %95 = arith.addf %93, %94 : vector<8x128xf32>
    %96 = math.tanh %95 : vector<8x128xf32>
    %97 = arith.mulf %92, %96 : vector<8x128xf32>
    %c16_i32_36 = arith.constant 16 : i32
    %98 = arith.muli %arg0, %c16_i32_36 : i32
    %c1_i32 = arith.constant 1 : i32
    %99 = arith.addi %98, %c1_i32 : i32
    %c40_i32_37 = arith.constant 40 : i32
    %100 = arith.cmpi slt, %99, %c40_i32_37 : i32
    %101 = arith.extui %100 : i1 to i32
    %102 = arith.sitofp %101 : i32 to f32
    %103 = vector.broadcast %102 : f32 to vector<8x128xf32>
    %104 = arith.mulf %103, %95 : vector<8x128xf32>
    %cst_38 = arith.constant 1.000000e+00 : f32
    %105 = arith.subf %cst_38, %102 : f32
    %106 = vector.broadcast %105 : f32 to vector<8x128xf32>
    %107 = arith.mulf %106, %58 : vector<8x128xf32>
    %108 = arith.addf %104, %107 : vector<8x128xf32>
    %109 = vector.broadcast %102 : f32 to vector<8x128xf32>
    %110 = arith.mulf %109, %97 : vector<8x128xf32>
    %cst_39 = arith.constant 1.000000e+00 : f32
    %111 = arith.subf %cst_39, %102 : f32
    %112 = vector.broadcast %111 : f32 to vector<8x128xf32>
    %113 = arith.mulf %112, %64 : vector<8x128xf32>
    %114 = arith.addf %110, %113 : vector<8x128xf32>
    %c0_40 = arith.constant 0 : index
    %c1_41 = arith.constant 1 : index
    %c0_42 = arith.constant 0 : index
    %115 = vector.load %arg7[%c0_40, %c1_41, %c0_42] : memref<8x16x128xf32, #tpu.memory_space<vmem>>, vector<8x1x128xf32>
    %116 = vector.shape_cast %115 : vector<8x1x128xf32> to vector<8x128xf32>
    %117 = vector.shape_cast %114 : vector<8x128xf32> to vector<8x1x128xf32>
    tpu.vector_store %arg7[%c0_40, %c1_41, %c0_42], %117 {strides = array<i32>} : memref<8x16x128xf32, #tpu.memory_space<vmem>>, vector<8x1x128xf32>,
    %c2 = arith.constant 2 : index
    %c0_43 = arith.constant 0 : index
    %c0_44 = arith.constant 0 : index
    %118 = vector.load %arg10[%c2, %c0_43, %c0_44] : memref<16x8x512xf32, #tpu.memory_space<vmem>>, vector<1x8x512xf32>
    %119 = vector.shape_cast %118 : vector<1x8x512xf32> to vector<8x512xf32>
    %120 = arith.truncf %114 : vector<8x128xf32> to vector<8x128xbf16>
    %cst_45 = arith.constant dense<0.000000e+00> : vector<8x512xf32>
    %121 = tpu.matmul %120, %15, %cst_45 {dimension_numbers = #tpu.dot_dimension_numbers<[1], [0], [0], [1], [0, 0, 1, 1], [], []>} : vector<8x128xbf16>, vector<128x512xbf16>, vector<8x512xf32> -> vector<8x512xf32>
    %122 = arith.addf %119, %121 : vector<8x512xf32>
    %123 = vector.extract_strided_slice %122 {offsets = [0, 0], sizes = [8, 128], strides = [1, 1]} : vector<8x512xf32> to vector<8x128xf32>
    %124 = arith.negf %123 : vector<8x128xf32>
    %125 = math.exp %124 : vector<8x128xf32>
    %cst_46 = arith.constant 1.000000e+00 : f32
    %126 = vector.broadcast %cst_46 : f32 to vector<8x128xf32>
    %127 = arith.addf %126, %125 : vector<8x128xf32>
    %128 = arith.divf %126, %127 : vector<8x128xf32>
    %129 = vector.extract_strided_slice %122 {offsets = [0, 128], sizes = [8, 128], strides = [1, 1]} : vector<8x512xf32> to vector<8x128xf32>
    %130 = arith.negf %129 : vector<8x128xf32>
    %131 = math.exp %130 : vector<8x128xf32>
    %cst_47 = arith.constant 1.000000e+00 : f32
    %132 = vector.broadcast %cst_47 : f32 to vector<8x128xf32>
    %133 = arith.addf %132, %131 : vector<8x128xf32>
    %134 = arith.divf %132, %133 : vector<8x128xf32>
    %135 = vector.extract_strided_slice %122 {offsets = [0, 256], sizes = [8, 128], strides = [1, 1]} : vector<8x512xf32> to vector<8x128xf32>
    %136 = math.tanh %135 : vector<8x128xf32>
    %137 = vector.extract_strided_slice %122 {offsets = [0, 384], sizes = [8, 128], strides = [1, 1]} : vector<8x512xf32> to vector<8x128xf32>
    %138 = arith.negf %137 : vector<8x128xf32>
    %139 = math.exp %138 : vector<8x128xf32>
    %cst_48 = arith.constant 1.000000e+00 : f32
    %140 = vector.broadcast %cst_48 : f32 to vector<8x128xf32>
    %141 = arith.addf %140, %139 : vector<8x128xf32>
    %142 = arith.divf %140, %141 : vector<8x128xf32>
    %143 = arith.mulf %134, %108 : vector<8x128xf32>
    %144 = arith.mulf %128, %136 : vector<8x128xf32>
    %145 = arith.addf %143, %144 : vector<8x128xf32>
    %146 = math.tanh %145 : vector<8x128xf32>
    %147 = arith.mulf %142, %146 : vector<8x128xf32>
    %c16_i32_49 = arith.constant 16 : i32
    %148 = arith.muli %arg0, %c16_i32_49 : i32
    %c2_i32 = arith.constant 2 : i32
    %149 = arith.addi %148, %c2_i32 : i32
    %c40_i32_50 = arith.constant 40 : i32
    %150 = arith.cmpi slt, %149, %c40_i32_50 : i32
    %151 = arith.extui %150 : i1 to i32
    %152 = arith.sitofp %151 : i32 to f32
    %153 = vector.broadcast %152 : f32 to vector<8x128xf32>
    %154 = arith.mulf %153, %145 : vector<8x128xf32>
    %cst_51 = arith.constant 1.000000e+00 : f32
    %155 = arith.subf %cst_51, %152 : f32
    %156 = vector.broadcast %155 : f32 to vector<8x128xf32>
    %157 = arith.mulf %156, %108 : vector<8x128xf32>
    %158 = arith.addf %154, %157 : vector<8x128xf32>
    %159 = vector.broadcast %152 : f32 to vector<8x128xf32>
    %160 = arith.mulf %159, %147 : vector<8x128xf32>
    %cst_52 = arith.constant 1.000000e+00 : f32
    %161 = arith.subf %cst_52, %152 : f32
    %162 = vector.broadcast %161 : f32 to vector<8x128xf32>
    %163 = arith.mulf %162, %114 : vector<8x128xf32>
    %164 = arith.addf %160, %163 : vector<8x128xf32>
    %c0_53 = arith.constant 0 : index
    %c2_54 = arith.constant 2 : index
    %c0_55 = arith.constant 0 : index
    %165 = vector.load %arg7[%c0_53, %c2_54, %c0_55] : memref<8x16x128xf32, #tpu.memory_space<vmem>>, vector<8x1x128xf32>
    %166 = vector.shape_cast %165 : vector<8x1x128xf32> to vector<8x128xf32>
    %167 = vector.shape_cast %164 : vector<8x128xf32> to vector<8x1x128xf32>
    tpu.vector_store %arg7[%c0_53, %c2_54, %c0_55], %167 {strides = array<i32>} : memref<8x16x128xf32, #tpu.memory_space<vmem>>, vector<8x1x128xf32>,
    %c3 = arith.constant 3 : index
    %c0_56 = arith.constant 0 : index
    %c0_57 = arith.constant 0 : index
    %168 = vector.load %arg10[%c3, %c0_56, %c0_57] : memref<16x8x512xf32, #tpu.memory_space<vmem>>, vector<1x8x512xf32>
    %169 = vector.shape_cast %168 : vector<1x8x512xf32> to vector<8x512xf32>
    %170 = arith.truncf %164 : vector<8x128xf32> to vector<8x128xbf16>
    %cst_58 = arith.constant dense<0.000000e+00> : vector<8x512xf32>
    %171 = tpu.matmul %170, %15, %cst_58 {dimension_numbers = #tpu.dot_dimension_numbers<[1], [0], [0], [1], [0, 0, 1, 1], [], []>} : vector<8x128xbf16>, vector<128x512xbf16>, vector<8x512xf32> -> vector<8x512xf32>
    %172 = arith.addf %169, %171 : vector<8x512xf32>
    %173 = vector.extract_strided_slice %172 {offsets = [0, 0], sizes = [8, 128], strides = [1, 1]} : vector<8x512xf32> to vector<8x128xf32>
    %174 = arith.negf %173 : vector<8x128xf32>
    %175 = math.exp %174 : vector<8x128xf32>
    %cst_59 = arith.constant 1.000000e+00 : f32
    %176 = vector.broadcast %cst_59 : f32 to vector<8x128xf32>
    %177 = arith.addf %176, %175 : vector<8x128xf32>
    %178 = arith.divf %176, %177 : vector<8x128xf32>
    %179 = vector.extract_strided_slice %172 {offsets = [0, 128], sizes = [8, 128], strides = [1, 1]} : vector<8x512xf32> to vector<8x128xf32>
    %180 = arith.negf %179 : vector<8x128xf32>
    %181 = math.exp %180 : vector<8x128xf32>
    %cst_60 = arith.constant 1.000000e+00 : f32
    %182 = vector.broadcast %cst_60 : f32 to vector<8x128xf32>
    %183 = arith.addf %182, %181 : vector<8x128xf32>
    %184 = arith.divf %182, %183 : vector<8x128xf32>
    %185 = vector.extract_strided_slice %172 {offsets = [0, 256], sizes = [8, 128], strides = [1, 1]} : vector<8x512xf32> to vector<8x128xf32>
    %186 = math.tanh %185 : vector<8x128xf32>
    %187 = vector.extract_strided_slice %172 {offsets = [0, 384], sizes = [8, 128], strides = [1, 1]} : vector<8x512xf32> to vector<8x128xf32>
    %188 = arith.negf %187 : vector<8x128xf32>
    %189 = math.exp %188 : vector<8x128xf32>
    %cst_61 = arith.constant 1.000000e+00 : f32
    %190 = vector.broadcast %cst_61 : f32 to vector<8x128xf32>
    %191 = arith.addf %190, %189 : vector<8x128xf32>
    %192 = arith.divf %190, %191 : vector<8x128xf32>
    %193 = arith.mulf %184, %158 : vector<8x128xf32>
    %194 = arith.mulf %178, %186 : vector<8x128xf32>
    %195 = arith.addf %193, %194 : vector<8x128xf32>
    %196 = math.tanh %195 : vector<8x128xf32>
    %197 = arith.mulf %192, %196 : vector<8x128xf32>
    %c16_i32_62 = arith.constant 16 : i32
    %198 = arith.muli %arg0, %c16_i32_62 : i32
    %c3_i32 = arith.constant 3 : i32
    %199 = arith.addi %198, %c3_i32 : i32
    %c40_i32_63 = arith.constant 40 : i32
    %200 = arith.cmpi slt, %199, %c40_i32_63 : i32
    %201 = arith.extui %200 : i1 to i32
    %202 = arith.sitofp %201 : i32 to f32
    %203 = vector.broadcast %202 : f32 to vector<8x128xf32>
    %204 = arith.mulf %203, %195 : vector<8x128xf32>
    %cst_64 = arith.constant 1.000000e+00 : f32
    %205 = arith.subf %cst_64, %202 : f32
    %206 = vector.broadcast %205 : f32 to vector<8x128xf32>
    %207 = arith.mulf %206, %158 : vector<8x128xf32>
    %208 = arith.addf %204, %207 : vector<8x128xf32>
    %209 = vector.broadcast %202 : f32 to vector<8x128xf32>
    %210 = arith.mulf %209, %197 : vector<8x128xf32>
    %cst_65 = arith.constant 1.000000e+00 : f32
    %211 = arith.subf %cst_65, %202 : f32
    %212 = vector.broadcast %211 : f32 to vector<8x128xf32>
    %213 = arith.mulf %212, %164 : vector<8x128xf32>
    %214 = arith.addf %210, %213 : vector<8x128xf32>
    %c0_66 = arith.constant 0 : index
    %c3_67 = arith.constant 3 : index
    %c0_68 = arith.constant 0 : index
    %215 = vector.load %arg7[%c0_66, %c3_67, %c0_68] : memref<8x16x128xf32, #tpu.memory_space<vmem>>, vector<8x1x128xf32>
    %216 = vector.shape_cast %215 : vector<8x1x128xf32> to vector<8x128xf32>
    %217 = vector.shape_cast %214 : vector<8x128xf32> to vector<8x1x128xf32>
    tpu.vector_store %arg7[%c0_66, %c3_67, %c0_68], %217 {strides = array<i32>} : memref<8x16x128xf32, #tpu.memory_space<vmem>>, vector<8x1x128xf32>,
    %c4 = arith.constant 4 : index
    %c0_69 = arith.constant 0 : index
    %c0_70 = arith.constant 0 : index
    %218 = vector.load %arg10[%c4, %c0_69, %c0_70] : memref<16x8x512xf32, #tpu.memory_space<vmem>>, vector<1x8x512xf32>
    %219 = vector.shape_cast %218 : vector<1x8x512xf32> to vector<8x512xf32>
    %220 = arith.truncf %214 : vector<8x128xf32> to vector<8x128xbf16>
    %cst_71 = arith.constant dense<0.000000e+00> : vector<8x512xf32>
    %221 = tpu.matmul %220, %15, %cst_71 {dimension_numbers = #tpu.dot_dimension_numbers<[1], [0], [0], [1], [0, 0, 1, 1], [], []>} : vector<8x128xbf16>, vector<128x512xbf16>, vector<8x512xf32> -> vector<8x512xf32>
    %222 = arith.addf %219, %221 : vector<8x512xf32>
    %223 = vector.extract_strided_slice %222 {offsets = [0, 0], sizes = [8, 128], strides = [1, 1]} : vector<8x512xf32> to vector<8x128xf32>
    %224 = arith.negf %223 : vector<8x128xf32>
    %225 = math.exp %224 : vector<8x128xf32>
    %cst_72 = arith.constant 1.000000e+00 : f32
    %226 = vector.broadcast %cst_72 : f32 to vector<8x128xf32>
    %227 = arith.addf %226, %225 : vector<8x128xf32>
    %228 = arith.divf %226, %227 : vector<8x128xf32>
    %229 = vector.extract_strided_slice %222 {offsets = [0, 128], sizes = [8, 128], strides = [1, 1]} : vector<8x512xf32> to vector<8x128xf32>
    %230 = arith.negf %229 : vector<8x128xf32>
    %231 = math.exp %230 : vector<8x128xf32>
    %cst_73 = arith.constant 1.000000e+00 : f32
    %232 = vector.broadcast %cst_73 : f32 to vector<8x128xf32>
    %233 = arith.addf %232, %231 : vector<8x128xf32>
    %234 = arith.divf %232, %233 : vector<8x128xf32>
    %235 = vector.extract_strided_slice %222 {offsets = [0, 256], sizes = [8, 128], strides = [1, 1]} : vector<8x512xf32> to vector<8x128xf32>
    %236 = math.tanh %235 : vector<8x128xf32>
    %237 = vector.extract_strided_slice %222 {offsets = [0, 384], sizes = [8, 128], strides = [1, 1]} : vector<8x512xf32> to vector<8x128xf32>
    %238 = arith.negf %237 : vector<8x128xf32>
    %239 = math.exp %238 : vector<8x128xf32>
    %cst_74 = arith.constant 1.000000e+00 : f32
    %240 = vector.broadcast %cst_74 : f32 to vector<8x128xf32>
    %241 = arith.addf %240, %239 : vector<8x128xf32>
    %242 = arith.divf %240, %241 : vector<8x128xf32>
    %243 = arith.mulf %234, %208 : vector<8x128xf32>
    %244 = arith.mulf %228, %236 : vector<8x128xf32>
    %245 = arith.addf %243, %244 : vector<8x128xf32>
    %246 = math.tanh %245 : vector<8x128xf32>
    %247 = arith.mulf %242, %246 : vector<8x128xf32>
    %c16_i32_75 = arith.constant 16 : i32
    %248 = arith.muli %arg0, %c16_i32_75 : i32
    %c4_i32 = arith.constant 4 : i32
    %249 = arith.addi %248, %c4_i32 : i32
    %c40_i32_76 = arith.constant 40 : i32
    %250 = arith.cmpi slt, %249, %c40_i32_76 : i32
    %251 = arith.extui %250 : i1 to i32
    %252 = arith.sitofp %251 : i32 to f32
    %253 = vector.broadcast %252 : f32 to vector<8x128xf32>
    %254 = arith.mulf %253, %245 : vector<8x128xf32>
    %cst_77 = arith.constant 1.000000e+00 : f32
    %255 = arith.subf %cst_77, %252 : f32
    %256 = vector.broadcast %255 : f32 to vector<8x128xf32>
    %257 = arith.mulf %256, %208 : vector<8x128xf32>
    %258 = arith.addf %254, %257 : vector<8x128xf32>
    %259 = vector.broadcast %252 : f32 to vector<8x128xf32>
    %260 = arith.mulf %259, %247 : vector<8x128xf32>
    %cst_78 = arith.constant 1.000000e+00 : f32
    %261 = arith.subf %cst_78, %252 : f32
    %262 = vector.broadcast %261 : f32 to vector<8x128xf32>
    %263 = arith.mulf %262, %214 : vector<8x128xf32>
    %264 = arith.addf %260, %263 : vector<8x128xf32>
    %c0_79 = arith.constant 0 : index
    %c4_80 = arith.constant 4 : index
    %c0_81 = arith.constant 0 : index
    %265 = vector.load %arg7[%c0_79, %c4_80, %c0_81] : memref<8x16x128xf32, #tpu.memory_space<vmem>>, vector<8x1x128xf32>
    %266 = vector.shape_cast %265 : vector<8x1x128xf32> to vector<8x128xf32>
    %267 = vector.shape_cast %264 : vector<8x128xf32> to vector<8x1x128xf32>
    tpu.vector_store %arg7[%c0_79, %c4_80, %c0_81], %267 {strides = array<i32>} : memref<8x16x128xf32, #tpu.memory_space<vmem>>, vector<8x1x128xf32>,
    %c5 = arith.constant 5 : index
    %c0_82 = arith.constant 0 : index
    %c0_83 = arith.constant 0 : index
    %268 = vector.load %arg10[%c5, %c0_82, %c0_83] : memref<16x8x512xf32, #tpu.memory_space<vmem>>, vector<1x8x512xf32>
    %269 = vector.shape_cast %268 : vector<1x8x512xf32> to vector<8x512xf32>
    %270 = arith.truncf %264 : vector<8x128xf32> to vector<8x128xbf16>
    %cst_84 = arith.constant dense<0.000000e+00> : vector<8x512xf32>
    %271 = tpu.matmul %270, %15, %cst_84 {dimension_numbers = #tpu.dot_dimension_numbers<[1], [0], [0], [1], [0, 0, 1, 1], [], []>} : vector<8x128xbf16>, vector<128x512xbf16>, vector<8x512xf32> -> vector<8x512xf32>
    %272 = arith.addf %269, %271 : vector<8x512xf32>
    %273 = vector.extract_strided_slice %272 {offsets = [0, 0], sizes = [8, 128], strides = [1, 1]} : vector<8x512xf32> to vector<8x128xf32>
    %274 = arith.negf %273 : vector<8x128xf32>
    %275 = math.exp %274 : vector<8x128xf32>
    %cst_85 = arith.constant 1.000000e+00 : f32
    %276 = vector.broadcast %cst_85 : f32 to vector<8x128xf32>
    %277 = arith.addf %276, %275 : vector<8x128xf32>
    %278 = arith.divf %276, %277 : vector<8x128xf32>
    %279 = vector.extract_strided_slice %272 {offsets = [0, 128], sizes = [8, 128], strides = [1, 1]} : vector<8x512xf32> to vector<8x128xf32>
    %280 = arith.negf %279 : vector<8x128xf32>
    %281 = math.exp %280 : vector<8x128xf32>
    %cst_86 = arith.constant 1.000000e+00 : f32
    %282 = vector.broadcast %cst_86 : f32 to vector<8x128xf32>
    %283 = arith.addf %282, %281 : vector<8x128xf32>
    %284 = arith.divf %282, %283 : vector<8x128xf32>
    %285 = vector.extract_strided_slice %272 {offsets = [0, 256], sizes = [8, 128], strides = [1, 1]} : vector<8x512xf32> to vector<8x128xf32>
    %286 = math.tanh %285 : vector<8x128xf32>
    %287 = vector.extract_strided_slice %272 {offsets = [0, 384], sizes = [8, 128], strides = [1, 1]} : vector<8x512xf32> to vector<8x128xf32>
    %288 = arith.negf %287 : vector<8x128xf32>
    %289 = math.exp %288 : vector<8x128xf32>
    %cst_87 = arith.constant 1.000000e+00 : f32
    %290 = vector.broadcast %cst_87 : f32 to vector<8x128xf32>
    %291 = arith.addf %290, %289 : vector<8x128xf32>
    %292 = arith.divf %290, %291 : vector<8x128xf32>
    %293 = arith.mulf %284, %258 : vector<8x128xf32>
    %294 = arith.mulf %278, %286 : vector<8x128xf32>
    %295 = arith.addf %293, %294 : vector<8x128xf32>
    %296 = math.tanh %295 : vector<8x128xf32>
    %297 = arith.mulf %292, %296 : vector<8x128xf32>
    %c16_i32_88 = arith.constant 16 : i32
    %298 = arith.muli %arg0, %c16_i32_88 : i32
    %c5_i32 = arith.constant 5 : i32
    %299 = arith.addi %298, %c5_i32 : i32
    %c40_i32_89 = arith.constant 40 : i32
    %300 = arith.cmpi slt, %299, %c40_i32_89 : i32
    %301 = arith.extui %300 : i1 to i32
    %302 = arith.sitofp %301 : i32 to f32
    %303 = vector.broadcast %302 : f32 to vector<8x128xf32>
    %304 = arith.mulf %303, %295 : vector<8x128xf32>
    %cst_90 = arith.constant 1.000000e+00 : f32
    %305 = arith.subf %cst_90, %302 : f32
    %306 = vector.broadcast %305 : f32 to vector<8x128xf32>
    %307 = arith.mulf %306, %258 : vector<8x128xf32>
    %308 = arith.addf %304, %307 : vector<8x128xf32>
    %309 = vector.broadcast %302 : f32 to vector<8x128xf32>
    %310 = arith.mulf %309, %297 : vector<8x128xf32>
    %cst_91 = arith.constant 1.000000e+00 : f32
    %311 = arith.subf %cst_91, %302 : f32
    %312 = vector.broadcast %311 : f32 to vector<8x128xf32>
    %313 = arith.mulf %312, %264 : vector<8x128xf32>
    %314 = arith.addf %310, %313 : vector<8x128xf32>
    %c0_92 = arith.constant 0 : index
    %c5_93 = arith.constant 5 : index
    %c0_94 = arith.constant 0 : index
    %315 = vector.load %arg7[%c0_92, %c5_93, %c0_94] : memref<8x16x128xf32, #tpu.memory_space<vmem>>, vector<8x1x128xf32>
    %316 = vector.shape_cast %315 : vector<8x1x128xf32> to vector<8x128xf32>
    %317 = vector.shape_cast %314 : vector<8x128xf32> to vector<8x1x128xf32>
    tpu.vector_store %arg7[%c0_92, %c5_93, %c0_94], %317 {strides = array<i32>} : memref<8x16x128xf32, #tpu.memory_space<vmem>>, vector<8x1x128xf32>,
    %c6 = arith.constant 6 : index
    %c0_95 = arith.constant 0 : index
    %c0_96 = arith.constant 0 : index
    %318 = vector.load %arg10[%c6, %c0_95, %c0_96] : memref<16x8x512xf32, #tpu.memory_space<vmem>>, vector<1x8x512xf32>
    %319 = vector.shape_cast %318 : vector<1x8x512xf32> to vector<8x512xf32>
    %320 = arith.truncf %314 : vector<8x128xf32> to vector<8x128xbf16>
    %cst_97 = arith.constant dense<0.000000e+00> : vector<8x512xf32>
    %321 = tpu.matmul %320, %15, %cst_97 {dimension_numbers = #tpu.dot_dimension_numbers<[1], [0], [0], [1], [0, 0, 1, 1], [], []>} : vector<8x128xbf16>, vector<128x512xbf16>, vector<8x512xf32> -> vector<8x512xf32>
    %322 = arith.addf %319, %321 : vector<8x512xf32>
    %323 = vector.extract_strided_slice %322 {offsets = [0, 0], sizes = [8, 128], strides = [1, 1]} : vector<8x512xf32> to vector<8x128xf32>
    %324 = arith.negf %323 : vector<8x128xf32>
    %325 = math.exp %324 : vector<8x128xf32>
    %cst_98 = arith.constant 1.000000e+00 : f32
    %326 = vector.broadcast %cst_98 : f32 to vector<8x128xf32>
    %327 = arith.addf %326, %325 : vector<8x128xf32>
    %328 = arith.divf %326, %327 : vector<8x128xf32>
    %329 = vector.extract_strided_slice %322 {offsets = [0, 128], sizes = [8, 128], strides = [1, 1]} : vector<8x512xf32> to vector<8x128xf32>
    %330 = arith.negf %329 : vector<8x128xf32>
    %331 = math.exp %330 : vector<8x128xf32>
    %cst_99 = arith.constant 1.000000e+00 : f32
    %332 = vector.broadcast %cst_99 : f32 to vector<8x128xf32>
    %333 = arith.addf %332, %331 : vector<8x128xf32>
    %334 = arith.divf %332, %333 : vector<8x128xf32>
    %335 = vector.extract_strided_slice %322 {offsets = [0, 256], sizes = [8, 128], strides = [1, 1]} : vector<8x512xf32> to vector<8x128xf32>
    %336 = math.tanh %335 : vector<8x128xf32>
    %337 = vector.extract_strided_slice %322 {offsets = [0, 384], sizes = [8, 128], strides = [1, 1]} : vector<8x512xf32> to vector<8x128xf32>
    %338 = arith.negf %337 : vector<8x128xf32>
    %339 = math.exp %338 : vector<8x128xf32>
    %cst_100 = arith.constant 1.000000e+00 : f32
    %340 = vector.broadcast %cst_100 : f32 to vector<8x128xf32>
    %341 = arith.addf %340, %339 : vector<8x128xf32>
    %342 = arith.divf %340, %341 : vector<8x128xf32>
    %343 = arith.mulf %334, %308 : vector<8x128xf32>
    %344 = arith.mulf %328, %336 : vector<8x128xf32>
    %345 = arith.addf %343, %344 : vector<8x128xf32>
    %346 = math.tanh %345 : vector<8x128xf32>
    %347 = arith.mulf %342, %346 : vector<8x128xf32>
    %c16_i32_101 = arith.constant 16 : i32
    %348 = arith.muli %arg0, %c16_i32_101 : i32
    %c6_i32 = arith.constant 6 : i32
    %349 = arith.addi %348, %c6_i32 : i32
    %c40_i32_102 = arith.constant 40 : i32
    %350 = arith.cmpi slt, %349, %c40_i32_102 : i32
    %351 = arith.extui %350 : i1 to i32
    %352 = arith.sitofp %351 : i32 to f32
    %353 = vector.broadcast %352 : f32 to vector<8x128xf32>
    %354 = arith.mulf %353, %345 : vector<8x128xf32>
    %cst_103 = arith.constant 1.000000e+00 : f32
    %355 = arith.subf %cst_103, %352 : f32
    %356 = vector.broadcast %355 : f32 to vector<8x128xf32>
    %357 = arith.mulf %356, %308 : vector<8x128xf32>
    %358 = arith.addf %354, %357 : vector<8x128xf32>
    %359 = vector.broadcast %352 : f32 to vector<8x128xf32>
    %360 = arith.mulf %359, %347 : vector<8x128xf32>
    %cst_104 = arith.constant 1.000000e+00 : f32
    %361 = arith.subf %cst_104, %352 : f32
    %362 = vector.broadcast %361 : f32 to vector<8x128xf32>
    %363 = arith.mulf %362, %314 : vector<8x128xf32>
    %364 = arith.addf %360, %363 : vector<8x128xf32>
    %c0_105 = arith.constant 0 : index
    %c6_106 = arith.constant 6 : index
    %c0_107 = arith.constant 0 : index
    %365 = vector.load %arg7[%c0_105, %c6_106, %c0_107] : memref<8x16x128xf32, #tpu.memory_space<vmem>>, vector<8x1x128xf32>
    %366 = vector.shape_cast %365 : vector<8x1x128xf32> to vector<8x128xf32>
    %367 = vector.shape_cast %364 : vector<8x128xf32> to vector<8x1x128xf32>
    tpu.vector_store %arg7[%c0_105, %c6_106, %c0_107], %367 {strides = array<i32>} : memref<8x16x128xf32, #tpu.memory_space<vmem>>, vector<8x1x128xf32>,
    %c7 = arith.constant 7 : index
    %c0_108 = arith.constant 0 : index
    %c0_109 = arith.constant 0 : index
    %368 = vector.load %arg10[%c7, %c0_108, %c0_109] : memref<16x8x512xf32, #tpu.memory_space<vmem>>, vector<1x8x512xf32>
    %369 = vector.shape_cast %368 : vector<1x8x512xf32> to vector<8x512xf32>
    %370 = arith.truncf %364 : vector<8x128xf32> to vector<8x128xbf16>
    %cst_110 = arith.constant dense<0.000000e+00> : vector<8x512xf32>
    %371 = tpu.matmul %370, %15, %cst_110 {dimension_numbers = #tpu.dot_dimension_numbers<[1], [0], [0], [1], [0, 0, 1, 1], [], []>} : vector<8x128xbf16>, vector<128x512xbf16>, vector<8x512xf32> -> vector<8x512xf32>
    %372 = arith.addf %369, %371 : vector<8x512xf32>
    %373 = vector.extract_strided_slice %372 {offsets = [0, 0], sizes = [8, 128], strides = [1, 1]} : vector<8x512xf32> to vector<8x128xf32>
    %374 = arith.negf %373 : vector<8x128xf32>
    %375 = math.exp %374 : vector<8x128xf32>
    %cst_111 = arith.constant 1.000000e+00 : f32
    %376 = vector.broadcast %cst_111 : f32 to vector<8x128xf32>
    %377 = arith.addf %376, %375 : vector<8x128xf32>
    %378 = arith.divf %376, %377 : vector<8x128xf32>
    %379 = vector.extract_strided_slice %372 {offsets = [0, 128], sizes = [8, 128], strides = [1, 1]} : vector<8x512xf32> to vector<8x128xf32>
    %380 = arith.negf %379 : vector<8x128xf32>
    %381 = math.exp %380 : vector<8x128xf32>
    %cst_112 = arith.constant 1.000000e+00 : f32
    %382 = vector.broadcast %cst_112 : f32 to vector<8x128xf32>
    %383 = arith.addf %382, %381 : vector<8x128xf32>
    %384 = arith.divf %382, %383 : vector<8x128xf32>
    %385 = vector.extract_strided_slice %372 {offsets = [0, 256], sizes = [8, 128], strides = [1, 1]} : vector<8x512xf32> to vector<8x128xf32>
    %386 = math.tanh %385 : vector<8x128xf32>
    %387 = vector.extract_strided_slice %372 {offsets = [0, 384], sizes = [8, 128], strides = [1, 1]} : vector<8x512xf32> to vector<8x128xf32>
    %388 = arith.negf %387 : vector<8x128xf32>
    %389 = math.exp %388 : vector<8x128xf32>
    %cst_113 = arith.constant 1.000000e+00 : f32
    %390 = vector.broadcast %cst_113 : f32 to vector<8x128xf32>
    %391 = arith.addf %390, %389 : vector<8x128xf32>
    %392 = arith.divf %390, %391 : vector<8x128xf32>
    %393 = arith.mulf %384, %358 : vector<8x128xf32>
    %394 = arith.mulf %378, %386 : vector<8x128xf32>
    %395 = arith.addf %393, %394 : vector<8x128xf32>
    %396 = math.tanh %395 : vector<8x128xf32>
    %397 = arith.mulf %392, %396 : vector<8x128xf32>
    %c16_i32_114 = arith.constant 16 : i32
    %398 = arith.muli %arg0, %c16_i32_114 : i32
    %c7_i32 = arith.constant 7 : i32
    %399 = arith.addi %398, %c7_i32 : i32
    %c40_i32_115 = arith.constant 40 : i32
    %400 = arith.cmpi slt, %399, %c40_i32_115 : i32
    %401 = arith.extui %400 : i1 to i32
    %402 = arith.sitofp %401 : i32 to f32
    %403 = vector.broadcast %402 : f32 to vector<8x128xf32>
    %404 = arith.mulf %403, %395 : vector<8x128xf32>
    %cst_116 = arith.constant 1.000000e+00 : f32
    %405 = arith.subf %cst_116, %402 : f32
    %406 = vector.broadcast %405 : f32 to vector<8x128xf32>
    %407 = arith.mulf %406, %358 : vector<8x128xf32>
    %408 = arith.addf %404, %407 : vector<8x128xf32>
    %409 = vector.broadcast %402 : f32 to vector<8x128xf32>
    %410 = arith.mulf %409, %397 : vector<8x128xf32>
    %cst_117 = arith.constant 1.000000e+00 : f32
    %411 = arith.subf %cst_117, %402 : f32
    %412 = vector.broadcast %411 : f32 to vector<8x128xf32>
    %413 = arith.mulf %412, %364 : vector<8x128xf32>
    %414 = arith.addf %410, %413 : vector<8x128xf32>
    %c0_118 = arith.constant 0 : index
    %c7_119 = arith.constant 7 : index
    %c0_120 = arith.constant 0 : index
    %415 = vector.load %arg7[%c0_118, %c7_119, %c0_120] : memref<8x16x128xf32, #tpu.memory_space<vmem>>, vector<8x1x128xf32>
    %416 = vector.shape_cast %415 : vector<8x1x128xf32> to vector<8x128xf32>
    %417 = vector.shape_cast %414 : vector<8x128xf32> to vector<8x1x128xf32>
    tpu.vector_store %arg7[%c0_118, %c7_119, %c0_120], %417 {strides = array<i32>} : memref<8x16x128xf32, #tpu.memory_space<vmem>>, vector<8x1x128xf32>,
    %c8 = arith.constant 8 : index
    %c0_121 = arith.constant 0 : index
    %c0_122 = arith.constant 0 : index
    %418 = vector.load %arg10[%c8, %c0_121, %c0_122] : memref<16x8x512xf32, #tpu.memory_space<vmem>>, vector<1x8x512xf32>
    %419 = vector.shape_cast %418 : vector<1x8x512xf32> to vector<8x512xf32>
    %420 = arith.truncf %414 : vector<8x128xf32> to vector<8x128xbf16>
    %cst_123 = arith.constant dense<0.000000e+00> : vector<8x512xf32>
    %421 = tpu.matmul %420, %15, %cst_123 {dimension_numbers = #tpu.dot_dimension_numbers<[1], [0], [0], [1], [0, 0, 1, 1], [], []>} : vector<8x128xbf16>, vector<128x512xbf16>, vector<8x512xf32> -> vector<8x512xf32>
    %422 = arith.addf %419, %421 : vector<8x512xf32>
    %423 = vector.extract_strided_slice %422 {offsets = [0, 0], sizes = [8, 128], strides = [1, 1]} : vector<8x512xf32> to vector<8x128xf32>
    %424 = arith.negf %423 : vector<8x128xf32>
    %425 = math.exp %424 : vector<8x128xf32>
    %cst_124 = arith.constant 1.000000e+00 : f32
    %426 = vector.broadcast %cst_124 : f32 to vector<8x128xf32>
    %427 = arith.addf %426, %425 : vector<8x128xf32>
    %428 = arith.divf %426, %427 : vector<8x128xf32>
    %429 = vector.extract_strided_slice %422 {offsets = [0, 128], sizes = [8, 128], strides = [1, 1]} : vector<8x512xf32> to vector<8x128xf32>
    %430 = arith.negf %429 : vector<8x128xf32>
    %431 = math.exp %430 : vector<8x128xf32>
    %cst_125 = arith.constant 1.000000e+00 : f32
    %432 = vector.broadcast %cst_125 : f32 to vector<8x128xf32>
    %433 = arith.addf %432, %431 : vector<8x128xf32>
    %434 = arith.divf %432, %433 : vector<8x128xf32>
    %435 = vector.extract_strided_slice %422 {offsets = [0, 256], sizes = [8, 128], strides = [1, 1]} : vector<8x512xf32> to vector<8x128xf32>
    %436 = math.tanh %435 : vector<8x128xf32>
    %437 = vector.extract_strided_slice %422 {offsets = [0, 384], sizes = [8, 128], strides = [1, 1]} : vector<8x512xf32> to vector<8x128xf32>
    %438 = arith.negf %437 : vector<8x128xf32>
    %439 = math.exp %438 : vector<8x128xf32>
    %cst_126 = arith.constant 1.000000e+00 : f32
    %440 = vector.broadcast %cst_126 : f32 to vector<8x128xf32>
    %441 = arith.addf %440, %439 : vector<8x128xf32>
    %442 = arith.divf %440, %441 : vector<8x128xf32>
    %443 = arith.mulf %434, %408 : vector<8x128xf32>
    %444 = arith.mulf %428, %436 : vector<8x128xf32>
    %445 = arith.addf %443, %444 : vector<8x128xf32>
    %446 = math.tanh %445 : vector<8x128xf32>
    %447 = arith.mulf %442, %446 : vector<8x128xf32>
    %c16_i32_127 = arith.constant 16 : i32
    %448 = arith.muli %arg0, %c16_i32_127 : i32
    %c8_i32 = arith.constant 8 : i32
    %449 = arith.addi %448, %c8_i32 : i32
    %c40_i32_128 = arith.constant 40 : i32
    %450 = arith.cmpi slt, %449, %c40_i32_128 : i32
    %451 = arith.extui %450 : i1 to i32
    %452 = arith.sitofp %451 : i32 to f32
    %453 = vector.broadcast %452 : f32 to vector<8x128xf32>
    %454 = arith.mulf %453, %445 : vector<8x128xf32>
    %cst_129 = arith.constant 1.000000e+00 : f32
    %455 = arith.subf %cst_129, %452 : f32
    %456 = vector.broadcast %455 : f32 to vector<8x128xf32>
    %457 = arith.mulf %456, %408 : vector<8x128xf32>
    %458 = arith.addf %454, %457 : vector<8x128xf32>
    %459 = vector.broadcast %452 : f32 to vector<8x128xf32>
    %460 = arith.mulf %459, %447 : vector<8x128xf32>
    %cst_130 = arith.constant 1.000000e+00 : f32
    %461 = arith.subf %cst_130, %452 : f32
    %462 = vector.broadcast %461 : f32 to vector<8x128xf32>
    %463 = arith.mulf %462, %414 : vector<8x128xf32>
    %464 = arith.addf %460, %463 : vector<8x128xf32>
    %c0_131 = arith.constant 0 : index
    %c8_132 = arith.constant 8 : index
    %c0_133 = arith.constant 0 : index
    %465 = vector.load %arg7[%c0_131, %c8_132, %c0_133] : memref<8x16x128xf32, #tpu.memory_space<vmem>>, vector<8x1x128xf32>
    %466 = vector.shape_cast %465 : vector<8x1x128xf32> to vector<8x128xf32>
    %467 = vector.shape_cast %464 : vector<8x128xf32> to vector<8x1x128xf32>
    tpu.vector_store %arg7[%c0_131, %c8_132, %c0_133], %467 {strides = array<i32>} : memref<8x16x128xf32, #tpu.memory_space<vmem>>, vector<8x1x128xf32>,
    %c9 = arith.constant 9 : index
    %c0_134 = arith.constant 0 : index
    %c0_135 = arith.constant 0 : index
    %468 = vector.load %arg10[%c9, %c0_134, %c0_135] : memref<16x8x512xf32, #tpu.memory_space<vmem>>, vector<1x8x512xf32>
    %469 = vector.shape_cast %468 : vector<1x8x512xf32> to vector<8x512xf32>
    %470 = arith.truncf %464 : vector<8x128xf32> to vector<8x128xbf16>
    %cst_136 = arith.constant dense<0.000000e+00> : vector<8x512xf32>
    %471 = tpu.matmul %470, %15, %cst_136 {dimension_numbers = #tpu.dot_dimension_numbers<[1], [0], [0], [1], [0, 0, 1, 1], [], []>} : vector<8x128xbf16>, vector<128x512xbf16>, vector<8x512xf32> -> vector<8x512xf32>
    %472 = arith.addf %469, %471 : vector<8x512xf32>
    %473 = vector.extract_strided_slice %472 {offsets = [0, 0], sizes = [8, 128], strides = [1, 1]} : vector<8x512xf32> to vector<8x128xf32>
    %474 = arith.negf %473 : vector<8x128xf32>
    %475 = math.exp %474 : vector<8x128xf32>
    %cst_137 = arith.constant 1.000000e+00 : f32
    %476 = vector.broadcast %cst_137 : f32 to vector<8x128xf32>
    %477 = arith.addf %476, %475 : vector<8x128xf32>
    %478 = arith.divf %476, %477 : vector<8x128xf32>
    %479 = vector.extract_strided_slice %472 {offsets = [0, 128], sizes = [8, 128], strides = [1, 1]} : vector<8x512xf32> to vector<8x128xf32>
    %480 = arith.negf %479 : vector<8x128xf32>
    %481 = math.exp %480 : vector<8x128xf32>
    %cst_138 = arith.constant 1.000000e+00 : f32
    %482 = vector.broadcast %cst_138 : f32 to vector<8x128xf32>
    %483 = arith.addf %482, %481 : vector<8x128xf32>
    %484 = arith.divf %482, %483 : vector<8x128xf32>
    %485 = vector.extract_strided_slice %472 {offsets = [0, 256], sizes = [8, 128], strides = [1, 1]} : vector<8x512xf32> to vector<8x128xf32>
    %486 = math.tanh %485 : vector<8x128xf32>
    %487 = vector.extract_strided_slice %472 {offsets = [0, 384], sizes = [8, 128], strides = [1, 1]} : vector<8x512xf32> to vector<8x128xf32>
    %488 = arith.negf %487 : vector<8x128xf32>
    %489 = math.exp %488 : vector<8x128xf32>
    %cst_139 = arith.constant 1.000000e+00 : f32
    %490 = vector.broadcast %cst_139 : f32 to vector<8x128xf32>
    %491 = arith.addf %490, %489 : vector<8x128xf32>
    %492 = arith.divf %490, %491 : vector<8x128xf32>
    %493 = arith.mulf %484, %458 : vector<8x128xf32>
    %494 = arith.mulf %478, %486 : vector<8x128xf32>
    %495 = arith.addf %493, %494 : vector<8x128xf32>
    %496 = math.tanh %495 : vector<8x128xf32>
    %497 = arith.mulf %492, %496 : vector<8x128xf32>
    %c16_i32_140 = arith.constant 16 : i32
    %498 = arith.muli %arg0, %c16_i32_140 : i32
    %c9_i32 = arith.constant 9 : i32
    %499 = arith.addi %498, %c9_i32 : i32
    %c40_i32_141 = arith.constant 40 : i32
    %500 = arith.cmpi slt, %499, %c40_i32_141 : i32
    %501 = arith.extui %500 : i1 to i32
    %502 = arith.sitofp %501 : i32 to f32
    %503 = vector.broadcast %502 : f32 to vector<8x128xf32>
    %504 = arith.mulf %503, %495 : vector<8x128xf32>
    %cst_142 = arith.constant 1.000000e+00 : f32
    %505 = arith.subf %cst_142, %502 : f32
    %506 = vector.broadcast %505 : f32 to vector<8x128xf32>
    %507 = arith.mulf %506, %458 : vector<8x128xf32>
    %508 = arith.addf %504, %507 : vector<8x128xf32>
    %509 = vector.broadcast %502 : f32 to vector<8x128xf32>
    %510 = arith.mulf %509, %497 : vector<8x128xf32>
    %cst_143 = arith.constant 1.000000e+00 : f32
    %511 = arith.subf %cst_143, %502 : f32
    %512 = vector.broadcast %511 : f32 to vector<8x128xf32>
    %513 = arith.mulf %512, %464 : vector<8x128xf32>
    %514 = arith.addf %510, %513 : vector<8x128xf32>
    %c0_144 = arith.constant 0 : index
    %c9_145 = arith.constant 9 : index
    %c0_146 = arith.constant 0 : index
    %515 = vector.load %arg7[%c0_144, %c9_145, %c0_146] : memref<8x16x128xf32, #tpu.memory_space<vmem>>, vector<8x1x128xf32>
    %516 = vector.shape_cast %515 : vector<8x1x128xf32> to vector<8x128xf32>
    %517 = vector.shape_cast %514 : vector<8x128xf32> to vector<8x1x128xf32>
    tpu.vector_store %arg7[%c0_144, %c9_145, %c0_146], %517 {strides = array<i32>} : memref<8x16x128xf32, #tpu.memory_space<vmem>>, vector<8x1x128xf32>,
    %c10 = arith.constant 10 : index
    %c0_147 = arith.constant 0 : index
    %c0_148 = arith.constant 0 : index
    %518 = vector.load %arg10[%c10, %c0_147, %c0_148] : memref<16x8x512xf32, #tpu.memory_space<vmem>>, vector<1x8x512xf32>
    %519 = vector.shape_cast %518 : vector<1x8x512xf32> to vector<8x512xf32>
    %520 = arith.truncf %514 : vector<8x128xf32> to vector<8x128xbf16>
    %cst_149 = arith.constant dense<0.000000e+00> : vector<8x512xf32>
    %521 = tpu.matmul %520, %15, %cst_149 {dimension_numbers = #tpu.dot_dimension_numbers<[1], [0], [0], [1], [0, 0, 1, 1], [], []>} : vector<8x128xbf16>, vector<128x512xbf16>, vector<8x512xf32> -> vector<8x512xf32>
    %522 = arith.addf %519, %521 : vector<8x512xf32>
    %523 = vector.extract_strided_slice %522 {offsets = [0, 0], sizes = [8, 128], strides = [1, 1]} : vector<8x512xf32> to vector<8x128xf32>
    %524 = arith.negf %523 : vector<8x128xf32>
    %525 = math.exp %524 : vector<8x128xf32>
    %cst_150 = arith.constant 1.000000e+00 : f32
    %526 = vector.broadcast %cst_150 : f32 to vector<8x128xf32>
    %527 = arith.addf %526, %525 : vector<8x128xf32>
    %528 = arith.divf %526, %527 : vector<8x128xf32>
    %529 = vector.extract_strided_slice %522 {offsets = [0, 128], sizes = [8, 128], strides = [1, 1]} : vector<8x512xf32> to vector<8x128xf32>
    %530 = arith.negf %529 : vector<8x128xf32>
    %531 = math.exp %530 : vector<8x128xf32>
    %cst_151 = arith.constant 1.000000e+00 : f32
    %532 = vector.broadcast %cst_151 : f32 to vector<8x128xf32>
    %533 = arith.addf %532, %531 : vector<8x128xf32>
    %534 = arith.divf %532, %533 : vector<8x128xf32>
    %535 = vector.extract_strided_slice %522 {offsets = [0, 256], sizes = [8, 128], strides = [1, 1]} : vector<8x512xf32> to vector<8x128xf32>
    %536 = math.tanh %535 : vector<8x128xf32>
    %537 = vector.extract_strided_slice %522 {offsets = [0, 384], sizes = [8, 128], strides = [1, 1]} : vector<8x512xf32> to vector<8x128xf32>
    %538 = arith.negf %537 : vector<8x128xf32>
    %539 = math.exp %538 : vector<8x128xf32>
    %cst_152 = arith.constant 1.000000e+00 : f32
    %540 = vector.broadcast %cst_152 : f32 to vector<8x128xf32>
    %541 = arith.addf %540, %539 : vector<8x128xf32>
    %542 = arith.divf %540, %541 : vector<8x128xf32>
    %543 = arith.mulf %534, %508 : vector<8x128xf32>
    %544 = arith.mulf %528, %536 : vector<8x128xf32>
    %545 = arith.addf %543, %544 : vector<8x128xf32>
    %546 = math.tanh %545 : vector<8x128xf32>
    %547 = arith.mulf %542, %546 : vector<8x128xf32>
    %c16_i32_153 = arith.constant 16 : i32
    %548 = arith.muli %arg0, %c16_i32_153 : i32
    %c10_i32 = arith.constant 10 : i32
    %549 = arith.addi %548, %c10_i32 : i32
    %c40_i32_154 = arith.constant 40 : i32
    %550 = arith.cmpi slt, %549, %c40_i32_154 : i32
    %551 = arith.extui %550 : i1 to i32
    %552 = arith.sitofp %551 : i32 to f32
    %553 = vector.broadcast %552 : f32 to vector<8x128xf32>
    %554 = arith.mulf %553, %545 : vector<8x128xf32>
    %cst_155 = arith.constant 1.000000e+00 : f32
    %555 = arith.subf %cst_155, %552 : f32
    %556 = vector.broadcast %555 : f32 to vector<8x128xf32>
    %557 = arith.mulf %556, %508 : vector<8x128xf32>
    %558 = arith.addf %554, %557 : vector<8x128xf32>
    %559 = vector.broadcast %552 : f32 to vector<8x128xf32>
    %560 = arith.mulf %559, %547 : vector<8x128xf32>
    %cst_156 = arith.constant 1.000000e+00 : f32
    %561 = arith.subf %cst_156, %552 : f32
    %562 = vector.broadcast %561 : f32 to vector<8x128xf32>
    %563 = arith.mulf %562, %514 : vector<8x128xf32>
    %564 = arith.addf %560, %563 : vector<8x128xf32>
    %c0_157 = arith.constant 0 : index
    %c10_158 = arith.constant 10 : index
    %c0_159 = arith.constant 0 : index
    %565 = vector.load %arg7[%c0_157, %c10_158, %c0_159] : memref<8x16x128xf32, #tpu.memory_space<vmem>>, vector<8x1x128xf32>
    %566 = vector.shape_cast %565 : vector<8x1x128xf32> to vector<8x128xf32>
    %567 = vector.shape_cast %564 : vector<8x128xf32> to vector<8x1x128xf32>
    tpu.vector_store %arg7[%c0_157, %c10_158, %c0_159], %567 {strides = array<i32>} : memref<8x16x128xf32, #tpu.memory_space<vmem>>, vector<8x1x128xf32>,
    %c11 = arith.constant 11 : index
    %c0_160 = arith.constant 0 : index
    %c0_161 = arith.constant 0 : index
    %568 = vector.load %arg10[%c11, %c0_160, %c0_161] : memref<16x8x512xf32, #tpu.memory_space<vmem>>, vector<1x8x512xf32>
    %569 = vector.shape_cast %568 : vector<1x8x512xf32> to vector<8x512xf32>
    %570 = arith.truncf %564 : vector<8x128xf32> to vector<8x128xbf16>
    %cst_162 = arith.constant dense<0.000000e+00> : vector<8x512xf32>
    %571 = tpu.matmul %570, %15, %cst_162 {dimension_numbers = #tpu.dot_dimension_numbers<[1], [0], [0], [1], [0, 0, 1, 1], [], []>} : vector<8x128xbf16>, vector<128x512xbf16>, vector<8x512xf32> -> vector<8x512xf32>
    %572 = arith.addf %569, %571 : vector<8x512xf32>
    %573 = vector.extract_strided_slice %572 {offsets = [0, 0], sizes = [8, 128], strides = [1, 1]} : vector<8x512xf32> to vector<8x128xf32>
    %574 = arith.negf %573 : vector<8x128xf32>
    %575 = math.exp %574 : vector<8x128xf32>
    %cst_163 = arith.constant 1.000000e+00 : f32
    %576 = vector.broadcast %cst_163 : f32 to vector<8x128xf32>
    %577 = arith.addf %576, %575 : vector<8x128xf32>
    %578 = arith.divf %576, %577 : vector<8x128xf32>
    %579 = vector.extract_strided_slice %572 {offsets = [0, 128], sizes = [8, 128], strides = [1, 1]} : vector<8x512xf32> to vector<8x128xf32>
    %580 = arith.negf %579 : vector<8x128xf32>
    %581 = math.exp %580 : vector<8x128xf32>
    %cst_164 = arith.constant 1.000000e+00 : f32
    %582 = vector.broadcast %cst_164 : f32 to vector<8x128xf32>
    %583 = arith.addf %582, %581 : vector<8x128xf32>
    %584 = arith.divf %582, %583 : vector<8x128xf32>
    %585 = vector.extract_strided_slice %572 {offsets = [0, 256], sizes = [8, 128], strides = [1, 1]} : vector<8x512xf32> to vector<8x128xf32>
    %586 = math.tanh %585 : vector<8x128xf32>
    %587 = vector.extract_strided_slice %572 {offsets = [0, 384], sizes = [8, 128], strides = [1, 1]} : vector<8x512xf32> to vector<8x128xf32>
    %588 = arith.negf %587 : vector<8x128xf32>
    %589 = math.exp %588 : vector<8x128xf32>
    %cst_165 = arith.constant 1.000000e+00 : f32
    %590 = vector.broadcast %cst_165 : f32 to vector<8x128xf32>
    %591 = arith.addf %590, %589 : vector<8x128xf32>
    %592 = arith.divf %590, %591 : vector<8x128xf32>
    %593 = arith.mulf %584, %558 : vector<8x128xf32>
    %594 = arith.mulf %578, %586 : vector<8x128xf32>
    %595 = arith.addf %593, %594 : vector<8x128xf32>
    %596 = math.tanh %595 : vector<8x128xf32>
    %597 = arith.mulf %592, %596 : vector<8x128xf32>
    %c16_i32_166 = arith.constant 16 : i32
    %598 = arith.muli %arg0, %c16_i32_166 : i32
    %c11_i32 = arith.constant 11 : i32
    %599 = arith.addi %598, %c11_i32 : i32
    %c40_i32_167 = arith.constant 40 : i32
    %600 = arith.cmpi slt, %599, %c40_i32_167 : i32
    %601 = arith.extui %600 : i1 to i32
    %602 = arith.sitofp %601 : i32 to f32
    %603 = vector.broadcast %602 : f32 to vector<8x128xf32>
    %604 = arith.mulf %603, %595 : vector<8x128xf32>
    %cst_168 = arith.constant 1.000000e+00 : f32
    %605 = arith.subf %cst_168, %602 : f32
    %606 = vector.broadcast %605 : f32 to vector<8x128xf32>
    %607 = arith.mulf %606, %558 : vector<8x128xf32>
    %608 = arith.addf %604, %607 : vector<8x128xf32>
    %609 = vector.broadcast %602 : f32 to vector<8x128xf32>
    %610 = arith.mulf %609, %597 : vector<8x128xf32>
    %cst_169 = arith.constant 1.000000e+00 : f32
    %611 = arith.subf %cst_169, %602 : f32
    %612 = vector.broadcast %611 : f32 to vector<8x128xf32>
    %613 = arith.mulf %612, %564 : vector<8x128xf32>
    %614 = arith.addf %610, %613 : vector<8x128xf32>
    %c0_170 = arith.constant 0 : index
    %c11_171 = arith.constant 11 : index
    %c0_172 = arith.constant 0 : index
    %615 = vector.load %arg7[%c0_170, %c11_171, %c0_172] : memref<8x16x128xf32, #tpu.memory_space<vmem>>, vector<8x1x128xf32>
    %616 = vector.shape_cast %615 : vector<8x1x128xf32> to vector<8x128xf32>
    %617 = vector.shape_cast %614 : vector<8x128xf32> to vector<8x1x128xf32>
    tpu.vector_store %arg7[%c0_170, %c11_171, %c0_172], %617 {strides = array<i32>} : memref<8x16x128xf32, #tpu.memory_space<vmem>>, vector<8x1x128xf32>,
    %c12 = arith.constant 12 : index
    %c0_173 = arith.constant 0 : index
    %c0_174 = arith.constant 0 : index
    %618 = vector.load %arg10[%c12, %c0_173, %c0_174] : memref<16x8x512xf32, #tpu.memory_space<vmem>>, vector<1x8x512xf32>
    %619 = vector.shape_cast %618 : vector<1x8x512xf32> to vector<8x512xf32>
    %620 = arith.truncf %614 : vector<8x128xf32> to vector<8x128xbf16>
    %cst_175 = arith.constant dense<0.000000e+00> : vector<8x512xf32>
    %621 = tpu.matmul %620, %15, %cst_175 {dimension_numbers = #tpu.dot_dimension_numbers<[1], [0], [0], [1], [0, 0, 1, 1], [], []>} : vector<8x128xbf16>, vector<128x512xbf16>, vector<8x512xf32> -> vector<8x512xf32>
    %622 = arith.addf %619, %621 : vector<8x512xf32>
    %623 = vector.extract_strided_slice %622 {offsets = [0, 0], sizes = [8, 128], strides = [1, 1]} : vector<8x512xf32> to vector<8x128xf32>
    %624 = arith.negf %623 : vector<8x128xf32>
    %625 = math.exp %624 : vector<8x128xf32>
    %cst_176 = arith.constant 1.000000e+00 : f32
    %626 = vector.broadcast %cst_176 : f32 to vector<8x128xf32>
    %627 = arith.addf %626, %625 : vector<8x128xf32>
    %628 = arith.divf %626, %627 : vector<8x128xf32>
    %629 = vector.extract_strided_slice %622 {offsets = [0, 128], sizes = [8, 128], strides = [1, 1]} : vector<8x512xf32> to vector<8x128xf32>
    %630 = arith.negf %629 : vector<8x128xf32>
    %631 = math.exp %630 : vector<8x128xf32>
    %cst_177 = arith.constant 1.000000e+00 : f32
    %632 = vector.broadcast %cst_177 : f32 to vector<8x128xf32>
    %633 = arith.addf %632, %631 : vector<8x128xf32>
    %634 = arith.divf %632, %633 : vector<8x128xf32>
    %635 = vector.extract_strided_slice %622 {offsets = [0, 256], sizes = [8, 128], strides = [1, 1]} : vector<8x512xf32> to vector<8x128xf32>
    %636 = math.tanh %635 : vector<8x128xf32>
    %637 = vector.extract_strided_slice %622 {offsets = [0, 384], sizes = [8, 128], strides = [1, 1]} : vector<8x512xf32> to vector<8x128xf32>
    %638 = arith.negf %637 : vector<8x128xf32>
    %639 = math.exp %638 : vector<8x128xf32>
    %cst_178 = arith.constant 1.000000e+00 : f32
    %640 = vector.broadcast %cst_178 : f32 to vector<8x128xf32>
    %641 = arith.addf %640, %639 : vector<8x128xf32>
    %642 = arith.divf %640, %641 : vector<8x128xf32>
    %643 = arith.mulf %634, %608 : vector<8x128xf32>
    %644 = arith.mulf %628, %636 : vector<8x128xf32>
    %645 = arith.addf %643, %644 : vector<8x128xf32>
    %646 = math.tanh %645 : vector<8x128xf32>
    %647 = arith.mulf %642, %646 : vector<8x128xf32>
    %c16_i32_179 = arith.constant 16 : i32
    %648 = arith.muli %arg0, %c16_i32_179 : i32
    %c12_i32 = arith.constant 12 : i32
    %649 = arith.addi %648, %c12_i32 : i32
    %c40_i32_180 = arith.constant 40 : i32
    %650 = arith.cmpi slt, %649, %c40_i32_180 : i32
    %651 = arith.extui %650 : i1 to i32
    %652 = arith.sitofp %651 : i32 to f32
    %653 = vector.broadcast %652 : f32 to vector<8x128xf32>
    %654 = arith.mulf %653, %645 : vector<8x128xf32>
    %cst_181 = arith.constant 1.000000e+00 : f32
    %655 = arith.subf %cst_181, %652 : f32
    %656 = vector.broadcast %655 : f32 to vector<8x128xf32>
    %657 = arith.mulf %656, %608 : vector<8x128xf32>
    %658 = arith.addf %654, %657 : vector<8x128xf32>
    %659 = vector.broadcast %652 : f32 to vector<8x128xf32>
    %660 = arith.mulf %659, %647 : vector<8x128xf32>
    %cst_182 = arith.constant 1.000000e+00 : f32
    %661 = arith.subf %cst_182, %652 : f32
    %662 = vector.broadcast %661 : f32 to vector<8x128xf32>
    %663 = arith.mulf %662, %614 : vector<8x128xf32>
    %664 = arith.addf %660, %663 : vector<8x128xf32>
    %c0_183 = arith.constant 0 : index
    %c12_184 = arith.constant 12 : index
    %c0_185 = arith.constant 0 : index
    %665 = vector.load %arg7[%c0_183, %c12_184, %c0_185] : memref<8x16x128xf32, #tpu.memory_space<vmem>>, vector<8x1x128xf32>
    %666 = vector.shape_cast %665 : vector<8x1x128xf32> to vector<8x128xf32>
    %667 = vector.shape_cast %664 : vector<8x128xf32> to vector<8x1x128xf32>
    tpu.vector_store %arg7[%c0_183, %c12_184, %c0_185], %667 {strides = array<i32>} : memref<8x16x128xf32, #tpu.memory_space<vmem>>, vector<8x1x128xf32>,
    %c13 = arith.constant 13 : index
    %c0_186 = arith.constant 0 : index
    %c0_187 = arith.constant 0 : index
    %668 = vector.load %arg10[%c13, %c0_186, %c0_187] : memref<16x8x512xf32, #tpu.memory_space<vmem>>, vector<1x8x512xf32>
    %669 = vector.shape_cast %668 : vector<1x8x512xf32> to vector<8x512xf32>
    %670 = arith.truncf %664 : vector<8x128xf32> to vector<8x128xbf16>
    %cst_188 = arith.constant dense<0.000000e+00> : vector<8x512xf32>
    %671 = tpu.matmul %670, %15, %cst_188 {dimension_numbers = #tpu.dot_dimension_numbers<[1], [0], [0], [1], [0, 0, 1, 1], [], []>} : vector<8x128xbf16>, vector<128x512xbf16>, vector<8x512xf32> -> vector<8x512xf32>
    %672 = arith.addf %669, %671 : vector<8x512xf32>
    %673 = vector.extract_strided_slice %672 {offsets = [0, 0], sizes = [8, 128], strides = [1, 1]} : vector<8x512xf32> to vector<8x128xf32>
    %674 = arith.negf %673 : vector<8x128xf32>
    %675 = math.exp %674 : vector<8x128xf32>
    %cst_189 = arith.constant 1.000000e+00 : f32
    %676 = vector.broadcast %cst_189 : f32 to vector<8x128xf32>
    %677 = arith.addf %676, %675 : vector<8x128xf32>
    %678 = arith.divf %676, %677 : vector<8x128xf32>
    %679 = vector.extract_strided_slice %672 {offsets = [0, 128], sizes = [8, 128], strides = [1, 1]} : vector<8x512xf32> to vector<8x128xf32>
    %680 = arith.negf %679 : vector<8x128xf32>
    %681 = math.exp %680 : vector<8x128xf32>
    %cst_190 = arith.constant 1.000000e+00 : f32
    %682 = vector.broadcast %cst_190 : f32 to vector<8x128xf32>
    %683 = arith.addf %682, %681 : vector<8x128xf32>
    %684 = arith.divf %682, %683 : vector<8x128xf32>
    %685 = vector.extract_strided_slice %672 {offsets = [0, 256], sizes = [8, 128], strides = [1, 1]} : vector<8x512xf32> to vector<8x128xf32>
    %686 = math.tanh %685 : vector<8x128xf32>
    %687 = vector.extract_strided_slice %672 {offsets = [0, 384], sizes = [8, 128], strides = [1, 1]} : vector<8x512xf32> to vector<8x128xf32>
    %688 = arith.negf %687 : vector<8x128xf32>
    %689 = math.exp %688 : vector<8x128xf32>
    %cst_191 = arith.constant 1.000000e+00 : f32
    %690 = vector.broadcast %cst_191 : f32 to vector<8x128xf32>
    %691 = arith.addf %690, %689 : vector<8x128xf32>
    %692 = arith.divf %690, %691 : vector<8x128xf32>
    %693 = arith.mulf %684, %658 : vector<8x128xf32>
    %694 = arith.mulf %678, %686 : vector<8x128xf32>
    %695 = arith.addf %693, %694 : vector<8x128xf32>
    %696 = math.tanh %695 : vector<8x128xf32>
    %697 = arith.mulf %692, %696 : vector<8x128xf32>
    %c16_i32_192 = arith.constant 16 : i32
    %698 = arith.muli %arg0, %c16_i32_192 : i32
    %c13_i32 = arith.constant 13 : i32
    %699 = arith.addi %698, %c13_i32 : i32
    %c40_i32_193 = arith.constant 40 : i32
    %700 = arith.cmpi slt, %699, %c40_i32_193 : i32
    %701 = arith.extui %700 : i1 to i32
    %702 = arith.sitofp %701 : i32 to f32
    %703 = vector.broadcast %702 : f32 to vector<8x128xf32>
    %704 = arith.mulf %703, %695 : vector<8x128xf32>
    %cst_194 = arith.constant 1.000000e+00 : f32
    %705 = arith.subf %cst_194, %702 : f32
    %706 = vector.broadcast %705 : f32 to vector<8x128xf32>
    %707 = arith.mulf %706, %658 : vector<8x128xf32>
    %708 = arith.addf %704, %707 : vector<8x128xf32>
    %709 = vector.broadcast %702 : f32 to vector<8x128xf32>
    %710 = arith.mulf %709, %697 : vector<8x128xf32>
    %cst_195 = arith.constant 1.000000e+00 : f32
    %711 = arith.subf %cst_195, %702 : f32
    %712 = vector.broadcast %711 : f32 to vector<8x128xf32>
    %713 = arith.mulf %712, %664 : vector<8x128xf32>
    %714 = arith.addf %710, %713 : vector<8x128xf32>
    %c0_196 = arith.constant 0 : index
    %c13_197 = arith.constant 13 : index
    %c0_198 = arith.constant 0 : index
    %715 = vector.load %arg7[%c0_196, %c13_197, %c0_198] : memref<8x16x128xf32, #tpu.memory_space<vmem>>, vector<8x1x128xf32>
    %716 = vector.shape_cast %715 : vector<8x1x128xf32> to vector<8x128xf32>
    %717 = vector.shape_cast %714 : vector<8x128xf32> to vector<8x1x128xf32>
    tpu.vector_store %arg7[%c0_196, %c13_197, %c0_198], %717 {strides = array<i32>} : memref<8x16x128xf32, #tpu.memory_space<vmem>>, vector<8x1x128xf32>,
    %c14 = arith.constant 14 : index
    %c0_199 = arith.constant 0 : index
    %c0_200 = arith.constant 0 : index
    %718 = vector.load %arg10[%c14, %c0_199, %c0_200] : memref<16x8x512xf32, #tpu.memory_space<vmem>>, vector<1x8x512xf32>
    %719 = vector.shape_cast %718 : vector<1x8x512xf32> to vector<8x512xf32>
    %720 = arith.truncf %714 : vector<8x128xf32> to vector<8x128xbf16>
    %cst_201 = arith.constant dense<0.000000e+00> : vector<8x512xf32>
    %721 = tpu.matmul %720, %15, %cst_201 {dimension_numbers = #tpu.dot_dimension_numbers<[1], [0], [0], [1], [0, 0, 1, 1], [], []>} : vector<8x128xbf16>, vector<128x512xbf16>, vector<8x512xf32> -> vector<8x512xf32>
    %722 = arith.addf %719, %721 : vector<8x512xf32>
    %723 = vector.extract_strided_slice %722 {offsets = [0, 0], sizes = [8, 128], strides = [1, 1]} : vector<8x512xf32> to vector<8x128xf32>
    %724 = arith.negf %723 : vector<8x128xf32>
    %725 = math.exp %724 : vector<8x128xf32>
    %cst_202 = arith.constant 1.000000e+00 : f32
    %726 = vector.broadcast %cst_202 : f32 to vector<8x128xf32>
    %727 = arith.addf %726, %725 : vector<8x128xf32>
    %728 = arith.divf %726, %727 : vector<8x128xf32>
    %729 = vector.extract_strided_slice %722 {offsets = [0, 128], sizes = [8, 128], strides = [1, 1]} : vector<8x512xf32> to vector<8x128xf32>
    %730 = arith.negf %729 : vector<8x128xf32>
    %731 = math.exp %730 : vector<8x128xf32>
    %cst_203 = arith.constant 1.000000e+00 : f32
    %732 = vector.broadcast %cst_203 : f32 to vector<8x128xf32>
    %733 = arith.addf %732, %731 : vector<8x128xf32>
    %734 = arith.divf %732, %733 : vector<8x128xf32>
    %735 = vector.extract_strided_slice %722 {offsets = [0, 256], sizes = [8, 128], strides = [1, 1]} : vector<8x512xf32> to vector<8x128xf32>
    %736 = math.tanh %735 : vector<8x128xf32>
    %737 = vector.extract_strided_slice %722 {offsets = [0, 384], sizes = [8, 128], strides = [1, 1]} : vector<8x512xf32> to vector<8x128xf32>
    %738 = arith.negf %737 : vector<8x128xf32>
    %739 = math.exp %738 : vector<8x128xf32>
    %cst_204 = arith.constant 1.000000e+00 : f32
    %740 = vector.broadcast %cst_204 : f32 to vector<8x128xf32>
    %741 = arith.addf %740, %739 : vector<8x128xf32>
    %742 = arith.divf %740, %741 : vector<8x128xf32>
    %743 = arith.mulf %734, %708 : vector<8x128xf32>
    %744 = arith.mulf %728, %736 : vector<8x128xf32>
    %745 = arith.addf %743, %744 : vector<8x128xf32>
    %746 = math.tanh %745 : vector<8x128xf32>
    %747 = arith.mulf %742, %746 : vector<8x128xf32>
    %c16_i32_205 = arith.constant 16 : i32
    %748 = arith.muli %arg0, %c16_i32_205 : i32
    %c14_i32 = arith.constant 14 : i32
    %749 = arith.addi %748, %c14_i32 : i32
    %c40_i32_206 = arith.constant 40 : i32
    %750 = arith.cmpi slt, %749, %c40_i32_206 : i32
    %751 = arith.extui %750 : i1 to i32
    %752 = arith.sitofp %751 : i32 to f32
    %753 = vector.broadcast %752 : f32 to vector<8x128xf32>
    %754 = arith.mulf %753, %745 : vector<8x128xf32>
    %cst_207 = arith.constant 1.000000e+00 : f32
    %755 = arith.subf %cst_207, %752 : f32
    %756 = vector.broadcast %755 : f32 to vector<8x128xf32>
    %757 = arith.mulf %756, %708 : vector<8x128xf32>
    %758 = arith.addf %754, %757 : vector<8x128xf32>
    %759 = vector.broadcast %752 : f32 to vector<8x128xf32>
    %760 = arith.mulf %759, %747 : vector<8x128xf32>
    %cst_208 = arith.constant 1.000000e+00 : f32
    %761 = arith.subf %cst_208, %752 : f32
    %762 = vector.broadcast %761 : f32 to vector<8x128xf32>
    %763 = arith.mulf %762, %714 : vector<8x128xf32>
    %764 = arith.addf %760, %763 : vector<8x128xf32>
    %c0_209 = arith.constant 0 : index
    %c14_210 = arith.constant 14 : index
    %c0_211 = arith.constant 0 : index
    %765 = vector.load %arg7[%c0_209, %c14_210, %c0_211] : memref<8x16x128xf32, #tpu.memory_space<vmem>>, vector<8x1x128xf32>
    %766 = vector.shape_cast %765 : vector<8x1x128xf32> to vector<8x128xf32>
    %767 = vector.shape_cast %764 : vector<8x128xf32> to vector<8x1x128xf32>
    tpu.vector_store %arg7[%c0_209, %c14_210, %c0_211], %767 {strides = array<i32>} : memref<8x16x128xf32, #tpu.memory_space<vmem>>, vector<8x1x128xf32>,
    %c15 = arith.constant 15 : index
    %c0_212 = arith.constant 0 : index
    %c0_213 = arith.constant 0 : index
    %768 = vector.load %arg10[%c15, %c0_212, %c0_213] : memref<16x8x512xf32, #tpu.memory_space<vmem>>, vector<1x8x512xf32>
    %769 = vector.shape_cast %768 : vector<1x8x512xf32> to vector<8x512xf32>
    %770 = arith.truncf %764 : vector<8x128xf32> to vector<8x128xbf16>
    %cst_214 = arith.constant dense<0.000000e+00> : vector<8x512xf32>
    %771 = tpu.matmul %770, %15, %cst_214 {dimension_numbers = #tpu.dot_dimension_numbers<[1], [0], [0], [1], [0, 0, 1, 1], [], []>} : vector<8x128xbf16>, vector<128x512xbf16>, vector<8x512xf32> -> vector<8x512xf32>
    %772 = arith.addf %769, %771 : vector<8x512xf32>
    %773 = vector.extract_strided_slice %772 {offsets = [0, 0], sizes = [8, 128], strides = [1, 1]} : vector<8x512xf32> to vector<8x128xf32>
    %774 = arith.negf %773 : vector<8x128xf32>
    %775 = math.exp %774 : vector<8x128xf32>
    %cst_215 = arith.constant 1.000000e+00 : f32
    %776 = vector.broadcast %cst_215 : f32 to vector<8x128xf32>
    %777 = arith.addf %776, %775 : vector<8x128xf32>
    %778 = arith.divf %776, %777 : vector<8x128xf32>
    %779 = vector.extract_strided_slice %772 {offsets = [0, 128], sizes = [8, 128], strides = [1, 1]} : vector<8x512xf32> to vector<8x128xf32>
    %780 = arith.negf %779 : vector<8x128xf32>
    %781 = math.exp %780 : vector<8x128xf32>
    %cst_216 = arith.constant 1.000000e+00 : f32
    %782 = vector.broadcast %cst_216 : f32 to vector<8x128xf32>
    %783 = arith.addf %782, %781 : vector<8x128xf32>
    %784 = arith.divf %782, %783 : vector<8x128xf32>
    %785 = vector.extract_strided_slice %772 {offsets = [0, 256], sizes = [8, 128], strides = [1, 1]} : vector<8x512xf32> to vector<8x128xf32>
    %786 = math.tanh %785 : vector<8x128xf32>
    %787 = vector.extract_strided_slice %772 {offsets = [0, 384], sizes = [8, 128], strides = [1, 1]} : vector<8x512xf32> to vector<8x128xf32>
    %788 = arith.negf %787 : vector<8x128xf32>
    %789 = math.exp %788 : vector<8x128xf32>
    %cst_217 = arith.constant 1.000000e+00 : f32
    %790 = vector.broadcast %cst_217 : f32 to vector<8x128xf32>
    %791 = arith.addf %790, %789 : vector<8x128xf32>
    %792 = arith.divf %790, %791 : vector<8x128xf32>
    %793 = arith.mulf %784, %758 : vector<8x128xf32>
    %794 = arith.mulf %778, %786 : vector<8x128xf32>
    %795 = arith.addf %793, %794 : vector<8x128xf32>
    %796 = math.tanh %795 : vector<8x128xf32>
    %797 = arith.mulf %792, %796 : vector<8x128xf32>
    %c16_i32_218 = arith.constant 16 : i32
    %798 = arith.muli %arg0, %c16_i32_218 : i32
    %c15_i32 = arith.constant 15 : i32
    %799 = arith.addi %798, %c15_i32 : i32
    %c40_i32_219 = arith.constant 40 : i32
    %800 = arith.cmpi slt, %799, %c40_i32_219 : i32
    %801 = arith.extui %800 : i1 to i32
    %802 = arith.sitofp %801 : i32 to f32
    %803 = vector.broadcast %802 : f32 to vector<8x128xf32>
    %804 = arith.mulf %803, %795 : vector<8x128xf32>
    %cst_220 = arith.constant 1.000000e+00 : f32
    %805 = arith.subf %cst_220, %802 : f32
    %806 = vector.broadcast %805 : f32 to vector<8x128xf32>
    %807 = arith.mulf %806, %758 : vector<8x128xf32>
    %808 = arith.addf %804, %807 : vector<8x128xf32>
    %809 = vector.broadcast %802 : f32 to vector<8x128xf32>
    %810 = arith.mulf %809, %797 : vector<8x128xf32>
    %cst_221 = arith.constant 1.000000e+00 : f32
    %811 = arith.subf %cst_221, %802 : f32
    %812 = vector.broadcast %811 : f32 to vector<8x128xf32>
    %813 = arith.mulf %812, %764 : vector<8x128xf32>
    %814 = arith.addf %810, %813 : vector<8x128xf32>
    %c0_222 = arith.constant 0 : index
    %c15_223 = arith.constant 15 : index
    %c0_224 = arith.constant 0 : index
    %815 = vector.load %arg7[%c0_222, %c15_223, %c0_224] : memref<8x16x128xf32, #tpu.memory_space<vmem>>, vector<8x1x128xf32>
    %816 = vector.shape_cast %815 : vector<8x1x128xf32> to vector<8x128xf32>
    %817 = vector.shape_cast %814 : vector<8x128xf32> to vector<8x1x128xf32>
    tpu.vector_store %arg7[%c0_222, %c15_223, %c0_224], %817 {strides = array<i32>} : memref<8x16x128xf32, #tpu.memory_space<vmem>>, vector<8x1x128xf32>,
    %c0_225 = arith.constant 0 : index
    %c0_226 = arith.constant 0 : index
    %818 = vector.load %arg8[%c0_225, %c0_226] : memref<8x128xf32, #tpu.memory_space<vmem>>, vector<8x128xf32>
    tpu.vector_store %arg8[%c0_225, %c0_226], %814 {strides = array<i32>} : memref<8x128xf32, #tpu.memory_space<vmem>>, vector<8x128xf32>,
    %c0_227 = arith.constant 0 : index
    %c0_228 = arith.constant 0 : index
    %819 = vector.load %arg9[%c0_227, %c0_228] : memref<8x128xf32, #tpu.memory_space<vmem>>, vector<8x128xf32>
    tpu.vector_store %arg9[%c0_227, %c0_228], %808 {strides = array<i32>} : memref<8x128xf32, #tpu.memory_space<vmem>>, vector<8x128xf32>,
    return
  }
  func.func @transform_0(%arg0: i32) -> (i32, i32, i32) {
    %c0_i32 = arith.constant 0 : i32
    %c0_i32_0 = arith.constant 0 : i32
    %c0_i32_1 = arith.constant 0 : i32
    return %arg0, %c0_i32, %c0_i32_0 : i32, i32, i32
  }
  func.func @transform_1(%arg0: i32) -> (i32, i32) {
    %c0_i32 = arith.constant 0 : i32
    %c0_i32_0 = arith.constant 0 : i32
    %c0_i32_1 = arith.constant 0 : i32
    return %c0_i32, %c0_i32_0 : i32, i32
  }
  func.func @transform_2(%arg0: i32) -> (i32, i32) {
    %c0_i32 = arith.constant 0 : i32
    %c0_i32_0 = arith.constant 0 : i32
    %c0_i32_1 = arith.constant 0 : i32
    return %c0_i32, %c0_i32_0 : i32, i32
  }
  func.func @transform_3(%arg0: i32) -> (i32, i32) {
    %c0_i32 = arith.constant 0 : i32
    %c0_i32_0 = arith.constant 0 : i32
    %c0_i32_1 = arith.constant 0 : i32
    return %c0_i32, %c0_i32_0 : i32, i32
  }
  func.func @transform_4(%arg0: i32) -> (i32, i32) {
    %c0_i32 = arith.constant 0 : i32
    %c0_i32_0 = arith.constant 0 : i32
    %c0_i32_1 = arith.constant 0 : i32
    return %c0_i32, %c0_i32_0 : i32, i32
  }
  func.func @transform_5(%arg0: i32) -> (i32, i32) {
    %c0_i32 = arith.constant 0 : i32
    %c0_i32_0 = arith.constant 0 : i32
    %c0_i32_1 = arith.constant 0 : i32
    return %c0_i32, %c0_i32_0 : i32, i32
  }
  func.func @transform_6(%arg0: i32) -> (i32, i32, i32) {
    %c0_i32 = arith.constant 0 : i32
    %c0_i32_0 = arith.constant 0 : i32
    %c0_i32_1 = arith.constant 0 : i32
    return %c0_i32, %arg0, %c0_i32_0 : i32, i32, i32
  }
  func.func @transform_7(%arg0: i32) -> (i32, i32) {
    %c0_i32 = arith.constant 0 : i32
    %c0_i32_0 = arith.constant 0 : i32
    %c0_i32_1 = arith.constant 0 : i32
    return %c0_i32, %c0_i32_0 : i32, i32
  }
  func.func @transform_8(%arg0: i32) -> (i32, i32) {
    %c0_i32 = arith.constant 0 : i32
    %c0_i32_0 = arith.constant 0 : i32
    %c0_i32_1 = arith.constant 0 : i32
    return %c0_i32, %c0_i32_0 : i32, i32
  }
}

</mosaic_0001>

<bundles_post_ra>
// kernel: tpu_custom_call.1
= control target key start
LH: loop header
LB: loop body
LE: loop exit
PB: predicated region body
PF: predicated region fallthrough
CT: control target
= control target key end

     0   :  { %s7262_s0 = inlined_call_operand.hbm [shape: f32[48,8,128], index: 0, kind: input, shape index: {}]   ;;  %s7263_s1 = inlined_call_operand.hbm [shape: f32[8,128], index: 1, kind: input, shape index: {}]   ;;  %s7264_s2 = inlined_call_operand.hbm [shape: f32[8,128], index: 2, kind: input, shape index: {}]   ;;  %s7265_s3 = inlined_call_operand.hbm [shape: bf16[128,512], index: 3, kind: input, shape index: {}]   ;;  %s7266_s4 = inlined_call_operand.hbm [shape: bf16[128,512], index: 4, kind: input, shape index: {}]   ;;  %s7267_s5 = inlined_call_operand.vmem [shape: f32[1,512], index: 5, kind: input, shape index: {}]   ;;  %s7268_s6 = inlined_call_operand.hbm [shape: f32[8,48,128], index: 6, kind: output, shape index: {0}]   ;;  %s7269_s7 = inlined_call_operand.hbm [shape: f32[8,128], index: 7, kind: output, shape index: {1}]   ;;  %s7270_s8 = inlined_call_operand.hbm [shape: f32[8,128], index: 8, kind: output, shape index: {2}]  }
   0x1   :  { %7277 = sst [smem:[#allocation75_spill]] %s7263_s1 }
   0x2   :  { %7278 = sst [smem:[#allocation76_spill]] %s7264_s2 }
   0x3   :  { %14 = vsyncpa [#allocation4], 0 }
   0x4   :  { %16 = vsyncpa [#allocation4 + $0x1], 0 }
   0x5   :  { %17 = vsyncpa [#allocation7], 0 }
   0x6   :  { %18 = vsyncpa [#allocation10], 0 }
   0x7   :  { %19 = vsyncpa [#allocation5], 0 }
   0x8   :  { %21 = vsyncpa [#allocation5 + $0x1], 0 }
   0x9   :  { %22 = vsyncpa [#allocation14], 0  ;;  %s5506_s27 = smov 0   ;;  %s5508_s28 = smov 0  }
   0xa   :  { %s5510_s29 = smov 0   ;;  %s5512_s30 = smov 0  }
   0xb LB: > { %s5527_s9 = sadd.s32 4294967295, %s5439_s30   ;;  %s4435_s10 = sadd.s32 4294967294, %s5439_s30   ;;  %s5439_s30 = sphi %s5512_s30, %s7411_s30   ;;  %s5435_s29 = sphi %s5510_s29, %s7410_s29   ;;  %s5431_s28 = sphi %s5508_s28, %s7409_s28   ;;  %s5427_s27 = sphi %s5506_s27, %s7408_s27  }
   0xc   : > { %p48_p0 = scmp.ne.s32.totalorder %s5431_s28, %s5427_s27  ;;  %p7271_p1 = scmp.eq.s32.totalorder %s5527_s9, 0 }
   0xd   : > { %p183_p3 = scmp.eq.s32.totalorder %s4435_s10, 2  ;;  %p4436_p5 = scmp.ge.s32.totalorder %s5439_s30, 1 }
   0xe   : > { %p5536_p4 = por %p7271_p1, %p48_p0  ;;  %p232_p7 = scmp.lt.s32.totalorder %s5439_s30, 4 }
   0xf   : > { %p5541_p6 = por %p183_p3, %p48_p0  ;;  %s5441_s14 = smov [#allocation6]  }
  0x10   : > { %s7279_s11 = scalar_select %p5536_p4, 1, 0 }
  0x11   : > { %s7280_s12 = scalar_select %p5541_p6, 1, 0 }
  0x12   : > { %p5547_p9 = pnand %p4436_p5, %p232_p7  ;;  %s245_s15 = sshll.u32 %s5441_s14, 4  ;;  %s246_s15 = int_to_ptr.vmem [resolvable:$true] %s245_s15 }
  0x13   : > { %s5442_s16 = smov [#allocation9]   ;;  %s5443_s19 = smov [#allocation8]  }
  0x14   : > { %s7281_s13 = scalar_select %p5547_p9, 1, 0 }
  0x15   : > { %p4675_p10 = pneg %p5547_p9  ;;  %s266_s17 = sshll.u32 %s5442_s16, 4  ;;  %s267_s17 = int_to_ptr.vmem [resolvable:$true] %s266_s17 }
  0x16   : > { %s256_s20 = sshll.u32 %s5443_s19, 4  ;;  %s5220_s21 = scalar_lea.vmem %s246_s15, 128  ;;  %s257_s20 = int_to_ptr.vmem [resolvable:$true] %s256_s20 }
  0x17   : > { %p5555_p11 = pnand %p4675_p10, %p7271_p1  ;;  %p5221_p13 = scmp.ne.s32.totalorder %s246_s15, %s5220_s21 }
  0x18   : > { %p5228_p5 = scmp.lt.s32.totalorder %s246_s15, %s246_s15  ;;  %p5229_p7 = scmp.lt.s32.totalorder %s5220_s21, %s5220_s21 }
  0x19   : > { %p5211_p12 = pneg %p5555_p11 }
  0x1a   : > { %p5230_p8 = por %p5229_p7, %p5228_p5 }
  0x1b   : > { %p5223_p0 = pnand %p5221_p13, %p5211_p12 }
  0x1d   : > { %p5224_p3 = pneg %p5223_p0 }
  0x1f   : > { %p5231_p10 = pnand %p5230_p8, %p5224_p3 }
  0x21   : > { %5234 = shalt.err (!%p5231_p10)
}
  0x22   : > { %s7283_s1 = sld [smem:[#allocation75_spill]]  ;;  %s5246_s24 = scalar_lea.vmem %s267_s17, 4096 }
  0x23   : > { %p5247_p1 = scmp.ne.s32.totalorder %s267_s17, %s5246_s24  ;;  %p5254_p13 = scmp.lt.s32.totalorder %s267_s17, %s267_s17 }
  0x24   : > { %p5255_p0 = scmp.lt.s32.totalorder %s5246_s24, %s5246_s24 }
  0x25   : > { %p5249_p2 = pnand %p5247_p1, %p5211_p12 }
  0x26   : > { %p5256_p4 = por %p5255_p0, %p5254_p13 }
  0x27   : > { %p5250_p6 = pneg %p5249_p2 }
  0x28   : > { %4678 = dma.hbm_to_vmem [thread:$0]  (!%p5555_p11), %s7283_s1, 128, %s246_s15, [#allocation7]  }
  0x29   : > { %p5257_p9 = pnand %p5256_p4, %p5250_p6 }
  0x2b   : > { %5260 = shalt.err (!%p5257_p9)
}
  0x2c   : > { %s5444_s25 = smov 256   ;;  %s5445_s26 = smov 16  }
  0x2d   : > { %4684 = dma.hbm_to_vmem [thread:$0]  (!%p5555_p11), %s7265_s3, 4096, %s267_s17, [#allocation10], %s5444_s25, %s5444_s25, %s5445_s26  }
  0x2e   : > { %s5272_s15 = scalar_lea.vmem %s257_s20, 128  ;;  %p5280_p3 = scmp.lt.s32.totalorder %s257_s20, %s257_s20 }
  0x2f   : > { %p5273_p8 = scmp.ne.s32.totalorder %s257_s20, %s5272_s15  ;;  %p5281_p5 = scmp.lt.s32.totalorder %s5272_s15, %s5272_s15 }
  0x31   : > { %p5275_p1 = pnand %p5273_p8, %p5211_p12  ;;  %p5282_p4 = por %p5281_p5, %p5280_p3 }
  0x33   : > { %p5276_p2 = pneg %p5275_p1 }
  0x35   : > { %p5283_p6 = pnand %p5282_p4, %p5276_p2 }
  0x37   : > { %5286 = shalt.err (!%p5283_p6)
}
  0x38   : > { %s7284_s2 = sld [smem:[#allocation76_spill]]  ;;  %s5446_s17 = smov [#allocation11]  }
  0x39   : > { %s279_s21 = sshll.u32 %s5446_s17, 4  ;;  %s280_s21 = int_to_ptr.vmem [resolvable:$true] %s279_s21 }
  0x3a   : > { %s5298_s22 = scalar_lea.vmem %s280_s21, 4096  ;;  %p5306_p13 = scmp.lt.s32.totalorder %s280_s21, %s280_s21 }
  0x3b   : > { %p5299_p9 = scmp.ne.s32.totalorder %s280_s21, %s5298_s22  ;;  %p5307_p0 = scmp.lt.s32.totalorder %s5298_s22, %s5298_s22 }
  0x3d   : > { %p5301_p7 = pnand %p5299_p9, %p5211_p12  ;;  %p5308_p8 = por %p5307_p0, %p5306_p13 }
  0x3e   : > { %4681 = dma.hbm_to_vmem [thread:$0]  (!%p5555_p11), %s7284_s2, 128, %s257_s20, [#allocation7]  }
  0x3f   : > { %p5302_p10 = pneg %p5301_p7 }
  0x41   : > { %p5309_p1 = pnand %p5308_p8, %p5302_p10 }
  0x43   : > { %5312 = shalt.err (!%p5309_p1)
}
  0x44   : > { %4687 = dma.hbm_to_vmem [thread:$0]  (!%p5555_p11), %s7266_s4, 4096, %s280_s21, [#allocation10], %s5444_s25, %s5444_s25, %s5445_s26  }
  0x45   : > { %s5594_s20 = sadd.s32 1, %s5439_s30   ;;  %s35_s10 = sadd.s32 1, %s5435_s29 }
  0x46   : > { %s32_s18 = ssub.s32 %s5439_s30, %s5594_s20  ;;  %p42_p12 = scmp.ne.s32.totalorder %s5435_s29, %s5431_s28 }
  0x47   : > { %p33_p2 = scmp.eq.s32.totalorder %s32_s18, 0  ;;  %p43_p3 = scmp.eq.s32.totalorder %s5439_s30, 0 }
  0x48   : > { %p7285_p5 = scmp.eq.s32.totalorder %s5527_s9, 2  ;;  %p4700_p6 = scmp.lt.s32.totalorder %s5439_s30, 3 }
  0x49   : > { %s5610_s15 = scalar_select %p33_p2, %s5435_s29, %s35_s10  }
  0x4a   : > { %p5604_p4 = por %p7285_p5, %p42_p12  ;;  %p44_p9 = por %p43_p3, %p42_p12 }
  0x4b   : > { %s296_s16 = sand.u32 1, %s5435_s29   ;;  %s4639_s25 = sshll.u32 %s5439_s30, 11 }
  0x4c   : > { %s7286_s14 = scalar_select %p5604_p4, 1, 0 }
  0x4d   : > { %s4442_s19 = sshll.u32 %s296_s16, 7  ;;  %s5617_s21 = scalar_lea.hbm %s7262_s0, %s4639_s25 }
  0x4e   : > { %s300_s22 = scalar_lea.vmem [#allocation3], %s4442_s19  ;;  %p5621_p11 = pnand %p4700_p6, %p44_p9 }
  0x4f   : > { %s307_s23 = sshll.u32 %s300_s22, 4  ;;  %s5625_s10 = scalar_lea.sflag [#allocation4], %s296_s16  ;;  %s5619_s23 = int_to_ptr.vmem [resolvable:$true] %s307_s23 }
  0x50   : > { %s5313_s18 = scalar_lea.hbm %s5617_s21, 2048  ;;  %p5315_p10 = pneg %p5621_p11 }
  0x51   : > { %p5314_p7 = scmp.ne.s32.totalorder %s5617_s21, %s5313_s18  ;;  %s5318_s19 = scalar_lea.hbm %s7262_s0, 6144 }
  0x52   : > { %p5319_p8 = scmp.lt.s32.totalorder %s5617_s21, %s7262_s0  ;;  %p5320_p1 = scmp.lt.s32.totalorder %s5318_s19, %s5313_s18 }
  0x53   : > { %p5316_p13 = pnand %p5315_p10, %p5314_p7 }
  0x54   : > { %p5321_p12 = por %p5320_p1, %p5319_p8 }
  0x55   : > { %p5317_p0 = pneg %p5316_p13 }
  0x57   : > { %p5322_p2 = pnand %p5321_p12, %p5317_p0 }
  0x59   : > { %5325 = shalt.err (!%p5322_p2)
}
  0x5a   : > { %s5326_s16 = scalar_lea.vmem %s5619_s23, 2048  ;;  %s5447_s1 = smov [#allocation3]  }
  0x5b   : > { %p5327_p3 = scmp.ne.s32.totalorder %s5619_s23, %s5326_s16  ;;  %s5331_s2 = sshll.u32 %s5447_s1, 4  ;;  %s5332_s2 = int_to_ptr.vmem [resolvable:$false] %s5331_s2 }
  0x5c   : > { %s5333_s25 = scalar_lea.vmem %s5332_s2, 4096  ;;  %p5334_p9 = scmp.lt.s32.totalorder %s5619_s23, %s5332_s2 }
  0x5d   : > { %p5329_p5 = pnand %p5327_p3, %p5315_p10  ;;  %p5335_p7 = scmp.lt.s32.totalorder %s5333_s25, %s5326_s16 }
  0x5f   : > { %p5330_p6 = pneg %p5329_p5  ;;  %p5336_p13 = por %p5335_p7, %p5334_p9 }
  0x61   : > { %p5337_p4 = pnand %p5336_p13, %p5330_p6 }
  0x63   : > { %5340 = shalt.err (!%p5337_p4)
}
  0x64   : > { %s5448_s18 = smov 128   ;;  %s5449_s26 = smov 8  }
  0x65   : > { %4691 = dma.hbm_to_vmem [thread:$0]  (!%p5621_p11), %s5617_s21, 2048, %s5619_s23, %s5625_s10, %s5448_s18, %s5448_s18, %s5449_s26  }
  0x66   : > { %p7288_p10 = scmp.ne.s32.totalorder %s7281_s13, 0 }
  0x68   : > { %319 = sbr.rel (%p7288_p10) target bundleno = 4355 (0x1103), region = 44 }
  0x6d   : > { %s5649_s1 = sand.u32 1, %s5431_s28   ;;  %p7289_p4 = scmp.ne.s32.totalorder %s7279_s11, 0 }
  0x6e   : > { %s4446_s2 = sshll.u32 %s5649_s1, 7  ;;  %s322_s19 = scalar_lea.sflag [#allocation4], %s5649_s1 }
  0x6f   : > { %s5653_s17 = scalar_lea.vmem [#allocation3], %s4446_s2 }
  0x70   : > { %5406 = dma.done.wait (%p7289_p4), %s322_s19, 2048  }
  0x71   : > { %5408 = vsyncadd (%p7289_p4), %s322_s19, 4294965248  ;;  %p7290_p11 = scmp.eq.s32.totalorder %s5527_s9, 0 }
  0x73   : > { %5410 = dma.done.wait (%p7290_p11), [#allocation7], 256   ;;  %p7291_p0 = pmov %p7290_p11 }
  0x75   : > { %5412 = vsyncadd (%p7291_p0), [#allocation7], 4294967040  ;;  %p7292_p8 = pmov %p7291_p0 }
  0x76   : > { %p7293_p1 = pmov %p7291_p0 }
  0x77   : > { %5414 = dma.done.wait (%p7292_p8), [#allocation10], 8192  }
  0x78   : > { %5416 = vsyncadd (%p7293_p1), [#allocation10], 4294959104  ;;  %s5667_s13 = scalar_lea.vmem [#allocation12], %s4446_s2  ;;  %p7294_p12 = scmp.ne.s32.totalorder %s5527_s9, 0 }
  0x7a   : > { %380 = sbr.rel (%p7294_p12) target bundleno = 129 (0x81), region = 68 }
  0x7f   : > { %v381_v0 = vld [vmem:[#allocation6] sm:$0xff]  ;;  %v383_v1 = vld [vmem:[#allocation8] sm:$0xff] }
  0x80   : > { %382 = vst [vmem:[#allocation13] sm:$0xff] %v381_v0  ;;  %384 = vst [vmem:[#allocation15] sm:$0xff] %v383_v1 }
  0x81 PF: > { %v4761_v2 = vld [vmem:[#allocation9 + $0xe4] ss:$16 sps:$4 sm:$0xff]   ;;  %v4763_v3 = vld [vmem:[#allocation9 + $0xec] ss:$16 sps:$4 sm:$0xff]   ;;  %v7275_v4 = vmov 0   ;;  %s6055_s23 = sshll.u32 %s5527_s9, 4 }
  0x82   : > { %671 = vmatprep.mubr.bf16.mxu0 %v7275_v4  ;;  %784 = vmatprep.mubr.bf16.mxu1 %v7275_v4  ;;  %v4765_v5 = vld [vmem:[#allocation9 + $0xe0] ss:$16 sps:$4 sm:$0xff]   ;;  %v4766_v6 = vld [vmem:[#allocation9 + $0xe8] ss:$16 sps:$4 sm:$0xff]   ;;  %v4767_v7 = vld [vmem:[#allocation9 + $0xc4] ss:$16 sps:$4 sm:$0xff]  }
  0x83   : > { %639 = vmatprep.subr.bf16.mxu0 %v4761_v2  ;;  %752 = vmatprep.subr.bf16.mxu1 %v4763_v3  ;;  %v4769_v8 = vld [vmem:[#allocation9 + $0xcc] ss:$16 sps:$4 sm:$0xff]   ;;  %v4771_v9 = vld [vmem:[#allocation9 + $0xc0] ss:$16 sps:$4 sm:$0xff]   ;;  %v4772_v10 = vld [vmem:[#allocation9 + $0xc8] ss:$16 sps:$4 sm:$0xff]  }
  0x84   : > { %640 = vmatpush1.bf16.msra.mxu0 %v4765_v5  ;;  %753 = vmatpush1.bf16.msra.mxu1 %v4766_v6  ;;  %v4773_v11 = vld [vmem:[#allocation9 + $0xa4] ss:$16 sps:$4 sm:$0xff]   ;;  %v4775_v12 = vld [vmem:[#allocation9 + $0xac] ss:$16 sps:$4 sm:$0xff]   ;;  %v4777_v13 = vld [vmem:[#allocation9 + $0xa0] ss:$16 sps:$4 sm:$0xff]  }
  0x85   : > { %641 = vmatprep.subr.bf16.mxu0 %v4767_v7  ;;  %754 = vmatprep.subr.bf16.mxu1 %v4769_v8  ;;  %v4778_v14 = vld [vmem:[#allocation9 + $0xa8] ss:$16 sps:$4 sm:$0xff]   ;;  %v4779_v15 = vld [vmem:[#allocation9 + $0x84] ss:$16 sps:$4 sm:$0xff]   ;;  %v4781_v16 = vld [vmem:[#allocation9 + $0x8c] ss:$16 sps:$4 sm:$0xff]  }
  0x86   : > { %v4783_v17 = vld [vmem:[#allocation9 + $0x80] ss:$16 sps:$4 sm:$0xff]   ;;  %v4784_v18 = vld [vmem:[#allocation9 + $0x88] ss:$16 sps:$4 sm:$0xff]   ;;  %v4785_v19 = vld [vmem:[#allocation9 + $0x64] ss:$16 sps:$4 sm:$0xff]  }
  0x87   : > { %v4787_v20 = vld [vmem:[#allocation9 + $0x6c] ss:$16 sps:$4 sm:$0xff]   ;;  %v4789_v21 = vld [vmem:[#allocation9 + $0x60] ss:$16 sps:$4 sm:$0xff]   ;;  %v4790_v22 = vld [vmem:[#allocation9 + $0x68] ss:$16 sps:$4 sm:$0xff]  }
  0x88   : > { %642 = vmatpush1.bf16.msra.mxu0 %v4771_v9  ;;  %755 = vmatpush1.bf16.msra.mxu1 %v4772_v10  ;;  %v4791_v23 = vld [vmem:[#allocation9 + $0x44] ss:$16 sps:$4 sm:$0xff]   ;;  %v4793_v24 = vld [vmem:[#allocation9 + $0x4c] ss:$16 sps:$4 sm:$0xff]   ;;  %v4795_v25 = vld [vmem:[#allocation9 + $0x40] ss:$16 sps:$4 sm:$0xff]  }
  0x89   : > { %643 = vmatprep.subr.bf16.mxu0 %v4773_v11  ;;  %756 = vmatprep.subr.bf16.mxu1 %v4775_v12  ;;  %v4796_v26 = vld [vmem:[#allocation9 + $0x48] ss:$16 sps:$4 sm:$0xff]   ;;  %v4797_v27 = vld [vmem:[#allocation9 + $0x24] ss:$16 sps:$4 sm:$0xff]   ;;  %v4799_v28 = vld [vmem:[#allocation9 + $0x2c] ss:$16 sps:$4 sm:$0xff]  }
  0x8a   : > { %v4801_v29 = vld [vmem:[#allocation9 + $0x20] ss:$16 sps:$4 sm:$0xff]   ;;  %v4802_v30 = vld [vmem:[#allocation9 + $0x28] ss:$16 sps:$4 sm:$0xff]   ;;  %v4803_v33 = vld [vmem:[#allocation9 + $0x4] ss:$16 sps:$4 sm:$0xff]  }
  0x8b   : > { %v385_v31 = vld [vmem:[%s5653_s17] sm:$0xff]  ;;  %v386_v32 = vld [vmem:[%s5653_s17 + $0x8] sm:$0xff]  ;;  %v387_v43 = vld [vmem:[%s5653_s17 + $0x10] sm:$0xff]  ;;  %p1239_p2 = scmp.lt.s32.totalorder %s6055_s23, 40  ;;  %s1433_s16 = sadd.s32 1, %s6055_s23 }
  0x8c   : > { %644 = vmatpush1.bf16.msra.mxu0 %v4777_v13  ;;  %757 = vmatpush1.bf16.msra.mxu1 %v4778_v14  ;;  %v4805_v34 = vld [vmem:[#allocation9 + $0xc] ss:$16 sps:$4 sm:$0xff]   ;;  %v401_v35 = vmax.f32 %v385_v31, 0.0  ;;  %v402_v36 = vmax.f32 %v386_v32, 0.0  ;;  %v4807_v37 = vld [vmem:[#allocation9] ss:$16 sps:$4 sm:$0xff]  }
  0x8d   : > { %645 = vmatprep.subr.bf16.mxu0 %v4779_v15  ;;  %758 = vmatprep.subr.bf16.mxu1 %v4781_v16  ;;  %v4808_v38 = vld [vmem:[#allocation9 + $0x8] ss:$16 sps:$4 sm:$0xff]   ;;  %v5675_v39 = vld [vmem:[#allocation11 + $0xe4] ss:$16 sps:$4 sm:$0xff]   ;;  %v5677_v40 = vld [vmem:[#allocation11 + $0xec] ss:$16 sps:$4 sm:$0xff]  }
  0x8e   : > { %v417_v41 = vpack.c.bf16 %v402_v36, %v401_v35  ;;  %v5679_v42 = vld [vmem:[#allocation11 + $0xe0] ss:$16 sps:$4 sm:$0xff]   ;;  %v388_v44 = vld [vmem:[%s5653_s17 + $0x18] sm:$0xff]  ;;  %v5684_v45 = vld [vmem:[#allocation11 + $0xc4] ss:$16 sps:$4 sm:$0xff]   ;;  %v403_v47 = vmax.f32 %v387_v43, 0.0 }
  0x8f   : > { %v5687_v46 = vld [vmem:[#allocation11 + $0xe8] ss:$16 sps:$4 sm:$0xff]   ;;  %v404_v48 = vmax.f32 %v388_v44, 0.0  ;;  %v5689_v49 = vld [vmem:[#allocation11 + $0xcc] ss:$16 sps:$4 sm:$0xff]   ;;  %v389_v54 = vld [vmem:[%s5653_s17 + $0x20] sm:$0xff] }
  0x90   : > { %646 = vmatpush1.bf16.msra.mxu0 %v4783_v17  ;;  %759 = vmatpush1.bf16.msra.mxu1 %v4784_v18  ;;  %v5693_v50 = vld [vmem:[#allocation11 + $0xc0] ss:$16 sps:$4 sm:$0xff]   ;;  %v5697_v51 = vld [vmem:[#allocation11 + $0xa4] ss:$16 sps:$4 sm:$0xff]   ;;  %v5700_v52 = vld [vmem:[#allocation11 + $0xc8] ss:$16 sps:$4 sm:$0xff]  }
  0x91   : > { %647 = vmatprep.subr.bf16.mxu0 %v4785_v19  ;;  %760 = vmatprep.subr.bf16.mxu1 %v4787_v20  ;;  %v418_v53 = vpack.c.bf16 %v404_v48, %v403_v47  ;;  %v390_v55 = vld [vmem:[%s5653_s17 + $0x28] sm:$0xff]  ;;  %v5707_v56 = vld [vmem:[#allocation11 + $0xa0] ss:$16 sps:$4 sm:$0xff]   ;;  %v5709_v57 = vld [vmem:[#allocation11 + $0x84] ss:$16 sps:$4 sm:$0xff]   ;;  %v405_v60 = vmax.f32 %v389_v54, 0.0 }
  0x92   : > { %v5711_v58 = vld [vmem:[#allocation11 + $0xac] ss:$16 sps:$4 sm:$0xff]   ;;  %v5714_v59 = vld [vmem:[#allocation11 + $0xa8] ss:$16 sps:$4 sm:$0xff]   ;;  %v406_v61 = vmax.f32 %v390_v55, 0.0  ;;  %v391_v3 = vld [vmem:[%s5653_s17 + $0x30] sm:$0xff]  ;;  %v459_v55 = vlaneseq }
  0x93   : > { %v5716_v62 = vld [vmem:[#allocation11 + $0x8c] ss:$16 sps:$4 sm:$0xff]   ;;  %v5721_v63 = vld [vmem:[#allocation11 + $0x80] ss:$16 sps:$4 sm:$0xff]   ;;  %v5725_v0 = vld [vmem:[#allocation11 + $0x64] ss:$16 sps:$4 sm:$0xff]  }
  0x94   : > { %648 = vmatpush1.bf16.msra.mxu0 %v4789_v21  ;;  %761 = vmatpush1.bf16.msra.mxu1 %v4790_v22  ;;  %v5728_v1 = vld [vmem:[#allocation11 + $0x88] ss:$16 sps:$4 sm:$0xff]   ;;  %v419_v2 = vpack.c.bf16 %v406_v61, %v405_v60  ;;  %v5734_v6 = vld [vmem:[#allocation11 + $0x60] ss:$16 sps:$4 sm:$0xff]   ;;  %v5736_v7 = vld [vmem:[#allocation11 + $0x6c] ss:$16 sps:$4 sm:$0xff]  }
  0x95   : > { %649 = vmatprep.subr.bf16.mxu0 %v4791_v23  ;;  %762 = vmatprep.subr.bf16.mxu1 %v4793_v24  ;;  %v392_v5 = vld [vmem:[%s5653_s17 + $0x38] sm:$0xff]  ;;  %v5739_v8 = vld [vmem:[#allocation11 + $0x44] ss:$16 sps:$4 sm:$0xff]   ;;  %v407_v10 = vmax.f32 %v391_v3, 0.0  ;;  %v5749_v13 = vld [vmem:[#allocation11 + $0x40] ss:$16 sps:$4 sm:$0xff]  }
  0x96   : > { %v5742_v9 = vld [vmem:[#allocation11 + $0x68] ss:$16 sps:$4 sm:$0xff]   ;;  %v408_v11 = vmax.f32 %v392_v5, 0.0  ;;  %v5744_v12 = vld [vmem:[#allocation11 + $0x4c] ss:$16 sps:$4 sm:$0xff]   ;;  %v393_v17 = vld [vmem:[%s5653_s17 + $0x40] sm:$0xff] }
  0x97   : > { %v5753_v14 = vld [vmem:[#allocation11 + $0x24] ss:$16 sps:$4 sm:$0xff]   ;;  %v5756_v15 = vld [vmem:[#allocation11 + $0x48] ss:$16 sps:$4 sm:$0xff]   ;;  %v5762_v19 = vld [vmem:[#allocation11 + $0x20] ss:$16 sps:$4 sm:$0xff]  }
  0x98   : > { %650 = vmatpush1.bf16.msra.mxu0 %v4795_v25  ;;  %763 = vmatpush1.bf16.msra.mxu1 %v4796_v26  ;;  %v420_v16 = vpack.c.bf16 %v408_v11, %v407_v10  ;;  %v394_v18 = vld [vmem:[%s5653_s17 + $0x48] sm:$0xff]  ;;  %v5768_v21 = vld [vmem:[#allocation11 + $0x4] ss:$16 sps:$4 sm:$0xff]   ;;  %v409_v23 = vmax.f32 %v393_v17, 0.0  ;;  %v5778_v26 = vld [vmem:[#allocation11] ss:$16 sps:$4 sm:$0xff]  }
  0x99   : > { %651 = vmatprep.subr.bf16.mxu0 %v4797_v27  ;;  %764 = vmatprep.subr.bf16.mxu1 %v4799_v28  ;;  %v5764_v20 = vld [vmem:[#allocation11 + $0x2c] ss:$16 sps:$4 sm:$0xff]   ;;  %v5770_v22 = vld [vmem:[#allocation11 + $0x28] ss:$16 sps:$4 sm:$0xff]   ;;  %v410_v24 = vmax.f32 %v394_v18, 0.0  ;;  %v5841_v60 = vshrl.u32 %v459_v55, 7 }
  0x9a   : > { %v5772_v25 = vld [vmem:[#allocation11 + $0xc] ss:$16 sps:$4 sm:$0xff]   ;;  %v5782_v27 = vld [vmem:[#allocation11 + $0x8] ss:$16 sps:$4 sm:$0xff]   ;;  %v457_v5 = vld [vmem:[%s7267_s5] sm:$0xf] }
  0x9b   : > { %v421_v28 = vpack.c.bf16 %v410_v24, %v409_v23  ;;  %v398_v35 = vld [vmem:[%s5653_s17 + $0x68] sm:$0xff]  ;;  %v400_v43 = vld [vmem:[%s5653_s17 + $0x78] sm:$0xff]  ;;  %v469_v61 = vsub.s32 2, %v5841_v60  ;;  %v473_v3 = vsub.s32 3, %v5841_v60  ;;  %v465_v17 = vsub.s32 1, %v5841_v60  ;;  %p1434_p3 = scmp.lt.s32.totalorder %s1433_s16, 40 }
  0x9c   : > { %652 = vmatpush1.bf16.msra.mxu0 %v4801_v29  ;;  %765 = vmatpush1.bf16.msra.mxu1 %v4802_v30  ;;  %v395_v29 = vld [vmem:[%s5653_s17 + $0x50] sm:$0xff]  ;;  %v396_v30 = vld [vmem:[%s5653_s17 + $0x58] sm:$0xff]  ;;  %v416_v47 = vmax.f32 %v400_v43, 0.0  ;;  %s1240_s24 = scalar_select %p1239_p2, 1, 0 }
  0x9d   : > { %653 = vmatprep.subr.bf16.mxu0 %v4803_v33  ;;  %766 = vmatprep.subr.bf16.mxu1 %v4805_v34  ;;  %v411_v31 = vmax.f32 %v395_v29, 0.0  ;;  %v412_v32 = vmax.f32 %v396_v30, 0.0  ;;  %v397_v34 = vld [vmem:[%s5653_s17 + $0x60] sm:$0xff]  ;;  %s1435_s25 = scalar_select %p1434_p3, 1, 0 }
  0x9e   : > { %v413_v36 = vmax.f32 %v397_v34, 0.0  ;;  %s1241_s10 = scvt.s32.f32 %s1240_s24  ;;  %s1628_s2 = sadd.s32 2, %s6055_s23 }
  0x9f   : > { %v422_v33 = vpack.c.bf16 %v412_v32, %v411_v31  ;;  %v5864_v31 = vrot.slane %v457_v5, %v465_v17  ;;  %s1436_s18 = scvt.s32.f32 %s1435_s25  ;;  %p1629_p5 = scmp.lt.s32.totalorder %s1628_s2, 40 }
  0xa0   : > { %654 = vmatpush1.bf16.msra.mxu0 %v4807_v37  ;;  %767 = vmatpush1.bf16.msra.mxu1 %v4808_v38  ;;  %v414_v37 = vmax.f32 %v398_v35, 0.0  ;;  %s1244_s22 = ssub.f32 1.0, %s1241_s10  ;;  %s1823_s21 = sadd.s32 3, %s6055_s23 }
  0xa1   : > { %1128 = vmatprep.subr.bf16.mxu0 %v5675_v39  ;;  %1169 = vmatprep.subr.bf16.mxu1 %v5677_v40  ;;  %s1439_s26 = ssub.f32 1.0, %s1436_s18  ;;  %p1824_p6 = scmp.lt.s32.totalorder %s1823_s21, 40 }
  0xa2   : > { %v423_v38 = vpack.c.bf16 %v414_v37, %v413_v36  ;;  %s1630_s19 = scalar_select %p1629_p5, 1, 0 }
  0xa3   : > { %672 = vmatmul.mubr.bf16.vlgmr.msra.gmra.mxu0 %v417_v41  ;;  %785 = vmatmul.mubr.bf16.vlgmr.msra.gmra.mxu1 %v417_v41  ;;  %v399_v41 = vld [vmem:[%s5653_s17 + $0x70] sm:$0xff]  ;;  %s1825_s24 = scalar_select %p1824_p6, 1, 0 }
  0xa4   : > { %1129 = vmatpush1.bf16.msra.mxu0 %v5679_v42  ;;  %681 = vmatprep.mubr.bf16.mxu0 %v7275_v4  ;;  %v415_v44 = vmax.f32 %v399_v41, 0.0  ;;  %s1631_s17 = scvt.s32.f32 %s1630_s19  ;;  %s2018_s16 = sadd.s32 4, %s6055_s23 }
  0xa5   : > { %794 = vmatprep.mubr.bf16.mxu1 %v7275_v4  ;;  %1130 = vmatprep.subr.bf16.mxu0 %v5684_v45  ;;  %p2019_p9 = scmp.lt.s32.totalorder %s2018_s16, 40  ;;  %s2213_s2 = sadd.s32 5, %s6055_s23 }
  0xa6   : > { %1170 = vmatpush1.bf16.msra.mxu1 %v5687_v46  ;;  %v424_v48 = vpack.c.bf16 %v416_v47, %v415_v44  ;;  %s1634_s11 = ssub.f32 1.0, %s1631_s17  ;;  %p2214_p7 = scmp.lt.s32.totalorder %s2213_s2, 40 }
  0xa7   : > { %1171 = vmatprep.subr.bf16.mxu1 %v5689_v49  ;;  %s2020_s25 = scalar_select %p2019_p9, 1, 0 }
  0xa8   : > { %1131 = vmatpush1.bf16.msra.mxu0 %v5693_v50  ;;  %s2215_s19 = scalar_select %p2214_p7, 1, 0 }
  0xa9   : > { %1132 = vmatprep.subr.bf16.mxu0 %v5697_v51  ;;  %s2408_s21 = sadd.s32 6, %s6055_s23  ;;  %s2603_s16 = sadd.s32 7, %s6055_s23 }
  0xaa   : > { %1172 = vmatpush1.bf16.msra.mxu1 %v5700_v52  ;;  %p2409_p13 = scmp.lt.s32.totalorder %s2408_s21, 40  ;;  %p2604_p10 = scmp.lt.s32.totalorder %s2603_s16, 40 }
  0xab   : > { %682 = vmatmul.mubr.bf16.gmra.mxu0 %v418_v53  ;;  %795 = vmatmul.mubr.bf16.gmra.mxu1 %v418_v53  ;;  %v5803_v53 = vld [vmem:[#allocation13] sm:$0xff]  ;;  %s2798_s2 = sadd.s32 8, %s6055_s23  ;;  %s2993_s21 = sadd.s32 9, %s6055_s23 }
  0xac   : > { %691 = vmatprep.mubr.bf16.mxu0 %v7275_v4  ;;  %804 = vmatprep.mubr.bf16.mxu1 %v7275_v4  ;;  %v967_v54 = vpack.c.bf16 %v5803_v53, %v5803_v53  ;;  %p2799_p4 = scmp.lt.s32.totalorder %s2798_s2, 40  ;;  %p2994_p11 = scmp.lt.s32.totalorder %s2993_s21, 40 }
  0xad   : > { %1133 = vmatpush1.bf16.msra.mxu0 %v5707_v56  ;;  %1173 = vmatprep.subr.bf16.mxu1 %v5711_v58  ;;  %s3188_s16 = sadd.s32 10, %s6055_s23  ;;  %s3383_s2 = sadd.s32 11, %s6055_s23 }
  0xae   : > { %1134 = vmatprep.subr.bf16.mxu0 %v5709_v57  ;;  %1174 = vmatpush1.bf16.msra.mxu1 %v5714_v59  ;;  %p3189_p0 = scmp.lt.s32.totalorder %s3188_s16, 40  ;;  %p3384_p8 = scmp.lt.s32.totalorder %s3383_s2, 40 }
  0xaf   : > { %1175 = vmatprep.subr.bf16.mxu1 %v5716_v62  ;;  %s3578_s21 = sadd.s32 12, %s6055_s23  ;;  %s3773_s16 = sadd.s32 13, %s6055_s23 }
  0xb0   : > { %p3579_p1 = scmp.lt.s32.totalorder %s3578_s21, 40  ;;  %p3774_p12 = scmp.lt.s32.totalorder %s3773_s16, 40 }
  0xb1   : > { %1135 = vmatpush1.bf16.msra.mxu0 %v5721_v63  ;;  %s3968_s2 = sadd.s32 14, %s6055_s23  ;;  %s4163_s21 = sadd.s32 15, %s6055_s23 }
  0xb2   : > { %1136 = vmatprep.subr.bf16.mxu0 %v5725_v0  ;;  %1176 = vmatpush1.bf16.msra.mxu1 %v5728_v1  ;;  %p3969_p2 = scmp.lt.s32.totalorder %s3968_s2, 40  ;;  %p4164_p3 = scmp.lt.s32.totalorder %s4163_s21, 40 }
  0xb3   : > { %692 = vmatmul.mubr.bf16.gmra.mxu0 %v419_v2  ;;  %805 = vmatmul.mubr.bf16.gmra.mxu1 %v419_v2  ;;  %v461_v2 = vsub.s32 0, %v5841_v60  ;;  %s4245_s23 = scalar_lea.sflag [#allocation5], %s5649_s1 }
  0xb4   : > { %701 = vmatprep.mubr.bf16.mxu0 %v7275_v4  ;;  %814 = vmatprep.mubr.bf16.mxu1 %v7275_v4 }
  0xb5   : > { %1137 = vmatpush1.bf16.msra.mxu0 %v5734_v6  ;;  %1177 = vmatprep.subr.bf16.mxu1 %v5736_v7  ;;  %v5860_v24 = vrot.slane %v457_v5, %v461_v2 }
  0xb6   : > { %1138 = vmatprep.subr.bf16.mxu0 %v5739_v8  ;;  %1178 = vmatpush1.bf16.msra.mxu1 %v5742_v9 }
  0xb7   : > { %1179 = vmatprep.subr.bf16.mxu1 %v5744_v12 }
  0xb9   : > { %1139 = vmatpush1.bf16.msra.mxu0 %v5749_v13 }
  0xba   : > { %1140 = vmatprep.subr.bf16.mxu0 %v5753_v14  ;;  %1180 = vmatpush1.bf16.msra.mxu1 %v5756_v15 }
  0xbb   : > { %702 = vmatmul.mubr.bf16.gmra.mxu0 %v420_v16  ;;  %815 = vmatmul.mubr.bf16.gmra.mxu1 %v420_v16  ;;  %v5853_v16 = vrot.slane %v457_v5, %v469_v61 }
  0xbc   : > { %711 = vmatprep.mubr.bf16.mxu0 %v7275_v4  ;;  %824 = vmatprep.mubr.bf16.mxu1 %v7275_v4 }
  0xbd   : > { %1141 = vmatpush1.bf16.msra.mxu0 %v5762_v19  ;;  %1181 = vmatprep.subr.bf16.mxu1 %v5764_v20 }
  0xbe   : > { %1142 = vmatprep.subr.bf16.mxu0 %v5768_v21  ;;  %1182 = vmatpush1.bf16.msra.mxu1 %v5770_v22 }
  0xbf   : > { %1183 = vmatprep.subr.bf16.mxu1 %v5772_v25 }
  0xc1   : > { %1143 = vmatpush1.bf16.msra.mxu0 %v5778_v26 }
  0xc2   : > { %1184 = vmatpush1.bf16.msra.mxu1 %v5782_v27  ;;  %1323 = vmatprep.subr.bf16.mxu0 %v5675_v39 }
  0xc3   : > { %712 = vmatmul.mubr.bf16.gmra.mxu0 %v421_v28  ;;  %825 = vmatmul.mubr.bf16.gmra.mxu1 %v421_v28  ;;  %v5862_v28 = vrot.slane %v457_v5, %v473_v3 }
  0xc4   : > { %721 = vmatprep.mubr.bf16.mxu0 %v7275_v4  ;;  %834 = vmatprep.mubr.bf16.mxu1 %v7275_v4 }
  0xc5   : > { %1364 = vmatprep.subr.bf16.mxu1 %v5677_v40 }
  0xcb   : > { %722 = vmatmul.mubr.bf16.gmra.mxu0 %v422_v33  ;;  %835 = vmatmul.mubr.bf16.gmra.mxu1 %v422_v33 }
  0xcc   : > { %731 = vmatprep.mubr.bf16.mxu0 %v7275_v4  ;;  %844 = vmatprep.mubr.bf16.mxu1 %v7275_v4 }
  0xd3   : > { %732 = vmatmul.mubr.bf16.gmra.mxu0 %v423_v38  ;;  %845 = vmatmul.mubr.bf16.gmra.mxu1 %v423_v38 }
  0xd4   : > { %741 = vmatprep.mubr.bf16.mxu0 %v7275_v4  ;;  %854 = vmatprep.mubr.bf16.mxu1 %v7275_v4 }
  0xdb   : > { %742 = vmatmul.mubr.bf16.gmra.mxu0 %v424_v48  ;;  %855 = vmatmul.mubr.bf16.gmra.mxu1 %v424_v48 }
  0xdc   : > { %1160 = vmatprep.mubr.bf16.mxu0 %v7275_v4  ;;  %1201 = vmatprep.mubr.bf16.mxu1 %v7275_v4 }
  0xe3   : > { %1161 = vmatmul.mubr.bf16.vlgmr.msra.gmra.mxu0 %v967_v54  ;;  %1202 = vmatmul.mubr.bf16.vlgmr.msra.gmra.mxu1 %v967_v54 }
  0xe4   : > { %1324 = vmatpush1.bf16.msra.mxu0 %v5679_v42  ;;  %1365 = vmatpush1.bf16.msra.mxu1 %v5687_v46 }
  0xe5   : > { %1325 = vmatprep.subr.bf16.mxu0 %v5684_v45  ;;  %1366 = vmatprep.subr.bf16.mxu1 %v5689_v49 }
  0xe6   : > { %1355 = vmatprep.mubr.bf16.mxu0 %v7275_v4  ;;  %1396 = vmatprep.mubr.bf16.mxu1 %v7275_v4 }
  0xe8   : > { %1326 = vmatpush1.bf16.msra.mxu0 %v5693_v50  ;;  %1367 = vmatpush1.bf16.msra.mxu1 %v5700_v52 }
  0xe9   : > { %1327 = vmatprep.subr.bf16.mxu0 %v5697_v51  ;;  %1368 = vmatprep.subr.bf16.mxu1 %v5711_v58 }
  0xec   : > { %1328 = vmatpush1.bf16.msra.mxu0 %v5707_v56  ;;  %1369 = vmatpush1.bf16.msra.mxu1 %v5714_v59 }
  0xed   : > { %1329 = vmatprep.subr.bf16.mxu0 %v5709_v57  ;;  %1370 = vmatprep.subr.bf16.mxu1 %v5716_v62 }
  0xf0   : > { %1330 = vmatpush1.bf16.msra.mxu0 %v5721_v63  ;;  %1371 = vmatpush1.bf16.msra.mxu1 %v5728_v1 }
  0xf1   : > { %1331 = vmatprep.subr.bf16.mxu0 %v5725_v0  ;;  %1372 = vmatprep.subr.bf16.mxu1 %v5736_v7 }
  0xf4   : > { %1332 = vmatpush1.bf16.msra.mxu0 %v5734_v6  ;;  %1373 = vmatpush1.bf16.msra.mxu1 %v5742_v9 }
  0xf5   : > { %1333 = vmatprep.subr.bf16.mxu0 %v5739_v8  ;;  %1374 = vmatprep.subr.bf16.mxu1 %v5744_v12 }
  0xf8   : > { %1334 = vmatpush1.bf16.msra.mxu0 %v5749_v13  ;;  %1375 = vmatpush1.bf16.msra.mxu1 %v5756_v15 }
  0xf9   : > { %1335 = vmatprep.subr.bf16.mxu0 %v5753_v14  ;;  %1376 = vmatprep.subr.bf16.mxu1 %v5764_v20 }
  0xfc   : > { %1336 = vmatpush1.bf16.msra.mxu0 %v5762_v19  ;;  %1377 = vmatpush1.bf16.msra.mxu1 %v5770_v22 }
  0xfd   : > { %1337 = vmatprep.subr.bf16.mxu0 %v5768_v21  ;;  %1378 = vmatprep.subr.bf16.mxu1 %v5772_v25 }
 0x100   : > { %1338 = vmatpush1.bf16.msra.mxu0 %v5778_v26  ;;  %1379 = vmatpush1.bf16.msra.mxu1 %v5782_v27 }
 0x101   : > { %1518 = vmatprep.subr.bf16.mxu0 %v5675_v39  ;;  %1559 = vmatprep.subr.bf16.mxu1 %v5677_v40 }
 0x163   : > { %v5849_v10 = vpop.f32.mrf.mxu0  ;;  %v5851_v11 = vpop.f32.mrf.mxu1 }
 0x165   : > { %v5856_v18 = vpop.f32.mrf.mxu0  ;;  %v5858_v23 = vpop.f32.mrf.mxu1 }
 0x167   : > { %v677_v29 = vpop.f32.mrf.mxu0  ;;  %v790_v30 = vpop.f32.mrf.mxu1 }
 0x168   : > { %v5867_v32 = vadd.f32 %v677_v29, %v5860_v24  ;;  %v5870_v33 = vadd.f32 %v790_v30, %v5853_v16 }
 0x169   : > { %v679_v34 = vpop.f32.mrf.mxu0  ;;  %v792_v35 = vpop.f32.mrf.mxu1 }
 0x16a   : > { %v5873_v36 = vadd.f32 %v679_v34, %v5864_v31  ;;  %v5876_v37 = vadd.f32 %v792_v35, %v5862_v28 }
 0x16b   : > { %v683_v38 = vpop.f32.mrf.mxu0  ;;  %v796_v41 = vpop.f32.mrf.mxu1 }
 0x16c   : > { %v5879_v43 = vadd.f32 %v683_v38, %v5860_v24  ;;  %v5882_v44 = vadd.f32 %v796_v41, %v5853_v16 }
 0x16d   : > { %v685_v47 = vpop.f32.mrf.mxu0  ;;  %v798_v48 = vpop.f32.mrf.mxu1 }
 0x16e   : > { %7295 = vst [vmem:[#allocation23_spill] sm:$0xff] %v5882_v44  ;;  %v5885_v54 = vadd.f32 %v685_v47, %v5864_v31  ;;  %v5888_v55 = vadd.f32 %v798_v48, %v5862_v28 }
 0x16f   : > { %v687_v61 = vpop.f32.mrf.mxu0  ;;  %v800_v2 = vpop.f32.mrf.mxu1 }
 0x170   : > { %v5891_v3 = vadd.f32 %v687_v61, %v5860_v24  ;;  %v5894_v5 = vadd.f32 %v800_v2, %v5853_v16 }
 0x171   : > { %v689_v17 = vpop.f32.mrf.mxu0  ;;  %v802_v29 = vpop.f32.mrf.mxu1 }
 0x172   : > { %7296 = vst [vmem:[#allocation24_spill] sm:$0xff] %v5891_v3  ;;  %7297 = vst [vmem:[#allocation25_spill] sm:$0xff] %v5894_v5  ;;  %v5897_v30 = vadd.f32 %v689_v17, %v5864_v31  ;;  %v5900_v34 = vadd.f32 %v802_v29, %v5862_v28 }
 0x173   : > { %v693_v35 = vpop.f32.mrf.mxu0  ;;  %v806_v38 = vpop.f32.mrf.mxu1 }
 0x174   : > { %7298 = vst [vmem:[#allocation26_spill] sm:$0xff] %v5897_v30  ;;  %7299 = vst [vmem:[#allocation27_spill] sm:$0xff] %v5900_v34  ;;  %v5903_v41 = vadd.f32 %v693_v35, %v5860_v24  ;;  %v5906_v47 = vadd.f32 %v806_v38, %v5853_v16 }
 0x175   : > { %v695_v48 = vpop.f32.mrf.mxu0  ;;  %v808_v61 = vpop.f32.mrf.mxu1 }
 0x176   : > { %7300 = vst [vmem:[#allocation28_spill] sm:$0xff] %v5903_v41  ;;  %7301 = vst [vmem:[#allocation29_spill] sm:$0xff] %v5906_v47  ;;  %v5909_v2 = vadd.f32 %v695_v48, %v5864_v31  ;;  %v5912_v4 = vadd.f32 %v808_v61, %v5862_v28 }
 0x177   : > { %v697_v17 = vpop.f32.mrf.mxu0  ;;  %v810_v5 = vpop.f32.mrf.mxu1 }
 0x178   : > { %7302 = vst [vmem:[#allocation30_spill] sm:$0xff] %v5909_v2  ;;  %7303 = vst [vmem:[#allocation31_spill] sm:$0xff] %v5912_v4  ;;  %v5915_v29 = vadd.f32 %v697_v17, %v5860_v24  ;;  %v5918_v34 = vadd.f32 %v810_v5, %v5853_v16 }
 0x179   : > { %v699_v35 = vpop.f32.mrf.mxu0  ;;  %v812_v41 = vpop.f32.mrf.mxu1 }
 0x17a   : > { %7304 = vst [vmem:[#allocation32_spill] sm:$0xff] %v5915_v29  ;;  %7305 = vst [vmem:[#allocation33_spill] sm:$0xff] %v5918_v34  ;;  %v5921_v38 = vadd.f32 %v699_v35, %v5864_v31  ;;  %v5924_v47 = vadd.f32 %v812_v41, %v5862_v28 }
 0x17b   : > { %v703_v48 = vpop.f32.mrf.mxu0  ;;  %v816_v2 = vpop.f32.mrf.mxu1 }
 0x17c   : > { %7306 = vst [vmem:[#allocation34_spill] sm:$0xff] %v5921_v38  ;;  %7307 = vst [vmem:[#allocation35_spill] sm:$0xff] %v5924_v47  ;;  %v5927_v61 = vadd.f32 %v703_v48, %v5860_v24  ;;  %v5930_v4 = vadd.f32 %v816_v2, %v5853_v16 }
 0x17d   : > { %v705_v17 = vpop.f32.mrf.mxu0  ;;  %v818_v29 = vpop.f32.mrf.mxu1 }
 0x17e   : > { %7308 = vst [vmem:[#allocation36_spill] sm:$0xff] %v5927_v61  ;;  %7309 = vst [vmem:[#allocation37_spill] sm:$0xff] %v5930_v4  ;;  %v5933_v5 = vadd.f32 %v705_v17, %v5864_v31  ;;  %v5936_v34 = vadd.f32 %v818_v29, %v5862_v28 }
 0x17f   : > { %v707_v35 = vpop.f32.mrf.mxu0  ;;  %v820_v38 = vpop.f32.mrf.mxu1 }
 0x180   : > { %7310 = vst [vmem:[#allocation38_spill] sm:$0xff] %v5933_v5  ;;  %7311 = vst [vmem:[#allocation39_spill] sm:$0xff] %v5936_v34  ;;  %v5939_v41 = vadd.f32 %v707_v35, %v5860_v24  ;;  %v5942_v47 = vadd.f32 %v820_v38, %v5853_v16 }
 0x181   : > { %v709_v48 = vpop.f32.mrf.mxu0  ;;  %v822_v61 = vpop.f32.mrf.mxu1 }
 0x182   : > { %7312 = vst [vmem:[#allocation40_spill] sm:$0xff] %v5939_v41  ;;  %7313 = vst [vmem:[#allocation41_spill] sm:$0xff] %v5942_v47  ;;  %v5945_v2 = vadd.f32 %v709_v48, %v5864_v31  ;;  %v5948_v4 = vadd.f32 %v822_v61, %v5862_v28 }
 0x183   : > { %v713_v17 = vpop.f32.mrf.mxu0  ;;  %v826_v5 = vpop.f32.mrf.mxu1 }
 0x184   : > { %7314 = vst [vmem:[#allocation42_spill] sm:$0xff] %v5945_v2  ;;  %7315 = vst [vmem:[#allocation43_spill] sm:$0xff] %v5948_v4  ;;  %v5951_v29 = vadd.f32 %v713_v17, %v5860_v24  ;;  %v5954_v34 = vadd.f32 %v826_v5, %v5853_v16 }
 0x185   : > { %v715_v35 = vpop.f32.mrf.mxu0  ;;  %v828_v41 = vpop.f32.mrf.mxu1 }
 0x186   : > { %7316 = vst [vmem:[#allocation44_spill] sm:$0xff] %v5951_v29  ;;  %7317 = vst [vmem:[#allocation45_spill] sm:$0xff] %v5954_v34  ;;  %v5957_v38 = vadd.f32 %v715_v35, %v5864_v31  ;;  %v5960_v47 = vadd.f32 %v828_v41, %v5862_v28 }
 0x187   : > { %v717_v48 = vpop.f32.mrf.mxu0  ;;  %v830_v2 = vpop.f32.mrf.mxu1 }
 0x188   : > { %7318 = vst [vmem:[#allocation46_spill] sm:$0xff] %v5957_v38  ;;  %7319 = vst [vmem:[#allocation47_spill] sm:$0xff] %v5960_v47  ;;  %v5963_v61 = vadd.f32 %v717_v48, %v5860_v24  ;;  %v5966_v4 = vadd.f32 %v830_v2, %v5853_v16 }
 0x189   : > { %v719_v17 = vpop.f32.mrf.mxu0  ;;  %v832_v29 = vpop.f32.mrf.mxu1 }
 0x18a   : > { %7320 = vst [vmem:[#allocation48_spill] sm:$0xff] %v5963_v61  ;;  %7321 = vst [vmem:[#allocation49_spill] sm:$0xff] %v5966_v4  ;;  %v5969_v5 = vadd.f32 %v719_v17, %v5864_v31  ;;  %v5972_v34 = vadd.f32 %v832_v29, %v5862_v28 }
 0x18b   : > { %v723_v35 = vpop.f32.mrf.mxu0  ;;  %v836_v38 = vpop.f32.mrf.mxu1 }
 0x18c   : > { %7322 = vst [vmem:[#allocation50_spill] sm:$0xff] %v5969_v5  ;;  %7323 = vst [vmem:[#allocation51_spill] sm:$0xff] %v5972_v34  ;;  %v5975_v41 = vadd.f32 %v723_v35, %v5860_v24  ;;  %v5978_v47 = vadd.f32 %v836_v38, %v5853_v16 }
 0x18d   : > { %v725_v48 = vpop.f32.mrf.mxu0  ;;  %v838_v61 = vpop.f32.mrf.mxu1 }
 0x18e   : > { %7324 = vst [vmem:[#allocation52_spill] sm:$0xff] %v5975_v41  ;;  %7325 = vst [vmem:[#allocation53_spill] sm:$0xff] %v5978_v47  ;;  %v5981_v2 = vadd.f32 %v725_v48, %v5864_v31  ;;  %v5984_v4 = vadd.f32 %v838_v61, %v5862_v28 }
 0x18f   : > { %v727_v17 = vpop.f32.mrf.mxu0  ;;  %v840_v5 = vpop.f32.mrf.mxu1 }
 0x190   : > { %7326 = vst [vmem:[#allocation54_spill] sm:$0xff] %v5981_v2  ;;  %7327 = vst [vmem:[#allocation55_spill] sm:$0xff] %v5984_v4  ;;  %v5987_v29 = vadd.f32 %v727_v17, %v5860_v24  ;;  %v5990_v34 = vadd.f32 %v840_v5, %v5853_v16 }
 0x191   : > { %v729_v35 = vpop.f32.mrf.mxu0  ;;  %v842_v41 = vpop.f32.mrf.mxu1 }
 0x192   : > { %7328 = vst [vmem:[#allocation56_spill] sm:$0xff] %v5987_v29  ;;  %7329 = vst [vmem:[#allocation57_spill] sm:$0xff] %v5990_v34  ;;  %v5993_v38 = vadd.f32 %v729_v35, %v5864_v31  ;;  %v5996_v47 = vadd.f32 %v842_v41, %v5862_v28 }
 0x193   : > { %v733_v48 = vpop.f32.mrf.mxu0  ;;  %v846_v2 = vpop.f32.mrf.mxu1 }
 0x194   : > { %7330 = vst [vmem:[#allocation58_spill] sm:$0xff] %v5993_v38  ;;  %7331 = vst [vmem:[#allocation59_spill] sm:$0xff] %v5996_v47  ;;  %v5999_v61 = vadd.f32 %v733_v48, %v5860_v24  ;;  %v6002_v4 = vadd.f32 %v846_v2, %v5853_v16 }
 0x195   : > { %v735_v17 = vpop.f32.mrf.mxu0  ;;  %v848_v29 = vpop.f32.mrf.mxu1 }
 0x196   : > { %7332 = vst [vmem:[#allocation60_spill] sm:$0xff] %v5999_v61  ;;  %7333 = vst [vmem:[#allocation61_spill] sm:$0xff] %v6002_v4  ;;  %v6005_v5 = vadd.f32 %v735_v17, %v5864_v31  ;;  %v6008_v34 = vadd.f32 %v848_v29, %v5862_v28 }
 0x197   : > { %v737_v35 = vpop.f32.mrf.mxu0  ;;  %v850_v38 = vpop.f32.mrf.mxu1 }
 0x198   : > { %7334 = vst [vmem:[#allocation62_spill] sm:$0xff] %v6005_v5  ;;  %7335 = vst [vmem:[#allocation63_spill] sm:$0xff] %v6008_v34  ;;  %v6011_v41 = vadd.f32 %v737_v35, %v5860_v24  ;;  %v6014_v47 = vadd.f32 %v850_v38, %v5853_v16 }
 0x199   : > { %v739_v48 = vpop.f32.mrf.mxu0  ;;  %v852_v61 = vpop.f32.mrf.mxu1 }
 0x19a   : > { %7336 = vst [vmem:[#allocation64_spill] sm:$0xff] %v6011_v41  ;;  %7337 = vst [vmem:[#allocation65_spill] sm:$0xff] %v6014_v47  ;;  %v6017_v2 = vadd.f32 %v739_v48, %v5864_v31  ;;  %v6020_v4 = vadd.f32 %v852_v61, %v5862_v28 }
 0x19b   : > { %v743_v17 = vpop.f32.mrf.mxu0  ;;  %v856_v5 = vpop.f32.mrf.mxu1 }
 0x19c   : > { %7338 = vst [vmem:[#allocation66_spill] sm:$0xff] %v6017_v2  ;;  %7339 = vst [vmem:[#allocation67_spill] sm:$0xff] %v6020_v4  ;;  %v6023_v29 = vadd.f32 %v743_v17, %v5860_v24  ;;  %v6026_v34 = vadd.f32 %v856_v5, %v5853_v16  ;;  %v674_v5 = vadd.f32 %v5849_v10, %v5860_v24 }
 0x19d   : > { %v745_v35 = vpop.f32.mrf.mxu0  ;;  %v858_v41 = vpop.f32.mrf.mxu1 }
 0x19e   : > { %7340 = vst [vmem:[#allocation68_spill] sm:$0xff] %v6023_v29  ;;  %7341 = vst [vmem:[#allocation69_spill] sm:$0xff] %v6026_v34  ;;  %v6029_v38 = vadd.f32 %v745_v35, %v5864_v31  ;;  %v6032_v47 = vadd.f32 %v858_v41, %v5862_v28 }
 0x19f   : > { %v747_v48 = vpop.f32.mrf.mxu0  ;;  %v860_v2 = vpop.f32.mrf.mxu1 }
 0x1a0   : > { %7342 = vst [vmem:[#allocation70_spill] sm:$0xff] %v6029_v38  ;;  %7343 = vst [vmem:[#allocation71_spill] sm:$0xff] %v6032_v47  ;;  %v6035_v61 = vadd.f32 %v747_v48, %v5860_v24  ;;  %v6038_v4 = vadd.f32 %v860_v2, %v5853_v16  ;;  %v676_v48 = vadd.f32 %v5856_v18, %v5864_v31 }
 0x1a1   : > { %v749_v17 = vpop.f32.mrf.mxu0  ;;  %v862_v29 = vpop.f32.mrf.mxu1  ;;  %v787_v18 = vadd.f32 %v5851_v11, %v5853_v16  ;;  %v962_v16 = vld [vmem:[#allocation15] sm:$0xff] }
 0x1a2   : > { %7344 = vst [vmem:[#allocation72_spill] sm:$0xff] %v6035_v61  ;;  %7345 = vst [vmem:[#allocation73_spill] sm:$0xff] %v6038_v4  ;;  %v6043_v34 = vadd.f32 %v749_v17, %v5864_v31  ;;  %v6046_v35 = vadd.f32 %v862_v29, %v5862_v28  ;;  %v789_v29 = vadd.f32 %v5858_v23, %v5862_v28 }
 0x1a3   : > { %v1162_v41 = vpop.f32.mrf.mxu0  ;;  %v1203_v47 = vpop.f32.mrf.mxu1 }
 0x1a4   : > { %7346 = vst [vmem:[#allocation74_spill] sm:$0xff] %v6046_v35  ;;  %v1210_v61 = vadd.f32 %v1162_v41, %v674_v5  ;;  %v1212_v31 = vadd.f32 %v1203_v47, %v787_v18 }
 0x1a5   : > { %v1164_v38 = vpop.f32.mrf.mxu0  ;;  %v1205_v2 = vpop.f32.mrf.mxu1 }
 0x1a6   : > { %v4517_v4 = vmul.f32 -1.442695, %v1210_v61  ;;  %v1211_v30 = vadd.f32 %v1164_v38, %v676_v48  ;;  %v1213_v35 = vadd.f32 %v1205_v2, %v789_v29  ;;  %v1245_v61 = vstv %s1244_s22 }
 0x1a7   : > { %v1166_v3 = vpop.f32.mrf.mxu0  ;;  %v1207_v44 = vpop.f32.mrf.mxu1  ;;  %v1242_v48 = vstv %s1241_s10  ;;  %v1246_v2 = vmul.f32 %v1245_v61, %v962_v16  ;;  %v5451_v29 = vmov 1966171168   ;;  %s1826_s10 = scvt.s32.f32 %s1825_s24 }
 0x1a8   : > { %4857 = vpow2.f32 %v4517_v4  ;;  %v4518_v10 = vmul.f32 -1.442695, %v1211_v30  ;;  %v4519_v5 = vmul.f32 -1.442695, %v1213_v35  ;;  %v1254_v18 = vunpack.c.l.s4 %v5451_v29  ;;  %s2410_s24 = scalar_select %p2409_p13, 1, 0 }
 0x1a9   : > { %v1167_v24 = vpop.f32.mrf.mxu0  ;;  %v1208_v17 = vpop.f32.mrf.mxu1  ;;  %s1829_s22 = ssub.f32 1.0, %s1826_s10 }
 0x1aa   : > { %4859 = vpow2.f32 %v4518_v10 }
 0x1ab   : > { %4861 = vtanh.f32 %v1212_v31 }
 0x1ac   : > { %4863 = vpow2.f32 %v4519_v5  ;;  %v1255_v5 = vunpack.c.0.s8 %v1254_v18 }
 0x1b5   : > { %v4858_v38 = vpop.eup %4857 }
 0x1b6   : > { %v1217_v3 = vadd.f32 1.0, %v4858_v38 }
 0x1b7   : > { %v4860_v4 = vpop.eup %4859 }
 0x1b8   : > { %4865 = vrcp.f32 %v1217_v3  ;;  %v1223_v44 = vadd.f32 1.0, %v4860_v4  ;;  %v4862_v23 = vpop.eup %4861  ;;  %v1249_v3 = vmul.f32 %v1245_v61, %v5803_v53 }
 0x1b9   : > { %v4864_v28 = vpop.eup %4863 }
 0x1ba   : > { %4867 = vrcp.f32 %v1223_v44  ;;  %v1230_v35 = vadd.f32 1.0, %v4864_v28  ;;  %v6062_v44 = vsub.s32 %v1255_v5, %v5841_v60 }
 0x1bc   : > { %4869 = vrcp.f32 %v1230_v35 }
 0x1c5   : > { %v4866_v11 = vpop.eup %4865 }
 0x1c6   : > { %v1234_v30 = vmul.f32 %v4866_v11, %v4862_v23 }
 0x1c7   : > { %v4868_v47 = vpop.eup %4867 }
 0x1c8   : > { %v1233_v41 = vmul.f32 %v4868_v47, %v962_v16 }
 0x1c9   : > { %v4870_v31 = vpop.eup %4869 }
 0x1ca   : > { %v1235_v10 = vadd.f32 %v1234_v30, %v1233_v41 }
 0x1cc   : > { %4871 = vtanh.f32 %v1235_v10  ;;  %v1243_v24 = vmul.f32 %v1242_v48, %v1235_v10 }
 0x1ce   : > { %v6058_v17 = vadd.f32 %v1246_v2, %v1243_v24  ;;  %v7347_v2 = vmov 0  }
 0x1d9   : > { %v4872_v38 = vpop.eup %4871 }
 0x1da   : > { %v1237_v4 = vmul.f32 %v4872_v38, %v4870_v31 }
 0x1dc   : > { %v1248_v23 = vmul.f32 %v1242_v48, %v1237_v4 }
 0x1de   : > { %v6064_v28 = vadd.f32 %v1249_v3, %v1248_v23 }
 0x1e0   : > { %v1252_v11 = vcombine.high %v6064_v28, %v6064_v28  ;;  %v1259_v16 = vrot.slane %v6064_v28, %v6062_v44  ;;  %v1322_v30 = vpack.c.bf16 %v6064_v28, %v6064_v28 }
 0x1e2   : > { %v1266_v53 = vrot.slane %v1252_v11, %v6062_v44  ;;  %v1267_v47 = vcombine.high %v1259_v16, %v1259_v16  ;;  %v1275_v60 = vrot.slane %v1259_v16, %v6062_v44  ;;  %4521 = vst.sshfl [vmem:[%s5667_s13] sm:$0x1 pattern:$0x73625140] %v1259_v16  ;;  %1356 = vmatmul.mubr.bf16.vlgmr.msra.gmra.mxu0 %v1322_v30 }
 0x1e3   : > { %1397 = vmatmul.mubr.bf16.vlgmr.msra.gmra.mxu1 %v1322_v30  ;;  %1519 = vmatpush1.bf16.msra.mxu0 %v5679_v42 }
 0x1e4   : > { %1560 = vmatpush1.bf16.msra.mxu1 %v5687_v46  ;;  %v1268_v61 = vcombine.high %v1266_v53, %v1266_v53  ;;  %v1282_v35 = vrot.slane %v1266_v53, %v6062_v44  ;;  %v1289_v41 = vrot.slane %v1267_v47, %v6062_v44  ;;  %v1297_v48 = vcombine.high %v1275_v60, %v1275_v60 }
 0x1e5   : > { %4522 = vst.sshfl [vmem:[%s5667_s13 + $0x10] sm:$0x1 pattern:$0x73625140] %v1267_v47  ;;  %1520 = vmatprep.subr.bf16.mxu0 %v5684_v45  ;;  %1561 = vmatprep.subr.bf16.mxu1 %v5689_v49 }
 0x1e6   : > { %4523 = vst.sshfl [vmem:[%s5667_s13 + $0x40] sm:$0x1 pattern:$0x73625140] %v1266_v53  ;;  %1550 = vmatprep.mubr.bf16.mxu0 %v7347_v2  ;;  %v1296_v10 = vrot.slane %v1268_v61, %v6062_v44  ;;  %v1298_v24 = vcombine.high %v1282_v35, %v1282_v35  ;;  %v1299_v29 = vcombine.high %v1289_v41, %v1289_v41  ;;  %1311 = vst [vmem:[%s5667_s13 + $0x20] sm:$0x1] %v1297_v48 }
 0x1e7   : > { %4524 = vst.sshfl [vmem:[%s5667_s13 + $0x50] sm:$0x1 pattern:$0x73625140] %v1268_v61  ;;  %1591 = vmatprep.mubr.bf16.mxu1 %v7347_v2  ;;  %1521 = vmatpush1.bf16.msra.mxu0 %v5693_v50 }
 0x1e8   : > { %1562 = vmatpush1.bf16.msra.mxu1 %v5700_v52  ;;  %v1300_v18 = vcombine.high %v1296_v10, %v1296_v10  ;;  %1312 = vst [vmem:[%s5667_s13 + $0x30] sm:$0x1] %v1299_v29  ;;  %1315 = vst [vmem:[%s5667_s13 + $0x60] sm:$0x1] %v1298_v24  ;;  %1522 = vmatprep.subr.bf16.mxu0 %v5697_v51 }
 0x1e9   : > { %1563 = vmatprep.subr.bf16.mxu1 %v5711_v58 }
 0x1ea   : > { %1316 = vst [vmem:[%s5667_s13 + $0x70] sm:$0x1] %v1300_v18 }
 0x1eb   : > { %1523 = vmatpush1.bf16.msra.mxu0 %v5707_v56 }
 0x1ec   : > { %1564 = vmatpush1.bf16.msra.mxu1 %v5714_v59  ;;  %1524 = vmatprep.subr.bf16.mxu0 %v5709_v57 }
 0x1ed   : > { %1565 = vmatprep.subr.bf16.mxu1 %v5716_v62 }
 0x1ef   : > { %1525 = vmatpush1.bf16.msra.mxu0 %v5721_v63 }
 0x1f0   : > { %1566 = vmatpush1.bf16.msra.mxu1 %v5728_v1  ;;  %1526 = vmatprep.subr.bf16.mxu0 %v5725_v0 }
 0x1f1   : > { %1567 = vmatprep.subr.bf16.mxu1 %v5736_v7 }
 0x1f3   : > { %1527 = vmatpush1.bf16.msra.mxu0 %v5734_v6 }
 0x1f4   : > { %1568 = vmatpush1.bf16.msra.mxu1 %v5742_v9  ;;  %1528 = vmatprep.subr.bf16.mxu0 %v5739_v8 }
 0x1f5   : > { %1569 = vmatprep.subr.bf16.mxu1 %v5744_v12 }
 0x1f7   : > { %1529 = vmatpush1.bf16.msra.mxu0 %v5749_v13 }
 0x1f8   : > { %1570 = vmatpush1.bf16.msra.mxu1 %v5756_v15  ;;  %1530 = vmatprep.subr.bf16.mxu0 %v5753_v14 }
 0x1f9   : > { %1571 = vmatprep.subr.bf16.mxu1 %v5764_v20 }
 0x1fb   : > { %1531 = vmatpush1.bf16.msra.mxu0 %v5762_v19 }
 0x1fc   : > { %1572 = vmatpush1.bf16.msra.mxu1 %v5770_v22  ;;  %1532 = vmatprep.subr.bf16.mxu0 %v5768_v21 }
 0x1fd   : > { %1573 = vmatprep.subr.bf16.mxu1 %v5772_v25 }
 0x1ff   : > { %1533 = vmatpush1.bf16.msra.mxu0 %v5778_v26 }
 0x200   : > { %1574 = vmatpush1.bf16.msra.mxu1 %v5782_v27  ;;  %1713 = vmatprep.subr.bf16.mxu0 %v5675_v39 }
 0x201   : > { %1754 = vmatprep.subr.bf16.mxu1 %v5677_v40 }
 0x2a2   : > { %v1357_v31 = vpop.f32.mrf.mxu0 }
 0x2a3   : > { %v1398_v5 = vpop.f32.mrf.mxu1  ;;  %v1405_v38 = vadd.f32 %v1357_v31, %v5867_v32  ;;  %v1437_v31 = vstv %s1436_s18  ;;  %s2021_s18 = scvt.s32.f32 %s2020_s25 }
 0x2a4   : > { %v1359_v3 = vpop.f32.mrf.mxu0  ;;  %v1407_v40 = vadd.f32 %v1398_v5, %v5870_v33  ;;  %v1440_v5 = vstv %s1439_s26  ;;  %s2605_s25 = scalar_select %p2604_p10, 1, 0 }
 0x2a5   : > { %v1400_v4 = vpop.f32.mrf.mxu1  ;;  %v4525_v23 = vmul.f32 -1.442695, %v1405_v38  ;;  %v1406_v11 = vadd.f32 %v1359_v3, %v5873_v36  ;;  %s2024_s26 = ssub.f32 1.0, %s2021_s18 }
 0x2a6   : > { %v1361_v16 = vpop.f32.mrf.mxu0  ;;  %v1408_v39 = vadd.f32 %v1400_v4, %v5876_v37  ;;  %v1441_v4 = vmul.f32 %v1440_v5, %v6058_v17 }
 0x2a7   : > { %v1402_v30 = vpop.f32.mrf.mxu1  ;;  %4873 = vpow2.f32 %v4525_v23  ;;  %v4526_v53 = vmul.f32 -1.442695, %v1406_v11 }
 0x2a8   : > { %v1362_v47 = vpop.f32.mrf.mxu0  ;;  %v4527_v61 = vmul.f32 -1.442695, %v1408_v39 }
 0x2a9   : > { %v1403_v60 = vpop.f32.mrf.mxu1  ;;  %4875 = vpow2.f32 %v4526_v53  ;;  %v1444_v47 = vmul.f32 %v1440_v5, %v6064_v28 }
 0x2aa   : > { %4877 = vtanh.f32 %v1407_v40 }
 0x2ab   : > { %4879 = vpow2.f32 %v4527_v61 }
 0x2b4   : > { %v4874_v35 = vpop.eup %4873 }
 0x2b5   : > { %v1412_v32 = vadd.f32 1.0, %v4874_v35 }
 0x2b6   : > { %v4876_v41 = vpop.eup %4875 }
 0x2b7   : > { %4881 = vrcp.f32 %v1412_v32  ;;  %v1418_v36 = vadd.f32 1.0, %v4876_v41  ;;  %v4878_v48 = vpop.eup %4877 }
 0x2b8   : > { %v4880_v10 = vpop.eup %4879 }
 0x2b9   : > { %4883 = vrcp.f32 %v1418_v36  ;;  %v1425_v33 = vadd.f32 1.0, %v4880_v10 }
 0x2bb   : > { %4885 = vrcp.f32 %v1425_v33 }
 0x2c4   : > { %v4882_v24 = vpop.eup %4881 }
 0x2c5   : > { %v1429_v37 = vmul.f32 %v4882_v24, %v4878_v48 }
 0x2c6   : > { %v4884_v29 = vpop.eup %4883 }
 0x2c7   : > { %v1428_v18 = vmul.f32 %v4884_v29, %v6058_v17 }
 0x2c8   : > { %v4886_v11 = vpop.eup %4885 }
 0x2c9   : > { %v1430_v38 = vadd.f32 %v1429_v37, %v1428_v18 }
 0x2cb   : > { %4887 = vtanh.f32 %v1430_v38  ;;  %v1438_v3 = vmul.f32 %v1437_v31, %v1430_v38 }
 0x2cd   : > { %v6126_v23 = vadd.f32 %v1441_v4, %v1438_v3 }
 0x2d8   : > { %v4888_v16 = vpop.eup %4887 }
 0x2d9   : > { %v1432_v30 = vmul.f32 %v4888_v16, %v4886_v11 }
 0x2db   : > { %v1443_v53 = vmul.f32 %v1437_v31, %v1432_v30 }
 0x2dd   : > { %v6129_v60 = vadd.f32 %v1444_v47, %v1443_v53 }
 0x2df   : > { %v1447_v39 = vcombine.high %v6129_v60, %v6129_v60  ;;  %v1454_v40 = vrot.slane %v6129_v60, %v6062_v44  ;;  %v1517_v17 = vpack.c.bf16 %v6129_v60, %v6129_v60 }
 0x2e1   : > { %v1461_v61 = vrot.slane %v1447_v39, %v6062_v44  ;;  %v1462_v35 = vcombine.high %v1454_v40, %v1454_v40  ;;  %v1470_v32 = vrot.slane %v1454_v40, %v6062_v44  ;;  %4528 = vst.sshfl [vmem:[%s5667_s13 + $0x1] sm:$0x1 pattern:$0x73625140] %v1454_v40  ;;  %1551 = vmatmul.mubr.bf16.vlgmr.msra.gmra.mxu0 %v1517_v17  ;;  %v6212_v40 = vld [vmem:[#allocation11 + $0xe8] ss:$16 sps:$4 sm:$0xff]  }
 0x2e2   : > { %1592 = vmatmul.mubr.bf16.vlgmr.msra.gmra.mxu1 %v1517_v17  ;;  %1714 = vmatpush1.bf16.msra.mxu0 %v5679_v42 }
 0x2e3   : > { %1755 = vmatpush1.bf16.msra.mxu1 %v5687_v46  ;;  %v1463_v28 = vcombine.high %v1461_v61, %v1461_v61  ;;  %v1477_v41 = vrot.slane %v1461_v61, %v6062_v44  ;;  %v1484_v36 = vrot.slane %v1462_v35, %v6062_v44  ;;  %v1492_v48 = vcombine.high %v1470_v32, %v1470_v32 }
 0x2e4   : > { %4529 = vst.sshfl [vmem:[%s5667_s13 + $0x11] sm:$0x1 pattern:$0x73625140] %v1462_v35  ;;  %1715 = vmatprep.subr.bf16.mxu0 %v5684_v45  ;;  %1756 = vmatprep.subr.bf16.mxu1 %v5689_v49  ;;  %v6182_v45 = vld [vmem:[#allocation11 + $0xe4] ss:$16 sps:$4 sm:$0xff]  }
 0x2e5   : > { %4530 = vst.sshfl [vmem:[%s5667_s13 + $0x41] sm:$0x1 pattern:$0x73625140] %v1461_v61  ;;  %1745 = vmatprep.mubr.bf16.mxu0 %v7347_v2  ;;  %v1491_v42 = vrot.slane %v1463_v28, %v6062_v44  ;;  %v1493_v46 = vcombine.high %v1477_v41, %v1477_v41  ;;  %v1494_v10 = vcombine.high %v1484_v36, %v1484_v36  ;;  %1506 = vst [vmem:[%s5667_s13 + $0x21] sm:$0x1] %v1492_v48 }
 0x2e6   : > { %4531 = vst.sshfl [vmem:[%s5667_s13 + $0x51] sm:$0x1 pattern:$0x73625140] %v1463_v28  ;;  %1786 = vmatprep.mubr.bf16.mxu1 %v7347_v2  ;;  %1716 = vmatpush1.bf16.msra.mxu0 %v5693_v50  ;;  %v6185_v49 = vld [vmem:[#allocation11 + $0xec] ss:$16 sps:$4 sm:$0xff]  }
 0x2e7   : > { %1757 = vmatpush1.bf16.msra.mxu1 %v5700_v52  ;;  %v1495_v24 = vcombine.high %v1491_v42, %v1491_v42  ;;  %1507 = vst [vmem:[%s5667_s13 + $0x31] sm:$0x1] %v1494_v10  ;;  %1510 = vst [vmem:[%s5667_s13 + $0x61] sm:$0x1] %v1493_v46  ;;  %1717 = vmatprep.subr.bf16.mxu0 %v5697_v51  ;;  %v6219_v28 = vld [vmem:[#allocation11 + $0xc4] ss:$16 sps:$4 sm:$0xff]  }
 0x2e8   : > { %1758 = vmatprep.subr.bf16.mxu1 %v5711_v58  ;;  %v6222_v41 = vld [vmem:[#allocation11 + $0xcc] ss:$16 sps:$4 sm:$0xff]   ;;  %v6230_v46 = vld [vmem:[#allocation11 + $0xc0] ss:$16 sps:$4 sm:$0xff]   ;;  %v6233_v10 = vld [vmem:[#allocation11 + $0xc8] ss:$16 sps:$4 sm:$0xff]  }
 0x2e9   : > { %1511 = vst [vmem:[%s5667_s13 + $0x71] sm:$0x1] %v1495_v24 }
 0x2ea   : > { %1718 = vmatpush1.bf16.msra.mxu0 %v5707_v56 }
 0x2eb   : > { %1759 = vmatpush1.bf16.msra.mxu1 %v5714_v59  ;;  %1719 = vmatprep.subr.bf16.mxu0 %v5709_v57 }
 0x2ec   : > { %1760 = vmatprep.subr.bf16.mxu1 %v5716_v62 }
 0x2ee   : > { %1720 = vmatpush1.bf16.msra.mxu0 %v5721_v63 }
 0x2ef   : > { %1761 = vmatpush1.bf16.msra.mxu1 %v5728_v1  ;;  %1721 = vmatprep.subr.bf16.mxu0 %v5725_v0 }
 0x2f0   : > { %1762 = vmatprep.subr.bf16.mxu1 %v5736_v7 }
 0x2f2   : > { %1722 = vmatpush1.bf16.msra.mxu0 %v5734_v6 }
 0x2f3   : > { %1763 = vmatpush1.bf16.msra.mxu1 %v5742_v9  ;;  %1723 = vmatprep.subr.bf16.mxu0 %v5739_v8  ;;  %v7348_v8 = vld [vmem:[#allocation23_spill] sm:$0xff] }
 0x2f4   : > { %1764 = vmatprep.subr.bf16.mxu1 %v5744_v12 }
 0x2f6   : > { %1724 = vmatpush1.bf16.msra.mxu0 %v5749_v13 }
 0x2f7   : > { %1765 = vmatpush1.bf16.msra.mxu1 %v5756_v15  ;;  %1725 = vmatprep.subr.bf16.mxu0 %v5753_v14 }
 0x2f8   : > { %1766 = vmatprep.subr.bf16.mxu1 %v5764_v20 }
 0x2fa   : > { %1726 = vmatpush1.bf16.msra.mxu0 %v5762_v19 }
 0x2fb   : > { %1767 = vmatpush1.bf16.msra.mxu1 %v5770_v22  ;;  %1727 = vmatprep.subr.bf16.mxu0 %v5768_v21 }
 0x2fc   : > { %1768 = vmatprep.subr.bf16.mxu1 %v5772_v25 }
 0x2fe   : > { %1728 = vmatpush1.bf16.msra.mxu0 %v5778_v26 }
 0x2ff   : > { %1769 = vmatpush1.bf16.msra.mxu1 %v5782_v27  ;;  %1908 = vmatprep.subr.bf16.mxu0 %v6182_v45 }
 0x300   : > { %1949 = vmatprep.subr.bf16.mxu1 %v6185_v49 }
 0x3a1   : > { %v1552_v50 = vpop.f32.mrf.mxu0 }
 0x3a2   : > { %v1593_v51 = vpop.f32.mrf.mxu1  ;;  %v1600_v52 = vadd.f32 %v1552_v50, %v5879_v43  ;;  %v6238_v50 = vld [vmem:[#allocation11 + $0xa4] ss:$16 sps:$4 sm:$0xff]  }
 0x3a3   : > { %v1554_v56 = vpop.f32.mrf.mxu0  ;;  %v1602_v9 = vadd.f32 %v1593_v51, %v7348_v8  ;;  %v6241_v51 = vld [vmem:[#allocation11 + $0xac] ss:$16 sps:$4 sm:$0xff]  }
 0x3a4   : > { %v1595_v57 = vpop.f32.mrf.mxu1  ;;  %v4532_v58 = vmul.f32 -1.442695, %v1600_v52  ;;  %v1601_v59 = vadd.f32 %v1554_v56, %v5885_v54  ;;  %v1632_v54 = vstv %s1631_s17  ;;  %v6245_v52 = vld [vmem:[#allocation11 + $0xa0] ss:$16 sps:$4 sm:$0xff]   ;;  %v6248_v56 = vld [vmem:[#allocation11 + $0xa8] ss:$16 sps:$4 sm:$0xff]   ;;  %s2216_s17 = scvt.s32.f32 %s2215_s19 }
 0x3a5   : > { %v1556_v62 = vpop.f32.mrf.mxu0  ;;  %v1603_v7 = vadd.f32 %v1595_v57, %v5888_v55  ;;  %v1635_v55 = vstv %s1634_s11  ;;  %v6251_v57 = vld [vmem:[#allocation11 + $0x84] ss:$16 sps:$4 sm:$0xff]   ;;  %v6278_v8 = vld [vmem:[#allocation11 + $0x4c] ss:$16 sps:$4 sm:$0xff]   ;;  %s2800_s19 = scalar_select %p2799_p4, 1, 0 }
 0x3a6   : > { %v1597_v63 = vpop.f32.mrf.mxu1  ;;  %4889 = vpow2.f32 %v4532_v58  ;;  %v4533_v0 = vmul.f32 -1.442695, %v1601_v59  ;;  %v1636_v33 = vmul.f32 %v1635_v55, %v6126_v23  ;;  %v1639_v4 = vmul.f32 %v1635_v55, %v6129_v60  ;;  %v6209_v60 = vld [vmem:[#allocation11 + $0xe0] ss:$16 sps:$4 sm:$0xff]   ;;  %v6254_v58 = vld [vmem:[#allocation11 + $0x8c] ss:$16 sps:$4 sm:$0xff]  }
 0x3a7   : > { %v1557_v1 = vpop.f32.mrf.mxu0  ;;  %v4534_v12 = vmul.f32 -1.442695, %v1603_v7  ;;  %v6257_v59 = vld [vmem:[#allocation11 + $0x80] ss:$16 sps:$4 sm:$0xff]   ;;  %v6260_v62 = vld [vmem:[#allocation11 + $0x88] ss:$16 sps:$4 sm:$0xff]  }
 0x3a8   : > { %v1598_v6 = vpop.f32.mrf.mxu1  ;;  %4891 = vpow2.f32 %v4533_v0  ;;  %v6263_v63 = vld [vmem:[#allocation11 + $0x64] ss:$16 sps:$4 sm:$0xff]   ;;  %v6266_v0 = vld [vmem:[#allocation11 + $0x6c] ss:$16 sps:$4 sm:$0xff]   ;;  %v6269_v1 = vld [vmem:[#allocation11 + $0x60] ss:$16 sps:$4 sm:$0xff]  }
 0x3a9   : > { %4893 = vtanh.f32 %v1602_v9  ;;  %v6272_v6 = vld [vmem:[#allocation11 + $0x68] ss:$16 sps:$4 sm:$0xff]   ;;  %v6275_v7 = vld [vmem:[#allocation11 + $0x44] ss:$16 sps:$4 sm:$0xff]   ;;  %v6281_v9 = vld [vmem:[#allocation11 + $0x40] ss:$16 sps:$4 sm:$0xff]  }
 0x3aa   : > { %4895 = vpow2.f32 %v4534_v12  ;;  %v6284_v12 = vld [vmem:[#allocation11 + $0x48] ss:$16 sps:$4 sm:$0xff]   ;;  %s2219_s11 = ssub.f32 1.0, %s2216_s17 }
 0x3b3   : > { %v4890_v13 = vpop.eup %4889 }
 0x3b4   : > { %v1607_v14 = vadd.f32 1.0, %v4890_v13  ;;  %v6287_v13 = vld [vmem:[#allocation11 + $0x24] ss:$16 sps:$4 sm:$0xff]  }
 0x3b5   : > { %v4892_v15 = vpop.eup %4891 }
 0x3b6   : > { %4897 = vrcp.f32 %v1607_v14  ;;  %v1613_v19 = vadd.f32 1.0, %v4892_v15  ;;  %v4894_v20 = vpop.eup %4893  ;;  %v6290_v14 = vld [vmem:[#allocation11 + $0x2c] ss:$16 sps:$4 sm:$0xff]   ;;  %v6293_v15 = vld [vmem:[#allocation11 + $0x20] ss:$16 sps:$4 sm:$0xff]  }
 0x3b7   : > { %v4896_v21 = vpop.eup %4895 }
 0x3b8   : > { %4899 = vrcp.f32 %v1613_v19  ;;  %v1620_v27 = vadd.f32 1.0, %v4896_v21  ;;  %v6296_v19 = vld [vmem:[#allocation11 + $0x28] ss:$16 sps:$4 sm:$0xff]   ;;  %v6302_v21 = vld [vmem:[#allocation11 + $0xc] ss:$16 sps:$4 sm:$0xff]  }
 0x3ba   : > { %4901 = vrcp.f32 %v1620_v27 }
 0x3c3   : > { %v4898_v22 = vpop.eup %4897 }
 0x3c4   : > { %v1624_v25 = vmul.f32 %v4898_v22, %v4894_v20  ;;  %v6299_v20 = vld [vmem:[#allocation11 + $0x4] ss:$16 sps:$4 sm:$0xff]   ;;  %v6305_v22 = vld [vmem:[#allocation11] ss:$16 sps:$4 sm:$0xff]  }
 0x3c5   : > { %v4900_v26 = vpop.eup %4899 }
 0x3c6   : > { %v1623_v43 = vmul.f32 %v4900_v26, %v6126_v23 }
 0x3c7   : > { %v4902_v31 = vpop.eup %4901 }
 0x3c8   : > { %v1625_v37 = vadd.f32 %v1624_v25, %v1623_v43  ;;  %v6308_v25 = vld [vmem:[#allocation11 + $0x8] ss:$16 sps:$4 sm:$0xff]  }
 0x3c9   : > { %v7349_v43 = vld [vmem:[#allocation24_spill] sm:$0xff] }
 0x3ca   : > { %4903 = vtanh.f32 %v1625_v37  ;;  %v1633_v29 = vmul.f32 %v1632_v54, %v1625_v37 }
 0x3cc   : > { %v6195_v18 = vadd.f32 %v1636_v33, %v1633_v29  ;;  %v7350_v33 = vld [vmem:[#allocation26_spill] sm:$0xff] }
 0x3d7   : > { %v4904_v5 = vpop.eup %4903 }
 0x3d8   : > { %v1627_v38 = vmul.f32 %v4904_v5, %v4902_v31 }
 0x3da   : > { %v1638_v3 = vmul.f32 %v1632_v54, %v1627_v38 }
 0x3dc   : > { %v6198_v11 = vadd.f32 %v1639_v4, %v1638_v3 }
 0x3de   : > { %v1642_v16 = vcombine.high %v6198_v11, %v6198_v11  ;;  %v1649_v30 = vrot.slane %v6198_v11, %v6062_v44  ;;  %v1712_v23 = vpack.c.bf16 %v6198_v11, %v6198_v11 }
 0x3e0   : > { %v1656_v53 = vrot.slane %v1642_v16, %v6062_v44  ;;  %v1657_v47 = vcombine.high %v1649_v30, %v1649_v30  ;;  %v1665_v39 = vrot.slane %v1649_v30, %v6062_v44  ;;  %4535 = vst.sshfl [vmem:[%s5667_s13 + $0x2] sm:$0x1 pattern:$0x73625140] %v1649_v30  ;;  %1746 = vmatmul.mubr.bf16.vlgmr.msra.gmra.mxu0 %v1712_v23  ;;  %v7351_v30 = vld [vmem:[#allocation27_spill] sm:$0xff] }
 0x3e1   : > { %1787 = vmatmul.mubr.bf16.vlgmr.msra.gmra.mxu1 %v1712_v23  ;;  %1909 = vmatpush1.bf16.msra.mxu0 %v6209_v60 }
 0x3e2   : > { %1950 = vmatpush1.bf16.msra.mxu1 %v6212_v40  ;;  %v1658_v17 = vcombine.high %v1656_v53, %v1656_v53  ;;  %v1672_v61 = vrot.slane %v1656_v53, %v6062_v44  ;;  %v1679_v35 = vrot.slane %v1657_v47, %v6062_v44  ;;  %v1687_v32 = vcombine.high %v1665_v39, %v1665_v39 }
 0x3e3   : > { %4536 = vst.sshfl [vmem:[%s5667_s13 + $0x12] sm:$0x1 pattern:$0x73625140] %v1657_v47  ;;  %1910 = vmatprep.subr.bf16.mxu0 %v6219_v28  ;;  %1951 = vmatprep.subr.bf16.mxu1 %v6222_v41 }
 0x3e4   : > { %4537 = vst.sshfl [vmem:[%s5667_s13 + $0x42] sm:$0x1 pattern:$0x73625140] %v1656_v53  ;;  %1940 = vmatprep.mubr.bf16.mxu0 %v7347_v2  ;;  %v1686_v36 = vrot.slane %v1658_v17, %v6062_v44  ;;  %v1688_v48 = vcombine.high %v1672_v61, %v1672_v61  ;;  %v1689_v42 = vcombine.high %v1679_v35, %v1679_v35  ;;  %1701 = vst [vmem:[%s5667_s13 + $0x22] sm:$0x1] %v1687_v32 }
 0x3e5   : > { %4538 = vst.sshfl [vmem:[%s5667_s13 + $0x52] sm:$0x1 pattern:$0x73625140] %v1658_v17  ;;  %1981 = vmatprep.mubr.bf16.mxu1 %v7347_v2  ;;  %1911 = vmatpush1.bf16.msra.mxu0 %v6230_v46  ;;  %v7352_v53 = vld [vmem:[#allocation25_spill] sm:$0xff] }
 0x3e6   : > { %1952 = vmatpush1.bf16.msra.mxu1 %v6233_v10  ;;  %v1690_v24 = vcombine.high %v1686_v36, %v1686_v36  ;;  %1702 = vst [vmem:[%s5667_s13 + $0x32] sm:$0x1] %v1689_v42  ;;  %1705 = vst [vmem:[%s5667_s13 + $0x62] sm:$0x1] %v1688_v48  ;;  %1912 = vmatprep.subr.bf16.mxu0 %v6238_v50 }
 0x3e7   : > { %1953 = vmatprep.subr.bf16.mxu1 %v6241_v51 }
 0x3e8   : > { %1706 = vst [vmem:[%s5667_s13 + $0x72] sm:$0x1] %v1690_v24 }
 0x3e9   : > { %1913 = vmatpush1.bf16.msra.mxu0 %v6245_v52 }
 0x3ea   : > { %1954 = vmatpush1.bf16.msra.mxu1 %v6248_v56  ;;  %1914 = vmatprep.subr.bf16.mxu0 %v6251_v57 }
 0x3eb   : > { %1955 = vmatprep.subr.bf16.mxu1 %v6254_v58 }
 0x3ed   : > { %1915 = vmatpush1.bf16.msra.mxu0 %v6257_v59 }
 0x3ee   : > { %1956 = vmatpush1.bf16.msra.mxu1 %v6260_v62  ;;  %1916 = vmatprep.subr.bf16.mxu0 %v6263_v63 }
 0x3ef   : > { %1957 = vmatprep.subr.bf16.mxu1 %v6266_v0 }
 0x3f1   : > { %1917 = vmatpush1.bf16.msra.mxu0 %v6269_v1 }
 0x3f2   : > { %1958 = vmatpush1.bf16.msra.mxu1 %v6272_v6  ;;  %1918 = vmatprep.subr.bf16.mxu0 %v6275_v7 }
 0x3f3   : > { %1959 = vmatprep.subr.bf16.mxu1 %v6278_v8 }
 0x3f5   : > { %1919 = vmatpush1.bf16.msra.mxu0 %v6281_v9 }
 0x3f6   : > { %1960 = vmatpush1.bf16.msra.mxu1 %v6284_v12  ;;  %1920 = vmatprep.subr.bf16.mxu0 %v6287_v13 }
 0x3f7   : > { %1961 = vmatprep.subr.bf16.mxu1 %v6290_v14 }
 0x3f9   : > { %1921 = vmatpush1.bf16.msra.mxu0 %v6293_v15 }
 0x3fa   : > { %1962 = vmatpush1.bf16.msra.mxu1 %v6296_v19  ;;  %1922 = vmatprep.subr.bf16.mxu0 %v6299_v20 }
 0x3fb   : > { %1963 = vmatprep.subr.bf16.mxu1 %v6302_v21 }
 0x3fd   : > { %1923 = vmatpush1.bf16.msra.mxu0 %v6305_v22 }
 0x3fe   : > { %1964 = vmatpush1.bf16.msra.mxu1 %v6308_v25  ;;  %2103 = vmatprep.subr.bf16.mxu0 %v6182_v45 }
 0x3ff   : > { %2144 = vmatprep.subr.bf16.mxu1 %v6185_v49 }
 0x4a0   : > { %v1747_v26 = vpop.f32.mrf.mxu0 }
 0x4a1   : > { %v1788_v27 = vpop.f32.mrf.mxu1  ;;  %v1795_v54 = vadd.f32 %v1747_v26, %v7349_v43 }
 0x4a2   : > { %v1749_v55 = vpop.f32.mrf.mxu0  ;;  %v1797_v47 = vadd.f32 %v1788_v27, %v7352_v53 }
 0x4a3   : > { %v1790_v37 = vpop.f32.mrf.mxu1  ;;  %v4539_v29 = vmul.f32 -1.442695, %v1795_v54  ;;  %v1796_v31 = vadd.f32 %v1749_v55, %v7350_v33  ;;  %v1827_v54 = vstv %s1826_s10  ;;  %v1830_v55 = vstv %s1829_s22  ;;  %s2411_s10 = scvt.s32.f32 %s2410_s24 }
 0x4a4   : > { %v1751_v5 = vpop.f32.mrf.mxu0  ;;  %v1798_v23 = vadd.f32 %v1790_v37, %v7351_v30  ;;  %v1831_v33 = vmul.f32 %v1830_v55, %v6195_v18  ;;  %s2995_s24 = scalar_select %p2994_p11, 1, 0 }
 0x4a5   : > { %v1792_v38 = vpop.f32.mrf.mxu1  ;;  %4905 = vpow2.f32 %v4539_v29  ;;  %v4540_v3 = vmul.f32 -1.442695, %v1796_v31  ;;  %s2414_s22 = ssub.f32 1.0, %s2411_s10 }
 0x4a6   : > { %v1752_v4 = vpop.f32.mrf.mxu0  ;;  %v4541_v39 = vmul.f32 -1.442695, %v1798_v23 }
 0x4a7   : > { %v1793_v16 = vpop.f32.mrf.mxu1  ;;  %4907 = vpow2.f32 %v4540_v3 }
 0x4a8   : > { %4909 = vtanh.f32 %v1797_v47  ;;  %v1834_v16 = vmul.f32 %v1830_v55, %v6198_v11 }
 0x4a9   : > { %4911 = vpow2.f32 %v4541_v39 }
 0x4b2   : > { %v4906_v17 = vpop.eup %4905 }
 0x4b3   : > { %v1802_v61 = vadd.f32 1.0, %v4906_v17 }
 0x4b4   : > { %v4908_v35 = vpop.eup %4907 }
 0x4b5   : > { %4913 = vrcp.f32 %v1802_v61  ;;  %v1808_v32 = vadd.f32 1.0, %v4908_v35  ;;  %v4910_v36 = vpop.eup %4909 }
 0x4b6   : > { %v4912_v48 = vpop.eup %4911 }
 0x4b7   : > { %4915 = vrcp.f32 %v1808_v32  ;;  %v1815_v27 = vadd.f32 1.0, %v4912_v48 }
 0x4b9   : > { %4917 = vrcp.f32 %v1815_v27 }
 0x4c2   : > { %v4914_v42 = vpop.eup %4913 }
 0x4c3   : > { %v1819_v24 = vmul.f32 %v4914_v42, %v4910_v36 }
 0x4c4   : > { %v4916_v26 = vpop.eup %4915 }
 0x4c5   : > { %v1818_v43 = vmul.f32 %v4916_v26, %v6195_v18 }
 0x4c6   : > { %v4918_v5 = vpop.eup %4917 }
 0x4c7   : > { %v1820_v37 = vadd.f32 %v1819_v24, %v1818_v43  ;;  %v7353_v43 = vld [vmem:[#allocation28_spill] sm:$0xff] }
 0x4c9   : > { %4919 = vtanh.f32 %v1820_v37  ;;  %v1828_v29 = vmul.f32 %v1827_v54, %v1820_v37 }
 0x4cb   : > { %v6320_v31 = vadd.f32 %v1831_v33, %v1828_v29  ;;  %v7354_v33 = vld [vmem:[#allocation30_spill] sm:$0xff] }
 0x4d6   : > { %v4920_v38 = vpop.eup %4919 }
 0x4d7   : > { %v1822_v3 = vmul.f32 %v4920_v38, %v4918_v5 }
 0x4d9   : > { %v1833_v4 = vmul.f32 %v1827_v54, %v1822_v3 }
 0x4db   : > { %v6323_v30 = vadd.f32 %v1834_v16, %v1833_v4 }
 0x4dd   : > { %v1837_v23 = vcombine.high %v6323_v30, %v6323_v30  ;;  %v1844_v53 = vrot.slane %v6323_v30, %v6062_v44  ;;  %v1907_v18 = vpack.c.bf16 %v6323_v30, %v6323_v30 }
 0x4df   : > { %v1851_v47 = vrot.slane %v1837_v23, %v6062_v44  ;;  %v1852_v39 = vcombine.high %v1844_v53, %v1844_v53  ;;  %v1860_v17 = vrot.slane %v1844_v53, %v6062_v44  ;;  %4542 = vst.sshfl [vmem:[%s5667_s13 + $0x3] sm:$0x1 pattern:$0x73625140] %v1844_v53  ;;  %1941 = vmatmul.mubr.bf16.vlgmr.msra.gmra.mxu0 %v1907_v18  ;;  %v7355_v53 = vld [vmem:[#allocation31_spill] sm:$0xff] }
 0x4e0   : > { %1982 = vmatmul.mubr.bf16.vlgmr.msra.gmra.mxu1 %v1907_v18  ;;  %2104 = vmatpush1.bf16.msra.mxu0 %v6209_v60 }
 0x4e1   : > { %2145 = vmatpush1.bf16.msra.mxu1 %v6212_v40  ;;  %v1853_v11 = vcombine.high %v1851_v47, %v1851_v47  ;;  %v1867_v61 = vrot.slane %v1851_v47, %v6062_v44  ;;  %v1874_v35 = vrot.slane %v1852_v39, %v6062_v44  ;;  %v1882_v32 = vcombine.high %v1860_v17, %v1860_v17 }
 0x4e2   : > { %4543 = vst.sshfl [vmem:[%s5667_s13 + $0x13] sm:$0x1 pattern:$0x73625140] %v1852_v39  ;;  %2105 = vmatprep.subr.bf16.mxu0 %v6219_v28  ;;  %2146 = vmatprep.subr.bf16.mxu1 %v6222_v41 }
 0x4e3   : > { %4544 = vst.sshfl [vmem:[%s5667_s13 + $0x43] sm:$0x1 pattern:$0x73625140] %v1851_v47  ;;  %2135 = vmatprep.mubr.bf16.mxu0 %v7347_v2  ;;  %v1881_v36 = vrot.slane %v1853_v11, %v6062_v44  ;;  %v1883_v48 = vcombine.high %v1867_v61, %v1867_v61  ;;  %v1884_v42 = vcombine.high %v1874_v35, %v1874_v35  ;;  %1896 = vst [vmem:[%s5667_s13 + $0x23] sm:$0x1] %v1882_v32 }
 0x4e4   : > { %4545 = vst.sshfl [vmem:[%s5667_s13 + $0x53] sm:$0x1 pattern:$0x73625140] %v1853_v11  ;;  %2176 = vmatprep.mubr.bf16.mxu1 %v7347_v2  ;;  %2106 = vmatpush1.bf16.msra.mxu0 %v6230_v46  ;;  %v7356_v47 = vld [vmem:[#allocation29_spill] sm:$0xff] }
 0x4e5   : > { %2147 = vmatpush1.bf16.msra.mxu1 %v6233_v10  ;;  %v1885_v24 = vcombine.high %v1881_v36, %v1881_v36  ;;  %1897 = vst [vmem:[%s5667_s13 + $0x33] sm:$0x1] %v1884_v42  ;;  %1900 = vst [vmem:[%s5667_s13 + $0x63] sm:$0x1] %v1883_v48  ;;  %2107 = vmatprep.subr.bf16.mxu0 %v6238_v50 }
 0x4e6   : > { %2148 = vmatprep.subr.bf16.mxu1 %v6241_v51 }
 0x4e7   : > { %1901 = vst [vmem:[%s5667_s13 + $0x73] sm:$0x1] %v1885_v24 }
 0x4e8   : > { %2108 = vmatpush1.bf16.msra.mxu0 %v6245_v52 }
 0x4e9   : > { %2149 = vmatpush1.bf16.msra.mxu1 %v6248_v56  ;;  %2109 = vmatprep.subr.bf16.mxu0 %v6251_v57 }
 0x4ea   : > { %2150 = vmatprep.subr.bf16.mxu1 %v6254_v58 }
 0x4ec   : > { %2110 = vmatpush1.bf16.msra.mxu0 %v6257_v59 }
 0x4ed   : > { %2151 = vmatpush1.bf16.msra.mxu1 %v6260_v62  ;;  %2111 = vmatprep.subr.bf16.mxu0 %v6263_v63 }
 0x4ee   : > { %2152 = vmatprep.subr.bf16.mxu1 %v6266_v0 }
 0x4f0   : > { %2112 = vmatpush1.bf16.msra.mxu0 %v6269_v1 }
 0x4f1   : > { %2153 = vmatpush1.bf16.msra.mxu1 %v6272_v6  ;;  %2113 = vmatprep.subr.bf16.mxu0 %v6275_v7 }
 0x4f2   : > { %2154 = vmatprep.subr.bf16.mxu1 %v6278_v8 }
 0x4f4   : > { %2114 = vmatpush1.bf16.msra.mxu0 %v6281_v9 }
 0x4f5   : > { %2155 = vmatpush1.bf16.msra.mxu1 %v6284_v12  ;;  %2115 = vmatprep.subr.bf16.mxu0 %v6287_v13 }
 0x4f6   : > { %2156 = vmatprep.subr.bf16.mxu1 %v6290_v14 }
 0x4f8   : > { %2116 = vmatpush1.bf16.msra.mxu0 %v6293_v15 }
 0x4f9   : > { %2157 = vmatpush1.bf16.msra.mxu1 %v6296_v19  ;;  %2117 = vmatprep.subr.bf16.mxu0 %v6299_v20 }
 0x4fa   : > { %2158 = vmatprep.subr.bf16.mxu1 %v6302_v21 }
 0x4fc   : > { %2118 = vmatpush1.bf16.msra.mxu0 %v6305_v22 }
 0x4fd   : > { %2159 = vmatpush1.bf16.msra.mxu1 %v6308_v25  ;;  %2298 = vmatprep.subr.bf16.mxu0 %v6182_v45 }
 0x4fe   : > { %2339 = vmatprep.subr.bf16.mxu1 %v6185_v49 }
 0x59f   : > { %v1942_v26 = vpop.f32.mrf.mxu0 }
 0x5a0   : > { %v1983_v27 = vpop.f32.mrf.mxu1  ;;  %v1990_v54 = vadd.f32 %v1942_v26, %v7353_v43 }
 0x5a1   : > { %v1944_v55 = vpop.f32.mrf.mxu0  ;;  %v1992_v39 = vadd.f32 %v1983_v27, %v7356_v47 }
 0x5a2   : > { %v1985_v37 = vpop.f32.mrf.mxu1  ;;  %v4546_v29 = vmul.f32 -1.442695, %v1990_v54  ;;  %v1991_v5 = vadd.f32 %v1944_v55, %v7354_v33  ;;  %v2022_v54 = vstv %s2021_s18  ;;  %v2025_v55 = vstv %s2024_s26  ;;  %s2606_s18 = scvt.s32.f32 %s2605_s25 }
 0x5a3   : > { %v1946_v38 = vpop.f32.mrf.mxu0  ;;  %v1993_v18 = vadd.f32 %v1985_v37, %v7355_v53  ;;  %v2026_v33 = vmul.f32 %v2025_v55, %v6320_v31  ;;  %s3190_s25 = scalar_select %p3189_p0, 1, 0 }
 0x5a4   : > { %v1987_v3 = vpop.f32.mrf.mxu1  ;;  %4921 = vpow2.f32 %v4546_v29  ;;  %v4547_v4 = vmul.f32 -1.442695, %v1991_v5  ;;  %s2609_s26 = ssub.f32 1.0, %s2606_s18 }
 0x5a5   : > { %v1947_v16 = vpop.f32.mrf.mxu0  ;;  %v4548_v17 = vmul.f32 -1.442695, %v1993_v18 }
 0x5a6   : > { %v1988_v23 = vpop.f32.mrf.mxu1  ;;  %4923 = vpow2.f32 %v4547_v4 }
 0x5a7   : > { %4925 = vtanh.f32 %v1992_v39  ;;  %v2029_v23 = vmul.f32 %v2025_v55, %v6323_v30 }
 0x5a8   : > { %4927 = vpow2.f32 %v4548_v17 }
 0x5b1   : > { %v4922_v11 = vpop.eup %4921 }
 0x5b2   : > { %v1997_v61 = vadd.f32 1.0, %v4922_v11 }
 0x5b3   : > { %v4924_v35 = vpop.eup %4923 }
 0x5b4   : > { %4929 = vrcp.f32 %v1997_v61  ;;  %v2003_v32 = vadd.f32 1.0, %v4924_v35  ;;  %v4926_v36 = vpop.eup %4925 }
 0x5b5   : > { %v4928_v48 = vpop.eup %4927 }
 0x5b6   : > { %4931 = vrcp.f32 %v2003_v32  ;;  %v2010_v27 = vadd.f32 1.0, %v4928_v48 }
 0x5b8   : > { %4933 = vrcp.f32 %v2010_v27 }
 0x5c1   : > { %v4930_v42 = vpop.eup %4929 }
 0x5c2   : > { %v2014_v24 = vmul.f32 %v4930_v42, %v4926_v36 }
 0x5c3   : > { %v4932_v26 = vpop.eup %4931 }
 0x5c4   : > { %v2013_v43 = vmul.f32 %v4932_v26, %v6320_v31 }
 0x5c5   : > { %v4934_v38 = vpop.eup %4933 }
 0x5c6   : > { %v2015_v37 = vadd.f32 %v2014_v24, %v2013_v43  ;;  %v7357_v43 = vld [vmem:[#allocation32_spill] sm:$0xff] }
 0x5c8   : > { %4935 = vtanh.f32 %v2015_v37  ;;  %v2023_v29 = vmul.f32 %v2022_v54, %v2015_v37 }
 0x5ca   : > { %v6385_v5 = vadd.f32 %v2026_v33, %v2023_v29  ;;  %v7358_v33 = vld [vmem:[#allocation34_spill] sm:$0xff] }
 0x5d5   : > { %v4936_v3 = vpop.eup %4935 }
 0x5d6   : > { %v2017_v4 = vmul.f32 %v4936_v3, %v4934_v38 }
 0x5d8   : > { %v2028_v16 = vmul.f32 %v2022_v54, %v2017_v4 }
 0x5da   : > { %v6388_v53 = vadd.f32 %v2029_v23, %v2028_v16 }
 0x5dc   : > { %v2032_v18 = vcombine.high %v6388_v53, %v6388_v53  ;;  %v2039_v47 = vrot.slane %v6388_v53, %v6062_v44  ;;  %v2102_v31 = vpack.c.bf16 %v6388_v53, %v6388_v53 }
 0x5de   : > { %v2046_v39 = vrot.slane %v2032_v18, %v6062_v44  ;;  %v2047_v17 = vcombine.high %v2039_v47, %v2039_v47  ;;  %v2055_v11 = vrot.slane %v2039_v47, %v6062_v44  ;;  %4549 = vst.sshfl [vmem:[%s5667_s13 + $0x4] sm:$0x1 pattern:$0x73625140] %v2039_v47  ;;  %2136 = vmatmul.mubr.bf16.vlgmr.msra.gmra.mxu0 %v2102_v31  ;;  %v7359_v47 = vld [vmem:[#allocation35_spill] sm:$0xff] }
 0x5df   : > { %2177 = vmatmul.mubr.bf16.vlgmr.msra.gmra.mxu1 %v2102_v31  ;;  %2299 = vmatpush1.bf16.msra.mxu0 %v6209_v60 }
 0x5e0   : > { %2340 = vmatpush1.bf16.msra.mxu1 %v6212_v40  ;;  %v2048_v30 = vcombine.high %v2046_v39, %v2046_v39  ;;  %v2062_v61 = vrot.slane %v2046_v39, %v6062_v44  ;;  %v2069_v35 = vrot.slane %v2047_v17, %v6062_v44  ;;  %v2077_v32 = vcombine.high %v2055_v11, %v2055_v11 }
 0x5e1   : > { %4550 = vst.sshfl [vmem:[%s5667_s13 + $0x14] sm:$0x1 pattern:$0x73625140] %v2047_v17  ;;  %2300 = vmatprep.subr.bf16.mxu0 %v6219_v28  ;;  %2341 = vmatprep.subr.bf16.mxu1 %v6222_v41 }
 0x5e2   : > { %4551 = vst.sshfl [vmem:[%s5667_s13 + $0x44] sm:$0x1 pattern:$0x73625140] %v2046_v39  ;;  %2330 = vmatprep.mubr.bf16.mxu0 %v7347_v2  ;;  %v2076_v36 = vrot.slane %v2048_v30, %v6062_v44  ;;  %v2078_v48 = vcombine.high %v2062_v61, %v2062_v61  ;;  %v2079_v42 = vcombine.high %v2069_v35, %v2069_v35  ;;  %2091 = vst [vmem:[%s5667_s13 + $0x24] sm:$0x1] %v2077_v32 }
 0x5e3   : > { %4552 = vst.sshfl [vmem:[%s5667_s13 + $0x54] sm:$0x1 pattern:$0x73625140] %v2048_v30  ;;  %2371 = vmatprep.mubr.bf16.mxu1 %v7347_v2  ;;  %2301 = vmatpush1.bf16.msra.mxu0 %v6230_v46  ;;  %v7360_v39 = vld [vmem:[#allocation33_spill] sm:$0xff] }
 0x5e4   : > { %2342 = vmatpush1.bf16.msra.mxu1 %v6233_v10  ;;  %v2080_v24 = vcombine.high %v2076_v36, %v2076_v36  ;;  %2092 = vst [vmem:[%s5667_s13 + $0x34] sm:$0x1] %v2079_v42  ;;  %2095 = vst [vmem:[%s5667_s13 + $0x64] sm:$0x1] %v2078_v48  ;;  %2302 = vmatprep.subr.bf16.mxu0 %v6238_v50 }
 0x5e5   : > { %2343 = vmatprep.subr.bf16.mxu1 %v6241_v51 }
 0x5e6   : > { %2096 = vst [vmem:[%s5667_s13 + $0x74] sm:$0x1] %v2080_v24 }
 0x5e7   : > { %2303 = vmatpush1.bf16.msra.mxu0 %v6245_v52 }
 0x5e8   : > { %2344 = vmatpush1.bf16.msra.mxu1 %v6248_v56  ;;  %2304 = vmatprep.subr.bf16.mxu0 %v6251_v57 }
 0x5e9   : > { %2345 = vmatprep.subr.bf16.mxu1 %v6254_v58 }
 0x5eb   : > { %2305 = vmatpush1.bf16.msra.mxu0 %v6257_v59 }
 0x5ec   : > { %2346 = vmatpush1.bf16.msra.mxu1 %v6260_v62  ;;  %2306 = vmatprep.subr.bf16.mxu0 %v6263_v63 }
 0x5ed   : > { %2347 = vmatprep.subr.bf16.mxu1 %v6266_v0 }
 0x5ef   : > { %2307 = vmatpush1.bf16.msra.mxu0 %v6269_v1 }
 0x5f0   : > { %2348 = vmatpush1.bf16.msra.mxu1 %v6272_v6  ;;  %2308 = vmatprep.subr.bf16.mxu0 %v6275_v7 }
 0x5f1   : > { %2349 = vmatprep.subr.bf16.mxu1 %v6278_v8 }
 0x5f3   : > { %2309 = vmatpush1.bf16.msra.mxu0 %v6281_v9 }
 0x5f4   : > { %2350 = vmatpush1.bf16.msra.mxu1 %v6284_v12  ;;  %2310 = vmatprep.subr.bf16.mxu0 %v6287_v13 }
 0x5f5   : > { %2351 = vmatprep.subr.bf16.mxu1 %v6290_v14 }
 0x5f7   : > { %2311 = vmatpush1.bf16.msra.mxu0 %v6293_v15 }
 0x5f8   : > { %2352 = vmatpush1.bf16.msra.mxu1 %v6296_v19  ;;  %2312 = vmatprep.subr.bf16.mxu0 %v6299_v20 }
 0x5f9   : > { %2353 = vmatprep.subr.bf16.mxu1 %v6302_v21 }
 0x5fb   : > { %2313 = vmatpush1.bf16.msra.mxu0 %v6305_v22 }
 0x5fc   : > { %2354 = vmatpush1.bf16.msra.mxu1 %v6308_v25  ;;  %2493 = vmatprep.subr.bf16.mxu0 %v6182_v45 }
 0x5fd   : > { %2534 = vmatprep.subr.bf16.mxu1 %v6185_v49 }
 0x69e   : > { %v2137_v26 = vpop.f32.mrf.mxu0 }
 0x69f   : > { %v2178_v27 = vpop.f32.mrf.mxu1  ;;  %v2185_v54 = vadd.f32 %v2137_v26, %v7357_v43 }
 0x6a0   : > { %v2139_v55 = vpop.f32.mrf.mxu0  ;;  %v2187_v17 = vadd.f32 %v2178_v27, %v7360_v39 }
 0x6a1   : > { %v2180_v37 = vpop.f32.mrf.mxu1  ;;  %v4553_v29 = vmul.f32 -1.442695, %v2185_v54  ;;  %v2186_v38 = vadd.f32 %v2139_v55, %v7358_v33  ;;  %v2217_v54 = vstv %s2216_s17  ;;  %v2220_v55 = vstv %s2219_s11  ;;  %s2801_s17 = scvt.s32.f32 %s2800_s19 }
 0x6a2   : > { %v2141_v3 = vpop.f32.mrf.mxu0  ;;  %v2188_v31 = vadd.f32 %v2180_v37, %v7359_v47  ;;  %v2221_v33 = vmul.f32 %v2220_v55, %v6385_v5  ;;  %s3385_s19 = scalar_select %p3384_p8, 1, 0 }
 0x6a3   : > { %v2182_v4 = vpop.f32.mrf.mxu1  ;;  %4937 = vpow2.f32 %v4553_v29  ;;  %v4554_v16 = vmul.f32 -1.442695, %v2186_v38  ;;  %s2804_s11 = ssub.f32 1.0, %s2801_s17 }
 0x6a4   : > { %v2142_v23 = vpop.f32.mrf.mxu0  ;;  %v4555_v11 = vmul.f32 -1.442695, %v2188_v31 }
 0x6a5   : > { %v2183_v18 = vpop.f32.mrf.mxu1  ;;  %4939 = vpow2.f32 %v4554_v16 }
 0x6a6   : > { %4941 = vtanh.f32 %v2187_v17  ;;  %v2224_v18 = vmul.f32 %v2220_v55, %v6388_v53 }
 0x6a7   : > { %4943 = vpow2.f32 %v4555_v11 }
 0x6b0   : > { %v4938_v30 = vpop.eup %4937 }
 0x6b1   : > { %v2192_v61 = vadd.f32 1.0, %v4938_v30 }
 0x6b2   : > { %v4940_v35 = vpop.eup %4939 }
 0x6b3   : > { %4945 = vrcp.f32 %v2192_v61  ;;  %v2198_v32 = vadd.f32 1.0, %v4940_v35  ;;  %v4942_v36 = vpop.eup %4941 }
 0x6b4   : > { %v4944_v48 = vpop.eup %4943 }
 0x6b5   : > { %4947 = vrcp.f32 %v2198_v32  ;;  %v2205_v27 = vadd.f32 1.0, %v4944_v48 }
 0x6b7   : > { %4949 = vrcp.f32 %v2205_v27 }
 0x6c0   : > { %v4946_v42 = vpop.eup %4945 }
 0x6c1   : > { %v2209_v24 = vmul.f32 %v4946_v42, %v4942_v36 }
 0x6c2   : > { %v4948_v26 = vpop.eup %4947 }
 0x6c3   : > { %v2208_v43 = vmul.f32 %v4948_v26, %v6385_v5 }
 0x6c4   : > { %v4950_v3 = vpop.eup %4949 }
 0x6c5   : > { %v2210_v37 = vadd.f32 %v2209_v24, %v2208_v43  ;;  %v7361_v43 = vld [vmem:[#allocation36_spill] sm:$0xff] }
 0x6c7   : > { %4951 = vtanh.f32 %v2210_v37  ;;  %v2218_v29 = vmul.f32 %v2217_v54, %v2210_v37 }
 0x6c9   : > { %v6450_v38 = vadd.f32 %v2221_v33, %v2218_v29  ;;  %v7362_v33 = vld [vmem:[#allocation38_spill] sm:$0xff] }
 0x6d4   : > { %v4952_v4 = vpop.eup %4951 }
 0x6d5   : > { %v2212_v16 = vmul.f32 %v4952_v4, %v4950_v3 }
 0x6d7   : > { %v2223_v23 = vmul.f32 %v2217_v54, %v2212_v16 }
 0x6d9   : > { %v6453_v47 = vadd.f32 %v2224_v18, %v2223_v23 }
 0x6db   : > { %v2227_v31 = vcombine.high %v6453_v47, %v6453_v47  ;;  %v2234_v39 = vrot.slane %v6453_v47, %v6062_v44  ;;  %v2297_v5 = vpack.c.bf16 %v6453_v47, %v6453_v47 }
 0x6dd   : > { %v2241_v17 = vrot.slane %v2227_v31, %v6062_v44  ;;  %v2242_v11 = vcombine.high %v2234_v39, %v2234_v39  ;;  %v2250_v30 = vrot.slane %v2234_v39, %v6062_v44  ;;  %4556 = vst.sshfl [vmem:[%s5667_s13 + $0x5] sm:$0x1 pattern:$0x73625140] %v2234_v39  ;;  %2331 = vmatmul.mubr.bf16.vlgmr.msra.gmra.mxu0 %v2297_v5 }
 0x6de   : > { %2372 = vmatmul.mubr.bf16.vlgmr.msra.gmra.mxu1 %v2297_v5  ;;  %2494 = vmatpush1.bf16.msra.mxu0 %v6209_v60 }
 0x6df   : > { %2535 = vmatpush1.bf16.msra.mxu1 %v6212_v40  ;;  %v2243_v53 = vcombine.high %v2241_v17, %v2241_v17  ;;  %v2257_v61 = vrot.slane %v2241_v17, %v6062_v44  ;;  %v2264_v35 = vrot.slane %v2242_v11, %v6062_v44  ;;  %v2272_v32 = vcombine.high %v2250_v30, %v2250_v30 }
 0x6e0   : > { %4557 = vst.sshfl [vmem:[%s5667_s13 + $0x15] sm:$0x1 pattern:$0x73625140] %v2242_v11  ;;  %2495 = vmatprep.subr.bf16.mxu0 %v6219_v28  ;;  %2536 = vmatprep.subr.bf16.mxu1 %v6222_v41 }
 0x6e1   : > { %4558 = vst.sshfl [vmem:[%s5667_s13 + $0x45] sm:$0x1 pattern:$0x73625140] %v2241_v17  ;;  %2525 = vmatprep.mubr.bf16.mxu0 %v7347_v2  ;;  %v2271_v36 = vrot.slane %v2243_v53, %v6062_v44  ;;  %v2273_v48 = vcombine.high %v2257_v61, %v2257_v61  ;;  %v2274_v42 = vcombine.high %v2264_v35, %v2264_v35  ;;  %2286 = vst [vmem:[%s5667_s13 + $0x25] sm:$0x1] %v2272_v32 }
 0x6e2   : > { %4559 = vst.sshfl [vmem:[%s5667_s13 + $0x55] sm:$0x1 pattern:$0x73625140] %v2243_v53  ;;  %2566 = vmatprep.mubr.bf16.mxu1 %v7347_v2  ;;  %2496 = vmatpush1.bf16.msra.mxu0 %v6230_v46 }
 0x6e3   : > { %2537 = vmatpush1.bf16.msra.mxu1 %v6233_v10  ;;  %v2275_v24 = vcombine.high %v2271_v36, %v2271_v36  ;;  %2287 = vst [vmem:[%s5667_s13 + $0x35] sm:$0x1] %v2274_v42  ;;  %2290 = vst [vmem:[%s5667_s13 + $0x65] sm:$0x1] %v2273_v48  ;;  %2497 = vmatprep.subr.bf16.mxu0 %v6238_v50 }
 0x6e4   : > { %2538 = vmatprep.subr.bf16.mxu1 %v6241_v51 }
 0x6e5   : > { %2291 = vst [vmem:[%s5667_s13 + $0x75] sm:$0x1] %v2275_v24 }
 0x6e6   : > { %2498 = vmatpush1.bf16.msra.mxu0 %v6245_v52 }
 0x6e7   : > { %2539 = vmatpush1.bf16.msra.mxu1 %v6248_v56  ;;  %2499 = vmatprep.subr.bf16.mxu0 %v6251_v57 }
 0x6e8   : > { %2540 = vmatprep.subr.bf16.mxu1 %v6254_v58 }
 0x6ea   : > { %2500 = vmatpush1.bf16.msra.mxu0 %v6257_v59 }
 0x6eb   : > { %2541 = vmatpush1.bf16.msra.mxu1 %v6260_v62  ;;  %2501 = vmatprep.subr.bf16.mxu0 %v6263_v63 }
 0x6ec   : > { %2542 = vmatprep.subr.bf16.mxu1 %v6266_v0 }
 0x6ee   : > { %2502 = vmatpush1.bf16.msra.mxu0 %v6269_v1 }
 0x6ef   : > { %2543 = vmatpush1.bf16.msra.mxu1 %v6272_v6  ;;  %2503 = vmatprep.subr.bf16.mxu0 %v6275_v7 }
 0x6f0   : > { %2544 = vmatprep.subr.bf16.mxu1 %v6278_v8 }
 0x6f2   : > { %2504 = vmatpush1.bf16.msra.mxu0 %v6281_v9 }
 0x6f3   : > { %2545 = vmatpush1.bf16.msra.mxu1 %v6284_v12  ;;  %2505 = vmatprep.subr.bf16.mxu0 %v6287_v13 }
 0x6f4   : > { %2546 = vmatprep.subr.bf16.mxu1 %v6290_v14 }
 0x6f6   : > { %2506 = vmatpush1.bf16.msra.mxu0 %v6293_v15 }
 0x6f7   : > { %2547 = vmatpush1.bf16.msra.mxu1 %v6296_v19  ;;  %2507 = vmatprep.subr.bf16.mxu0 %v6299_v20 }
 0x6f8   : > { %2548 = vmatprep.subr.bf16.mxu1 %v6302_v21 }
 0x6fa   : > { %2508 = vmatpush1.bf16.msra.mxu0 %v6305_v22 }
 0x6fb   : > { %2549 = vmatpush1.bf16.msra.mxu1 %v6308_v25  ;;  %2688 = vmatprep.subr.bf16.mxu0 %v6182_v45  ;;  %v7363_v45 = vld [vmem:[#allocation39_spill] sm:$0xff] }
 0x6fc   : > { %2729 = vmatprep.subr.bf16.mxu1 %v6185_v49  ;;  %v7364_v49 = vld [vmem:[#allocation37_spill] sm:$0xff] }
 0x79d   : > { %v2332_v26 = vpop.f32.mrf.mxu0 }
 0x79e   : > { %v2373_v27 = vpop.f32.mrf.mxu1  ;;  %v2380_v54 = vadd.f32 %v2332_v26, %v7361_v43  ;;  %v2415_v43 = vstv %s2414_s22 }
 0x79f   : > { %v2334_v55 = vpop.f32.mrf.mxu0  ;;  %v2382_v5 = vadd.f32 %v2373_v27, %v7364_v49  ;;  %v2412_v27 = vstv %s2411_s10  ;;  %s2996_s10 = scvt.s32.f32 %s2995_s24 }
 0x7a0   : > { %v2375_v37 = vpop.f32.mrf.mxu1  ;;  %v4560_v29 = vmul.f32 -1.442695, %v2380_v54  ;;  %v2381_v3 = vadd.f32 %v2334_v55, %v7362_v33  ;;  %s3580_s24 = scalar_select %p3579_p1, 1, 0 }
 0x7a1   : > { %v2336_v4 = vpop.f32.mrf.mxu0  ;;  %v2383_v39 = vadd.f32 %v2375_v37, %v7363_v45  ;;  %v2416_v37 = vmul.f32 %v2415_v43, %v6450_v38  ;;  %s2999_s22 = ssub.f32 1.0, %s2996_s10 }
 0x7a2   : > { %v2377_v16 = vpop.f32.mrf.mxu1  ;;  %4953 = vpow2.f32 %v4560_v29  ;;  %v4561_v23 = vmul.f32 -1.442695, %v2381_v3 }
 0x7a3   : > { %v2337_v18 = vpop.f32.mrf.mxu0  ;;  %v4562_v17 = vmul.f32 -1.442695, %v2383_v39 }
 0x7a4   : > { %v2378_v31 = vpop.f32.mrf.mxu1  ;;  %4955 = vpow2.f32 %v4561_v23  ;;  %v2419_v23 = vmul.f32 %v2415_v43, %v6453_v47 }
 0x7a5   : > { %4957 = vtanh.f32 %v2382_v5 }
 0x7a6   : > { %4959 = vpow2.f32 %v4562_v17 }
 0x7af   : > { %v4954_v11 = vpop.eup %4953 }
 0x7b0   : > { %v2387_v30 = vadd.f32 1.0, %v4954_v11 }
 0x7b1   : > { %v4956_v53 = vpop.eup %4955 }
 0x7b2   : > { %4961 = vrcp.f32 %v2387_v30  ;;  %v2393_v61 = vadd.f32 1.0, %v4956_v53  ;;  %v4958_v35 = vpop.eup %4957 }
 0x7b3   : > { %v4960_v32 = vpop.eup %4959 }
 0x7b4   : > { %4963 = vrcp.f32 %v2393_v61  ;;  %v2400_v24 = vadd.f32 1.0, %v4960_v32 }
 0x7b6   : > { %4965 = vrcp.f32 %v2400_v24  ;;  %v2610_v24 = vstv %s2609_s26 }
 0x7bf   : > { %v4962_v36 = vpop.eup %4961 }
 0x7c0   : > { %v2404_v48 = vmul.f32 %v4962_v36, %v4958_v35 }
 0x7c1   : > { %v4964_v42 = vpop.eup %4963 }
 0x7c2   : > { %v2403_v26 = vmul.f32 %v4964_v42, %v6450_v38  ;;  %v2607_v42 = vstv %s2606_s18  ;;  %s3191_s18 = scvt.s32.f32 %s3190_s25 }
 0x7c3   : > { %v4966_v33 = vpop.eup %4965  ;;  %s3775_s25 = scalar_select %p3774_p12, 1, 0 }
 0x7c4   : > { %v2405_v54 = vadd.f32 %v2404_v48, %v2403_v26  ;;  %s3194_s26 = ssub.f32 1.0, %s3191_s18 }
 0x7c6   : > { %4967 = vtanh.f32 %v2405_v54  ;;  %v2413_v55 = vmul.f32 %v2412_v27, %v2405_v54 }
 0x7c8   : > { %v6515_v29 = vadd.f32 %v2416_v37, %v2413_v55 }
 0x7ca   : > { %v2611_v43 = vmul.f32 %v2610_v24, %v6515_v29 }
 0x7d3   : > { %v4968_v3 = vpop.eup %4967 }
 0x7d4   : > { %v2407_v4 = vmul.f32 %v4968_v3, %v4966_v33 }
 0x7d6   : > { %v2418_v16 = vmul.f32 %v2412_v27, %v2407_v4 }
 0x7d8   : > { %v6518_v18 = vadd.f32 %v2419_v23, %v2418_v16 }
 0x7da   : > { %v2422_v31 = vcombine.high %v6518_v18, %v6518_v18  ;;  %v2429_v45 = vrot.slane %v6518_v18, %v6062_v44  ;;  %v2492_v38 = vpack.c.bf16 %v6518_v18, %v6518_v18  ;;  %v2614_v4 = vmul.f32 %v2610_v24, %v6518_v18  ;;  %v6598_v18 = vld [vmem:[#allocation11 + $0xe0] ss:$16 sps:$4 sm:$0xff]  }
 0x7dc   : > { %v2436_v39 = vrot.slane %v2422_v31, %v6062_v44  ;;  %v2437_v49 = vcombine.high %v2429_v45, %v2429_v45  ;;  %v2445_v5 = vrot.slane %v2429_v45, %v6062_v44  ;;  %4563 = vst.sshfl [vmem:[%s5667_s13 + $0x6] sm:$0x1 pattern:$0x73625140] %v2429_v45  ;;  %2526 = vmatmul.mubr.bf16.vlgmr.msra.gmra.mxu0 %v2492_v38 }
 0x7dd   : > { %2567 = vmatmul.mubr.bf16.vlgmr.msra.gmra.mxu1 %v2492_v38  ;;  %2689 = vmatpush1.bf16.msra.mxu0 %v6209_v60 }
 0x7de   : > { %2730 = vmatpush1.bf16.msra.mxu1 %v6212_v40  ;;  %v2438_v47 = vcombine.high %v2436_v39, %v2436_v39  ;;  %v2452_v17 = vrot.slane %v2436_v39, %v6062_v44  ;;  %v2459_v11 = vrot.slane %v2437_v49, %v6062_v44  ;;  %v2467_v30 = vcombine.high %v2445_v5, %v2445_v5 }
 0x7df   : > { %4564 = vst.sshfl [vmem:[%s5667_s13 + $0x16] sm:$0x1 pattern:$0x73625140] %v2437_v49  ;;  %2690 = vmatprep.subr.bf16.mxu0 %v6219_v28  ;;  %2731 = vmatprep.subr.bf16.mxu1 %v6222_v41  ;;  %v6571_v28 = vld [vmem:[#allocation11 + $0xe4] ss:$16 sps:$4 sm:$0xff]  }
 0x7e0   : > { %4565 = vst.sshfl [vmem:[%s5667_s13 + $0x46] sm:$0x1 pattern:$0x73625140] %v2436_v39  ;;  %2720 = vmatprep.mubr.bf16.mxu0 %v7347_v2  ;;  %v2466_v60 = vrot.slane %v2438_v47, %v6062_v44  ;;  %v2468_v40 = vcombine.high %v2452_v17, %v2452_v17  ;;  %v2469_v53 = vcombine.high %v2459_v11, %v2459_v11  ;;  %2481 = vst [vmem:[%s5667_s13 + $0x26] sm:$0x1] %v2467_v30 }
 0x7e1   : > { %4566 = vst.sshfl [vmem:[%s5667_s13 + $0x56] sm:$0x1 pattern:$0x73625140] %v2438_v47  ;;  %2761 = vmatprep.mubr.bf16.mxu1 %v7347_v2  ;;  %2691 = vmatpush1.bf16.msra.mxu0 %v6230_v46  ;;  %v6574_v41 = vld [vmem:[#allocation11 + $0xec] ss:$16 sps:$4 sm:$0xff]  }
 0x7e2   : > { %2732 = vmatpush1.bf16.msra.mxu1 %v6233_v10  ;;  %v2470_v61 = vcombine.high %v2466_v60, %v2466_v60  ;;  %2482 = vst [vmem:[%s5667_s13 + $0x36] sm:$0x1] %v2469_v53  ;;  %2485 = vst [vmem:[%s5667_s13 + $0x66] sm:$0x1] %v2468_v40  ;;  %2692 = vmatprep.subr.bf16.mxu0 %v6238_v50  ;;  %v7365_v50 = vld [vmem:[#allocation40_spill] sm:$0xff] }
 0x7e3   : > { %2733 = vmatprep.subr.bf16.mxu1 %v6241_v51  ;;  %v6601_v49 = vld [vmem:[#allocation11 + $0xe8] ss:$16 sps:$4 sm:$0xff]   ;;  %v6608_v30 = vld [vmem:[#allocation11 + $0xc4] ss:$16 sps:$4 sm:$0xff]   ;;  %v6611_v60 = vld [vmem:[#allocation11 + $0xcc] ss:$16 sps:$4 sm:$0xff]  }
 0x7e4   : > { %2486 = vst [vmem:[%s5667_s13 + $0x76] sm:$0x1] %v2470_v61 }
 0x7e5   : > { %2693 = vmatpush1.bf16.msra.mxu0 %v6245_v52 }
 0x7e6   : > { %2734 = vmatpush1.bf16.msra.mxu1 %v6248_v56  ;;  %2694 = vmatprep.subr.bf16.mxu0 %v6251_v57 }
 0x7e7   : > { %2735 = vmatprep.subr.bf16.mxu1 %v6254_v58  ;;  %v7366_v58 = vld [vmem:[#allocation42_spill] sm:$0xff] }
 0x7e9   : > { %2695 = vmatpush1.bf16.msra.mxu0 %v6257_v59 }
 0x7ea   : > { %2736 = vmatpush1.bf16.msra.mxu1 %v6260_v62  ;;  %2696 = vmatprep.subr.bf16.mxu0 %v6263_v63 }
 0x7eb   : > { %2737 = vmatprep.subr.bf16.mxu1 %v6266_v0 }
 0x7ed   : > { %2697 = vmatpush1.bf16.msra.mxu0 %v6269_v1 }
 0x7ee   : > { %2738 = vmatpush1.bf16.msra.mxu1 %v6272_v6  ;;  %2698 = vmatprep.subr.bf16.mxu0 %v6275_v7  ;;  %v7367_v7 = vld [vmem:[#allocation43_spill] sm:$0xff] }
 0x7ef   : > { %2739 = vmatprep.subr.bf16.mxu1 %v6278_v8 }
 0x7f1   : > { %2699 = vmatpush1.bf16.msra.mxu0 %v6281_v9  ;;  %v7368_v9 = vld [vmem:[#allocation41_spill] sm:$0xff] }
 0x7f2   : > { %2740 = vmatpush1.bf16.msra.mxu1 %v6284_v12  ;;  %2700 = vmatprep.subr.bf16.mxu0 %v6287_v13 }
 0x7f3   : > { %2741 = vmatprep.subr.bf16.mxu1 %v6290_v14 }
 0x7f5   : > { %2701 = vmatpush1.bf16.msra.mxu0 %v6293_v15 }
 0x7f6   : > { %2742 = vmatpush1.bf16.msra.mxu1 %v6296_v19  ;;  %2702 = vmatprep.subr.bf16.mxu0 %v6299_v20 }
 0x7f7   : > { %2743 = vmatprep.subr.bf16.mxu1 %v6302_v21 }
 0x7f9   : > { %2703 = vmatpush1.bf16.msra.mxu0 %v6305_v22 }
 0x7fa   : > { %2744 = vmatpush1.bf16.msra.mxu1 %v6308_v25  ;;  %2883 = vmatprep.subr.bf16.mxu0 %v6571_v28 }
 0x7fb   : > { %2924 = vmatprep.subr.bf16.mxu1 %v6574_v41 }
 0x89c   : > { %v2527_v46 = vpop.f32.mrf.mxu0 }
 0x89d   : > { %v2568_v10 = vpop.f32.mrf.mxu1  ;;  %v2575_v51 = vadd.f32 %v2527_v46, %v7365_v50  ;;  %v6619_v46 = vld [vmem:[#allocation11 + $0xc0] ss:$16 sps:$4 sm:$0xff]  }
 0x89e   : > { %v2529_v52 = vpop.f32.mrf.mxu0  ;;  %v2577_v12 = vadd.f32 %v2568_v10, %v7368_v9  ;;  %v6622_v10 = vld [vmem:[#allocation11 + $0xc8] ss:$16 sps:$4 sm:$0xff]   ;;  %v6667_v9 = vld [vmem:[#allocation11 + $0x4c] ss:$16 sps:$4 sm:$0xff]  }
 0x89f   : > { %v2570_v56 = vpop.f32.mrf.mxu1  ;;  %v4567_v57 = vmul.f32 -1.442695, %v2575_v51  ;;  %v2576_v59 = vadd.f32 %v2529_v52, %v7366_v58  ;;  %v6627_v51 = vld [vmem:[#allocation11 + $0xa4] ss:$16 sps:$4 sm:$0xff]   ;;  %v6630_v52 = vld [vmem:[#allocation11 + $0xac] ss:$16 sps:$4 sm:$0xff]  }
 0x8a0   : > { %v2531_v62 = vpop.f32.mrf.mxu0  ;;  %v2578_v8 = vadd.f32 %v2570_v56, %v7367_v7  ;;  %v6634_v56 = vld [vmem:[#allocation11 + $0xa0] ss:$16 sps:$4 sm:$0xff]   ;;  %v6640_v58 = vld [vmem:[#allocation11 + $0x84] ss:$16 sps:$4 sm:$0xff]   ;;  %v6661_v7 = vld [vmem:[#allocation11 + $0x68] ss:$16 sps:$4 sm:$0xff]  }
 0x8a1   : > { %v2572_v63 = vpop.f32.mrf.mxu1  ;;  %4969 = vpow2.f32 %v4567_v57  ;;  %v4568_v0 = vmul.f32 -1.442695, %v2576_v59  ;;  %v6637_v57 = vld [vmem:[#allocation11 + $0xa8] ss:$16 sps:$4 sm:$0xff]   ;;  %v6643_v59 = vld [vmem:[#allocation11 + $0x8c] ss:$16 sps:$4 sm:$0xff]  }
 0x8a2   : > { %v2532_v1 = vpop.f32.mrf.mxu0  ;;  %v4569_v13 = vmul.f32 -1.442695, %v2578_v8  ;;  %v6646_v62 = vld [vmem:[#allocation11 + $0x80] ss:$16 sps:$4 sm:$0xff]   ;;  %v6649_v63 = vld [vmem:[#allocation11 + $0x88] ss:$16 sps:$4 sm:$0xff]  }
 0x8a3   : > { %v2573_v6 = vpop.f32.mrf.mxu1  ;;  %4971 = vpow2.f32 %v4568_v0  ;;  %v6652_v0 = vld [vmem:[#allocation11 + $0x64] ss:$16 sps:$4 sm:$0xff]   ;;  %v6655_v1 = vld [vmem:[#allocation11 + $0x6c] ss:$16 sps:$4 sm:$0xff]  }
 0x8a4   : > { %4973 = vtanh.f32 %v2577_v12  ;;  %v6658_v6 = vld [vmem:[#allocation11 + $0x60] ss:$16 sps:$4 sm:$0xff]   ;;  %v6664_v8 = vld [vmem:[#allocation11 + $0x44] ss:$16 sps:$4 sm:$0xff]  }
 0x8a5   : > { %4975 = vpow2.f32 %v4569_v13  ;;  %v6670_v12 = vld [vmem:[#allocation11 + $0x40] ss:$16 sps:$4 sm:$0xff]   ;;  %v6673_v13 = vld [vmem:[#allocation11 + $0x48] ss:$16 sps:$4 sm:$0xff]  }
 0x8ae   : > { %v4970_v14 = vpop.eup %4969 }
 0x8af   : > { %v2582_v15 = vadd.f32 1.0, %v4970_v14  ;;  %v6676_v14 = vld [vmem:[#allocation11 + $0x24] ss:$16 sps:$4 sm:$0xff]  }
 0x8b0   : > { %v4972_v19 = vpop.eup %4971 }
 0x8b1   : > { %4977 = vrcp.f32 %v2582_v15  ;;  %v2588_v20 = vadd.f32 1.0, %v4972_v19  ;;  %v4974_v21 = vpop.eup %4973  ;;  %v6679_v15 = vld [vmem:[#allocation11 + $0x2c] ss:$16 sps:$4 sm:$0xff]   ;;  %v6682_v19 = vld [vmem:[#allocation11 + $0x20] ss:$16 sps:$4 sm:$0xff]  }
 0x8b2   : > { %v4976_v22 = vpop.eup %4975 }
 0x8b3   : > { %4979 = vrcp.f32 %v2588_v20  ;;  %v2595_v36 = vadd.f32 1.0, %v4976_v22  ;;  %v6685_v20 = vld [vmem:[#allocation11 + $0x28] ss:$16 sps:$4 sm:$0xff]   ;;  %v6691_v22 = vld [vmem:[#allocation11 + $0xc] ss:$16 sps:$4 sm:$0xff]  }
 0x8b5   : > { %4981 = vrcp.f32 %v2595_v36 }
 0x8be   : > { %v4978_v25 = vpop.eup %4977 }
 0x8bf   : > { %v2599_v35 = vmul.f32 %v4978_v25, %v4974_v21  ;;  %v6688_v21 = vld [vmem:[#allocation11 + $0x4] ss:$16 sps:$4 sm:$0xff]   ;;  %v6694_v25 = vld [vmem:[#allocation11] ss:$16 sps:$4 sm:$0xff]  }
 0x8c0   : > { %v4980_v32 = vpop.eup %4979 }
 0x8c1   : > { %v2598_v48 = vmul.f32 %v4980_v32, %v6515_v29 }
 0x8c2   : > { %v4982_v55 = vpop.eup %4981 }
 0x8c3   : > { %v2600_v26 = vadd.f32 %v2599_v35, %v2598_v48  ;;  %v6697_v35 = vld [vmem:[#allocation11 + $0x8] ss:$16 sps:$4 sm:$0xff]  }
 0x8c4   : > { %v7369_v48 = vld [vmem:[#allocation44_spill] sm:$0xff] }
 0x8c5   : > { %4983 = vtanh.f32 %v2600_v26  ;;  %v2608_v27 = vmul.f32 %v2607_v42, %v2600_v26 }
 0x8c7   : > { %v6584_v54 = vadd.f32 %v2611_v43, %v2608_v27  ;;  %v7370_v43 = vld [vmem:[#allocation46_spill] sm:$0xff] }
 0x8d2   : > { %v4984_v37 = vpop.eup %4983 }
 0x8d3   : > { %v2602_v33 = vmul.f32 %v4984_v37, %v4982_v55 }
 0x8d5   : > { %v2613_v3 = vmul.f32 %v2607_v42, %v2602_v33 }
 0x8d7   : > { %v6587_v16 = vadd.f32 %v2614_v4, %v2613_v3 }
 0x8d9   : > { %v2617_v23 = vcombine.high %v6587_v16, %v6587_v16  ;;  %v2624_v31 = vrot.slane %v6587_v16, %v6062_v44  ;;  %v2687_v29 = vpack.c.bf16 %v6587_v16, %v6587_v16 }
 0x8db   : > { %v2631_v45 = vrot.slane %v2617_v23, %v6062_v44  ;;  %v2632_v38 = vcombine.high %v2624_v31, %v2624_v31  ;;  %v2640_v39 = vrot.slane %v2624_v31, %v6062_v44  ;;  %4570 = vst.sshfl [vmem:[%s5667_s13 + $0x7] sm:$0x1 pattern:$0x73625140] %v2624_v31  ;;  %2721 = vmatmul.mubr.bf16.vlgmr.msra.gmra.mxu0 %v2687_v29  ;;  %v7371_v31 = vld [vmem:[#allocation47_spill] sm:$0xff] }
 0x8dc   : > { %2762 = vmatmul.mubr.bf16.vlgmr.msra.gmra.mxu1 %v2687_v29  ;;  %2884 = vmatpush1.bf16.msra.mxu0 %v6598_v18 }
 0x8dd   : > { %2925 = vmatpush1.bf16.msra.mxu1 %v6601_v49  ;;  %v2633_v5 = vcombine.high %v2631_v45, %v2631_v45  ;;  %v2647_v47 = vrot.slane %v2631_v45, %v6062_v44  ;;  %v2654_v17 = vrot.slane %v2632_v38, %v6062_v44  ;;  %v2662_v11 = vcombine.high %v2640_v39, %v2640_v39 }
 0x8de   : > { %4571 = vst.sshfl [vmem:[%s5667_s13 + $0x17] sm:$0x1 pattern:$0x73625140] %v2632_v38  ;;  %2885 = vmatprep.subr.bf16.mxu0 %v6608_v30  ;;  %2926 = vmatprep.subr.bf16.mxu1 %v6611_v60 }
 0x8df   : > { %4572 = vst.sshfl [vmem:[%s5667_s13 + $0x47] sm:$0x1 pattern:$0x73625140] %v2631_v45  ;;  %2915 = vmatprep.mubr.bf16.mxu0 %v7347_v2  ;;  %v2661_v40 = vrot.slane %v2633_v5, %v6062_v44  ;;  %v2663_v53 = vcombine.high %v2647_v47, %v2647_v47  ;;  %v2664_v61 = vcombine.high %v2654_v17, %v2654_v17  ;;  %2676 = vst [vmem:[%s5667_s13 + $0x27] sm:$0x1] %v2662_v11 }
 0x8e0   : > { %4573 = vst.sshfl [vmem:[%s5667_s13 + $0x57] sm:$0x1 pattern:$0x73625140] %v2633_v5  ;;  %2956 = vmatprep.mubr.bf16.mxu1 %v7347_v2  ;;  %2886 = vmatpush1.bf16.msra.mxu0 %v6619_v46  ;;  %v7372_v45 = vld [vmem:[#allocation45_spill] sm:$0xff] }
 0x8e1   : > { %2927 = vmatpush1.bf16.msra.mxu1 %v6622_v10  ;;  %v2665_v50 = vcombine.high %v2661_v40, %v2661_v40  ;;  %2677 = vst [vmem:[%s5667_s13 + $0x37] sm:$0x1] %v2664_v61  ;;  %2680 = vst [vmem:[%s5667_s13 + $0x67] sm:$0x1] %v2663_v53  ;;  %2887 = vmatprep.subr.bf16.mxu0 %v6627_v51 }
 0x8e2   : > { %2928 = vmatprep.subr.bf16.mxu1 %v6630_v52 }
 0x8e3   : > { %2681 = vst [vmem:[%s5667_s13 + $0x77] sm:$0x1] %v2665_v50 }
 0x8e4   : > { %2888 = vmatpush1.bf16.msra.mxu0 %v6634_v56 }
 0x8e5   : > { %2929 = vmatpush1.bf16.msra.mxu1 %v6637_v57  ;;  %2889 = vmatprep.subr.bf16.mxu0 %v6640_v58 }
 0x8e6   : > { %2930 = vmatprep.subr.bf16.mxu1 %v6643_v59 }
 0x8e8   : > { %2890 = vmatpush1.bf16.msra.mxu0 %v6646_v62 }
 0x8e9   : > { %2931 = vmatpush1.bf16.msra.mxu1 %v6649_v63  ;;  %2891 = vmatprep.subr.bf16.mxu0 %v6652_v0 }
 0x8ea   : > { %2932 = vmatprep.subr.bf16.mxu1 %v6655_v1 }
 0x8ec   : > { %2892 = vmatpush1.bf16.msra.mxu0 %v6658_v6 }
 0x8ed   : > { %2933 = vmatpush1.bf16.msra.mxu1 %v6661_v7  ;;  %2893 = vmatprep.subr.bf16.mxu0 %v6664_v8 }
 0x8ee   : > { %2934 = vmatprep.subr.bf16.mxu1 %v6667_v9 }
 0x8f0   : > { %2894 = vmatpush1.bf16.msra.mxu0 %v6670_v12 }
 0x8f1   : > { %2935 = vmatpush1.bf16.msra.mxu1 %v6673_v13  ;;  %2895 = vmatprep.subr.bf16.mxu0 %v6676_v14 }
 0x8f2   : > { %2936 = vmatprep.subr.bf16.mxu1 %v6679_v15 }
 0x8f4   : > { %2896 = vmatpush1.bf16.msra.mxu0 %v6682_v19 }
 0x8f5   : > { %2937 = vmatpush1.bf16.msra.mxu1 %v6685_v20  ;;  %2897 = vmatprep.subr.bf16.mxu0 %v6688_v21 }
 0x8f6   : > { %2938 = vmatprep.subr.bf16.mxu1 %v6691_v22 }
 0x8f8   : > { %2898 = vmatpush1.bf16.msra.mxu0 %v6694_v25 }
 0x8f9   : > { %2939 = vmatpush1.bf16.msra.mxu1 %v6697_v35  ;;  %3078 = vmatprep.subr.bf16.mxu0 %v6571_v28 }
 0x8fa   : > { %3119 = vmatprep.subr.bf16.mxu1 %v6574_v41 }
 0x99b   : > { %v2722_v32 = vpop.f32.mrf.mxu0 }
 0x99c   : > { %v2763_v36 = vpop.f32.mrf.mxu1  ;;  %v2770_v42 = vadd.f32 %v2722_v32, %v7369_v48 }
 0x99d   : > { %v2724_v24 = vpop.f32.mrf.mxu0  ;;  %v2772_v38 = vadd.f32 %v2763_v36, %v7372_v45 }
 0x99e   : > { %v2765_v26 = vpop.f32.mrf.mxu1  ;;  %v4574_v27 = vmul.f32 -1.442695, %v2770_v42  ;;  %v2771_v55 = vadd.f32 %v2724_v24, %v7370_v43  ;;  %v2802_v42 = vstv %s2801_s17  ;;  %v2805_v24 = vstv %s2804_s11  ;;  %s3386_s17 = scvt.s32.f32 %s3385_s19 }
 0x99f   : > { %v2726_v37 = vpop.f32.mrf.mxu0  ;;  %v2773_v29 = vadd.f32 %v2765_v26, %v7371_v31  ;;  %v2806_v43 = vmul.f32 %v2805_v24, %v6584_v54  ;;  %s3970_s19 = scalar_select %p3969_p2, 1, 0 }
 0x9a0   : > { %v2767_v33 = vpop.f32.mrf.mxu1  ;;  %4985 = vpow2.f32 %v4574_v27  ;;  %v4575_v3 = vmul.f32 -1.442695, %v2771_v55  ;;  %s3389_s11 = ssub.f32 1.0, %s3386_s17 }
 0x9a1   : > { %v2727_v4 = vpop.f32.mrf.mxu0  ;;  %v4576_v39 = vmul.f32 -1.442695, %v2773_v29 }
 0x9a2   : > { %v2768_v23 = vpop.f32.mrf.mxu1  ;;  %4987 = vpow2.f32 %v4575_v3 }
 0x9a3   : > { %4989 = vtanh.f32 %v2772_v38  ;;  %v2809_v23 = vmul.f32 %v2805_v24, %v6587_v16 }
 0x9a4   : > { %4991 = vpow2.f32 %v4576_v39 }
 0x9ad   : > { %v4986_v5 = vpop.eup %4985 }
 0x9ae   : > { %v2777_v47 = vadd.f32 1.0, %v4986_v5 }
 0x9af   : > { %v4988_v17 = vpop.eup %4987 }
 0x9b0   : > { %4993 = vrcp.f32 %v2777_v47  ;;  %v2783_v11 = vadd.f32 1.0, %v4988_v17  ;;  %v4990_v40 = vpop.eup %4989 }
 0x9b1   : > { %v4992_v53 = vpop.eup %4991 }
 0x9b2   : > { %4995 = vrcp.f32 %v2783_v11  ;;  %v2790_v36 = vadd.f32 1.0, %v4992_v53 }
 0x9b4   : > { %4997 = vrcp.f32 %v2790_v36 }
 0x9bd   : > { %v4994_v61 = vpop.eup %4993 }
 0x9be   : > { %v2794_v50 = vmul.f32 %v4994_v61, %v4990_v40 }
 0x9bf   : > { %v4996_v32 = vpop.eup %4995 }
 0x9c0   : > { %v2793_v48 = vmul.f32 %v4996_v32, %v6584_v54 }
 0x9c1   : > { %v4998_v37 = vpop.eup %4997 }
 0x9c2   : > { %v2795_v26 = vadd.f32 %v2794_v50, %v2793_v48  ;;  %v7373_v48 = vld [vmem:[#allocation48_spill] sm:$0xff] }
 0x9c4   : > { %4999 = vtanh.f32 %v2795_v26  ;;  %v2803_v27 = vmul.f32 %v2802_v42, %v2795_v26 }
 0x9c6   : > { %v6709_v55 = vadd.f32 %v2806_v43, %v2803_v27  ;;  %v7374_v43 = vld [vmem:[#allocation50_spill] sm:$0xff] }
 0x9d1   : > { %v5000_v33 = vpop.eup %4999 }
 0x9d2   : > { %v2797_v3 = vmul.f32 %v5000_v33, %v4998_v37 }
 0x9d4   : > { %v2808_v4 = vmul.f32 %v2802_v42, %v2797_v3 }
 0x9d6   : > { %v6712_v31 = vadd.f32 %v2809_v23, %v2808_v4 }
 0x9d8   : > { %v2812_v29 = vcombine.high %v6712_v31, %v6712_v31  ;;  %v2819_v45 = vrot.slane %v6712_v31, %v6062_v44  ;;  %v2882_v54 = vpack.c.bf16 %v6712_v31, %v6712_v31 }
 0x9da   : > { %v2826_v38 = vrot.slane %v2812_v29, %v6062_v44  ;;  %v2827_v39 = vcombine.high %v2819_v45, %v2819_v45  ;;  %v2835_v5 = vrot.slane %v2819_v45, %v6062_v44  ;;  %4577 = vst.sshfl [vmem:[%s5667_s13 + $0x8] sm:$0x1 pattern:$0x73625140] %v2819_v45  ;;  %2916 = vmatmul.mubr.bf16.vlgmr.msra.gmra.mxu0 %v2882_v54  ;;  %v7375_v45 = vld [vmem:[#allocation51_spill] sm:$0xff] }
 0x9db   : > { %2957 = vmatmul.mubr.bf16.vlgmr.msra.gmra.mxu1 %v2882_v54  ;;  %3079 = vmatpush1.bf16.msra.mxu0 %v6598_v18 }
 0x9dc   : > { %3120 = vmatpush1.bf16.msra.mxu1 %v6601_v49  ;;  %v2828_v16 = vcombine.high %v2826_v38, %v2826_v38  ;;  %v2842_v47 = vrot.slane %v2826_v38, %v6062_v44  ;;  %v2849_v17 = vrot.slane %v2827_v39, %v6062_v44  ;;  %v2857_v11 = vcombine.high %v2835_v5, %v2835_v5 }
 0x9dd   : > { %4578 = vst.sshfl [vmem:[%s5667_s13 + $0x18] sm:$0x1 pattern:$0x73625140] %v2827_v39  ;;  %3080 = vmatprep.subr.bf16.mxu0 %v6608_v30  ;;  %3121 = vmatprep.subr.bf16.mxu1 %v6611_v60 }
 0x9de   : > { %4579 = vst.sshfl [vmem:[%s5667_s13 + $0x48] sm:$0x1 pattern:$0x73625140] %v2826_v38  ;;  %3110 = vmatprep.mubr.bf16.mxu0 %v7347_v2  ;;  %v2856_v40 = vrot.slane %v2828_v16, %v6062_v44  ;;  %v2858_v53 = vcombine.high %v2842_v47, %v2842_v47  ;;  %v2859_v61 = vcombine.high %v2849_v17, %v2849_v17  ;;  %2871 = vst [vmem:[%s5667_s13 + $0x28] sm:$0x1] %v2857_v11 }
 0x9df   : > { %4580 = vst.sshfl [vmem:[%s5667_s13 + $0x58] sm:$0x1 pattern:$0x73625140] %v2828_v16  ;;  %3151 = vmatprep.mubr.bf16.mxu1 %v7347_v2  ;;  %3081 = vmatpush1.bf16.msra.mxu0 %v6619_v46  ;;  %v7376_v38 = vld [vmem:[#allocation49_spill] sm:$0xff] }
 0x9e0   : > { %3122 = vmatpush1.bf16.msra.mxu1 %v6622_v10  ;;  %v2860_v50 = vcombine.high %v2856_v40, %v2856_v40  ;;  %2872 = vst [vmem:[%s5667_s13 + $0x38] sm:$0x1] %v2859_v61  ;;  %2875 = vst [vmem:[%s5667_s13 + $0x68] sm:$0x1] %v2858_v53  ;;  %3082 = vmatprep.subr.bf16.mxu0 %v6627_v51 }
 0x9e1   : > { %3123 = vmatprep.subr.bf16.mxu1 %v6630_v52 }
 0x9e2   : > { %2876 = vst [vmem:[%s5667_s13 + $0x78] sm:$0x1] %v2860_v50 }
 0x9e3   : > { %3083 = vmatpush1.bf16.msra.mxu0 %v6634_v56 }
 0x9e4   : > { %3124 = vmatpush1.bf16.msra.mxu1 %v6637_v57  ;;  %3084 = vmatprep.subr.bf16.mxu0 %v6640_v58 }
 0x9e5   : > { %3125 = vmatprep.subr.bf16.mxu1 %v6643_v59 }
 0x9e7   : > { %3085 = vmatpush1.bf16.msra.mxu0 %v6646_v62 }
 0x9e8   : > { %3126 = vmatpush1.bf16.msra.mxu1 %v6649_v63  ;;  %3086 = vmatprep.subr.bf16.mxu0 %v6652_v0 }
 0x9e9   : > { %3127 = vmatprep.subr.bf16.mxu1 %v6655_v1 }
 0x9eb   : > { %3087 = vmatpush1.bf16.msra.mxu0 %v6658_v6 }
 0x9ec   : > { %3128 = vmatpush1.bf16.msra.mxu1 %v6661_v7  ;;  %3088 = vmatprep.subr.bf16.mxu0 %v6664_v8 }
 0x9ed   : > { %3129 = vmatprep.subr.bf16.mxu1 %v6667_v9 }
 0x9ef   : > { %3089 = vmatpush1.bf16.msra.mxu0 %v6670_v12 }
 0x9f0   : > { %3130 = vmatpush1.bf16.msra.mxu1 %v6673_v13  ;;  %3090 = vmatprep.subr.bf16.mxu0 %v6676_v14 }
 0x9f1   : > { %3131 = vmatprep.subr.bf16.mxu1 %v6679_v15 }
 0x9f3   : > { %3091 = vmatpush1.bf16.msra.mxu0 %v6682_v19 }
 0x9f4   : > { %3132 = vmatpush1.bf16.msra.mxu1 %v6685_v20  ;;  %3092 = vmatprep.subr.bf16.mxu0 %v6688_v21 }
 0x9f5   : > { %3133 = vmatprep.subr.bf16.mxu1 %v6691_v22 }
 0x9f7   : > { %3093 = vmatpush1.bf16.msra.mxu0 %v6694_v25 }
 0x9f8   : > { %3134 = vmatpush1.bf16.msra.mxu1 %v6697_v35  ;;  %3273 = vmatprep.subr.bf16.mxu0 %v6571_v28 }
 0x9f9   : > { %3314 = vmatprep.subr.bf16.mxu1 %v6574_v41 }
 0xa9a   : > { %v2917_v32 = vpop.f32.mrf.mxu0 }
 0xa9b   : > { %v2958_v36 = vpop.f32.mrf.mxu1  ;;  %v2965_v42 = vadd.f32 %v2917_v32, %v7373_v48 }
 0xa9c   : > { %v2919_v24 = vpop.f32.mrf.mxu0  ;;  %v2967_v39 = vadd.f32 %v2958_v36, %v7376_v38 }
 0xa9d   : > { %v2960_v26 = vpop.f32.mrf.mxu1  ;;  %v4581_v27 = vmul.f32 -1.442695, %v2965_v42  ;;  %v2966_v37 = vadd.f32 %v2919_v24, %v7374_v43  ;;  %v2997_v42 = vstv %s2996_s10  ;;  %v3000_v24 = vstv %s2999_s22  ;;  %s3581_s10 = scvt.s32.f32 %s3580_s24 }
 0xa9e   : > { %v2921_v33 = vpop.f32.mrf.mxu0  ;;  %v2968_v54 = vadd.f32 %v2960_v26, %v7375_v45  ;;  %v3001_v43 = vmul.f32 %v3000_v24, %v6709_v55  ;;  %s4165_s24 = scalar_select %p4164_p3, 1, 0 }
 0xa9f   : > { %v2962_v3 = vpop.f32.mrf.mxu1  ;;  %5001 = vpow2.f32 %v4581_v27  ;;  %v4582_v4 = vmul.f32 -1.442695, %v2966_v37  ;;  %s3584_s22 = ssub.f32 1.0, %s3581_s10 }
 0xaa0   : > { %v2922_v23 = vpop.f32.mrf.mxu0  ;;  %v4583_v5 = vmul.f32 -1.442695, %v2968_v54 }
 0xaa1   : > { %v2963_v29 = vpop.f32.mrf.mxu1  ;;  %5003 = vpow2.f32 %v4582_v4 }
 0xaa2   : > { %5005 = vtanh.f32 %v2967_v39  ;;  %v3004_v29 = vmul.f32 %v3000_v24, %v6712_v31 }
 0xaa3   : > { %5007 = vpow2.f32 %v4583_v5 }
 0xaac   : > { %v5002_v16 = vpop.eup %5001 }
 0xaad   : > { %v2972_v47 = vadd.f32 1.0, %v5002_v16 }
 0xaae   : > { %v5004_v17 = vpop.eup %5003 }
 0xaaf   : > { %5009 = vrcp.f32 %v2972_v47  ;;  %v2978_v11 = vadd.f32 1.0, %v5004_v17  ;;  %v5006_v40 = vpop.eup %5005 }
 0xab0   : > { %v5008_v53 = vpop.eup %5007 }
 0xab1   : > { %5011 = vrcp.f32 %v2978_v11  ;;  %v2985_v36 = vadd.f32 1.0, %v5008_v53 }
 0xab3   : > { %5013 = vrcp.f32 %v2985_v36 }
 0xabc   : > { %v5010_v61 = vpop.eup %5009 }
 0xabd   : > { %v2989_v50 = vmul.f32 %v5010_v61, %v5006_v40 }
 0xabe   : > { %v5012_v32 = vpop.eup %5011 }
 0xabf   : > { %v2988_v48 = vmul.f32 %v5012_v32, %v6709_v55 }
 0xac0   : > { %v5014_v33 = vpop.eup %5013 }
 0xac1   : > { %v2990_v26 = vadd.f32 %v2989_v50, %v2988_v48  ;;  %v7377_v48 = vld [vmem:[#allocation52_spill] sm:$0xff] }
 0xac3   : > { %5015 = vtanh.f32 %v2990_v26  ;;  %v2998_v27 = vmul.f32 %v2997_v42, %v2990_v26 }
 0xac5   : > { %v6774_v37 = vadd.f32 %v3001_v43, %v2998_v27  ;;  %v7378_v43 = vld [vmem:[#allocation54_spill] sm:$0xff] }
 0xad0   : > { %v5016_v3 = vpop.eup %5015 }
 0xad1   : > { %v2992_v4 = vmul.f32 %v5016_v3, %v5014_v33 }
 0xad3   : > { %v3003_v23 = vmul.f32 %v2997_v42, %v2992_v4 }
 0xad5   : > { %v6777_v45 = vadd.f32 %v3004_v29, %v3003_v23 }
 0xad7   : > { %v3007_v54 = vcombine.high %v6777_v45, %v6777_v45  ;;  %v3014_v38 = vrot.slane %v6777_v45, %v6062_v44  ;;  %v3077_v55 = vpack.c.bf16 %v6777_v45, %v6777_v45 }
 0xad9   : > { %v3021_v39 = vrot.slane %v3007_v54, %v6062_v44  ;;  %v3022_v5 = vcombine.high %v3014_v38, %v3014_v38  ;;  %v3030_v16 = vrot.slane %v3014_v38, %v6062_v44  ;;  %4584 = vst.sshfl [vmem:[%s5667_s13 + $0x9] sm:$0x1 pattern:$0x73625140] %v3014_v38  ;;  %3111 = vmatmul.mubr.bf16.vlgmr.msra.gmra.mxu0 %v3077_v55  ;;  %v7379_v38 = vld [vmem:[#allocation55_spill] sm:$0xff] }
 0xada   : > { %3152 = vmatmul.mubr.bf16.vlgmr.msra.gmra.mxu1 %v3077_v55  ;;  %3274 = vmatpush1.bf16.msra.mxu0 %v6598_v18 }
 0xadb   : > { %3315 = vmatpush1.bf16.msra.mxu1 %v6601_v49  ;;  %v3023_v31 = vcombine.high %v3021_v39, %v3021_v39  ;;  %v3037_v47 = vrot.slane %v3021_v39, %v6062_v44  ;;  %v3044_v17 = vrot.slane %v3022_v5, %v6062_v44  ;;  %v3052_v11 = vcombine.high %v3030_v16, %v3030_v16 }
 0xadc   : > { %4585 = vst.sshfl [vmem:[%s5667_s13 + $0x19] sm:$0x1 pattern:$0x73625140] %v3022_v5  ;;  %3275 = vmatprep.subr.bf16.mxu0 %v6608_v30  ;;  %3316 = vmatprep.subr.bf16.mxu1 %v6611_v60 }
 0xadd   : > { %4586 = vst.sshfl [vmem:[%s5667_s13 + $0x49] sm:$0x1 pattern:$0x73625140] %v3021_v39  ;;  %3305 = vmatprep.mubr.bf16.mxu0 %v7347_v2  ;;  %v3051_v40 = vrot.slane %v3023_v31, %v6062_v44  ;;  %v3053_v53 = vcombine.high %v3037_v47, %v3037_v47  ;;  %v3054_v61 = vcombine.high %v3044_v17, %v3044_v17  ;;  %3066 = vst [vmem:[%s5667_s13 + $0x29] sm:$0x1] %v3052_v11 }
 0xade   : > { %4587 = vst.sshfl [vmem:[%s5667_s13 + $0x59] sm:$0x1 pattern:$0x73625140] %v3023_v31  ;;  %3346 = vmatprep.mubr.bf16.mxu1 %v7347_v2  ;;  %3276 = vmatpush1.bf16.msra.mxu0 %v6619_v46  ;;  %v7380_v39 = vld [vmem:[#allocation53_spill] sm:$0xff] }
 0xadf   : > { %3317 = vmatpush1.bf16.msra.mxu1 %v6622_v10  ;;  %v3055_v50 = vcombine.high %v3051_v40, %v3051_v40  ;;  %3067 = vst [vmem:[%s5667_s13 + $0x39] sm:$0x1] %v3054_v61  ;;  %3070 = vst [vmem:[%s5667_s13 + $0x69] sm:$0x1] %v3053_v53  ;;  %3277 = vmatprep.subr.bf16.mxu0 %v6627_v51 }
 0xae0   : > { %3318 = vmatprep.subr.bf16.mxu1 %v6630_v52 }
 0xae1   : > { %3071 = vst [vmem:[%s5667_s13 + $0x79] sm:$0x1] %v3055_v50 }
 0xae2   : > { %3278 = vmatpush1.bf16.msra.mxu0 %v6634_v56 }
 0xae3   : > { %3319 = vmatpush1.bf16.msra.mxu1 %v6637_v57  ;;  %3279 = vmatprep.subr.bf16.mxu0 %v6640_v58 }
 0xae4   : > { %3320 = vmatprep.subr.bf16.mxu1 %v6643_v59 }
 0xae6   : > { %3280 = vmatpush1.bf16.msra.mxu0 %v6646_v62 }
 0xae7   : > { %3321 = vmatpush1.bf16.msra.mxu1 %v6649_v63  ;;  %3281 = vmatprep.subr.bf16.mxu0 %v6652_v0 }
 0xae8   : > { %3322 = vmatprep.subr.bf16.mxu1 %v6655_v1 }
 0xaea   : > { %3282 = vmatpush1.bf16.msra.mxu0 %v6658_v6 }
 0xaeb   : > { %3323 = vmatpush1.bf16.msra.mxu1 %v6661_v7  ;;  %3283 = vmatprep.subr.bf16.mxu0 %v6664_v8 }
 0xaec   : > { %3324 = vmatprep.subr.bf16.mxu1 %v6667_v9 }
 0xaee   : > { %3284 = vmatpush1.bf16.msra.mxu0 %v6670_v12 }
 0xaef   : > { %3325 = vmatpush1.bf16.msra.mxu1 %v6673_v13  ;;  %3285 = vmatprep.subr.bf16.mxu0 %v6676_v14 }
 0xaf0   : > { %3326 = vmatprep.subr.bf16.mxu1 %v6679_v15 }
 0xaf2   : > { %3286 = vmatpush1.bf16.msra.mxu0 %v6682_v19 }
 0xaf3   : > { %3327 = vmatpush1.bf16.msra.mxu1 %v6685_v20  ;;  %3287 = vmatprep.subr.bf16.mxu0 %v6688_v21 }
 0xaf4   : > { %3328 = vmatprep.subr.bf16.mxu1 %v6691_v22 }
 0xaf6   : > { %3288 = vmatpush1.bf16.msra.mxu0 %v6694_v25 }
 0xaf7   : > { %3329 = vmatpush1.bf16.msra.mxu1 %v6697_v35  ;;  %3468 = vmatprep.subr.bf16.mxu0 %v6571_v28 }
 0xaf8   : > { %3509 = vmatprep.subr.bf16.mxu1 %v6574_v41 }
 0xb99   : > { %v3112_v32 = vpop.f32.mrf.mxu0 }
 0xb9a   : > { %v3153_v36 = vpop.f32.mrf.mxu1  ;;  %v3160_v42 = vadd.f32 %v3112_v32, %v7377_v48 }
 0xb9b   : > { %v3114_v24 = vpop.f32.mrf.mxu0  ;;  %v3162_v5 = vadd.f32 %v3153_v36, %v7380_v39 }
 0xb9c   : > { %v3155_v26 = vpop.f32.mrf.mxu1  ;;  %v4588_v27 = vmul.f32 -1.442695, %v3160_v42  ;;  %v3161_v33 = vadd.f32 %v3114_v24, %v7378_v43  ;;  %v3192_v42 = vstv %s3191_s18  ;;  %v3195_v24 = vstv %s3194_s26  ;;  %s3776_s18 = scvt.s32.f32 %s3775_s25 }
 0xb9d   : > { %v3116_v3 = vpop.f32.mrf.mxu0  ;;  %v3163_v55 = vadd.f32 %v3155_v26, %v7379_v38  ;;  %v3196_v43 = vmul.f32 %v3195_v24, %v6774_v37 }
 0xb9e   : > { %v3157_v4 = vpop.f32.mrf.mxu1  ;;  %5017 = vpow2.f32 %v4588_v27  ;;  %v4589_v23 = vmul.f32 -1.442695, %v3161_v33  ;;  %s3779_s26 = ssub.f32 1.0, %s3776_s18 }
 0xb9f   : > { %v3117_v29 = vpop.f32.mrf.mxu0  ;;  %v4590_v16 = vmul.f32 -1.442695, %v3163_v55 }
 0xba0   : > { %v3158_v54 = vpop.f32.mrf.mxu1  ;;  %5019 = vpow2.f32 %v4589_v23 }
 0xba1   : > { %5021 = vtanh.f32 %v3162_v5  ;;  %v3199_v54 = vmul.f32 %v3195_v24, %v6777_v45 }
 0xba2   : > { %5023 = vpow2.f32 %v4590_v16 }
 0xbab   : > { %v5018_v31 = vpop.eup %5017 }
 0xbac   : > { %v3167_v47 = vadd.f32 1.0, %v5018_v31 }
 0xbad   : > { %v5020_v17 = vpop.eup %5019 }
 0xbae   : > { %5025 = vrcp.f32 %v3167_v47  ;;  %v3173_v11 = vadd.f32 1.0, %v5020_v17  ;;  %v5022_v40 = vpop.eup %5021 }
 0xbaf   : > { %v5024_v53 = vpop.eup %5023 }
 0xbb0   : > { %5027 = vrcp.f32 %v3173_v11  ;;  %v3180_v36 = vadd.f32 1.0, %v5024_v53 }
 0xbb2   : > { %5029 = vrcp.f32 %v3180_v36 }
 0xbbb   : > { %v5026_v61 = vpop.eup %5025 }
 0xbbc   : > { %v3184_v50 = vmul.f32 %v5026_v61, %v5022_v40 }
 0xbbd   : > { %v5028_v32 = vpop.eup %5027 }
 0xbbe   : > { %v3183_v48 = vmul.f32 %v5028_v32, %v6774_v37 }
 0xbbf   : > { %v5030_v3 = vpop.eup %5029 }
 0xbc0   : > { %v3185_v26 = vadd.f32 %v3184_v50, %v3183_v48  ;;  %v7381_v48 = vld [vmem:[#allocation56_spill] sm:$0xff] }
 0xbc2   : > { %5031 = vtanh.f32 %v3185_v26  ;;  %v3193_v27 = vmul.f32 %v3192_v42, %v3185_v26 }
 0xbc4   : > { %v6839_v33 = vadd.f32 %v3196_v43, %v3193_v27  ;;  %v7382_v43 = vld [vmem:[#allocation58_spill] sm:$0xff] }
 0xbcf   : > { %v5032_v4 = vpop.eup %5031 }
 0xbd0   : > { %v3187_v23 = vmul.f32 %v5032_v4, %v5030_v3 }
 0xbd2   : > { %v3198_v29 = vmul.f32 %v3192_v42, %v3187_v23 }
 0xbd4   : > { %v6842_v38 = vadd.f32 %v3199_v54, %v3198_v29 }
 0xbd6   : > { %v3202_v55 = vcombine.high %v6842_v38, %v6842_v38  ;;  %v3209_v39 = vrot.slane %v6842_v38, %v6062_v44  ;;  %v3272_v37 = vpack.c.bf16 %v6842_v38, %v6842_v38 }
 0xbd8   : > { %v3216_v5 = vrot.slane %v3202_v55, %v6062_v44  ;;  %v3217_v16 = vcombine.high %v3209_v39, %v3209_v39  ;;  %v3225_v31 = vrot.slane %v3209_v39, %v6062_v44  ;;  %4591 = vst.sshfl [vmem:[%s5667_s13 + $0xa] sm:$0x1 pattern:$0x73625140] %v3209_v39  ;;  %3306 = vmatmul.mubr.bf16.vlgmr.msra.gmra.mxu0 %v3272_v37 }
 0xbd9   : > { %3347 = vmatmul.mubr.bf16.vlgmr.msra.gmra.mxu1 %v3272_v37  ;;  %3469 = vmatpush1.bf16.msra.mxu0 %v6598_v18 }
 0xbda   : > { %3510 = vmatpush1.bf16.msra.mxu1 %v6601_v49  ;;  %v3218_v45 = vcombine.high %v3216_v5, %v3216_v5  ;;  %v3232_v47 = vrot.slane %v3216_v5, %v6062_v44  ;;  %v3239_v17 = vrot.slane %v3217_v16, %v6062_v44  ;;  %v3247_v11 = vcombine.high %v3225_v31, %v3225_v31 }
 0xbdb   : > { %4592 = vst.sshfl [vmem:[%s5667_s13 + $0x1a] sm:$0x1 pattern:$0x73625140] %v3217_v16  ;;  %3470 = vmatprep.subr.bf16.mxu0 %v6608_v30  ;;  %3511 = vmatprep.subr.bf16.mxu1 %v6611_v60 }
 0xbdc   : > { %4593 = vst.sshfl [vmem:[%s5667_s13 + $0x4a] sm:$0x1 pattern:$0x73625140] %v3216_v5  ;;  %3500 = vmatprep.mubr.bf16.mxu0 %v7347_v2  ;;  %v3246_v40 = vrot.slane %v3218_v45, %v6062_v44  ;;  %v3248_v53 = vcombine.high %v3232_v47, %v3232_v47  ;;  %v3249_v61 = vcombine.high %v3239_v17, %v3239_v17  ;;  %3261 = vst [vmem:[%s5667_s13 + $0x2a] sm:$0x1] %v3247_v11 }
 0xbdd   : > { %4594 = vst.sshfl [vmem:[%s5667_s13 + $0x5a] sm:$0x1 pattern:$0x73625140] %v3218_v45  ;;  %3541 = vmatprep.mubr.bf16.mxu1 %v7347_v2  ;;  %3471 = vmatpush1.bf16.msra.mxu0 %v6619_v46 }
 0xbde   : > { %3512 = vmatpush1.bf16.msra.mxu1 %v6622_v10  ;;  %v3250_v50 = vcombine.high %v3246_v40, %v3246_v40  ;;  %3262 = vst [vmem:[%s5667_s13 + $0x3a] sm:$0x1] %v3249_v61  ;;  %3265 = vst [vmem:[%s5667_s13 + $0x6a] sm:$0x1] %v3248_v53  ;;  %3472 = vmatprep.subr.bf16.mxu0 %v6627_v51 }
 0xbdf   : > { %3513 = vmatprep.subr.bf16.mxu1 %v6630_v52 }
 0xbe0   : > { %3266 = vst [vmem:[%s5667_s13 + $0x7a] sm:$0x1] %v3250_v50 }
 0xbe1   : > { %3473 = vmatpush1.bf16.msra.mxu0 %v6634_v56 }
 0xbe2   : > { %3514 = vmatpush1.bf16.msra.mxu1 %v6637_v57  ;;  %3474 = vmatprep.subr.bf16.mxu0 %v6640_v58 }
 0xbe3   : > { %3515 = vmatprep.subr.bf16.mxu1 %v6643_v59 }
 0xbe5   : > { %3475 = vmatpush1.bf16.msra.mxu0 %v6646_v62 }
 0xbe6   : > { %3516 = vmatpush1.bf16.msra.mxu1 %v6649_v63  ;;  %3476 = vmatprep.subr.bf16.mxu0 %v6652_v0 }
 0xbe7   : > { %3517 = vmatprep.subr.bf16.mxu1 %v6655_v1 }
 0xbe9   : > { %3477 = vmatpush1.bf16.msra.mxu0 %v6658_v6 }
 0xbea   : > { %3518 = vmatpush1.bf16.msra.mxu1 %v6661_v7  ;;  %3478 = vmatprep.subr.bf16.mxu0 %v6664_v8 }
 0xbeb   : > { %3519 = vmatprep.subr.bf16.mxu1 %v6667_v9 }
 0xbed   : > { %3479 = vmatpush1.bf16.msra.mxu0 %v6670_v12 }
 0xbee   : > { %3520 = vmatpush1.bf16.msra.mxu1 %v6673_v13  ;;  %3480 = vmatprep.subr.bf16.mxu0 %v6676_v14 }
 0xbef   : > { %3521 = vmatprep.subr.bf16.mxu1 %v6679_v15 }
 0xbf1   : > { %3481 = vmatpush1.bf16.msra.mxu0 %v6682_v19 }
 0xbf2   : > { %3522 = vmatpush1.bf16.msra.mxu1 %v6685_v20  ;;  %3482 = vmatprep.subr.bf16.mxu0 %v6688_v21 }
 0xbf3   : > { %3523 = vmatprep.subr.bf16.mxu1 %v6691_v22 }
 0xbf5   : > { %3483 = vmatpush1.bf16.msra.mxu0 %v6694_v25 }
 0xbf6   : > { %3524 = vmatpush1.bf16.msra.mxu1 %v6697_v35  ;;  %3663 = vmatprep.subr.bf16.mxu0 %v6571_v28  ;;  %v7383_v28 = vld [vmem:[#allocation59_spill] sm:$0xff] }
 0xbf7   : > { %3704 = vmatprep.subr.bf16.mxu1 %v6574_v41  ;;  %v7384_v41 = vld [vmem:[#allocation57_spill] sm:$0xff] }
 0xc98   : > { %v3307_v32 = vpop.f32.mrf.mxu0 }
 0xc99   : > { %v3348_v36 = vpop.f32.mrf.mxu1  ;;  %v3355_v42 = vadd.f32 %v3307_v32, %v7381_v48  ;;  %v3390_v48 = vstv %s3389_s11 }
 0xc9a   : > { %v3309_v24 = vpop.f32.mrf.mxu0  ;;  %v3357_v37 = vadd.f32 %v3348_v36, %v7384_v41  ;;  %v3387_v36 = vstv %s3386_s17  ;;  %s3971_s17 = scvt.s32.f32 %s3970_s19 }
 0xc9b   : > { %v3350_v26 = vpop.f32.mrf.mxu1  ;;  %v4595_v27 = vmul.f32 -1.442695, %v3355_v42  ;;  %v3356_v3 = vadd.f32 %v3309_v24, %v7382_v43 }
 0xc9c   : > { %v3311_v4 = vpop.f32.mrf.mxu0  ;;  %v3358_v39 = vadd.f32 %v3350_v26, %v7383_v28  ;;  %v3391_v26 = vmul.f32 %v3390_v48, %v6839_v33  ;;  %s3974_s11 = ssub.f32 1.0, %s3971_s17 }
 0xc9d   : > { %v3352_v23 = vpop.f32.mrf.mxu1  ;;  %5033 = vpow2.f32 %v4595_v27  ;;  %v4596_v29 = vmul.f32 -1.442695, %v3356_v3 }
 0xc9e   : > { %v3312_v54 = vpop.f32.mrf.mxu0  ;;  %v4597_v5 = vmul.f32 -1.442695, %v3358_v39 }
 0xc9f   : > { %v3353_v55 = vpop.f32.mrf.mxu1  ;;  %5035 = vpow2.f32 %v4596_v29  ;;  %v3394_v29 = vmul.f32 %v3390_v48, %v6842_v38 }
 0xca0   : > { %5037 = vtanh.f32 %v3357_v37 }
 0xca1   : > { %5039 = vpow2.f32 %v4597_v5 }
 0xcaa   : > { %v5034_v16 = vpop.eup %5033 }
 0xcab   : > { %v3362_v31 = vadd.f32 1.0, %v5034_v16 }
 0xcac   : > { %v5036_v45 = vpop.eup %5035 }
 0xcad   : > { %5041 = vrcp.f32 %v3362_v31  ;;  %v3368_v47 = vadd.f32 1.0, %v5036_v45  ;;  %v5038_v17 = vpop.eup %5037 }
 0xcae   : > { %v5040_v11 = vpop.eup %5039 }
 0xcaf   : > { %5043 = vrcp.f32 %v3368_v47  ;;  %v3375_v50 = vadd.f32 1.0, %v5040_v11 }
 0xcb1   : > { %5045 = vrcp.f32 %v3375_v50  ;;  %v3585_v50 = vstv %s3584_s22 }
 0xcba   : > { %v5042_v40 = vpop.eup %5041 }
 0xcbb   : > { %v3379_v53 = vmul.f32 %v5042_v40, %v5038_v17 }
 0xcbc   : > { %v5044_v61 = vpop.eup %5043 }
 0xcbd   : > { %v3378_v32 = vmul.f32 %v5044_v61, %v6839_v33  ;;  %v3582_v61 = vstv %s3581_s10  ;;  %s4166_s10 = scvt.s32.f32 %s4165_s24 }
 0xcbe   : > { %v5046_v43 = vpop.eup %5045 }
 0xcbf   : > { %v3380_v42 = vadd.f32 %v3379_v53, %v3378_v32  ;;  %s4169_s22 = ssub.f32 1.0, %s4166_s10 }
 0xcc1   : > { %5047 = vtanh.f32 %v3380_v42  ;;  %v3388_v24 = vmul.f32 %v3387_v36, %v3380_v42 }
 0xcc3   : > { %v6904_v27 = vadd.f32 %v3391_v26, %v3388_v24 }
 0xcc5   : > { %v3586_v48 = vmul.f32 %v3585_v50, %v6904_v27 }
 0xcce   : > { %v5048_v3 = vpop.eup %5047 }
 0xccf   : > { %v3382_v4 = vmul.f32 %v5048_v3, %v5046_v43 }
 0xcd1   : > { %v3393_v23 = vmul.f32 %v3387_v36, %v3382_v4 }
 0xcd3   : > { %v6907_v54 = vadd.f32 %v3394_v29, %v3393_v23 }
 0xcd5   : > { %v3397_v55 = vcombine.high %v6907_v54, %v6907_v54  ;;  %v3404_v28 = vrot.slane %v6907_v54, %v6062_v44  ;;  %v3467_v33 = vpack.c.bf16 %v6907_v54, %v6907_v54  ;;  %v3589_v4 = vmul.f32 %v3585_v50, %v6907_v54  ;;  %v6987_v54 = vld [vmem:[#allocation11 + $0xe0] ss:$16 sps:$4 sm:$0xff]  }
 0xcd7   : > { %v3411_v39 = vrot.slane %v3397_v55, %v6062_v44  ;;  %v3412_v41 = vcombine.high %v3404_v28, %v3404_v28  ;;  %v3420_v37 = vrot.slane %v3404_v28, %v6062_v44  ;;  %4598 = vst.sshfl [vmem:[%s5667_s13 + $0xb] sm:$0x1 pattern:$0x73625140] %v3404_v28  ;;  %3501 = vmatmul.mubr.bf16.vlgmr.msra.gmra.mxu0 %v3467_v33 }
 0xcd8   : > { %3542 = vmatmul.mubr.bf16.vlgmr.msra.gmra.mxu1 %v3467_v33  ;;  %3664 = vmatpush1.bf16.msra.mxu0 %v6598_v18 }
 0xcd9   : > { %3705 = vmatpush1.bf16.msra.mxu1 %v6601_v49  ;;  %v3413_v38 = vcombine.high %v3411_v39, %v3411_v39  ;;  %v3427_v5 = vrot.slane %v3411_v39, %v6062_v44  ;;  %v3434_v16 = vrot.slane %v3412_v41, %v6062_v44  ;;  %v3442_v31 = vcombine.high %v3420_v37, %v3420_v37 }
 0xcda   : > { %4599 = vst.sshfl [vmem:[%s5667_s13 + $0x1b] sm:$0x1 pattern:$0x73625140] %v3412_v41  ;;  %3665 = vmatprep.subr.bf16.mxu0 %v6608_v30  ;;  %3706 = vmatprep.subr.bf16.mxu1 %v6611_v60  ;;  %v6960_v30 = vld [vmem:[#allocation11 + $0xe4] ss:$16 sps:$4 sm:$0xff]  }
 0xcdb   : > { %4600 = vst.sshfl [vmem:[%s5667_s13 + $0x4b] sm:$0x1 pattern:$0x73625140] %v3411_v39  ;;  %3695 = vmatprep.mubr.bf16.mxu0 %v7347_v2  ;;  %v3441_v18 = vrot.slane %v3413_v38, %v6062_v44  ;;  %v3443_v49 = vcombine.high %v3427_v5, %v3427_v5  ;;  %v3444_v45 = vcombine.high %v3434_v16, %v3434_v16  ;;  %3456 = vst [vmem:[%s5667_s13 + $0x2b] sm:$0x1] %v3442_v31 }
 0xcdc   : > { %4601 = vst.sshfl [vmem:[%s5667_s13 + $0x5b] sm:$0x1 pattern:$0x73625140] %v3413_v38  ;;  %3736 = vmatprep.mubr.bf16.mxu1 %v7347_v2  ;;  %3666 = vmatpush1.bf16.msra.mxu0 %v6619_v46  ;;  %v6963_v60 = vld [vmem:[#allocation11 + $0xec] ss:$16 sps:$4 sm:$0xff]  }
 0xcdd   : > { %3707 = vmatpush1.bf16.msra.mxu1 %v6622_v10  ;;  %v3445_v47 = vcombine.high %v3441_v18, %v3441_v18  ;;  %3457 = vst [vmem:[%s5667_s13 + $0x3b] sm:$0x1] %v3444_v45  ;;  %3460 = vst [vmem:[%s5667_s13 + $0x6b] sm:$0x1] %v3443_v49  ;;  %3667 = vmatprep.subr.bf16.mxu0 %v6627_v51  ;;  %v7385_v51 = vld [vmem:[#allocation60_spill] sm:$0xff] }
 0xcde   : > { %3708 = vmatprep.subr.bf16.mxu1 %v6630_v52  ;;  %v6990_v41 = vld [vmem:[#allocation11 + $0xe8] ss:$16 sps:$4 sm:$0xff]   ;;  %v6997_v31 = vld [vmem:[#allocation11 + $0xc4] ss:$16 sps:$4 sm:$0xff]   ;;  %v7000_v18 = vld [vmem:[#allocation11 + $0xcc] ss:$16 sps:$4 sm:$0xff]  }
 0xcdf   : > { %3461 = vst [vmem:[%s5667_s13 + $0x7b] sm:$0x1] %v3445_v47 }
 0xce0   : > { %3668 = vmatpush1.bf16.msra.mxu0 %v6634_v56 }
 0xce1   : > { %3709 = vmatpush1.bf16.msra.mxu1 %v6637_v57  ;;  %3669 = vmatprep.subr.bf16.mxu0 %v6640_v58 }
 0xce2   : > { %3710 = vmatprep.subr.bf16.mxu1 %v6643_v59  ;;  %v7386_v59 = vld [vmem:[#allocation62_spill] sm:$0xff] }
 0xce4   : > { %3670 = vmatpush1.bf16.msra.mxu0 %v6646_v62 }
 0xce5   : > { %3711 = vmatpush1.bf16.msra.mxu1 %v6649_v63  ;;  %3671 = vmatprep.subr.bf16.mxu0 %v6652_v0 }
 0xce6   : > { %3712 = vmatprep.subr.bf16.mxu1 %v6655_v1 }
 0xce8   : > { %3672 = vmatpush1.bf16.msra.mxu0 %v6658_v6 }
 0xce9   : > { %3713 = vmatpush1.bf16.msra.mxu1 %v6661_v7  ;;  %3673 = vmatprep.subr.bf16.mxu0 %v6664_v8  ;;  %v7387_v8 = vld [vmem:[#allocation63_spill] sm:$0xff] }
 0xcea   : > { %3714 = vmatprep.subr.bf16.mxu1 %v6667_v9 }
 0xcec   : > { %3674 = vmatpush1.bf16.msra.mxu0 %v6670_v12  ;;  %v7388_v12 = vld [vmem:[#allocation61_spill] sm:$0xff] }
 0xced   : > { %3715 = vmatpush1.bf16.msra.mxu1 %v6673_v13  ;;  %3675 = vmatprep.subr.bf16.mxu0 %v6676_v14 }
 0xcee   : > { %3716 = vmatprep.subr.bf16.mxu1 %v6679_v15 }
 0xcf0   : > { %3676 = vmatpush1.bf16.msra.mxu0 %v6682_v19 }
 0xcf1   : > { %3717 = vmatpush1.bf16.msra.mxu1 %v6685_v20  ;;  %3677 = vmatprep.subr.bf16.mxu0 %v6688_v21 }
 0xcf2   : > { %3718 = vmatprep.subr.bf16.mxu1 %v6691_v22 }
 0xcf4   : > { %3678 = vmatpush1.bf16.msra.mxu0 %v6694_v25 }
 0xcf5   : > { %3719 = vmatpush1.bf16.msra.mxu1 %v6697_v35  ;;  %3858 = vmatprep.subr.bf16.mxu0 %v6960_v30 }
 0xcf6   : > { %3899 = vmatprep.subr.bf16.mxu1 %v6963_v60 }
 0xd97   : > { %v3502_v46 = vpop.f32.mrf.mxu0 }
 0xd98   : > { %v3543_v10 = vpop.f32.mrf.mxu1  ;;  %v3550_v52 = vadd.f32 %v3502_v46, %v7385_v51  ;;  %v7008_v46 = vld [vmem:[#allocation11 + $0xc0] ss:$16 sps:$4 sm:$0xff]  }
 0xd99   : > { %v3504_v56 = vpop.f32.mrf.mxu0  ;;  %v3552_v13 = vadd.f32 %v3543_v10, %v7388_v12  ;;  %v7011_v10 = vld [vmem:[#allocation11 + $0xc8] ss:$16 sps:$4 sm:$0xff]   ;;  %v7056_v12 = vld [vmem:[#allocation11 + $0x4c] ss:$16 sps:$4 sm:$0xff]  }
 0xd9a   : > { %v3545_v57 = vpop.f32.mrf.mxu1  ;;  %v4602_v58 = vmul.f32 -1.442695, %v3550_v52  ;;  %v3551_v62 = vadd.f32 %v3504_v56, %v7386_v59  ;;  %v7016_v52 = vld [vmem:[#allocation11 + $0xa4] ss:$16 sps:$4 sm:$0xff]   ;;  %v7019_v56 = vld [vmem:[#allocation11 + $0xac] ss:$16 sps:$4 sm:$0xff]  }
 0xd9b   : > { %v3506_v63 = vpop.f32.mrf.mxu0  ;;  %v3553_v9 = vadd.f32 %v3545_v57, %v7387_v8  ;;  %v7023_v57 = vld [vmem:[#allocation11 + $0xa0] ss:$16 sps:$4 sm:$0xff]   ;;  %v7029_v59 = vld [vmem:[#allocation11 + $0x84] ss:$16 sps:$4 sm:$0xff]   ;;  %v7050_v8 = vld [vmem:[#allocation11 + $0x68] ss:$16 sps:$4 sm:$0xff]  }
 0xd9c   : > { %v3547_v0 = vpop.f32.mrf.mxu1  ;;  %5049 = vpow2.f32 %v4602_v58  ;;  %v4603_v1 = vmul.f32 -1.442695, %v3551_v62  ;;  %v7026_v58 = vld [vmem:[#allocation11 + $0xa8] ss:$16 sps:$4 sm:$0xff]   ;;  %v7032_v62 = vld [vmem:[#allocation11 + $0x8c] ss:$16 sps:$4 sm:$0xff]  }
 0xd9d   : > { %v3507_v6 = vpop.f32.mrf.mxu0  ;;  %v4604_v14 = vmul.f32 -1.442695, %v3553_v9  ;;  %v7035_v63 = vld [vmem:[#allocation11 + $0x80] ss:$16 sps:$4 sm:$0xff]   ;;  %v7038_v0 = vld [vmem:[#allocation11 + $0x88] ss:$16 sps:$4 sm:$0xff]  }
 0xd9e   : > { %v3548_v7 = vpop.f32.mrf.mxu1  ;;  %5051 = vpow2.f32 %v4603_v1  ;;  %v7041_v1 = vld [vmem:[#allocation11 + $0x64] ss:$16 sps:$4 sm:$0xff]   ;;  %v7044_v6 = vld [vmem:[#allocation11 + $0x6c] ss:$16 sps:$4 sm:$0xff]  }
 0xd9f   : > { %5053 = vtanh.f32 %v3552_v13  ;;  %v7047_v7 = vld [vmem:[#allocation11 + $0x60] ss:$16 sps:$4 sm:$0xff]   ;;  %v7053_v9 = vld [vmem:[#allocation11 + $0x44] ss:$16 sps:$4 sm:$0xff]  }
 0xda0   : > { %5055 = vpow2.f32 %v4604_v14  ;;  %v7059_v13 = vld [vmem:[#allocation11 + $0x40] ss:$16 sps:$4 sm:$0xff]   ;;  %v7062_v14 = vld [vmem:[#allocation11 + $0x48] ss:$16 sps:$4 sm:$0xff]  }
 0xda9   : > { %v5050_v15 = vpop.eup %5049 }
 0xdaa   : > { %v3557_v19 = vadd.f32 1.0, %v5050_v15  ;;  %v7065_v15 = vld [vmem:[#allocation11 + $0x24] ss:$16 sps:$4 sm:$0xff]  }
 0xdab   : > { %v5052_v20 = vpop.eup %5051 }
 0xdac   : > { %5057 = vrcp.f32 %v3557_v19  ;;  %v3563_v21 = vadd.f32 1.0, %v5052_v20  ;;  %v5054_v22 = vpop.eup %5053  ;;  %v7068_v19 = vld [vmem:[#allocation11 + $0x2c] ss:$16 sps:$4 sm:$0xff]   ;;  %v7071_v20 = vld [vmem:[#allocation11 + $0x20] ss:$16 sps:$4 sm:$0xff]  }
 0xdad   : > { %v5056_v25 = vpop.eup %5055 }
 0xdae   : > { %5059 = vrcp.f32 %v3563_v21  ;;  %v3570_v40 = vadd.f32 1.0, %v5056_v25  ;;  %v7074_v21 = vld [vmem:[#allocation11 + $0x28] ss:$16 sps:$4 sm:$0xff]   ;;  %v7080_v25 = vld [vmem:[#allocation11 + $0xc] ss:$16 sps:$4 sm:$0xff]  }
 0xdb0   : > { %5061 = vrcp.f32 %v3570_v40 }
 0xdb9   : > { %v5058_v35 = vpop.eup %5057 }
 0xdba   : > { %v3574_v17 = vmul.f32 %v5058_v35, %v5054_v22  ;;  %v7077_v22 = vld [vmem:[#allocation11 + $0x4] ss:$16 sps:$4 sm:$0xff]   ;;  %v7083_v35 = vld [vmem:[#allocation11] ss:$16 sps:$4 sm:$0xff]  }
 0xdbb   : > { %v5060_v11 = vpop.eup %5059 }
 0xdbc   : > { %v3573_v53 = vmul.f32 %v5060_v11, %v6904_v27 }
 0xdbd   : > { %v5062_v24 = vpop.eup %5061 }
 0xdbe   : > { %v3575_v32 = vadd.f32 %v3574_v17, %v3573_v53  ;;  %v7086_v17 = vld [vmem:[#allocation11 + $0x8] ss:$16 sps:$4 sm:$0xff]  }
 0xdbf   : > { %v7389_v53 = vld [vmem:[#allocation64_spill] sm:$0xff] }
 0xdc0   : > { %5063 = vtanh.f32 %v3575_v32  ;;  %v3583_v36 = vmul.f32 %v3582_v61, %v3575_v32 }
 0xdc2   : > { %v6973_v42 = vadd.f32 %v3586_v48, %v3583_v36  ;;  %v7390_v48 = vld [vmem:[#allocation66_spill] sm:$0xff] }
 0xdcd   : > { %v5064_v26 = vpop.eup %5063 }
 0xdce   : > { %v3577_v43 = vmul.f32 %v5064_v26, %v5062_v24 }
 0xdd0   : > { %v3588_v3 = vmul.f32 %v3582_v61, %v3577_v43 }
 0xdd2   : > { %v6976_v23 = vadd.f32 %v3589_v4, %v3588_v3 }
 0xdd4   : > { %v3592_v29 = vcombine.high %v6976_v23, %v6976_v23  ;;  %v3599_v55 = vrot.slane %v6976_v23, %v6062_v44  ;;  %v3662_v27 = vpack.c.bf16 %v6976_v23, %v6976_v23 }
 0xdd6   : > { %v3606_v28 = vrot.slane %v3592_v29, %v6062_v44  ;;  %v3607_v33 = vcombine.high %v3599_v55, %v3599_v55  ;;  %v3615_v39 = vrot.slane %v3599_v55, %v6062_v44  ;;  %4605 = vst.sshfl [vmem:[%s5667_s13 + $0xc] sm:$0x1 pattern:$0x73625140] %v3599_v55  ;;  %3696 = vmatmul.mubr.bf16.vlgmr.msra.gmra.mxu0 %v3662_v27 }
 0xdd7   : > { %3737 = vmatmul.mubr.bf16.vlgmr.msra.gmra.mxu1 %v3662_v27  ;;  %3859 = vmatpush1.bf16.msra.mxu0 %v6987_v54 }
 0xdd8   : > { %3900 = vmatpush1.bf16.msra.mxu1 %v6990_v41  ;;  %v3608_v37 = vcombine.high %v3606_v28, %v3606_v28  ;;  %v3622_v38 = vrot.slane %v3606_v28, %v6062_v44  ;;  %v3629_v5 = vrot.slane %v3607_v33, %v6062_v44  ;;  %v3637_v16 = vcombine.high %v3615_v39, %v3615_v39 }
 0xdd9   : > { %4606 = vst.sshfl [vmem:[%s5667_s13 + $0x1c] sm:$0x1 pattern:$0x73625140] %v3607_v33  ;;  %3860 = vmatprep.subr.bf16.mxu0 %v6997_v31  ;;  %3901 = vmatprep.subr.bf16.mxu1 %v7000_v18 }
 0xdda   : > { %4607 = vst.sshfl [vmem:[%s5667_s13 + $0x4c] sm:$0x1 pattern:$0x73625140] %v3606_v28  ;;  %3890 = vmatprep.mubr.bf16.mxu0 %v7347_v2  ;;  %v3636_v49 = vrot.slane %v3608_v37, %v6062_v44  ;;  %v3638_v45 = vcombine.high %v3622_v38, %v3622_v38  ;;  %v3639_v47 = vcombine.high %v3629_v5, %v3629_v5  ;;  %3651 = vst [vmem:[%s5667_s13 + $0x2c] sm:$0x1] %v3637_v16 }
 0xddb   : > { %4608 = vst.sshfl [vmem:[%s5667_s13 + $0x5c] sm:$0x1 pattern:$0x73625140] %v3608_v37  ;;  %3931 = vmatprep.mubr.bf16.mxu1 %v7347_v2  ;;  %3861 = vmatpush1.bf16.msra.mxu0 %v7008_v46 }
 0xddc   : > { %3902 = vmatpush1.bf16.msra.mxu1 %v7011_v10  ;;  %v3640_v51 = vcombine.high %v3636_v49, %v3636_v49  ;;  %3652 = vst [vmem:[%s5667_s13 + $0x3c] sm:$0x1] %v3639_v47  ;;  %3655 = vst [vmem:[%s5667_s13 + $0x6c] sm:$0x1] %v3638_v45  ;;  %3862 = vmatprep.subr.bf16.mxu0 %v7016_v52 }
 0xddd   : > { %3903 = vmatprep.subr.bf16.mxu1 %v7019_v56 }
 0xdde   : > { %3656 = vst [vmem:[%s5667_s13 + $0x7c] sm:$0x1] %v3640_v51 }
 0xddf   : > { %3863 = vmatpush1.bf16.msra.mxu0 %v7023_v57 }
 0xde0   : > { %3904 = vmatpush1.bf16.msra.mxu1 %v7026_v58  ;;  %3864 = vmatprep.subr.bf16.mxu0 %v7029_v59 }
 0xde1   : > { %3905 = vmatprep.subr.bf16.mxu1 %v7032_v62 }
 0xde3   : > { %3865 = vmatpush1.bf16.msra.mxu0 %v7035_v63 }
 0xde4   : > { %3906 = vmatpush1.bf16.msra.mxu1 %v7038_v0  ;;  %3866 = vmatprep.subr.bf16.mxu0 %v7041_v1 }
 0xde5   : > { %3907 = vmatprep.subr.bf16.mxu1 %v7044_v6 }
 0xde7   : > { %3867 = vmatpush1.bf16.msra.mxu0 %v7047_v7 }
 0xde8   : > { %3908 = vmatpush1.bf16.msra.mxu1 %v7050_v8  ;;  %3868 = vmatprep.subr.bf16.mxu0 %v7053_v9 }
 0xde9   : > { %3909 = vmatprep.subr.bf16.mxu1 %v7056_v12 }
 0xdeb   : > { %3869 = vmatpush1.bf16.msra.mxu0 %v7059_v13 }
 0xdec   : > { %3910 = vmatpush1.bf16.msra.mxu1 %v7062_v14  ;;  %3870 = vmatprep.subr.bf16.mxu0 %v7065_v15 }
 0xded   : > { %3911 = vmatprep.subr.bf16.mxu1 %v7068_v19 }
 0xdef   : > { %3871 = vmatpush1.bf16.msra.mxu0 %v7071_v20 }
 0xdf0   : > { %3912 = vmatpush1.bf16.msra.mxu1 %v7074_v21  ;;  %3872 = vmatprep.subr.bf16.mxu0 %v7077_v22 }
 0xdf1   : > { %3913 = vmatprep.subr.bf16.mxu1 %v7080_v25 }
 0xdf3   : > { %3873 = vmatpush1.bf16.msra.mxu0 %v7083_v35 }
 0xdf4   : > { %3914 = vmatpush1.bf16.msra.mxu1 %v7086_v17  ;;  %4053 = vmatprep.subr.bf16.mxu0 %v6960_v30  ;;  %v7391_v30 = vld [vmem:[#allocation67_spill] sm:$0xff] }
 0xdf5   : > { %4094 = vmatprep.subr.bf16.mxu1 %v6963_v60  ;;  %v7392_v60 = vld [vmem:[#allocation65_spill] sm:$0xff] }
 0xe96   : > { %v3697_v11 = vpop.f32.mrf.mxu0 }
 0xe97   : > { %v3738_v40 = vpop.f32.mrf.mxu1  ;;  %v3745_v61 = vadd.f32 %v3697_v11, %v7389_v53  ;;  %v3780_v53 = vstv %s3779_s26 }
 0xe98   : > { %v3699_v50 = vpop.f32.mrf.mxu0  ;;  %v3747_v27 = vadd.f32 %v3738_v40, %v7392_v60  ;;  %v3777_v40 = vstv %s3776_s18 }
 0xe99   : > { %v3740_v32 = vpop.f32.mrf.mxu1  ;;  %v4609_v36 = vmul.f32 -1.442695, %v3745_v61  ;;  %v3746_v24 = vadd.f32 %v3699_v50, %v7390_v48 }
 0xe9a   : > { %v3701_v26 = vpop.f32.mrf.mxu0  ;;  %v3748_v55 = vadd.f32 %v3740_v32, %v7391_v30  ;;  %v3781_v32 = vmul.f32 %v3780_v53, %v6973_v42 }
 0xe9b   : > { %v3742_v43 = vpop.f32.mrf.mxu1  ;;  %5065 = vpow2.f32 %v4609_v36  ;;  %v4610_v3 = vmul.f32 -1.442695, %v3746_v24 }
 0xe9c   : > { %v3702_v4 = vpop.f32.mrf.mxu0  ;;  %v4611_v28 = vmul.f32 -1.442695, %v3748_v55 }
 0xe9d   : > { %v3743_v29 = vpop.f32.mrf.mxu1  ;;  %5067 = vpow2.f32 %v4610_v3  ;;  %v3784_v3 = vmul.f32 %v3780_v53, %v6976_v23 }
 0xe9e   : > { %5069 = vtanh.f32 %v3747_v27 }
 0xe9f   : > { %5071 = vpow2.f32 %v4611_v28 }
 0xea8   : > { %v5066_v33 = vpop.eup %5065 }
 0xea9   : > { %v3752_v39 = vadd.f32 1.0, %v5066_v33 }
 0xeaa   : > { %v5068_v37 = vpop.eup %5067 }
 0xeab   : > { %5073 = vrcp.f32 %v3752_v39  ;;  %v3758_v38 = vadd.f32 1.0, %v5068_v37  ;;  %v5070_v5 = vpop.eup %5069 }
 0xeac   : > { %v5072_v16 = vpop.eup %5071 }
 0xead   : > { %5075 = vrcp.f32 %v3758_v38  ;;  %v3765_v51 = vadd.f32 1.0, %v5072_v16  ;;  %v3972_v16 = vstv %s3971_s17 }
 0xeaf   : > { %5077 = vrcp.f32 %v3765_v51 }
 0xeb8   : > { %v5074_v49 = vpop.eup %5073 }
 0xeb9   : > { %v3769_v45 = vmul.f32 %v5074_v49, %v5070_v5  ;;  %v3975_v49 = vstv %s3974_s11 }
 0xeba   : > { %v5076_v47 = vpop.eup %5075 }
 0xebb   : > { %v3768_v11 = vmul.f32 %v5076_v47, %v6973_v42 }
 0xebc   : > { %v5078_v48 = vpop.eup %5077 }
 0xebd   : > { %v3770_v61 = vadd.f32 %v3769_v45, %v3768_v11 }
 0xebf   : > { %5079 = vtanh.f32 %v3770_v61  ;;  %v3778_v50 = vmul.f32 %v3777_v40, %v3770_v61 }
 0xec1   : > { %v7098_v36 = vadd.f32 %v3781_v32, %v3778_v50 }
 0xec3   : > { %v3976_v51 = vmul.f32 %v3975_v49, %v7098_v36 }
 0xecc   : > { %v5080_v24 = vpop.eup %5079 }
 0xecd   : > { %v3772_v26 = vmul.f32 %v5080_v24, %v5078_v48 }
 0xecf   : > { %v3783_v43 = vmul.f32 %v3777_v40, %v3772_v26 }
 0xed1   : > { %v7101_v4 = vadd.f32 %v3784_v3, %v3783_v43 }
 0xed3   : > { %v3787_v29 = vcombine.high %v7101_v4, %v7101_v4  ;;  %v3794_v30 = vrot.slane %v7101_v4, %v6062_v44  ;;  %v3857_v42 = vpack.c.bf16 %v7101_v4, %v7101_v4  ;;  %v3979_v32 = vmul.f32 %v3975_v49, %v7101_v4 }
 0xed5   : > { %v3801_v55 = vrot.slane %v3787_v29, %v6062_v44  ;;  %v3802_v60 = vcombine.high %v3794_v30, %v3794_v30  ;;  %v3810_v27 = vrot.slane %v3794_v30, %v6062_v44  ;;  %4612 = vst.sshfl [vmem:[%s5667_s13 + $0xd] sm:$0x1 pattern:$0x73625140] %v3794_v30  ;;  %3891 = vmatmul.mubr.bf16.vlgmr.msra.gmra.mxu0 %v3857_v42 }
 0xed6   : > { %3932 = vmatmul.mubr.bf16.vlgmr.msra.gmra.mxu1 %v3857_v42  ;;  %4054 = vmatpush1.bf16.msra.mxu0 %v6987_v54 }
 0xed7   : > { %4095 = vmatpush1.bf16.msra.mxu1 %v6990_v41  ;;  %v3803_v23 = vcombine.high %v3801_v55, %v3801_v55  ;;  %v3817_v28 = vrot.slane %v3801_v55, %v6062_v44  ;;  %v3824_v33 = vrot.slane %v3802_v60, %v6062_v44  ;;  %v3832_v39 = vcombine.high %v3810_v27, %v3810_v27 }
 0xed8   : > { %4613 = vst.sshfl [vmem:[%s5667_s13 + $0x1d] sm:$0x1 pattern:$0x73625140] %v3802_v60  ;;  %4055 = vmatprep.subr.bf16.mxu0 %v6997_v31  ;;  %4096 = vmatprep.subr.bf16.mxu1 %v7000_v18  ;;  %v7393_v18 = vld [vmem:[#allocation68_spill] sm:$0xff] }
 0xed9   : > { %4614 = vst.sshfl [vmem:[%s5667_s13 + $0x4d] sm:$0x1 pattern:$0x73625140] %v3801_v55  ;;  %4085 = vmatprep.mubr.bf16.mxu0 %v7347_v2  ;;  %v3831_v54 = vrot.slane %v3803_v23, %v6062_v44  ;;  %v3833_v41 = vcombine.high %v3817_v28, %v3817_v28  ;;  %v3834_v37 = vcombine.high %v3824_v33, %v3824_v33  ;;  %3846 = vst [vmem:[%s5667_s13 + $0x2d] sm:$0x1] %v3832_v39 }
 0xeda   : > { %4615 = vst.sshfl [vmem:[%s5667_s13 + $0x5d] sm:$0x1 pattern:$0x73625140] %v3803_v23  ;;  %4126 = vmatprep.mubr.bf16.mxu1 %v7347_v2  ;;  %4056 = vmatpush1.bf16.msra.mxu0 %v7008_v46 }
 0xedb   : > { %4097 = vmatpush1.bf16.msra.mxu1 %v7011_v10  ;;  %v3835_v38 = vcombine.high %v3831_v54, %v3831_v54  ;;  %3847 = vst [vmem:[%s5667_s13 + $0x3d] sm:$0x1] %v3834_v37  ;;  %3850 = vst [vmem:[%s5667_s13 + $0x6d] sm:$0x1] %v3833_v41  ;;  %4057 = vmatprep.subr.bf16.mxu0 %v7016_v52  ;;  %v7397_v54 = vld [vmem:[#allocation72_spill] sm:$0xff] }
 0xedc   : > { %4098 = vmatprep.subr.bf16.mxu1 %v7019_v56 }
 0xedd   : > { %3851 = vst [vmem:[%s5667_s13 + $0x7d] sm:$0x1] %v3835_v38 }
 0xede   : > { %4058 = vmatpush1.bf16.msra.mxu0 %v7023_v57  ;;  %v7394_v57 = vld [vmem:[#allocation70_spill] sm:$0xff] }
 0xedf   : > { %4099 = vmatpush1.bf16.msra.mxu1 %v7026_v58  ;;  %4059 = vmatprep.subr.bf16.mxu0 %v7029_v59 }
 0xee0   : > { %4100 = vmatprep.subr.bf16.mxu1 %v7032_v62 }
 0xee2   : > { %4060 = vmatpush1.bf16.msra.mxu0 %v7035_v63 }
 0xee3   : > { %4101 = vmatpush1.bf16.msra.mxu1 %v7038_v0  ;;  %4061 = vmatprep.subr.bf16.mxu0 %v7041_v1 }
 0xee4   : > { %4102 = vmatprep.subr.bf16.mxu1 %v7044_v6  ;;  %v7395_v6 = vld [vmem:[#allocation71_spill] sm:$0xff] }
 0xee6   : > { %4062 = vmatpush1.bf16.msra.mxu0 %v7047_v7 }
 0xee7   : > { %4103 = vmatpush1.bf16.msra.mxu1 %v7050_v8  ;;  %4063 = vmatprep.subr.bf16.mxu0 %v7053_v9  ;;  %v7396_v8 = vld [vmem:[#allocation69_spill] sm:$0xff] }
 0xee8   : > { %4104 = vmatprep.subr.bf16.mxu1 %v7056_v12 }
 0xeea   : > { %4064 = vmatpush1.bf16.msra.mxu0 %v7059_v13 }
 0xeeb   : > { %4105 = vmatpush1.bf16.msra.mxu1 %v7062_v14  ;;  %4065 = vmatprep.subr.bf16.mxu0 %v7065_v15 }
 0xeec   : > { %4106 = vmatprep.subr.bf16.mxu1 %v7068_v19 }
 0xeee   : > { %4066 = vmatpush1.bf16.msra.mxu0 %v7071_v20 }
 0xeef   : > { %4107 = vmatpush1.bf16.msra.mxu1 %v7074_v21  ;;  %4067 = vmatprep.subr.bf16.mxu0 %v7077_v22 }
 0xef0   : > { %4108 = vmatprep.subr.bf16.mxu1 %v7080_v25 }
 0xef2   : > { %4068 = vmatpush1.bf16.msra.mxu0 %v7083_v35 }
 0xef3   : > { %4109 = vmatpush1.bf16.msra.mxu1 %v7086_v17 }
 0xf95   : > { %v3892_v2 = vpop.f32.mrf.mxu0 }
 0xf96   : > { %v3933_v31 = vpop.f32.mrf.mxu1  ;;  %v3940_v46 = vadd.f32 %v3892_v2, %v7393_v18 }
 0xf97   : > { %v3894_v10 = vpop.f32.mrf.mxu0  ;;  %v3942_v9 = vadd.f32 %v3933_v31, %v7396_v8 }
 0xf98   : > { %v3935_v52 = vpop.f32.mrf.mxu1  ;;  %v4616_v56 = vmul.f32 -1.442695, %v3940_v46  ;;  %v3941_v58 = vadd.f32 %v3894_v10, %v7394_v57  ;;  %v7398_v57 = vld [vmem:[#allocation74_spill] sm:$0xff] }
 0xf99   : > { %v3896_v59 = vpop.f32.mrf.mxu0  ;;  %v3943_v7 = vadd.f32 %v3935_v52, %v7395_v6 }
 0xf9a   : > { %v3937_v62 = vpop.f32.mrf.mxu1  ;;  %5081 = vpow2.f32 %v4616_v56  ;;  %v4617_v63 = vmul.f32 -1.442695, %v3941_v58  ;;  %v7399_v59 = vld [vmem:[#allocation73_spill] sm:$0xff] }
 0xf9b   : > { %v3897_v0 = vpop.f32.mrf.mxu0  ;;  %v4618_v12 = vmul.f32 -1.442695, %v3943_v7 }
 0xf9c   : > { %v3938_v1 = vpop.f32.mrf.mxu1  ;;  %5083 = vpow2.f32 %v4617_v63 }
 0xf9d   : > { %5085 = vtanh.f32 %v3942_v9 }
 0xf9e   : > { %5087 = vpow2.f32 %v4618_v12 }
 0xfa7   : > { %v5082_v13 = vpop.eup %5081 }
 0xfa8   : > { %v3947_v14 = vadd.f32 1.0, %v5082_v13 }
 0xfa9   : > { %v5084_v15 = vpop.eup %5083 }
 0xfaa   : > { %5089 = vrcp.f32 %v3947_v14  ;;  %v3953_v19 = vadd.f32 1.0, %v5084_v15  ;;  %v5086_v20 = vpop.eup %5085 }
 0xfab   : > { %v5088_v21 = vpop.eup %5087 }
 0xfac   : > { %5091 = vrcp.f32 %v3953_v19  ;;  %v3960_v17 = vadd.f32 1.0, %v5088_v21  ;;  %v4170_v19 = vstv %s4169_s22 }
 0xfae   : > { %5093 = vrcp.f32 %v3960_v17 }
 0xfb7   : > { %v5090_v22 = vpop.eup %5089 }
 0xfb8   : > { %v3964_v25 = vmul.f32 %v5090_v22, %v5086_v20  ;;  %v4167_v20 = vstv %s4166_s10 }
 0xfb9   : > { %v5092_v35 = vpop.eup %5091 }
 0xfba   : > { %v3963_v5 = vmul.f32 %v5092_v35, %v7098_v36 }
 0xfbb   : > { %v5094_v40 = vpop.eup %5093 }
 0xfbc   : > { %v3965_v45 = vadd.f32 %v3964_v25, %v3963_v5 }
 0xfbe   : > { %5095 = vtanh.f32 %v3965_v45  ;;  %v3973_v47 = vmul.f32 %v3972_v16, %v3965_v45 }
 0xfc0   : > { %v7161_v11 = vadd.f32 %v3976_v51, %v3973_v47 }
 0xfc2   : > { %v4171_v22 = vmul.f32 %v4170_v19, %v7161_v11 }
 0xfcb   : > { %v5096_v53 = vpop.eup %5095 }
 0xfcc   : > { %v3967_v61 = vmul.f32 %v5096_v53, %v5094_v40 }
 0xfce   : > { %v3978_v50 = vmul.f32 %v3972_v16, %v3967_v61 }
 0xfd0   : > { %v7164_v48 = vadd.f32 %v3979_v32, %v3978_v50 }
 0xfd2   : > { %v3982_v24 = vcombine.high %v7164_v48, %v7164_v48  ;;  %v3989_v26 = vrot.slane %v7164_v48, %v6062_v44  ;;  %v4052_v36 = vpack.c.bf16 %v7164_v48, %v7164_v48  ;;  %v4174_v49 = vmul.f32 %v4170_v19, %v7164_v48 }
 0xfd4   : > { %v3996_v43 = vrot.slane %v3982_v24, %v6062_v44  ;;  %v3997_v3 = vcombine.high %v3989_v26, %v3989_v26  ;;  %v4005_v29 = vrot.slane %v3989_v26, %v6062_v44  ;;  %4619 = vst.sshfl [vmem:[%s5667_s13 + $0xe] sm:$0x1 pattern:$0x73625140] %v3989_v26  ;;  %4086 = vmatmul.mubr.bf16.vlgmr.msra.gmra.mxu0 %v4052_v36 }
 0xfd5   : > { %4127 = vmatmul.mubr.bf16.vlgmr.msra.gmra.mxu1 %v4052_v36 }
 0xfd6   : > { %v3998_v4 = vcombine.high %v3996_v43, %v3996_v43  ;;  %v4012_v30 = vrot.slane %v3996_v43, %v6062_v44  ;;  %v4019_v42 = vrot.slane %v3997_v3, %v6062_v44  ;;  %v4027_v55 = vcombine.high %v4005_v29, %v4005_v29  ;;  %4620 = vst.sshfl [vmem:[%s5667_s13 + $0x1e] sm:$0x1 pattern:$0x73625140] %v3997_v3 }
 0xfd7   : > { %4621 = vst.sshfl [vmem:[%s5667_s13 + $0x4e] sm:$0x1 pattern:$0x73625140] %v3996_v43 }
 0xfd8   : > { %v4026_v60 = vrot.slane %v3998_v4, %v6062_v44  ;;  %v4028_v27 = vcombine.high %v4012_v30, %v4012_v30  ;;  %v4029_v23 = vcombine.high %v4019_v42, %v4019_v42  ;;  %4041 = vst [vmem:[%s5667_s13 + $0x2e] sm:$0x1] %v4027_v55  ;;  %4622 = vst.sshfl [vmem:[%s5667_s13 + $0x5e] sm:$0x1 pattern:$0x73625140] %v3998_v4 }
 0xfda   : > { %v4030_v28 = vcombine.high %v4026_v60, %v4026_v60  ;;  %4042 = vst [vmem:[%s5667_s13 + $0x3e] sm:$0x1] %v4029_v23  ;;  %4045 = vst [vmem:[%s5667_s13 + $0x6e] sm:$0x1] %v4028_v27 }
 0xfdc   : > { %4046 = vst [vmem:[%s5667_s13 + $0x7e] sm:$0x1] %v4030_v28 }
0x1094   : > { %v4087_v33 = vpop.f32.mrf.mxu0 }
0x1095   : > { %v4128_v39 = vpop.f32.mrf.mxu1  ;;  %v4135_v41 = vadd.f32 %v4087_v33, %v7397_v54 }
0x1096   : > { %v4089_v37 = vpop.f32.mrf.mxu0  ;;  %v4137_v62 = vadd.f32 %v4128_v39, %v7399_v59 }
0x1097   : > { %v4130_v38 = vpop.f32.mrf.mxu1  ;;  %v4623_v2 = vmul.f32 -1.442695, %v4135_v41  ;;  %v4136_v31 = vadd.f32 %v4089_v37, %v6043_v34 }
0x1098   : > { %v4091_v18 = vpop.f32.mrf.mxu0  ;;  %v4138_v58 = vadd.f32 %v4130_v38, %v7398_v57 }
0x1099   : > { %v4132_v46 = vpop.f32.mrf.mxu1  ;;  %5097 = vpow2.f32 %v4623_v2  ;;  %v4624_v10 = vmul.f32 -1.442695, %v4136_v31 }
0x109a   : > { %v4092_v52 = vpop.f32.mrf.mxu0  ;;  %v4625_v63 = vmul.f32 -1.442695, %v4138_v58 }
0x109b   : > { %v4133_v56 = vpop.f32.mrf.mxu1  ;;  %5099 = vpow2.f32 %v4624_v10 }
0x109c   : > { %5101 = vtanh.f32 %v4137_v62 }
0x109d   : > { %5103 = vpow2.f32 %v4625_v63 }
0x10a6   : > { %v5098_v0 = vpop.eup %5097 }
0x10a7   : > { %v4142_v1 = vadd.f32 1.0, %v5098_v0 }
0x10a8   : > { %v5100_v6 = vpop.eup %5099 }
0x10a9   : > { %5105 = vrcp.f32 %v4142_v1  ;;  %v4148_v34 = vadd.f32 1.0, %v5100_v6  ;;  %v5102_v7 = vpop.eup %5101 }
0x10aa   : > { %v5104_v8 = vpop.eup %5103 }
0x10ab   : > { %5107 = vrcp.f32 %v4148_v34  ;;  %v4155_v14 = vadd.f32 1.0, %v5104_v8 }
0x10ad   : > { %5109 = vrcp.f32 %v4155_v14 }
0x10b6   : > { %v5106_v9 = vpop.eup %5105 }
0x10b7   : > { %v4159_v12 = vmul.f32 %v5106_v9, %v5102_v7 }
0x10b8   : > { %v5108_v13 = vpop.eup %5107 }
0x10b9   : > { %v4158_v15 = vmul.f32 %v5108_v13, %v7161_v11 }
0x10ba   : > { %v5110_v17 = vpop.eup %5109 }
0x10bb   : > { %v4160_v21 = vadd.f32 %v4159_v12, %v4158_v15 }
0x10bd   : > { %5111 = vtanh.f32 %v4160_v21  ;;  %v4168_v25 = vmul.f32 %v4167_v20, %v4160_v21 }
0x10bf   : > { %v4172_v35 = vadd.f32 %v4171_v22, %v4168_v25 }
0x10c1   : > { %4243 = vst [vmem:[#allocation15] sm:$0xff] %v4172_v35 }
0x10ca   : > { %v5112_v5 = vpop.eup %5111 }
0x10cb   : > { %v4162_v16 = vmul.f32 %v5112_v5, %v5110_v17 }
0x10cd   : > { %v4173_v45 = vmul.f32 %v4167_v20, %v4162_v16 }
0x10cf   : > { %v4175_v47 = vadd.f32 %v4174_v49, %v4173_v45 }
0x10d1   : > { %v4177_v51 = vcombine.high %v4175_v47, %v4175_v47  ;;  %v4184_v40 = vrot.slane %v4175_v47, %v6062_v44  ;;  %4242 = vst [vmem:[#allocation13] sm:$0xff] %v4175_v47 }
0x10d3   : > { %v4191_v11 = vrot.slane %v4177_v51, %v6062_v44  ;;  %v4192_v53 = vcombine.high %v4184_v40, %v4184_v40  ;;  %v4200_v61 = vrot.slane %v4184_v40, %v6062_v44  ;;  %4626 = vst.sshfl [vmem:[%s5667_s13 + $0xf] sm:$0x1 pattern:$0x73625140] %v4184_v40 }
0x10d5   : > { %v4193_v50 = vcombine.high %v4191_v11, %v4191_v11  ;;  %v4207_v32 = vrot.slane %v4191_v11, %v6062_v44  ;;  %v4214_v48 = vrot.slane %v4192_v53, %v6062_v44  ;;  %v4222_v24 = vcombine.high %v4200_v61, %v4200_v61  ;;  %4627 = vst.sshfl [vmem:[%s5667_s13 + $0x1f] sm:$0x1 pattern:$0x73625140] %v4192_v53 }
0x10d6   : > { %4628 = vst.sshfl [vmem:[%s5667_s13 + $0x4f] sm:$0x1 pattern:$0x73625140] %v4191_v11 }
0x10d7   : > { %v4221_v26 = vrot.slane %v4193_v50, %v6062_v44  ;;  %v4223_v36 = vcombine.high %v4207_v32, %v4207_v32  ;;  %v4224_v43 = vcombine.high %v4214_v48, %v4214_v48  ;;  %4236 = vst [vmem:[%s5667_s13 + $0x2f] sm:$0x1] %v4222_v24  ;;  %4629 = vst.sshfl [vmem:[%s5667_s13 + $0x5f] sm:$0x1 pattern:$0x73625140] %v4193_v50 }
0x10d9   : > { %v4225_v3 = vcombine.high %v4221_v26, %v4221_v26  ;;  %4237 = vst [vmem:[%s5667_s13 + $0x3f] sm:$0x1] %v4224_v43  ;;  %4240 = vst [vmem:[%s5667_s13 + $0x6f] sm:$0x1] %v4223_v36 }
0x10db   : > { %4241 = vst [vmem:[%s5667_s13 + $0x7f] sm:$0x1] %v4225_v3 }
0x10dc   : > { %s4640_s16 = sshll.u32 %s5527_s9, 8  ;;  %s4268_s25 = sshll.u32 %s5667_s13, 4  ;;  %s4269_s25 = int_to_ptr.vmem [resolvable:$true] %s4268_s25 }
0x10dd   : > { %s4257_s2 = scalar_lea.hbm %s7268_s6, %s4640_s16  ;;  %s5452_s19 = smov 256  }
0x10de   : > { %p7400_p5 = scmp.ne.s32.totalorder %s7286_s14, 0  ;;  %s5453_s1 = smov 768  }
0x10df   : > { %s5454_s17 = smov 2   ;;  %s5455_s11 = smov 128  }
0x10e0   : > { %4659 = sst [smem:[#allocation17]] (%p7400_p5), %s5452_s19  ;;  %s5456_s13 = smov 8  }
0x10e1   : > { %4660 = sst [smem:[#allocation17 + $0x1]] (%p7400_p5), %s5453_s1  ;;  %s5457_s21 = smov 131072  }
0x10e2   : > { %4661 = sst [smem:[#allocation17 + $0x2]] (%p7400_p5), %s5454_s17  ;;  %s5458_s24 = smov 0  }
0x10e3   : > { %4662 = sst [smem:[#allocation17 + $0x3]] (%p7400_p5), %s5455_s11  ;;  %s5459_s10 = smov [#allocation13]  }
0x10e4   : > { %4663 = sst [smem:[#allocation17 + $0x4]] (%p7400_p5), %s5455_s11  ;;  %s4295_s22 = sshll.u32 %s5459_s10, 4  ;;  %s4296_s22 = int_to_ptr.vmem [resolvable:$true] %s4295_s22 }
0x10e5   : > { %4664 = sst [smem:[#allocation17 + $0x5]] (%p7400_p5), %s5456_s13  ;;  %s5460_s16 = smov [#allocation15]  }
0x10e6   : > { %4665 = dma.general (%p7400_p5), %s4269_s25, 2048, %s4257_s2, %s4245_s23, %s5457_s21, [#allocation17], %s5458_s24, 0  }
0x10e7   : > { %s4306_s18 = sshll.u32 %s5460_s16, 4  ;;  %s5341_s26 = scalar_lea.vmem %s4296_s22, 128  ;;  %s4307_s18 = int_to_ptr.vmem [resolvable:$true] %s4306_s18 }
0x10e8   : > { %p5342_p6 = scmp.ne.s32.totalorder %s4296_s22, %s5341_s26  ;;  %p7401_p9 = scmp.eq.s32.totalorder %s5527_s9, 2 }
0x10e9   : > { %p5348_p10 = scmp.lt.s32.totalorder %s4296_s22, %s4296_s22  ;;  %p5349_p4 = scmp.lt.s32.totalorder %s5341_s26, %s5341_s26 }
0x10ea   : > { %p5343_p7 = pnand %p5342_p6, %p7401_p9 }
0x10eb   : > { %p5350_p11 = por %p5349_p4, %p5348_p10 }
0x10ec   : > { %p5344_p13 = pneg %p5343_p7 }
0x10ee   : > { %p5351_p0 = pnand %p5350_p11, %p5344_p13 }
0x10f0   : > { %5354 = shalt.err (!%p5351_p0)
}
0x10f1   : > { %p7402_p8 = pmov %p7401_p9  ;;  %s5365_s25 = scalar_lea.vmem %s4307_s18, 128 }
0x10f2   : > { %p5366_p1 = scmp.ne.s32.totalorder %s4307_s18, %s5365_s25  ;;  %p5372_p5 = scmp.lt.s32.totalorder %s4307_s18, %s4307_s18 }
0x10f3   : > { %4667 = dma.vmem_to_hbm [thread:$0]  (%p7402_p8), %s4296_s22, 128, %s7269_s7, [#allocation14]  }
0x10f4   : > { %p7403_p12 = pmov %p7402_p8  ;;  %p5373_p6 = scmp.lt.s32.totalorder %s5365_s25, %s5365_s25 }
0x10f6   : > { %p5367_p2 = pnand %p5366_p1, %p7403_p12  ;;  %p5374_p9 = por %p5373_p6, %p5372_p5 }
0x10f8   : > { %p5368_p3 = pneg %p5367_p2 }
0x10fa   : > { %p5375_p7 = pnand %p5374_p9, %p5368_p3 }
0x10fc   : > { %5378 = shalt.err (!%p5375_p7)
}
0x10fd   : > { %p7404_p13 = pmov %p7402_p8  ;;  %p7405_p10 = pmov %p7402_p8 }
0x10ff   : > { %4669 = dma.vmem_to_hbm [thread:$0]  (%p7404_p13), %s4307_s18, 128, %s7270_s8, [#allocation14]  }
0x1100   : > { %5418 = dma.done.wait (%p7405_p10), [#allocation14], 256   ;;  %p7406_p4 = pmov %p7402_p8 }
0x1102   : > { %5420 = vsyncadd (%p7406_p4), [#allocation14], 4294967040 }
0x1103 PF: > { %p4709_p11 = scmp.ge.s32.totalorder %s5439_s30, 2  ;;  %s4326_s1 = sand.u32 1, %s5427_s27  }
0x1104   : > { %p7407_p0 = scmp.ne.s32.totalorder %s7280_s12, 0  ;;  %s4327_s17 = scalar_lea.sflag [#allocation5], %s4326_s1 }
0x1106   : > { %p4693_p8 = pnand %p4709_p11, %p7407_p0 }
0x1108   : > { %p4694_p1 = pneg %p4693_p8 }
0x110a   : > { %5422 = dma.done.wait (%p4694_p1), %s4327_s17, 2048  }
0x110b   : > { %5424 = vsyncadd (%p4694_p1), %s4327_s17, 4294965248  ;;  %p25_p12 = scmp.ge.s32.totalorder %s5594_s20, 5   ;;  %s7408_s27 = smov %s5431_s28 }
0x110c   : > { %s7409_s28 = smov %s5435_s29  ;;  %s7410_s29 = smov %s5610_s15 }
0x110d   : > { %s7411_s30 = smov %s5594_s20  ;;  %27 = sbr.rel (!%p25_p12) target bundleno = 11 (0xb), region = 145 }
0x1112   :  { %4332 = vsyncpa [#allocation4], 1 }
0x1113   :  { %4334 = vsyncpa [#allocation4 + $0x1], 1 }
0x1114   :  { %4335 = vsyncpa [#allocation7], 1 }
0x1115   :  { %4336 = vsyncpa [#allocation10], 1 }
0x1116   :  { %4337 = vsyncpa [#allocation5], 1 }
0x1117   :  { %4339 = vsyncpa [#allocation5 + $0x1], 1 }
0x1118   :  { %4340 = vsyncpa [#allocation14], 1 }

// kernel: tpu_custom_call.1
= control target key start
LH: loop header
LB: loop body
LE: loop exit
PB: predicated region body
PF: predicated region fallthrough
CT: control target
= control target key end

     0   :  { %s7262_s0 = inlined_call_operand.hbm [shape: f32[48,8,128], index: 0, kind: input, shape index: {}]   ;;  %s7263_s1 = inlined_call_operand.hbm [shape: f32[8,128], index: 1, kind: input, shape index: {}]   ;;  %s7264_s2 = inlined_call_operand.hbm [shape: f32[8,128], index: 2, kind: input, shape index: {}]   ;;  %s7265_s3 = inlined_call_operand.hbm [shape: bf16[128,512], index: 3, kind: input, shape index: {}]   ;;  %s7266_s4 = inlined_call_operand.hbm [shape: bf16[128,512], index: 4, kind: input, shape index: {}]   ;;  %s7267_s5 = inlined_call_operand.vmem [shape: f32[1,512], index: 5, kind: input, shape index: {}]   ;;  %s7268_s6 = inlined_call_operand.hbm [shape: f32[8,48,128], index: 6, kind: output, shape index: {0}]   ;;  %s7269_s7 = inlined_call_operand.hbm [shape: f32[8,128], index: 7, kind: output, shape index: {1}]   ;;  %s7270_s8 = inlined_call_operand.hbm [shape: f32[8,128], index: 8, kind: output, shape index: {2}]  }
   0x1   :  { %7277 = sst [smem:[#allocation75_spill]] %s7263_s1 }
   0x2   :  { %7278 = sst [smem:[#allocation76_spill]] %s7264_s2 }
   0x3   :  { %14 = vsyncpa [#allocation4], 0 }
   0x4   :  { %16 = vsyncpa [#allocation4 + $0x1], 0 }
   0x5   :  { %17 = vsyncpa [#allocation7], 0 }
   0x6   :  { %18 = vsyncpa [#allocation10], 0 }
   0x7   :  { %19 = vsyncpa [#allocation5], 0 }
   0x8   :  { %21 = vsyncpa [#allocation5 + $0x1], 0 }
   0x9   :  { %22 = vsyncpa [#allocation14], 0  ;;  %s5506_s27 = smov 0   ;;  %s5508_s28 = smov 0  }
   0xa   :  { %s5510_s29 = smov 0   ;;  %s5512_s30 = smov 0  }
   0xb LB: > { %s5527_s9 = sadd.s32 4294967295, %s5439_s30   ;;  %s4435_s10 = sadd.s32 4294967294, %s5439_s30   ;;  %s5439_s30 = sphi %s5512_s30, %s7411_s30   ;;  %s5435_s29 = sphi %s5510_s29, %s7410_s29   ;;  %s5431_s28 = sphi %s5508_s28, %s7409_s28   ;;  %s5427_s27 = sphi %s5506_s27, %s7408_s27  }
   0xc   : > { %p48_p0 = scmp.ne.s32.totalorder %s5431_s28, %s5427_s27  ;;  %p7271_p1 = scmp.eq.s32.totalorder %s5527_s9, 0 }
   0xd   : > { %p183_p3 = scmp.eq.s32.totalorder %s4435_s10, 2  ;;  %p4436_p5 = scmp.ge.s32.totalorder %s5439_s30, 1 }
   0xe   : > { %p5536_p4 = por %p7271_p1, %p48_p0  ;;  %p232_p7 = scmp.lt.s32.totalorder %s5439_s30, 4 }
   0xf   : > { %p5541_p6 = por %p183_p3, %p48_p0  ;;  %s5441_s14 = smov [#allocation6]  }
  0x10   : > { %s7279_s11 = scalar_select %p5536_p4, 1, 0 }
  0x11   : > { %s7280_s12 = scalar_select %p5541_p6, 1, 0 }
  0x12   : > { %p5547_p9 = pnand %p4436_p5, %p232_p7  ;;  %s245_s15 = sshll.u32 %s5441_s14, 4  ;;  %s246_s15 = int_to_ptr.vmem [resolvable:$true] %s245_s15 }
  0x13   : > { %s5442_s16 = smov [#allocation9]   ;;  %s5443_s19 = smov [#allocation8]  }
  0x14   : > { %s7281_s13 = scalar_select %p5547_p9, 1, 0 }
  0x15   : > { %p4675_p10 = pneg %p5547_p9  ;;  %s266_s17 = sshll.u32 %s5442_s16, 4  ;;  %s267_s17 = int_to_ptr.vmem [resolvable:$true] %s266_s17 }
  0x16   : > { %s256_s20 = sshll.u32 %s5443_s19, 4  ;;  %s5220_s21 = scalar_lea.vmem %s246_s15, 128  ;;  %s257_s20 = int_to_ptr.vmem [resolvable:$true] %s256_s20 }
  0x17   : > { %p5555_p11 = pnand %p4675_p10, %p7271_p1  ;;  %p5221_p13 = scmp.ne.s32.totalorder %s246_s15, %s5220_s21 }
  0x18   : > { %p5228_p5 = scmp.lt.s32.totalorder %s246_s15, %s246_s15  ;;  %p5229_p7 = scmp.lt.s32.totalorder %s5220_s21, %s5220_s21 }
  0x19   : > { %p5211_p12 = pneg %p5555_p11 }
  0x1a   : > { %p5230_p8 = por %p5229_p7, %p5228_p5 }
  0x1b   : > { %p5223_p0 = pnand %p5221_p13, %p5211_p12 }
  0x1d   : > { %p5224_p3 = pneg %p5223_p0 }
  0x1f   : > { %p5231_p10 = pnand %p5230_p8, %p5224_p3 }
  0x21   : > { %5234 = shalt.err (!%p5231_p10)
}
  0x22   : > { %s7283_s1 = sld [smem:[#allocation75_spill]]  ;;  %s5246_s24 = scalar_lea.vmem %s267_s17, 4096 }
  0x23   : > { %p5247_p1 = scmp.ne.s32.totalorder %s267_s17, %s5246_s24  ;;  %p5254_p13 = scmp.lt.s32.totalorder %s267_s17, %s267_s17 }
  0x24   : > { %p5255_p0 = scmp.lt.s32.totalorder %s5246_s24, %s5246_s24 }
  0x25   : > { %p5249_p2 = pnand %p5247_p1, %p5211_p12 }
  0x26   : > { %p5256_p4 = por %p5255_p0, %p5254_p13 }
  0x27   : > { %p5250_p6 = pneg %p5249_p2 }
  0x28   : > { %4678 = dma.hbm_to_vmem [thread:$0]  (!%p5555_p11), %s7283_s1, 128, %s246_s15, [#allocation7]  }
  0x29   : > { %p5257_p9 = pnand %p5256_p4, %p5250_p6 }
  0x2b   : > { %5260 = shalt.err (!%p5257_p9)
}
  0x2c   : > { %s5444_s25 = smov 256   ;;  %s5445_s26 = smov 16  }
  0x2d   : > { %4684 = dma.hbm_to_vmem [thread:$0]  (!%p5555_p11), %s7265_s3, 4096, %s267_s17, [#allocation10], %s5444_s25, %s5444_s25, %s5445_s26  }
  0x2e   : > { %s5272_s15 = scalar_lea.vmem %s257_s20, 128  ;;  %p5280_p3 = scmp.lt.s32.totalorder %s257_s20, %s257_s20 }
  0x2f   : > { %p5273_p8 = scmp.ne.s32.totalorder %s257_s20, %s5272_s15  ;;  %p5281_p5 = scmp.lt.s32.totalorder %s5272_s15, %s5272_s15 }
  0x31   : > { %p5275_p1 = pnand %p5273_p8, %p5211_p12  ;;  %p5282_p4 = por %p5281_p5, %p5280_p3 }
  0x33   : > { %p5276_p2 = pneg %p5275_p1 }
  0x35   : > { %p5283_p6 = pnand %p5282_p4, %p5276_p2 }
  0x37   : > { %5286 = shalt.err (!%p5283_p6)
}
  0x38   : > { %s7284_s2 = sld [smem:[#allocation76_spill]]  ;;  %s5446_s17 = smov [#allocation11]  }
  0x39   : > { %s279_s21 = sshll.u32 %s5446_s17, 4  ;;  %s280_s21 = int_to_ptr.vmem [resolvable:$true] %s279_s21 }
  0x3a   : > { %s5298_s22 = scalar_lea.vmem %s280_s21, 4096  ;;  %p5306_p13 = scmp.lt.s32.totalorder %s280_s21, %s280_s21 }
  0x3b   : > { %p5299_p9 = scmp.ne.s32.totalorder %s280_s21, %s5298_s22  ;;  %p5307_p0 = scmp.lt.s32.totalorder %s5298_s22, %s5298_s22 }
  0x3d   : > { %p5301_p7 = pnand %p5299_p9, %p5211_p12  ;;  %p5308_p8 = por %p5307_p0, %p5306_p13 }
  0x3e   : > { %4681 = dma.hbm_to_vmem [thread:$0]  (!%p5555_p11), %s7284_s2, 128, %s257_s20, [#allocation7]  }
  0x3f   : > { %p5302_p10 = pneg %p5301_p7 }
  0x41   : > { %p5309_p1 = pnand %p5308_p8, %p5302_p10 }
  0x43   : > { %5312 = shalt.err (!%p5309_p1)
}
  0x44   : > { %4687 = dma.hbm_to_vmem [thread:$0]  (!%p5555_p11), %s7266_s4, 4096, %s280_s21, [#allocation10], %s5444_s25, %s5444_s25, %s5445_s26  }
  0x45   : > { %s5594_s20 = sadd.s32 1, %s5439_s30   ;;  %s35_s10 = sadd.s32 1, %s5435_s29 }
  0x46   : > { %s32_s18 = ssub.s32 %s5439_s30, %s5594_s20  ;;  %p42_p12 = scmp.ne.s32.totalorder %s5435_s29, %s5431_s28 }
  0x47   : > { %p33_p2 = scmp.eq.s32.totalorder %s32_s18, 0  ;;  %p43_p3 = scmp.eq.s32.totalorder %s5439_s30, 0 }
  0x48   : > { %p7285_p5 = scmp.eq.s32.totalorder %s5527_s9, 2  ;;  %p4700_p6 = scmp.lt.s32.totalorder %s5439_s30, 3 }
  0x49   : > { %s5610_s15 = scalar_select %p33_p2, %s5435_s29, %s35_s10  }
  0x4a   : > { %p5604_p4 = por %p7285_p5, %p42_p12  ;;  %p44_p9 = por %p43_p3, %p42_p12 }
  0x4b   : > { %s296_s16 = sand.u32 1, %s5435_s29   ;;  %s4639_s25 = sshll.u32 %s5439_s30, 11 }
  0x4c   : > { %s7286_s14 = scalar_select %p5604_p4, 1, 0 }
  0x4d   : > { %s4442_s19 = sshll.u32 %s296_s16, 7  ;;  %s5617_s21 = scalar_lea.hbm %s7262_s0, %s4639_s25 }
  0x4e   : > { %s300_s22 = scalar_lea.vmem [#allocation3], %s4442_s19  ;;  %p5621_p11 = pnand %p4700_p6, %p44_p9 }
  0x4f   : > { %s307_s23 = sshll.u32 %s300_s22, 4  ;;  %s5625_s10 = scalar_lea.sflag [#allocation4], %s296_s16  ;;  %s5619_s23 = int_to_ptr.vmem [resolvable:$true] %s307_s23 }
  0x50   : > { %s5313_s18 = scalar_lea.hbm %s5617_s21, 2048  ;;  %p5315_p10 = pneg %p5621_p11 }
  0x51   : > { %p5314_p7 = scmp.ne.s32.totalorder %s5617_s21, %s5313_s18  ;;  %s5318_s19 = scalar_lea.hbm %s7262_s0, 6144 }
  0x52   : > { %p5319_p8 = scmp.lt.s32.totalorder %s5617_s21, %s7262_s0  ;;  %p5320_p1 = scmp.lt.s32.totalorder %s5318_s19, %s5313_s18 }
  0x53   : > { %p5316_p13 = pnand %p5315_p10, %p5314_p7 }
  0x54   : > { %p5321_p12 = por %p5320_p1, %p5319_p8 }
  0x55   : > { %p5317_p0 = pneg %p5316_p13 }
  0x57   : > { %p5322_p2 = pnand %p5321_p12, %p5317_p0 }
  0x59   : > { %5325 = shalt.err (!%p5322_p2)
}
  0x5a   : > { %s5326_s16 = scalar_lea.vmem %s5619_s23, 2048  ;;  %s5447_s1 = smov [#allocation3]  }
  0x5b   : > { %p5327_p3 = scmp.ne.s32.totalorder %s5619_s23, %s5326_s16  ;;  %s5331_s2 = sshll.u32 %s5447_s1, 4  ;;  %s5332_s2 = int_to_ptr.vmem [resolvable:$false] %s5331_s2 }
  0x5c   : > { %s5333_s25 = scalar_lea.vmem %s5332_s2, 4096  ;;  %p5334_p9 = scmp.lt.s32.totalorder %s5619_s23, %s5332_s2 }
  0x5d   : > { %p5329_p5 = pnand %p5327_p3, %p5315_p10  ;;  %p5335_p7 = scmp.lt.s32.totalorder %s5333_s25, %s5326_s16 }
  0x5f   : > { %p5330_p6 = pneg %p5329_p5  ;;  %p5336_p13 = por %p5335_p7, %p5334_p9 }
  0x61   : > { %p5337_p4 = pnand %p5336_p13, %p5330_p6 }
  0x63   : > { %5340 = shalt.err (!%p5337_p4)
}
  0x64   : > { %s5448_s18 = smov 128   ;;  %s5449_s26 = smov 8  }
  0x65   : > { %4691 = dma.hbm_to_vmem [thread:$0]  (!%p5621_p11), %s5617_s21, 2048, %s5619_s23, %s5625_s10, %s5448_s18, %s5448_s18, %s5449_s26  }
  0x66   : > { %p7288_p10 = scmp.ne.s32.totalorder %s7281_s13, 0 }
  0x68   : > { %319 = sbr.rel (%p7288_p10) target bundleno = 4355 (0x1103), region = 44 }
  0x6d   : > { %s5649_s1 = sand.u32 1, %s5431_s28   ;;  %p7289_p4 = scmp.ne.s32.totalorder %s7279_s11, 0 }
  0x6e   : > { %s4446_s2 = sshll.u32 %s5649_s1, 7  ;;  %s322_s19 = scalar_lea.sflag [#allocation4], %s5649_s1 }
  0x6f   : > { %s5653_s17 = scalar_lea.vmem [#allocation3], %s4446_s2 }
  0x70   : > { %5406 = dma.done.wait (%p7289_p4), %s322_s19, 2048  }
  0x71   : > { %5408 = vsyncadd (%p7289_p4), %s322_s19, 4294965248  ;;  %p7290_p11 = scmp.eq.s32.totalorder %s5527_s9, 0 }
  0x73   : > { %5410 = dma.done.wait (%p7290_p11), [#allocation7], 256   ;;  %p7291_p0 = pmov %p7290_p11 }
  0x75   : > { %5412 = vsyncadd (%p7291_p0), [#allocation7], 4294967040  ;;  %p7292_p8 = pmov %p7291_p0 }
  0x76   : > { %p7293_p1 = pmov %p7291_p0 }
  0x77   : > { %5414 = dma.done.wait (%p7292_p8), [#allocation10], 8192  }
  0x78   : > { %5416 = vsyncadd (%p7293_p1), [#allocation10], 4294959104  ;;  %s5667_s13 = scalar_lea.vmem [#allocation12], %s4446_s2  ;;  %p7294_p12 = scmp.ne.s32.totalorder %s5527_s9, 0 }
  0x7a   : > { %380 = sbr.rel (%p7294_p12) target bundleno = 129 (0x81), region = 68 }
  0x7f   : > { %v381_v0 = vld [vmem:[#allocation6] sm:$0xff]  ;;  %v383_v1 = vld [vmem:[#allocation8] sm:$0xff] }
  0x80   : > { %382 = vst [vmem:[#allocation13] sm:$0xff] %v381_v0  ;;  %384 = vst [vmem:[#allocation15] sm:$0xff] %v383_v1 }
  0x81 PF: > { %v4761_v2 = vld [vmem:[#allocation9 + $0xe4] ss:$16 sps:$4 sm:$0xff]   ;;  %v4763_v3 = vld [vmem:[#allocation9 + $0xec] ss:$16 sps:$4 sm:$0xff]   ;;  %v7275_v4 = vmov 0   ;;  %s6055_s23 = sshll.u32 %s5527_s9, 4 }
  0x82   : > { %671 = vmatprep.mubr.bf16.mxu0 %v7275_v4  ;;  %784 = vmatprep.mubr.bf16.mxu1 %v7275_v4  ;;  %v4765_v5 = vld [vmem:[#allocation9 + $0xe0] ss:$16 sps:$4 sm:$0xff]   ;;  %v4766_v6 = vld [vmem:[#allocation9 + $0xe8] ss:$16 sps:$4 sm:$0xff]   ;;  %v4767_v7 = vld [vmem:[#allocation9 + $0xc4] ss:$16 sps:$4 sm:$0xff]  }
  0x83   : > { %639 = vmatprep.subr.bf16.mxu0 %v4761_v2  ;;  %752 = vmatprep.subr.bf16.mxu1 %v4763_v3  ;;  %v4769_v8 = vld [vmem:[#allocation9 + $0xcc] ss:$16 sps:$4 sm:$0xff]   ;;  %v4771_v9 = vld [vmem:[#allocation9 + $0xc0] ss:$16 sps:$4 sm:$0xff]   ;;  %v4772_v10 = vld [vmem:[#allocation9 + $0xc8] ss:$16 sps:$4 sm:$0xff]  }
  0x84   : > { %640 = vmatpush1.bf16.msra.mxu0 %v4765_v5  ;;  %753 = vmatpush1.bf16.msra.mxu1 %v4766_v6  ;;  %v4773_v11 = vld [vmem:[#allocation9 + $0xa4] ss:$16 sps:$4 sm:$0xff]   ;;  %v4775_v12 = vld [vmem:[#allocation9 + $0xac] ss:$16 sps:$4 sm:$0xff]   ;;  %v4777_v13 = vld [vmem:[#allocation9 + $0xa0] ss:$16 sps:$4 sm:$0xff]  }
  0x85   : > { %641 = vmatprep.subr.bf16.mxu0 %v4767_v7  ;;  %754 = vmatprep.subr.bf16.mxu1 %v4769_v8  ;;  %v4778_v14 = vld [vmem:[#allocation9 + $0xa8] ss:$16 sps:$4 sm:$0xff]   ;;  %v4779_v15 = vld [vmem:[#allocation9 + $0x84] ss:$16 sps:$4 sm:$0xff]   ;;  %v4781_v16 = vld [vmem:[#allocation9 + $0x8c] ss:$16 sps:$4 sm:$0xff]  }
  0x86   : > { %v4783_v17 = vld [vmem:[#allocation9 + $0x80] ss:$16 sps:$4 sm:$0xff]   ;;  %v4784_v18 = vld [vmem:[#allocation9 + $0x88] ss:$16 sps:$4 sm:$0xff]   ;;  %v4785_v19 = vld [vmem:[#allocation9 + $0x64] ss:$16 sps:$4 sm:$0xff]  }
  0x87   : > { %v4787_v20 = vld [vmem:[#allocation9 + $0x6c] ss:$16 sps:$4 sm:$0xff]   ;;  %v4789_v21 = vld [vmem:[#allocation9 + $0x60] ss:$16 sps:$4 sm:$0xff]   ;;  %v4790_v22 = vld [vmem:[#allocation9 + $0x68] ss:$16 sps:$4 sm:$0xff]  }
  0x88   : > { %642 = vmatpush1.bf16.msra.mxu0 %v4771_v9  ;;  %755 = vmatpush1.bf16.msra.mxu1 %v4772_v10  ;;  %v4791_v23 = vld [vmem:[#allocation9 + $0x44] ss:$16 sps:$4 sm:$0xff]   ;;  %v4793_v24 = vld [vmem:[#allocation9 + $0x4c] ss:$16 sps:$4 sm:$0xff]   ;;  %v4795_v25 = vld [vmem:[#allocation9 + $0x40] ss:$16 sps:$4 sm:$0xff]  }
  0x89   : > { %643 = vmatprep.subr.bf16.mxu0 %v4773_v11  ;;  %756 = vmatprep.subr.bf16.mxu1 %v4775_v12  ;;  %v4796_v26 = vld [vmem:[#allocation9 + $0x48] ss:$16 sps:$4 sm:$0xff]   ;;  %v4797_v27 = vld [vmem:[#allocation9 + $0x24] ss:$16 sps:$4 sm:$0xff]   ;;  %v4799_v28 = vld [vmem:[#allocation9 + $0x2c] ss:$16 sps:$4 sm:$0xff]  }
  0x8a   : > { %v4801_v29 = vld [vmem:[#allocation9 + $0x20] ss:$16 sps:$4 sm:$0xff]   ;;  %v4802_v30 = vld [vmem:[#allocation9 + $0x28] ss:$16 sps:$4 sm:$0xff]   ;;  %v4803_v33 = vld [vmem:[#allocation9 + $0x4] ss:$16 sps:$4 sm:$0xff]  }
  0x8b   : > { %v385_v31 = vld [vmem:[%s5653_s17] sm:$0xff]  ;;  %v386_v32 = vld [vmem:[%s5653_s17 + $0x8] sm:$0xff]  ;;  %v387_v43 = vld [vmem:[%s5653_s17 + $0x10] sm:$0xff]  ;;  %p1239_p2 = scmp.lt.s32.totalorder %s6055_s23, 40  ;;  %s1433_s16 = sadd.s32 1, %s6055_s23 }
  0x8c   : > { %644 = vmatpush1.bf16.msra.mxu0 %v4777_v13  ;;  %757 = vmatpush1.bf16.msra.mxu1 %v4778_v14  ;;  %v4805_v34 = vld [vmem:[#allocation9 + $0xc] ss:$16 sps:$4 sm:$0xff]   ;;  %v401_v35 = vmax.f32 %v385_v31, 0.0  ;;  %v402_v36 = vmax.f32 %v386_v32, 0.0  ;;  %v4807_v37 = vld [vmem:[#allocation9] ss:$16 sps:$4 sm:$0xff]  }
  0x8d   : > { %645 = vmatprep.subr.bf16.mxu0 %v4779_v15  ;;  %758 = vmatprep.subr.bf16.mxu1 %v4781_v16  ;;  %v4808_v38 = vld [vmem:[#allocation9 + $0x8] ss:$16 sps:$4 sm:$0xff]   ;;  %v5675_v39 = vld [vmem:[#allocation11 + $0xe4] ss:$16 sps:$4 sm:$0xff]   ;;  %v5677_v40 = vld [vmem:[#allocation11 + $0xec] ss:$16 sps:$4 sm:$0xff]  }
  0x8e   : > { %v417_v41 = vpack.c.bf16 %v402_v36, %v401_v35  ;;  %v5679_v42 = vld [vmem:[#allocation11 + $0xe0] ss:$16 sps:$4 sm:$0xff]   ;;  %v388_v44 = vld [vmem:[%s5653_s17 + $0x18] sm:$0xff]  ;;  %v5684_v45 = vld [vmem:[#allocation11 + $0xc4] ss:$16 sps:$4 sm:$0xff]   ;;  %v403_v47 = vmax.f32 %v387_v43, 0.0 }
  0x8f   : > { %v5687_v46 = vld [vmem:[#allocation11 + $0xe8] ss:$16 sps:$4 sm:$0xff]   ;;  %v404_v48 = vmax.f32 %v388_v44, 0.0  ;;  %v5689_v49 = vld [vmem:[#allocation11 + $0xcc] ss:$16 sps:$4 sm:$0xff]   ;;  %v389_v54 = vld [vmem:[%s5653_s17 + $0x20] sm:$0xff] }
  0x90   : > { %646 = vmatpush1.bf16.msra.mxu0 %v4783_v17  ;;  %759 = vmatpush1.bf16.msra.mxu1 %v4784_v18  ;;  %v5693_v50 = vld [vmem:[#allocation11 + $0xc0] ss:$16 sps:$4 sm:$0xff]   ;;  %v5697_v51 = vld [vmem:[#allocation11 + $0xa4] ss:$16 sps:$4 sm:$0xff]   ;;  %v5700_v52 = vld [vmem:[#allocation11 + $0xc8] ss:$16 sps:$4 sm:$0xff]  }
  0x91   : > { %647 = vmatprep.subr.bf16.mxu0 %v4785_v19  ;;  %760 = vmatprep.subr.bf16.mxu1 %v4787_v20  ;;  %v418_v53 = vpack.c.bf16 %v404_v48, %v403_v47  ;;  %v390_v55 = vld [vmem:[%s5653_s17 + $0x28] sm:$0xff]  ;;  %v5707_v56 = vld [vmem:[#allocation11 + $0xa0] ss:$16 sps:$4 sm:$0xff]   ;;  %v5709_v57 = vld [vmem:[#allocation11 + $0x84] ss:$16 sps:$4 sm:$0xff]   ;;  %v405_v60 = vmax.f32 %v389_v54, 0.0 }
  0x92   : > { %v5711_v58 = vld [vmem:[#allocation11 + $0xac] ss:$16 sps:$4 sm:$0xff]   ;;  %v5714_v59 = vld [vmem:[#allocation11 + $0xa8] ss:$16 sps:$4 sm:$0xff]   ;;  %v406_v61 = vmax.f32 %v390_v55, 0.0  ;;  %v391_v3 = vld [vmem:[%s5653_s17 + $0x30] sm:$0xff]  ;;  %v459_v55 = vlaneseq }
  0x93   : > { %v5716_v62 = vld [vmem:[#allocation11 + $0x8c] ss:$16 sps:$4 sm:$0xff]   ;;  %v5721_v63 = vld [vmem:[#allocation11 + $0x80] ss:$16 sps:$4 sm:$0xff]   ;;  %v5725_v0 = vld [vmem:[#allocation11 + $0x64] ss:$16 sps:$4 sm:$0xff]  }
  0x94   : > { %648 = vmatpush1.bf16.msra.mxu0 %v4789_v21  ;;  %761 = vmatpush1.bf16.msra.mxu1 %v4790_v22  ;;  %v5728_v1 = vld [vmem:[#allocation11 + $0x88] ss:$16 sps:$4 sm:$0xff]   ;;  %v419_v2 = vpack.c.bf16 %v406_v61, %v405_v60  ;;  %v5734_v6 = vld [vmem:[#allocation11 + $0x60] ss:$16 sps:$4 sm:$0xff]   ;;  %v5736_v7 = vld [vmem:[#allocation11 + $0x6c] ss:$16 sps:$4 sm:$0xff]  }
  0x95   : > { %649 = vmatprep.subr.bf16.mxu0 %v4791_v23  ;;  %762 = vmatprep.subr.bf16.mxu1 %v4793_v24  ;;  %v392_v5 = vld [vmem:[%s5653_s17 + $0x38] sm:$0xff]  ;;  %v5739_v8 = vld [vmem:[#allocation11 + $0x44] ss:$16 sps:$4 sm:$0xff]   ;;  %v407_v10 = vmax.f32 %v391_v3, 0.0  ;;  %v5749_v13 = vld [vmem:[#allocation11 + $0x40] ss:$16 sps:$4 sm:$0xff]  }
  0x96   : > { %v5742_v9 = vld [vmem:[#allocation11 + $0x68] ss:$16 sps:$4 sm:$0xff]   ;;  %v408_v11 = vmax.f32 %v392_v5, 0.0  ;;  %v5744_v12 = vld [vmem:[#allocation11 + $0x4c] ss:$16 sps:$4 sm:$0xff]   ;;  %v393_v17 = vld [vmem:[%s5653_s17 + $0x40] sm:$0xff] }
  0x97   : > { %v5753_v14 = vld [vmem:[#allocation11 + $0x24] ss:$16 sps:$4 sm:$0xff]   ;;  %v5756_v15 = vld [vmem:[#allocation11 + $0x48] ss:$16 sps:$4 sm:$0xff]   ;;  %v5762_v19 = vld [vmem:[#allocation11 + $0x20] ss:$16 sps:$4 sm:$0xff]  }
  0x98   : > { %650 = vmatpush1.bf16.msra.mxu0 %v4795_v25  ;;  %763 = vmatpush1.bf16.msra.mxu1 %v4796_v26  ;;  %v420_v16 = vpack.c.bf16 %v408_v11, %v407_v10  ;;  %v394_v18 = vld [vmem:[%s5653_s17 + $0x48] sm:$0xff]  ;;  %v5768_v21 = vld [vmem:[#allocation11 + $0x4] ss:$16 sps:$4 sm:$0xff]   ;;  %v409_v23 = vmax.f32 %v393_v17, 0.0  ;;  %v5778_v26 = vld [vmem:[#allocation11] ss:$16 sps:$4 sm:$0xff]  }
  0x99   : > { %651 = vmatprep.subr.bf16.mxu0 %v4797_v27  ;;  %764 = vmatprep.subr.bf16.mxu1 %v4799_v28  ;;  %v5764_v20 = vld [vmem:[#allocation11 + $0x2c] ss:$16 sps:$4 sm:$0xff]   ;;  %v5770_v22 = vld [vmem:[#allocation11 + $0x28] ss:$16 sps:$4 sm:$0xff]   ;;  %v410_v24 = vmax.f32 %v394_v18, 0.0  ;;  %v5841_v60 = vshrl.u32 %v459_v55, 7 }
  0x9a   : > { %v5772_v25 = vld [vmem:[#allocation11 + $0xc] ss:$16 sps:$4 sm:$0xff]   ;;  %v5782_v27 = vld [vmem:[#allocation11 + $0x8] ss:$16 sps:$4 sm:$0xff]   ;;  %v457_v5 = vld [vmem:[%s7267_s5] sm:$0xf] }
  0x9b   : > { %v421_v28 = vpack.c.bf16 %v410_v24, %v409_v23  ;;  %v398_v35 = vld [vmem:[%s5653_s17 + $0x68] sm:$0xff]  ;;  %v400_v43 = vld [vmem:[%s5653_s17 + $0x78] sm:$0xff]  ;;  %v469_v61 = vsub.s32 2, %v5841_v60  ;;  %v473_v3 = vsub.s32 3, %v5841_v60  ;;  %v465_v17 = vsub.s32 1, %v5841_v60  ;;  %p1434_p3 = scmp.lt.s32.totalorder %s1433_s16, 40 }
  0x9c   : > { %652 = vmatpush1.bf16.msra.mxu0 %v4801_v29  ;;  %765 = vmatpush1.bf16.msra.mxu1 %v4802_v30  ;;  %v395_v29 = vld [vmem:[%s5653_s17 + $0x50] sm:$0xff]  ;;  %v396_v30 = vld [vmem:[%s5653_s17 + $0x58] sm:$0xff]  ;;  %v416_v47 = vmax.f32 %v400_v43, 0.0  ;;  %s1240_s24 = scalar_select %p1239_p2, 1, 0 }
  0x9d   : > { %653 = vmatprep.subr.bf16.mxu0 %v4803_v33  ;;  %766 = vmatprep.subr.bf16.mxu1 %v4805_v34  ;;  %v411_v31 = vmax.f32 %v395_v29, 0.0  ;;  %v412_v32 = vmax.f32 %v396_v30, 0.0  ;;  %v397_v34 = vld [vmem:[%s5653_s17 + $0x60] sm:$0xff]  ;;  %s1435_s25 = scalar_select %p1434_p3, 1, 0 }
  0x9e   : > { %v413_v36 = vmax.f32 %v397_v34, 0.0  ;;  %s1241_s10 = scvt.s32.f32 %s1240_s24  ;;  %s1628_s2 = sadd.s32 2, %s6055_s23 }
  0x9f   : > { %v422_v33 = vpack.c.bf16 %v412_v32, %v411_v31  ;;  %v5864_v31 = vrot.slane %v457_v5, %v465_v17  ;;  %s1436_s18 = scvt.s32.f32 %s1435_s25  ;;  %p1629_p5 = scmp.lt.s32.totalorder %s1628_s2, 40 }
  0xa0   : > { %654 = vmatpush1.bf16.msra.mxu0 %v4807_v37  ;;  %767 = vmatpush1.bf16.msra.mxu1 %v4808_v38  ;;  %v414_v37 = vmax.f32 %v398_v35, 0.0  ;;  %s1244_s22 = ssub.f32 1.0, %s1241_s10  ;;  %s1823_s21 = sadd.s32 3, %s6055_s23 }
  0xa1   : > { %1128 = vmatprep.subr.bf16.mxu0 %v5675_v39  ;;  %1169 = vmatprep.subr.bf16.mxu1 %v5677_v40  ;;  %s1439_s26 = ssub.f32 1.0, %s1436_s18  ;;  %p1824_p6 = scmp.lt.s32.totalorder %s1823_s21, 40 }
  0xa2   : > { %v423_v38 = vpack.c.bf16 %v414_v37, %v413_v36  ;;  %s1630_s19 = scalar_select %p1629_p5, 1, 0 }
  0xa3   : > { %672 = vmatmul.mubr.bf16.vlgmr.msra.gmra.mxu0 %v417_v41  ;;  %785 = vmatmul.mubr.bf16.vlgmr.msra.gmra.mxu1 %v417_v41  ;;  %v399_v41 = vld [vmem:[%s5653_s17 + $0x70] sm:$0xff]  ;;  %s1825_s24 = scalar_select %p1824_p6, 1, 0 }
  0xa4   : > { %1129 = vmatpush1.bf16.msra.mxu0 %v5679_v42  ;;  %681 = vmatprep.mubr.bf16.mxu0 %v7275_v4  ;;  %v415_v44 = vmax.f32 %v399_v41, 0.0  ;;  %s1631_s17 = scvt.s32.f32 %s1630_s19  ;;  %s2018_s16 = sadd.s32 4, %s6055_s23 }
  0xa5   : > { %794 = vmatprep.mubr.bf16.mxu1 %v7275_v4  ;;  %1130 = vmatprep.subr.bf16.mxu0 %v5684_v45  ;;  %p2019_p9 = scmp.lt.s32.totalorder %s2018_s16, 40  ;;  %s2213_s2 = sadd.s32 5, %s6055_s23 }
  0xa6   : > { %1170 = vmatpush1.bf16.msra.mxu1 %v5687_v46  ;;  %v424_v48 = vpack.c.bf16 %v416_v47, %v415_v44  ;;  %s1634_s11 = ssub.f32 1.0, %s1631_s17  ;;  %p2214_p7 = scmp.lt.s32.totalorder %s2213_s2, 40 }
  0xa7   : > { %1171 = vmatprep.subr.bf16.mxu1 %v5689_v49  ;;  %s2020_s25 = scalar_select %p2019_p9, 1, 0 }
  0xa8   : > { %1131 = vmatpush1.bf16.msra.mxu0 %v5693_v50  ;;  %s2215_s19 = scalar_select %p2214_p7, 1, 0 }
  0xa9   : > { %1132 = vmatprep.subr.bf16.mxu0 %v5697_v51  ;;  %s2408_s21 = sadd.s32 6, %s6055_s23  ;;  %s2603_s16 = sadd.s32 7, %s6055_s23 }
  0xaa   : > { %1172 = vmatpush1.bf16.msra.mxu1 %v5700_v52  ;;  %p2409_p13 = scmp.lt.s32.totalorder %s2408_s21, 40  ;;  %p2604_p10 = scmp.lt.s32.totalorder %s2603_s16, 40 }
  0xab   : > { %682 = vmatmul.mubr.bf16.gmra.mxu0 %v418_v53  ;;  %795 = vmatmul.mubr.bf16.gmra.mxu1 %v418_v53  ;;  %v5803_v53 = vld [vmem:[#allocation13] sm:$0xff]  ;;  %s2798_s2 = sadd.s32 8, %s6055_s23  ;;  %s2993_s21 = sadd.s32 9, %s6055_s23 }
  0xac   : > { %691 = vmatprep.mubr.bf16.mxu0 %v7275_v4  ;;  %804 = vmatprep.mubr.bf16.mxu1 %v7275_v4  ;;  %v967_v54 = vpack.c.bf16 %v5803_v53, %v5803_v53  ;;  %p2799_p4 = scmp.lt.s32.totalorder %s2798_s2, 40  ;;  %p2994_p11 = scmp.lt.s32.totalorder %s2993_s21, 40 }
  0xad   : > { %1133 = vmatpush1.bf16.msra.mxu0 %v5707_v56  ;;  %1173 = vmatprep.subr.bf16.mxu1 %v5711_v58  ;;  %s3188_s16 = sadd.s32 10, %s6055_s23  ;;  %s3383_s2 = sadd.s32 11, %s6055_s23 }
  0xae   : > { %1134 = vmatprep.subr.bf16.mxu0 %v5709_v57  ;;  %1174 = vmatpush1.bf16.msra.mxu1 %v5714_v59  ;;  %p3189_p0 = scmp.lt.s32.totalorder %s3188_s16, 40  ;;  %p3384_p8 = scmp.lt.s32.totalorder %s3383_s2, 40 }
  0xaf   : > { %1175 = vmatprep.subr.bf16.mxu1 %v5716_v62  ;;  %s3578_s21 = sadd.s32 12, %s6055_s23  ;;  %s3773_s16 = sadd.s32 13, %s6055_s23 }
  0xb0   : > { %p3579_p1 = scmp.lt.s32.totalorder %s3578_s21, 40  ;;  %p3774_p12 = scmp.lt.s32.totalorder %s3773_s16, 40 }
  0xb1   : > { %1135 = vmatpush1.bf16.msra.mxu0 %v5721_v63  ;;  %s3968_s2 = sadd.s32 14, %s6055_s23  ;;  %s4163_s21 = sadd.s32 15, %s6055_s23 }
  0xb2   : > { %1136 = vmatprep.subr.bf16.mxu0 %v5725_v0  ;;  %1176 = vmatpush1.bf16.msra.mxu1 %v5728_v1  ;;  %p3969_p2 = scmp.lt.s32.totalorder %s3968_s2, 40  ;;  %p4164_p3 = scmp.lt.s32.totalorder %s4163_s21, 40 }
  0xb3   : > { %692 = vmatmul.mubr.bf16.gmra.mxu0 %v419_v2  ;;  %805 = vmatmul.mubr.bf16.gmra.mxu1 %v419_v2  ;;  %v461_v2 = vsub.s32 0, %v5841_v60  ;;  %s4245_s23 = scalar_lea.sflag [#allocation5], %s5649_s1 }
  0xb4   : > { %701 = vmatprep.mubr.bf16.mxu0 %v7275_v4  ;;  %814 = vmatprep.mubr.bf16.mxu1 %v7275_v4 }
  0xb5   : > { %1137 = vmatpush1.bf16.msra.mxu0 %v5734_v6  ;;  %1177 = vmatprep.subr.bf16.mxu1 %v5736_v7  ;;  %v5860_v24 = vrot.slane %v457_v5, %v461_v2 }
  0xb6   : > { %1138 = vmatprep.subr.bf16.mxu0 %v5739_v8  ;;  %1178 = vmatpush1.bf16.msra.mxu1 %v5742_v9 }
  0xb7   : > { %1179 = vmatprep.subr.bf16.mxu1 %v5744_v12 }
  0xb9   : > { %1139 = vmatpush1.bf16.msra.mxu0 %v5749_v13 }
  0xba   : > { %1140 = vmatprep.subr.bf16.mxu0 %v5753_v14  ;;  %1180 = vmatpush1.bf16.msra.mxu1 %v5756_v15 }
  0xbb   : > { %702 = vmatmul.mubr.bf16.gmra.mxu0 %v420_v16  ;;  %815 = vmatmul.mubr.bf16.gmra.mxu1 %v420_v16  ;;  %v5853_v16 = vrot.slane %v457_v5, %v469_v61 }
  0xbc   : > { %711 = vmatprep.mubr.bf16.mxu0 %v7275_v4  ;;  %824 = vmatprep.mubr.bf16.mxu1 %v7275_v4 }
  0xbd   : > { %1141 = vmatpush1.bf16.msra.mxu0 %v5762_v19  ;;  %1181 = vmatprep.subr.bf16.mxu1 %v5764_v20 }
  0xbe   : > { %1142 = vmatprep.subr.bf16.mxu0 %v5768_v21  ;;  %1182 = vmatpush1.bf16.msra.mxu1 %v5770_v22 }
  0xbf   : > { %1183 = vmatprep.subr.bf16.mxu1 %v5772_v25 }
  0xc1   : > { %1143 = vmatpush1.bf16.msra.mxu0 %v5778_v26 }
  0xc2   : > { %1184 = vmatpush1.bf16.msra.mxu1 %v5782_v27  ;;  %1323 = vmatprep.subr.bf16.mxu0 %v5675_v39 }
  0xc3   : > { %712 = vmatmul.mubr.bf16.gmra.mxu0 %v421_v28  ;;  %825 = vmatmul.mubr.bf16.gmra.mxu1 %v421_v28  ;;  %v5862_v28 = vrot.slane %v457_v5, %v473_v3 }
  0xc4   : > { %721 = vmatprep.mubr.bf16.mxu0 %v7275_v4  ;;  %834 = vmatprep.mubr.bf16.mxu1 %v7275_v4 }
  0xc5   : > { %1364 = vmatprep.subr.bf16.mxu1 %v5677_v40 }
  0xcb   : > { %722 = vmatmul.mubr.bf16.gmra.mxu0 %v422_v33  ;;  %835 = vmatmul.mubr.bf16.gmra.mxu1 %v422_v33 }
  0xcc   : > { %731 = vmatprep.mubr.bf16.mxu0 %v7275_v4  ;;  %844 = vmatprep.mubr.bf16.mxu1 %v7275_v4 }
  0xd3   : > { %732 = vmatmul.mubr.bf16.gmra.mxu0 %v423_v38  ;;  %845 = vmatmul.mubr.bf16.gmra.mxu1 %v423_v38 }
  0xd4   : > { %741 = vmatprep.mubr.bf16.mxu0 %v7275_v4  ;;  %854 = vmatprep.mubr.bf16.mxu1 %v7275_v4 }
  0xdb   : > { %742 = vmatmul.mubr.bf16.gmra.mxu0 %v424_v48  ;;  %855 = vmatmul.mubr.bf16.gmra.mxu1 %v424_v48 }
  0xdc   : > { %1160 = vmatprep.mubr.bf16.mxu0 %v7275_v4  ;;  %1201 = vmatprep.mubr.bf16.mxu1 %v7275_v4 }
  0xe3   : > { %1161 = vmatmul.mubr.bf16.vlgmr.msra.gmra.mxu0 %v967_v54  ;;  %1202 = vmatmul.mubr.bf16.vlgmr.msra.gmra.mxu1 %v967_v54 }
  0xe4   : > { %1324 = vmatpush1.bf16.msra.mxu0 %v5679_v42  ;;  %1365 = vmatpush1.bf16.msra.mxu1 %v5687_v46 }
  0xe5   : > { %1325 = vmatprep.subr.bf16.mxu0 %v5684_v45  ;;  %1366 = vmatprep.subr.bf16.mxu1 %v5689_v49 }
  0xe6   : > { %1355 = vmatprep.mubr.bf16.mxu0 %v7275_v4  ;;  %1396 = vmatprep.mubr.bf16.mxu1 %v7275_v4 }
  0xe8   : > { %1326 = vmatpush1.bf16.msra.mxu0 %v5693_v50  ;;  %1367 = vmatpush1.bf16.msra.mxu1 %v5700_v52 }
  0xe9   : > { %1327 = vmatprep.subr.bf16.mxu0 %v5697_v51  ;;  %1368 = vmatprep.subr.bf16.mxu1 %v5711_v58 }
  0xec   : > { %1328 = vmatpush1.bf16.msra.mxu0 %v5707_v56  ;;  %1369 = vmatpush1.bf16.msra.mxu1 %v5714_v59 }
  0xed   : > { %1329 = vmatprep.subr.bf16.mxu0 %v5709_v57  ;;  %1370 = vmatprep.subr.bf16.mxu1 %v5716_v62 }
  0xf0   : > { %1330 = vmatpush1.bf16.msra.mxu0 %v5721_v63  ;;  %1371 = vmatpush1.bf16.msra.mxu1 %v5728_v1 }
  0xf1   : > { %1331 = vmatprep.subr.bf16.mxu0 %v5725_v0  ;;  %1372 = vmatprep.subr.bf16.mxu1 %v5736_v7 }
  0xf4   : > { %1332 = vmatpush1.bf16.msra.mxu0 %v5734_v6  ;;  %1373 = vmatpush1.bf16.msra.mxu1 %v5742_v9 }
  0xf5   : > { %1333 = vmatprep.subr.bf16.mxu0 %v5739_v8  ;;  %1374 = vmatprep.subr.bf16.mxu1 %v5744_v12 }
  0xf8   : > { %1334 = vmatpush1.bf16.msra.mxu0 %v5749_v13  ;;  %1375 = vmatpush1.bf16.msra.mxu1 %v5756_v15 }
  0xf9   : > { %1335 = vmatprep.subr.bf16.mxu0 %v5753_v14  ;;  %1376 = vmatprep.subr.bf16.mxu1 %v5764_v20 }
  0xfc   : > { %1336 = vmatpush1.bf16.msra.mxu0 %v5762_v19  ;;  %1377 = vmatpush1.bf16.msra.mxu1 %v5770_v22 }
  0xfd   : > { %1337 = vmatprep.subr.bf16.mxu0 %v5768_v21  ;;  %1378 = vmatprep.subr.bf16.mxu1 %v5772_v25 }
 0x100   : > { %1338 = vmatpush1.bf16.msra.mxu0 %v5778_v26  ;;  %1379 = vmatpush1.bf16.msra.mxu1 %v5782_v27 }
 0x101   : > { %1518 = vmatprep.subr.bf16.mxu0 %v5675_v39  ;;  %1559 = vmatprep.subr.bf16.mxu1 %v5677_v40 }
 0x163   : > { %v5849_v10 = vpop.f32.mrf.mxu0  ;;  %v5851_v11 = vpop.f32.mrf.mxu1 }
 0x165   : > { %v5856_v18 = vpop.f32.mrf.mxu0  ;;  %v5858_v23 = vpop.f32.mrf.mxu1 }
 0x167   : > { %v677_v29 = vpop.f32.mrf.mxu0  ;;  %v790_v30 = vpop.f32.mrf.mxu1 }
 0x168   : > { %v5867_v32 = vadd.f32 %v677_v29, %v5860_v24  ;;  %v5870_v33 = vadd.f32 %v790_v30, %v5853_v16 }
 0x169   : > { %v679_v34 = vpop.f32.mrf.mxu0  ;;  %v792_v35 = vpop.f32.mrf.mxu1 }
 0x16a   : > { %v5873_v36 = vadd.f32 %v679_v34, %v5864_v31  ;;  %v5876_v37 = vadd.f32 %v792_v35, %v5862_v28 }
 0x16b   : > { %v683_v38 = vpop.f32.mrf.mxu0  ;;  %v796_v41 = vpop.f32.mrf.mxu1 }
 0x16c   : > { %v5879_v43 = vadd.f32 %v683_v38, %v5860_v24  ;;  %v5882_v44 = vadd.f32 %v796_v41, %v5853_v16 }
 0x16d   : > { %v685_v47 = vpop.f32.mrf.mxu0  ;;  %v798_v48 = vpop.f32.mrf.mxu1 }
 0x16e   : > { %7295 = vst [vmem:[#allocation23_spill] sm:$0xff] %v5882_v44  ;;  %v5885_v54 = vadd.f32 %v685_v47, %v5864_v31  ;;  %v5888_v55 = vadd.f32 %v798_v48, %v5862_v28 }
 0x16f   : > { %v687_v61 = vpop.f32.mrf.mxu0  ;;  %v800_v2 = vpop.f32.mrf.mxu1 }
 0x170   : > { %v5891_v3 = vadd.f32 %v687_v61, %v5860_v24  ;;  %v5894_v5 = vadd.f32 %v800_v2, %v5853_v16 }
 0x171   : > { %v689_v17 = vpop.f32.mrf.mxu0  ;;  %v802_v29 = vpop.f32.mrf.mxu1 }
 0x172   : > { %7296 = vst [vmem:[#allocation24_spill] sm:$0xff] %v5891_v3  ;;  %7297 = vst [vmem:[#allocation25_spill] sm:$0xff] %v5894_v5  ;;  %v5897_v30 = vadd.f32 %v689_v17, %v5864_v31  ;;  %v5900_v34 = vadd.f32 %v802_v29, %v5862_v28 }
 0x173   : > { %v693_v35 = vpop.f32.mrf.mxu0  ;;  %v806_v38 = vpop.f32.mrf.mxu1 }
 0x174   : > { %7298 = vst [vmem:[#allocation26_spill] sm:$0xff] %v5897_v30  ;;  %7299 = vst [vmem:[#allocation27_spill] sm:$0xff] %v5900_v34  ;;  %v5903_v41 = vadd.f32 %v693_v35, %v5860_v24  ;;  %v5906_v47 = vadd.f32 %v806_v38, %v5853_v16 }
 0x175   : > { %v695_v48 = vpop.f32.mrf.mxu0  ;;  %v808_v61 = vpop.f32.mrf.mxu1 }
 0x176   : > { %7300 = vst [vmem:[#allocation28_spill] sm:$0xff] %v5903_v41  ;;  %7301 = vst [vmem:[#allocation29_spill] sm:$0xff] %v5906_v47  ;;  %v5909_v2 = vadd.f32 %v695_v48, %v5864_v31  ;;  %v5912_v4 = vadd.f32 %v808_v61, %v5862_v28 }
 0x177   : > { %v697_v17 = vpop.f32.mrf.mxu0  ;;  %v810_v5 = vpop.f32.mrf.mxu1 }
 0x178   : > { %7302 = vst [vmem:[#allocation30_spill] sm:$0xff] %v5909_v2  ;;  %7303 = vst [vmem:[#allocation31_spill] sm:$0xff] %v5912_v4  ;;  %v5915_v29 = vadd.f32 %v697_v17, %v5860_v24  ;;  %v5918_v34 = vadd.f32 %v810_v5, %v5853_v16 }
 0x179   : > { %v699_v35 = vpop.f32.mrf.mxu0  ;;  %v812_v41 = vpop.f32.mrf.mxu1 }
 0x17a   : > { %7304 = vst [vmem:[#allocation32_spill] sm:$0xff] %v5915_v29  ;;  %7305 = vst [vmem:[#allocation33_spill] sm:$0xff] %v5918_v34  ;;  %v5921_v38 = vadd.f32 %v699_v35, %v5864_v31  ;;  %v5924_v47 = vadd.f32 %v812_v41, %v5862_v28 }
 0x17b   : > { %v703_v48 = vpop.f32.mrf.mxu0  ;;  %v816_v2 = vpop.f32.mrf.mxu1 }
 0x17c   : > { %7306 = vst [vmem:[#allocation34_spill] sm:$0xff] %v5921_v38  ;;  %7307 = vst [vmem:[#allocation35_spill] sm:$0xff] %v5924_v47  ;;  %v5927_v61 = vadd.f32 %v703_v48, %v5860_v24  ;;  %v5930_v4 = vadd.f32 %v816_v2, %v5853_v16 }
 0x17d   : > { %v705_v17 = vpop.f32.mrf.mxu0  ;;  %v818_v29 = vpop.f32.mrf.mxu1 }
 0x17e   : > { %7308 = vst [vmem:[#allocation36_spill] sm:$0xff] %v5927_v61  ;;  %7309 = vst [vmem:[#allocation37_spill] sm:$0xff] %v5930_v4  ;;  %v5933_v5 = vadd.f32 %v705_v17, %v5864_v31  ;;  %v5936_v34 = vadd.f32 %v818_v29, %v5862_v28 }
 0x17f   : > { %v707_v35 = vpop.f32.mrf.mxu0  ;;  %v820_v38 = vpop.f32.mrf.mxu1 }
 0x180   : > { %7310 = vst [vmem:[#allocation38_spill] sm:$0xff] %v5933_v5  ;;  %7311 = vst [vmem:[#allocation39_spill] sm:$0xff] %v5936_v34  ;;  %v5939_v41 = vadd.f32 %v707_v35, %v5860_v24  ;;  %v5942_v47 = vadd.f32 %v820_v38, %v5853_v16 }
 0x181   : > { %v709_v48 = vpop.f32.mrf.mxu0  ;;  %v822_v61 = vpop.f32.mrf.mxu1 }
 0x182   : > { %7312 = vst [vmem:[#allocation40_spill] sm:$0xff] %v5939_v41  ;;  %7313 = vst [vmem:[#allocation41_spill] sm:$0xff] %v5942_v47  ;;  %v5945_v2 = vadd.f32 %v709_v48, %v5864_v31  ;;  %v5948_v4 = vadd.f32 %v822_v61, %v5862_v28 }
 0x183   : > { %v713_v17 = vpop.f32.mrf.mxu0  ;;  %v826_v5 = vpop.f32.mrf.mxu1 }
 0x184   : > { %7314 = vst [vmem:[#allocation42_spill] sm:$0xff] %v5945_v2  ;;  %7315 = vst [vmem:[#allocation43_spill] sm:$0xff] %v5948_v4  ;;  %v5951_v29 = vadd.f32 %v713_v17, %v5860_v24  ;;  %v5954_v34 = vadd.f32 %v826_v5, %v5853_v16 }
 0x185   : > { %v715_v35 = vpop.f32.mrf.mxu0  ;;  %v828_v41 = vpop.f32.mrf.mxu1 }
 0x186   : > { %7316 = vst [vmem:[#allocation44_spill] sm:$0xff] %v5951_v29  ;;  %7317 = vst [vmem:[#allocation45_spill] sm:$0xff] %v5954_v34  ;;  %v5957_v38 = vadd.f32 %v715_v35, %v5864_v31  ;;  %v5960_v47 = vadd.f32 %v828_v41, %v5862_v28 }
 0x187   : > { %v717_v48 = vpop.f32.mrf.mxu0  ;;  %v830_v2 = vpop.f32.mrf.mxu1 }
 0x188   : > { %7318 = vst [vmem:[#allocation46_spill] sm:$0xff] %v5957_v38  ;;  %7319 = vst [vmem:[#allocation47_spill] sm:$0xff] %v5960_v47  ;;  %v5963_v61 = vadd.f32 %v717_v48, %v5860_v24  ;;  %v5966_v4 = vadd.f32 %v830_v2, %v5853_v16 }
 0x189   : > { %v719_v17 = vpop.f32.mrf.mxu0  ;;  %v832_v29 = vpop.f32.mrf.mxu1 }
 0x18a   : > { %7320 = vst [vmem:[#allocation48_spill] sm:$0xff] %v5963_v61  ;;  %7321 = vst [vmem:[#allocation49_spill] sm:$0xff] %v5966_v4  ;;  %v5969_v5 = vadd.f32 %v719_v17, %v5864_v31  ;;  %v5972_v34 = vadd.f32 %v832_v29, %v5862_v28 }
 0x18b   : > { %v723_v35 = vpop.f32.mrf.mxu0  ;;  %v836_v38 = vpop.f32.mrf.mxu1 }
 0x18c   : > { %7322 = vst [vmem:[#allocation50_spill] sm:$0xff] %v5969_v5  ;;  %7323 = vst [vmem:[#allocation51_spill] sm:$0xff] %v5972_v34  ;;  %v5975_v41 = vadd.f32 %v723_v35, %v5860_v24  ;;  %v5978_v47 = vadd.f32 %v836_v38, %v5853_v16 }
 0x18d   : > { %v725_v48 = vpop.f32.mrf.mxu0  ;;  %v838_v61 = vpop.f32.mrf.mxu1 }
 0x18e   : > { %7324 = vst [vmem:[#allocation52_spill] sm:$0xff] %v5975_v41  ;;  %7325 = vst [vmem:[#allocation53_spill] sm:$0xff] %v5978_v47  ;;  %v5981_v2 = vadd.f32 %v725_v48, %v5864_v31  ;;  %v5984_v4 = vadd.f32 %v838_v61, %v5862_v28 }
 0x18f   : > { %v727_v17 = vpop.f32.mrf.mxu0  ;;  %v840_v5 = vpop.f32.mrf.mxu1 }
 0x190   : > { %7326 = vst [vmem:[#allocation54_spill] sm:$0xff] %v5981_v2  ;;  %7327 = vst [vmem:[#allocation55_spill] sm:$0xff] %v5984_v4  ;;  %v5987_v29 = vadd.f32 %v727_v17, %v5860_v24  ;;  %v5990_v34 = vadd.f32 %v840_v5, %v5853_v16 }
 0x191   : > { %v729_v35 = vpop.f32.mrf.mxu0  ;;  %v842_v41 = vpop.f32.mrf.mxu1 }
 0x192   : > { %7328 = vst [vmem:[#allocation56_spill] sm:$0xff] %v5987_v29  ;;  %7329 = vst [vmem:[#allocation57_spill] sm:$0xff] %v5990_v34  ;;  %v5993_v38 = vadd.f32 %v729_v35, %v5864_v31  ;;  %v5996_v47 = vadd.f32 %v842_v41, %v5862_v28 }
 0x193   : > { %v733_v48 = vpop.f32.mrf.mxu0  ;;  %v846_v2 = vpop.f32.mrf.mxu1 }
 0x194   : > { %7330 = vst [vmem:[#allocation58_spill] sm:$0xff] %v5993_v38  ;;  %7331 = vst [vmem:[#allocation59_spill] sm:$0xff] %v5996_v47  ;;  %v5999_v61 = vadd.f32 %v733_v48, %v5860_v24  ;;  %v6002_v4 = vadd.f32 %v846_v2, %v5853_v16 }
 0x195   : > { %v735_v17 = vpop.f32.mrf.mxu0  ;;  %v848_v29 = vpop.f32.mrf.mxu1 }
 0x196   : > { %7332 = vst [vmem:[#allocation60_spill] sm:$0xff] %v5999_v61  ;;  %7333 = vst [vmem:[#allocation61_spill] sm:$0xff] %v6002_v4  ;;  %v6005_v5 = vadd.f32 %v735_v17, %v5864_v31  ;;  %v6008_v34 = vadd.f32 %v848_v29, %v5862_v28 }
 0x197   : > { %v737_v35 = vpop.f32.mrf.mxu0  ;;  %v850_v38 = vpop.f32.mrf.mxu1 }
 0x198   : > { %7334 = vst [vmem:[#allocation62_spill] sm:$0xff] %v6005_v5  ;;  %7335 = vst [vmem:[#allocation63_spill] sm:$0xff] %v6008_v34  ;;  %v6011_v41 = vadd.f32 %v737_v35, %v5860_v24  ;;  %v6014_v47 = vadd.f32 %v850_v38, %v5853_v16 }
 0x199   : > { %v739_v48 = vpop.f32.mrf.mxu0  ;;  %v852_v61 = vpop.f32.mrf.mxu1 }
 0x19a   : > { %7336 = vst [vmem:[#allocation64_spill] sm:$0xff] %v6011_v41  ;;  %7337 = vst [vmem:[#allocation65_spill] sm:$0xff] %v6014_v47  ;;  %v6017_v2 = vadd.f32 %v739_v48, %v5864_v31  ;;  %v6020_v4 = vadd.f32 %v852_v61, %v5862_v28 }
 0x19b   : > { %v743_v17 = vpop.f32.mrf.mxu0  ;;  %v856_v5 = vpop.f32.mrf.mxu1 }
 0x19c   : > { %7338 = vst [vmem:[#allocation66_spill] sm:$0xff] %v6017_v2  ;;  %7339 = vst [vmem:[#allocation67_spill] sm:$0xff] %v6020_v4  ;;  %v6023_v29 = vadd.f32 %v743_v17, %v5860_v24  ;;  %v6026_v34 = vadd.f32 %v856_v5, %v5853_v16  ;;  %v674_v5 = vadd.f32 %v5849_v10, %v5860_v24 }
 0x19d   : > { %v745_v35 = vpop.f32.mrf.mxu0  ;;  %v858_v41 = vpop.f32.mrf.mxu1 }
 0x19e   : > { %7340 = vst [vmem:[#allocation68_spill] sm:$0xff] %v6023_v29  ;;  %7341 = vst [vmem:[#allocation69_spill] sm:$0xff] %v6026_v34  ;;  %v6029_v38 = vadd.f32 %v745_v35, %v5864_v31  ;;  %v6032_v47 = vadd.f32 %v858_v41, %v5862_v28 }
 0x19f   : > { %v747_v48 = vpop.f32.mrf.mxu0  ;;  %v860_v2 = vpop.f32.mrf.mxu1 }
 0x1a0   : > { %7342 = vst [vmem:[#allocation70_spill] sm:$0xff] %v6029_v38  ;;  %7343 = vst [vmem:[#allocation71_spill] sm:$0xff] %v6032_v47  ;;  %v6035_v61 = vadd.f32 %v747_v48, %v5860_v24  ;;  %v6038_v4 = vadd.f32 %v860_v2, %v5853_v16  ;;  %v676_v48 = vadd.f32 %v5856_v18, %v5864_v31 }
 0x1a1   : > { %v749_v17 = vpop.f32.mrf.mxu0  ;;  %v862_v29 = vpop.f32.mrf.mxu1  ;;  %v787_v18 = vadd.f32 %v5851_v11, %v5853_v16  ;;  %v962_v16 = vld [vmem:[#allocation15] sm:$0xff] }
 0x1a2   : > { %7344 = vst [vmem:[#allocation72_spill] sm:$0xff] %v6035_v61  ;;  %7345 = vst [vmem:[#allocation73_spill] sm:$0xff] %v6038_v4  ;;  %v6043_v34 = vadd.f32 %v749_v17, %v5864_v31  ;;  %v6046_v35 = vadd.f32 %v862_v29, %v5862_v28  ;;  %v789_v29 = vadd.f32 %v5858_v23, %v5862_v28 }
 0x1a3   : > { %v1162_v41 = vpop.f32.mrf.mxu0  ;;  %v1203_v47 = vpop.f32.mrf.mxu1 }
 0x1a4   : > { %7346 = vst [vmem:[#allocation74_spill] sm:$0xff] %v6046_v35  ;;  %v1210_v61 = vadd.f32 %v1162_v41, %v674_v5  ;;  %v1212_v31 = vadd.f32 %v1203_v47, %v787_v18 }
 0x1a5   : > { %v1164_v38 = vpop.f32.mrf.mxu0  ;;  %v1205_v2 = vpop.f32.mrf.mxu1 }
 0x1a6   : > { %v4517_v4 = vmul.f32 -1.442695, %v1210_v61  ;;  %v1211_v30 = vadd.f32 %v1164_v38, %v676_v48  ;;  %v1213_v35 = vadd.f32 %v1205_v2, %v789_v29  ;;  %v1245_v61 = vstv %s1244_s22 }
 0x1a7   : > { %v1166_v3 = vpop.f32.mrf.mxu0  ;;  %v1207_v44 = vpop.f32.mrf.mxu1  ;;  %v1242_v48 = vstv %s1241_s10  ;;  %v1246_v2 = vmul.f32 %v1245_v61, %v962_v16  ;;  %v5451_v29 = vmov 1966171168   ;;  %s1826_s10 = scvt.s32.f32 %s1825_s24 }
 0x1a8   : > { %4857 = vpow2.f32 %v4517_v4  ;;  %v4518_v10 = vmul.f32 -1.442695, %v1211_v30  ;;  %v4519_v5 = vmul.f32 -1.442695, %v1213_v35  ;;  %v1254_v18 = vunpack.c.l.s4 %v5451_v29  ;;  %s2410_s24 = scalar_select %p2409_p13, 1, 0 }
 0x1a9   : > { %v1167_v24 = vpop.f32.mrf.mxu0  ;;  %v1208_v17 = vpop.f32.mrf.mxu1  ;;  %s1829_s22 = ssub.f32 1.0, %s1826_s10 }
 0x1aa   : > { %4859 = vpow2.f32 %v4518_v10 }
 0x1ab   : > { %4861 = vtanh.f32 %v1212_v31 }
 0x1ac   : > { %4863 = vpow2.f32 %v4519_v5  ;;  %v1255_v5 = vunpack.c.0.s8 %v1254_v18 }
 0x1b5   : > { %v4858_v38 = vpop.eup %4857 }
 0x1b6   : > { %v1217_v3 = vadd.f32 1.0, %v4858_v38 }
 0x1b7   : > { %v4860_v4 = vpop.eup %4859 }
 0x1b8   : > { %4865 = vrcp.f32 %v1217_v3  ;;  %v1223_v44 = vadd.f32 1.0, %v4860_v4  ;;  %v4862_v23 = vpop.eup %4861  ;;  %v1249_v3 = vmul.f32 %v1245_v61, %v5803_v53 }
 0x1b9   : > { %v4864_v28 = vpop.eup %4863 }
 0x1ba   : > { %4867 = vrcp.f32 %v1223_v44  ;;  %v1230_v35 = vadd.f32 1.0, %v4864_v28  ;;  %v6062_v44 = vsub.s32 %v1255_v5, %v5841_v60 }
 0x1bc   : > { %4869 = vrcp.f32 %v1230_v35 }
 0x1c5   : > { %v4866_v11 = vpop.eup %4865 }
 0x1c6   : > { %v1234_v30 = vmul.f32 %v4866_v11, %v4862_v23 }
 0x1c7   : > { %v4868_v47 = vpop.eup %4867 }
 0x1c8   : > { %v1233_v41 = vmul.f32 %v4868_v47, %v962_v16 }
 0x1c9   : > { %v4870_v31 = vpop.eup %4869 }
 0x1ca   : > { %v1235_v10 = vadd.f32 %v1234_v30, %v1233_v41 }
 0x1cc   : > { %4871 = vtanh.f32 %v1235_v10  ;;  %v1243_v24 = vmul.f32 %v1242_v48, %v1235_v10 }
 0x1ce   : > { %v6058_v17 = vadd.f32 %v1246_v2, %v1243_v24  ;;  %v7347_v2 = vmov 0  }
 0x1d9   : > { %v4872_v38 = vpop.eup %4871 }
 0x1da   : > { %v1237_v4 = vmul.f32 %v4872_v38, %v4870_v31 }
 0x1dc   : > { %v1248_v23 = vmul.f32 %v1242_v48, %v1237_v4 }
 0x1de   : > { %v6064_v28 = vadd.f32 %v1249_v3, %v1248_v23 }
 0x1e0   : > { %v1252_v11 = vcombine.high %v6064_v28, %v6064_v28  ;;  %v1259_v16 = vrot.slane %v6064_v28, %v6062_v44  ;;  %v1322_v30 = vpack.c.bf16 %v6064_v28, %v6064_v28 }
 0x1e2   : > { %v1266_v53 = vrot.slane %v1252_v11, %v6062_v44  ;;  %v1267_v47 = vcombine.high %v1259_v16, %v1259_v16  ;;  %v1275_v60 = vrot.slane %v1259_v16, %v6062_v44  ;;  %4521 = vst.sshfl [vmem:[%s5667_s13] sm:$0x1 pattern:$0x73625140] %v1259_v16  ;;  %1356 = vmatmul.mubr.bf16.vlgmr.msra.gmra.mxu0 %v1322_v30 }
 0x1e3   : > { %1397 = vmatmul.mubr.bf16.vlgmr.msra.gmra.mxu1 %v1322_v30  ;;  %1519 = vmatpush1.bf16.msra.mxu0 %v5679_v42 }
 0x1e4   : > { %1560 = vmatpush1.bf16.msra.mxu1 %v5687_v46  ;;  %v1268_v61 = vcombine.high %v1266_v53, %v1266_v53  ;;  %v1282_v35 = vrot.slane %v1266_v53, %v6062_v44  ;;  %v1289_v41 = vrot.slane %v1267_v47, %v6062_v44  ;;  %v1297_v48 = vcombine.high %v1275_v60, %v1275_v60 }
 0x1e5   : > { %4522 = vst.sshfl [vmem:[%s5667_s13 + $0x10] sm:$0x1 pattern:$0x73625140] %v1267_v47  ;;  %1520 = vmatprep.subr.bf16.mxu0 %v5684_v45  ;;  %1561 = vmatprep.subr.bf16.mxu1 %v5689_v49 }
 0x1e6   : > { %4523 = vst.sshfl [vmem:[%s5667_s13 + $0x40] sm:$0x1 pattern:$0x73625140] %v1266_v53  ;;  %1550 = vmatprep.mubr.bf16.mxu0 %v7347_v2  ;;  %v1296_v10 = vrot.slane %v1268_v61, %v6062_v44  ;;  %v1298_v24 = vcombine.high %v1282_v35, %v1282_v35  ;;  %v1299_v29 = vcombine.high %v1289_v41, %v1289_v41  ;;  %1311 = vst [vmem:[%s5667_s13 + $0x20] sm:$0x1] %v1297_v48 }
 0x1e7   : > { %4524 = vst.sshfl [vmem:[%s5667_s13 + $0x50] sm:$0x1 pattern:$0x73625140] %v1268_v61  ;;  %1591 = vmatprep.mubr.bf16.mxu1 %v7347_v2  ;;  %1521 = vmatpush1.bf16.msra.mxu0 %v5693_v50 }
 0x1e8   : > { %1562 = vmatpush1.bf16.msra.mxu1 %v5700_v52  ;;  %v1300_v18 = vcombine.high %v1296_v10, %v1296_v10  ;;  %1312 = vst [vmem:[%s5667_s13 + $0x30] sm:$0x1] %v1299_v29  ;;  %1315 = vst [vmem:[%s5667_s13 + $0x60] sm:$0x1] %v1298_v24  ;;  %1522 = vmatprep.subr.bf16.mxu0 %v5697_v51 }
 0x1e9   : > { %1563 = vmatprep.subr.bf16.mxu1 %v5711_v58 }
 0x1ea   : > { %1316 = vst [vmem:[%s5667_s13 + $0x70] sm:$0x1] %v1300_v18 }
 0x1eb   : > { %1523 = vmatpush1.bf16.msra.mxu0 %v5707_v56 }
 0x1ec   : > { %1564 = vmatpush1.bf16.msra.mxu1 %v5714_v59  ;;  %1524 = vmatprep.subr.bf16.mxu0 %v5709_v57 }
 0x1ed   : > { %1565 = vmatprep.subr.bf16.mxu1 %v5716_v62 }
 0x1ef   : > { %1525 = vmatpush1.bf16.msra.mxu0 %v5721_v63 }
 0x1f0   : > { %1566 = vmatpush1.bf16.msra.mxu1 %v5728_v1  ;;  %1526 = vmatprep.subr.bf16.mxu0 %v5725_v0 }
 0x1f1   : > { %1567 = vmatprep.subr.bf16.mxu1 %v5736_v7 }
 0x1f3   : > { %1527 = vmatpush1.bf16.msra.mxu0 %v5734_v6 }
 0x1f4   : > { %1568 = vmatpush1.bf16.msra.mxu1 %v5742_v9  ;;  %1528 = vmatprep.subr.bf16.mxu0 %v5739_v8 }
 0x1f5   : > { %1569 = vmatprep.subr.bf16.mxu1 %v5744_v12 }
 0x1f7   : > { %1529 = vmatpush1.bf16.msra.mxu0 %v5749_v13 }
 0x1f8   : > { %1570 = vmatpush1.bf16.msra.mxu1 %v5756_v15  ;;  %1530 = vmatprep.subr.bf16.mxu0 %v5753_v14 }
 0x1f9   : > { %1571 = vmatprep.subr.bf16.mxu1 %v5764_v20 }
 0x1fb   : > { %1531 = vmatpush1.bf16.msra.mxu0 %v5762_v19 }
 0x1fc   : > { %1572 = vmatpush1.bf16.msra.mxu1 %v5770_v22  ;;  %1532 = vmatprep.subr.bf16.mxu0 %v5768_v21 }
 0x1fd   : > { %1573 = vmatprep.subr.bf16.mxu1 %v5772_v25 }
 0x1ff   : > { %1533 = vmatpush1.bf16.msra.mxu0 %v5778_v26 }
 0x200   : > { %1574 = vmatpush1.bf16.msra.mxu1 %v5782_v27  ;;  %1713 = vmatprep.subr.bf16.mxu0 %v5675_v39 }
 0x201   : > { %1754 = vmatprep.subr.bf16.mxu1 %v5677_v40 }
 0x2a2   : > { %v1357_v31 = vpop.f32.mrf.mxu0 }
 0x2a3   : > { %v1398_v5 = vpop.f32.mrf.mxu1  ;;  %v1405_v38 = vadd.f32 %v1357_v31, %v5867_v32  ;;  %v1437_v31 = vstv %s1436_s18  ;;  %s2021_s18 = scvt.s32.f32 %s2020_s25 }
 0x2a4   : > { %v1359_v3 = vpop.f32.mrf.mxu0  ;;  %v1407_v40 = vadd.f32 %v1398_v5, %v5870_v33  ;;  %v1440_v5 = vstv %s1439_s26  ;;  %s2605_s25 = scalar_select %p2604_p10, 1, 0 }
 0x2a5   : > { %v1400_v4 = vpop.f32.mrf.mxu1  ;;  %v4525_v23 = vmul.f32 -1.442695, %v1405_v38  ;;  %v1406_v11 = vadd.f32 %v1359_v3, %v5873_v36  ;;  %s2024_s26 = ssub.f32 1.0, %s2021_s18 }
 0x2a6   : > { %v1361_v16 = vpop.f32.mrf.mxu0  ;;  %v1408_v39 = vadd.f32 %v1400_v4, %v5876_v37  ;;  %v1441_v4 = vmul.f32 %v1440_v5, %v6058_v17 }
 0x2a7   : > { %v1402_v30 = vpop.f32.mrf.mxu1  ;;  %4873 = vpow2.f32 %v4525_v23  ;;  %v4526_v53 = vmul.f32 -1.442695, %v1406_v11 }
 0x2a8   : > { %v1362_v47 = vpop.f32.mrf.mxu0  ;;  %v4527_v61 = vmul.f32 -1.442695, %v1408_v39 }
 0x2a9   : > { %v1403_v60 = vpop.f32.mrf.mxu1  ;;  %4875 = vpow2.f32 %v4526_v53  ;;  %v1444_v47 = vmul.f32 %v1440_v5, %v6064_v28 }
 0x2aa   : > { %4877 = vtanh.f32 %v1407_v40 }
 0x2ab   : > { %4879 = vpow2.f32 %v4527_v61 }
 0x2b4   : > { %v4874_v35 = vpop.eup %4873 }
 0x2b5   : > { %v1412_v32 = vadd.f32 1.0, %v4874_v35 }
 0x2b6   : > { %v4876_v41 = vpop.eup %4875 }
 0x2b7   : > { %4881 = vrcp.f32 %v1412_v32  ;;  %v1418_v36 = vadd.f32 1.0, %v4876_v41  ;;  %v4878_v48 = vpop.eup %4877 }
 0x2b8   : > { %v4880_v10 = vpop.eup %4879 }
 0x2b9   : > { %4883 = vrcp.f32 %v1418_v36  ;;  %v1425_v33 = vadd.f32 1.0, %v4880_v10 }
 0x2bb   : > { %4885 = vrcp.f32 %v1425_v33 }
 0x2c4   : > { %v4882_v24 = vpop.eup %4881 }
 0x2c5   : > { %v1429_v37 = vmul.f32 %v4882_v24, %v4878_v48 }
 0x2c6   : > { %v4884_v29 = vpop.eup %4883 }
 0x2c7   : > { %v1428_v18 = vmul.f32 %v4884_v29, %v6058_v17 }
 0x2c8   : > { %v4886_v11 = vpop.eup %4885 }
 0x2c9   : > { %v1430_v38 = vadd.f32 %v1429_v37, %v1428_v18 }
 0x2cb   : > { %4887 = vtanh.f32 %v1430_v38  ;;  %v1438_v3 = vmul.f32 %v1437_v31, %v1430_v38 }
 0x2cd   : > { %v6126_v23 = vadd.f32 %v1441_v4, %v1438_v3 }
 0x2d8   : > { %v4888_v16 = vpop.eup %4887 }
 0x2d9   : > { %v1432_v30 = vmul.f32 %v4888_v16, %v4886_v11 }
 0x2db   : > { %v1443_v53 = vmul.f32 %v1437_v31, %v1432_v30 }
 0x2dd   : > { %v6129_v60 = vadd.f32 %v1444_v47, %v1443_v53 }
 0x2df   : > { %v1447_v39 = vcombine.high %v6129_v60, %v6129_v60  ;;  %v1454_v40 = vrot.slane %v6129_v60, %v6062_v44  ;;  %v1517_v17 = vpack.c.bf16 %v6129_v60, %v6129_v60 }
 0x2e1   : > { %v1461_v61 = vrot.slane %v1447_v39, %v6062_v44  ;;  %v1462_v35 = vcombine.high %v1454_v40, %v1454_v40  ;;  %v1470_v32 = vrot.slane %v1454_v40, %v6062_v44  ;;  %4528 = vst.sshfl [vmem:[%s5667_s13 + $0x1] sm:$0x1 pattern:$0x73625140] %v1454_v40  ;;  %1551 = vmatmul.mubr.bf16.vlgmr.msra.gmra.mxu0 %v1517_v17  ;;  %v6212_v40 = vld [vmem:[#allocation11 + $0xe8] ss:$16 sps:$4 sm:$0xff]  }
 0x2e2   : > { %1592 = vmatmul.mubr.bf16.vlgmr.msra.gmra.mxu1 %v1517_v17  ;;  %1714 = vmatpush1.bf16.msra.mxu0 %v5679_v42 }
 0x2e3   : > { %1755 = vmatpush1.bf16.msra.mxu1 %v5687_v46  ;;  %v1463_v28 = vcombine.high %v1461_v61, %v1461_v61  ;;  %v1477_v41 = vrot.slane %v1461_v61, %v6062_v44  ;;  %v1484_v36 = vrot.slane %v1462_v35, %v6062_v44  ;;  %v1492_v48 = vcombine.high %v1470_v32, %v1470_v32 }
 0x2e4   : > { %4529 = vst.sshfl [vmem:[%s5667_s13 + $0x11] sm:$0x1 pattern:$0x73625140] %v1462_v35  ;;  %1715 = vmatprep.subr.bf16.mxu0 %v5684_v45  ;;  %1756 = vmatprep.subr.bf16.mxu1 %v5689_v49  ;;  %v6182_v45 = vld [vmem:[#allocation11 + $0xe4] ss:$16 sps:$4 sm:$0xff]  }
 0x2e5   : > { %4530 = vst.sshfl [vmem:[%s5667_s13 + $0x41] sm:$0x1 pattern:$0x73625140] %v1461_v61  ;;  %1745 = vmatprep.mubr.bf16.mxu0 %v7347_v2  ;;  %v1491_v42 = vrot.slane %v1463_v28, %v6062_v44  ;;  %v1493_v46 = vcombine.high %v1477_v41, %v1477_v41  ;;  %v1494_v10 = vcombine.high %v1484_v36, %v1484_v36  ;;  %1506 = vst [vmem:[%s5667_s13 + $0x21] sm:$0x1] %v1492_v48 }
 0x2e6   : > { %4531 = vst.sshfl [vmem:[%s5667_s13 + $0x51] sm:$0x1 pattern:$0x73625140] %v1463_v28  ;;  %1786 = vmatprep.mubr.bf16.mxu1 %v7347_v2  ;;  %1716 = vmatpush1.bf16.msra.mxu0 %v5693_v50  ;;  %v6185_v49 = vld [vmem:[#allocation11 + $0xec] ss:$16 sps:$4 sm:$0xff]  }
 0x2e7   : > { %1757 = vmatpush1.bf16.msra.mxu1 %v5700_v52  ;;  %v1495_v24 = vcombine.high %v1491_v42, %v1491_v42  ;;  %1507 = vst [vmem:[%s5667_s13 + $0x31] sm:$0x1] %v1494_v10  ;;  %1510 = vst [vmem:[%s5667_s13 + $0x61] sm:$0x1] %v1493_v46  ;;  %1717 = vmatprep.subr.bf16.mxu0 %v5697_v51  ;;  %v6219_v28 = vld [vmem:[#allocation11 + $0xc4] ss:$16 sps:$4 sm:$0xff]  }
 0x2e8   : > { %1758 = vmatprep.subr.bf16.mxu1 %v5711_v58  ;;  %v6222_v41 = vld [vmem:[#allocation11 + $0xcc] ss:$16 sps:$4 sm:$0xff]   ;;  %v6230_v46 = vld [vmem:[#allocation11 + $0xc0] ss:$16 sps:$4 sm:$0xff]   ;;  %v6233_v10 = vld [vmem:[#allocation11 + $0xc8] ss:$16 sps:$4 sm:$0xff]  }
 0x2e9   : > { %1511 = vst [vmem:[%s5667_s13 + $0x71] sm:$0x1] %v1495_v24 }
 0x2ea   : > { %1718 = vmatpush1.bf16.msra.mxu0 %v5707_v56 }
 0x2eb   : > { %1759 = vmatpush1.bf16.msra.mxu1 %v5714_v59  ;;  %1719 = vmatprep.subr.bf16.mxu0 %v5709_v57 }
 0x2ec   : > { %1760 = vmatprep.subr.bf16.mxu1 %v5716_v62 }
 0x2ee   : > { %1720 = vmatpush1.bf16.msra.mxu0 %v5721_v63 }
 0x2ef   : > { %1761 = vmatpush1.bf16.msra.mxu1 %v5728_v1  ;;  %1721 = vmatprep.subr.bf16.mxu0 %v5725_v0 }
 0x2f0   : > { %1762 = vmatprep.subr.bf16.mxu1 %v5736_v7 }
 0x2f2   : > { %1722 = vmatpush1.bf16.msra.mxu0 %v5734_v6 }
 0x2f3   : > { %1763 = vmatpush1.bf16.msra.mxu1 %v5742_v9  ;;  %1723 = vmatprep.subr.bf16.mxu0 %v5739_v8  ;;  %v7348_v8 = vld [vmem:[#allocation23_spill] sm:$0xff] }
 0x2f4   : > { %1764 = vmatprep.subr.bf16.mxu1 %v5744_v12 }
 0x2f6   : > { %1724 = vmatpush1.bf16.msra.mxu0 %v5749_v13 }
 0x2f7   : > { %1765 = vmatpush1.bf16.msra.mxu1 %v5756_v15  ;;  %1725 = vmatprep.subr.bf16.mxu0 %v5753_v14 }
 0x2f8   : > { %1766 = vmatprep.subr.bf16.mxu1 %v5764_v20 }
 0x2fa   : > { %1726 = vmatpush1.bf16.msra.mxu0 %v5762_v19 }
 0x2fb   : > { %1767 = vmatpush1.bf16.msra.mxu1 %v5770_v22  ;;  %1727 = vmatprep.subr.bf16.mxu0 %v5768_v21 }
 0x2fc   : > { %1768 = vmatprep.subr.bf16.mxu1 %v5772_v25 }
 0x2fe   : > { %1728 = vmatpush1.bf16.msra.mxu0 %v5778_v26 }
 0x2ff   : > { %1769 = vmatpush1.bf16.msra.mxu1 %v5782_v27  ;;  %1908 = vmatprep.subr.bf16.mxu0 %v6182_v45 }
 0x300   : > { %1949 = vmatprep.subr.bf16.mxu1 %v6185_v49 }
 0x3a1   : > { %v1552_v50 = vpop.f32.mrf.mxu0 }
 0x3a2   : > { %v1593_v51 = vpop.f32.mrf.mxu1  ;;  %v1600_v52 = vadd.f32 %v1552_v50, %v5879_v43  ;;  %v6238_v50 = vld [vmem:[#allocation11 + $0xa4] ss:$16 sps:$4 sm:$0xff]  }
 0x3a3   : > { %v1554_v56 = vpop.f32.mrf.mxu0  ;;  %v1602_v9 = vadd.f32 %v1593_v51, %v7348_v8  ;;  %v6241_v51 = vld [vmem:[#allocation11 + $0xac] ss:$16 sps:$4 sm:$0xff]  }
 0x3a4   : > { %v1595_v57 = vpop.f32.mrf.mxu1  ;;  %v4532_v58 = vmul.f32 -1.442695, %v1600_v52  ;;  %v1601_v59 = vadd.f32 %v1554_v56, %v5885_v54  ;;  %v1632_v54 = vstv %s1631_s17  ;;  %v6245_v52 = vld [vmem:[#allocation11 + $0xa0] ss:$16 sps:$4 sm:$0xff]   ;;  %v6248_v56 = vld [vmem:[#allocation11 + $0xa8] ss:$16 sps:$4 sm:$0xff]   ;;  %s2216_s17 = scvt.s32.f32 %s2215_s19 }
 0x3a5   : > { %v1556_v62 = vpop.f32.mrf.mxu0  ;;  %v1603_v7 = vadd.f32 %v1595_v57, %v5888_v55  ;;  %v1635_v55 = vstv %s1634_s11  ;;  %v6251_v57 = vld [vmem:[#allocation11 + $0x84] ss:$16 sps:$4 sm:$0xff]   ;;  %v6278_v8 = vld [vmem:[#allocation11 + $0x4c] ss:$16 sps:$4 sm:$0xff]   ;;  %s2800_s19 = scalar_select %p2799_p4, 1, 0 }
 0x3a6   : > { %v1597_v63 = vpop.f32.mrf.mxu1  ;;  %4889 = vpow2.f32 %v4532_v58  ;;  %v4533_v0 = vmul.f32 -1.442695, %v1601_v59  ;;  %v1636_v33 = vmul.f32 %v1635_v55, %v6126_v23  ;;  %v1639_v4 = vmul.f32 %v1635_v55, %v6129_v60  ;;  %v6209_v60 = vld [vmem:[#allocation11 + $0xe0] ss:$16 sps:$4 sm:$0xff]   ;;  %v6254_v58 = vld [vmem:[#allocation11 + $0x8c] ss:$16 sps:$4 sm:$0xff]  }
 0x3a7   : > { %v1557_v1 = vpop.f32.mrf.mxu0  ;;  %v4534_v12 = vmul.f32 -1.442695, %v1603_v7  ;;  %v6257_v59 = vld [vmem:[#allocation11 + $0x80] ss:$16 sps:$4 sm:$0xff]   ;;  %v6260_v62 = vld [vmem:[#allocation11 + $0x88] ss:$16 sps:$4 sm:$0xff]  }
 0x3a8   : > { %v1598_v6 = vpop.f32.mrf.mxu1  ;;  %4891 = vpow2.f32 %v4533_v0  ;;  %v6263_v63 = vld [vmem:[#allocation11 + $0x64] ss:$16 sps:$4 sm:$0xff]   ;;  %v6266_v0 = vld [vmem:[#allocation11 + $0x6c] ss:$16 sps:$4 sm:$0xff]   ;;  %v6269_v1 = vld [vmem:[#allocation11 + $0x60] ss:$16 sps:$4 sm:$0xff]  }
 0x3a9   : > { %4893 = vtanh.f32 %v1602_v9  ;;  %v6272_v6 = vld [vmem:[#allocation11 + $0x68] ss:$16 sps:$4 sm:$0xff]   ;;  %v6275_v7 = vld [vmem:[#allocation11 + $0x44] ss:$16 sps:$4 sm:$0xff]   ;;  %v6281_v9 = vld [vmem:[#allocation11 + $0x40] ss:$16 sps:$4 sm:$0xff]  }
 0x3aa   : > { %4895 = vpow2.f32 %v4534_v12  ;;  %v6284_v12 = vld [vmem:[#allocation11 + $0x48] ss:$16 sps:$4 sm:$0xff]   ;;  %s2219_s11 = ssub.f32 1.0, %s2216_s17 }
 0x3b3   : > { %v4890_v13 = vpop.eup %4889 }
 0x3b4   : > { %v1607_v14 = vadd.f32 1.0, %v4890_v13  ;;  %v6287_v13 = vld [vmem:[#allocation11 + $0x24] ss:$16 sps:$4 sm:$0xff]  }
 0x3b5   : > { %v4892_v15 = vpop.eup %4891 }
 0x3b6   : > { %4897 = vrcp.f32 %v1607_v14  ;;  %v1613_v19 = vadd.f32 1.0, %v4892_v15  ;;  %v4894_v20 = vpop.eup %4893  ;;  %v6290_v14 = vld [vmem:[#allocation11 + $0x2c] ss:$16 sps:$4 sm:$0xff]   ;;  %v6293_v15 = vld [vmem:[#allocation11 + $0x20] ss:$16 sps:$4 sm:$0xff]  }
 0x3b7   : > { %v4896_v21 = vpop.eup %4895 }
 0x3b8   : > { %4899 = vrcp.f32 %v1613_v19  ;;  %v1620_v27 = vadd.f32 1.0, %v4896_v21  ;;  %v6296_v19 = vld [vmem:[#allocation11 + $0x28] ss:$16 sps:$4 sm:$0xff]   ;;  %v6302_v21 = vld [vmem:[#allocation11 + $0xc] ss:$16 sps:$4 sm:$0xff]  }
 0x3ba   : > { %4901 = vrcp.f32 %v1620_v27 }
 0x3c3   : > { %v4898_v22 = vpop.eup %4897 }
 0x3c4   : > { %v1624_v25 = vmul.f32 %v4898_v22, %v4894_v20  ;;  %v6299_v20 = vld [vmem:[#allocation11 + $0x4] ss:$16 sps:$4 sm:$0xff]   ;;  %v6305_v22 = vld [vmem:[#allocation11] ss:$16 sps:$4 sm:$0xff]  }
 0x3c5   : > { %v4900_v26 = vpop.eup %4899 }
 0x3c6   : > { %v1623_v43 = vmul.f32 %v4900_v26, %v6126_v23 }
 0x3c7   : > { %v4902_v31 = vpop.eup %4901 }
 0x3c8   : > { %v1625_v37 = vadd.f32 %v1624_v25, %v1623_v43  ;;  %v6308_v25 = vld [vmem:[#allocation11 + $0x8] ss:$16 sps:$4 sm:$0xff]  }
 0x3c9   : > { %v7349_v43 = vld [vmem:[#allocation24_spill] sm:$0xff] }
 0x3ca   : > { %4903 = vtanh.f32 %v1625_v37  ;;  %v1633_v29 = vmul.f32 %v1632_v54, %v1625_v37 }
 0x3cc   : > { %v6195_v18 = vadd.f32 %v1636_v33, %v1633_v29  ;;  %v7350_v33 = vld [vmem:[#allocation26_spill] sm:$0xff] }
 0x3d7   : > { %v4904_v5 = vpop.eup %4903 }
 0x3d8   : > { %v1627_v38 = vmul.f32 %v4904_v5, %v4902_v31 }
 0x3da   : > { %v1638_v3 = vmul.f32 %v1632_v54, %v1627_v38 }
 0x3dc   : > { %v6198_v11 = vadd.f32 %v1639_v4, %v1638_v3 }
 0x3de   : > { %v1642_v16 = vcombine.high %v6198_v11, %v6198_v11  ;;  %v1649_v30 = vrot.slane %v6198_v11, %v6062_v44  ;;  %v1712_v23 = vpack.c.bf16 %v6198_v11, %v6198_v11 }
 0x3e0   : > { %v1656_v53 = vrot.slane %v1642_v16, %v6062_v44  ;;  %v1657_v47 = vcombine.high %v1649_v30, %v1649_v30  ;;  %v1665_v39 = vrot.slane %v1649_v30, %v6062_v44  ;;  %4535 = vst.sshfl [vmem:[%s5667_s13 + $0x2] sm:$0x1 pattern:$0x73625140] %v1649_v30  ;;  %1746 = vmatmul.mubr.bf16.vlgmr.msra.gmra.mxu0 %v1712_v23  ;;  %v7351_v30 = vld [vmem:[#allocation27_spill] sm:$0xff] }
 0x3e1   : > { %1787 = vmatmul.mubr.bf16.vlgmr.msra.gmra.mxu1 %v1712_v23  ;;  %1909 = vmatpush1.bf16.msra.mxu0 %v6209_v60 }
 0x3e2   : > { %1950 = vmatpush1.bf16.msra.mxu1 %v6212_v40  ;;  %v1658_v17 = vcombine.high %v1656_v53, %v1656_v53  ;;  %v1672_v61 = vrot.slane %v1656_v53, %v6062_v44  ;;  %v1679_v35 = vrot.slane %v1657_v47, %v6062_v44  ;;  %v1687_v32 = vcombine.high %v1665_v39, %v1665_v39 }
 0x3e3   : > { %4536 = vst.sshfl [vmem:[%s5667_s13 + $0x12] sm:$0x1 pattern:$0x73625140] %v1657_v47  ;;  %1910 = vmatprep.subr.bf16.mxu0 %v6219_v28  ;;  %1951 = vmatprep.subr.bf16.mxu1 %v6222_v41 }
 0x3e4   : > { %4537 = vst.sshfl [vmem:[%s5667_s13 + $0x42] sm:$0x1 pattern:$0x73625140] %v1656_v53  ;;  %1940 = vmatprep.mubr.bf16.mxu0 %v7347_v2  ;;  %v1686_v36 = vrot.slane %v1658_v17, %v6062_v44  ;;  %v1688_v48 = vcombine.high %v1672_v61, %v1672_v61  ;;  %v1689_v42 = vcombine.high %v1679_v35, %v1679_v35  ;;  %1701 = vst [vmem:[%s5667_s13 + $0x22] sm:$0x1] %v1687_v32 }
 0x3e5   : > { %4538 = vst.sshfl [vmem:[%s5667_s13 + $0x52] sm:$0x1 pattern:$0x73625140] %v1658_v17  ;;  %1981 = vmatprep.mubr.bf16.mxu1 %v7347_v2  ;;  %1911 = vmatpush1.bf16.msra.mxu0 %v6230_v46  ;;  %v7352_v53 = vld [vmem:[#allocation25_spill] sm:$0xff] }
 0x3e6   : > { %1952 = vmatpush1.bf16.msra.mxu1 %v6233_v10  ;;  %v1690_v24 = vcombine.high %v1686_v36, %v1686_v36  ;;  %1702 = vst [vmem:[%s5667_s13 + $0x32] sm:$0x1] %v1689_v42  ;;  %1705 = vst [vmem:[%s5667_s13 + $0x62] sm:$0x1] %v1688_v48  ;;  %1912 = vmatprep.subr.bf16.mxu0 %v6238_v50 }
 0x3e7   : > { %1953 = vmatprep.subr.bf16.mxu1 %v6241_v51 }
 0x3e8   : > { %1706 = vst [vmem:[%s5667_s13 + $0x72] sm:$0x1] %v1690_v24 }
 0x3e9   : > { %1913 = vmatpush1.bf16.msra.mxu0 %v6245_v52 }
 0x3ea   : > { %1954 = vmatpush1.bf16.msra.mxu1 %v6248_v56  ;;  %1914 = vmatprep.subr.bf16.mxu0 %v6251_v57 }
 0x3eb   : > { %1955 = vmatprep.subr.bf16.mxu1 %v6254_v58 }
 0x3ed   : > { %1915 = vmatpush1.bf16.msra.mxu0 %v6257_v59 }
 0x3ee   : > { %1956 = vmatpush1.bf16.msra.mxu1 %v6260_v62  ;;  %1916 = vmatprep.subr.bf16.mxu0 %v6263_v63 }
 0x3ef   : > { %1957 = vmatprep.subr.bf16.mxu1 %v6266_v0 }
 0x3f1   : > { %1917 = vmatpush1.bf16.msra.mxu0 %v6269_v1 }
 0x3f2   : > { %1958 = vmatpush1.bf16.msra.mxu1 %v6272_v6  ;;  %1918 = vmatprep.subr.bf16.mxu0 %v6275_v7 }
 0x3f3   : > { %1959 = vmatprep.subr.bf16.mxu1 %v6278_v8 }
 0x3f5   : > { %1919 = vmatpush1.bf16.msra.mxu0 %v6281_v9 }
 0x3f6   : > { %1960 = vmatpush1.bf16.msra.mxu1 %v6284_v12  ;;  %1920 = vmatprep.subr.bf16.mxu0 %v6287_v13 }
 0x3f7   : > { %1961 = vmatprep.subr.bf16.mxu1 %v6290_v14 }
 0x3f9   : > { %1921 = vmatpush1.bf16.msra.mxu0 %v6293_v15 }
 0x3fa   : > { %1962 = vmatpush1.bf16.msra.mxu1 %v6296_v19  ;;  %1922 = vmatprep.subr.bf16.mxu0 %v6299_v20 }
 0x3fb   : > { %1963 = vmatprep.subr.bf16.mxu1 %v6302_v21 }
 0x3fd   : > { %1923 = vmatpush1.bf16.msra.mxu0 %v6305_v22 }
 0x3fe   : > { %1964 = vmatpush1.bf16.msra.mxu1 %v6308_v25  ;;  %2103 = vmatprep.subr.bf16.mxu0 %v6182_v45 }
 0x3ff   : > { %2144 = vmatprep.subr.bf16.mxu1 %v6185_v49 }
 0x4a0   : > { %v1747_v26 = vpop.f32.mrf.mxu0 }
 0x4a1   : > { %v1788_v27 = vpop.f32.mrf.mxu1  ;;  %v1795_v54 = vadd.f32 %v1747_v26, %v7349_v43 }
 0x4a2   : > { %v1749_v55 = vpop.f32.mrf.mxu0  ;;  %v1797_v47 = vadd.f32 %v1788_v27, %v7352_v53 }
 0x4a3   : > { %v1790_v37 = vpop.f32.mrf.mxu1  ;;  %v4539_v29 = vmul.f32 -1.442695, %v1795_v54  ;;  %v1796_v31 = vadd.f32 %v1749_v55, %v7350_v33  ;;  %v1827_v54 = vstv %s1826_s10  ;;  %v1830_v55 = vstv %s1829_s22  ;;  %s2411_s10 = scvt.s32.f32 %s2410_s24 }
 0x4a4   : > { %v1751_v5 = vpop.f32.mrf.mxu0  ;;  %v1798_v23 = vadd.f32 %v1790_v37, %v7351_v30  ;;  %v1831_v33 = vmul.f32 %v1830_v55, %v6195_v18  ;;  %s2995_s24 = scalar_select %p2994_p11, 1, 0 }
 0x4a5   : > { %v1792_v38 = vpop.f32.mrf.mxu1  ;;  %4905 = vpow2.f32 %v4539_v29  ;;  %v4540_v3 = vmul.f32 -1.442695, %v1796_v31  ;;  %s2414_s22 = ssub.f32 1.0, %s2411_s10 }
 0x4a6   : > { %v1752_v4 = vpop.f32.mrf.mxu0  ;;  %v4541_v39 = vmul.f32 -1.442695, %v1798_v23 }
 0x4a7   : > { %v1793_v16 = vpop.f32.mrf.mxu1  ;;  %4907 = vpow2.f32 %v4540_v3 }
 0x4a8   : > { %4909 = vtanh.f32 %v1797_v47  ;;  %v1834_v16 = vmul.f32 %v1830_v55, %v6198_v11 }
 0x4a9   : > { %4911 = vpow2.f32 %v4541_v39 }
 0x4b2   : > { %v4906_v17 = vpop.eup %4905 }
 0x4b3   : > { %v1802_v61 = vadd.f32 1.0, %v4906_v17 }
 0x4b4   : > { %v4908_v35 = vpop.eup %4907 }
 0x4b5   : > { %4913 = vrcp.f32 %v1802_v61  ;;  %v1808_v32 = vadd.f32 1.0, %v4908_v35  ;;  %v4910_v36 = vpop.eup %4909 }
 0x4b6   : > { %v4912_v48 = vpop.eup %4911 }
 0x4b7   : > { %4915 = vrcp.f32 %v1808_v32  ;;  %v1815_v27 = vadd.f32 1.0, %v4912_v48 }
 0x4b9   : > { %4917 = vrcp.f32 %v1815_v27 }
 0x4c2   : > { %v4914_v42 = vpop.eup %4913 }
 0x4c3   : > { %v1819_v24 = vmul.f32 %v4914_v42, %v4910_v36 }
 0x4c4   : > { %v4916_v26 = vpop.eup %4915 }
 0x4c5   : > { %v1818_v43 = vmul.f32 %v4916_v26, %v6195_v18 }
 0x4c6   : > { %v4918_v5 = vpop.eup %4917 }
 0x4c7   : > { %v1820_v37 = vadd.f32 %v1819_v24, %v1818_v43  ;;  %v7353_v43 = vld [vmem:[#allocation28_spill] sm:$0xff] }
 0x4c9   : > { %4919 = vtanh.f32 %v1820_v37  ;;  %v1828_v29 = vmul.f32 %v1827_v54, %v1820_v37 }
 0x4cb   : > { %v6320_v31 = vadd.f32 %v1831_v33, %v1828_v29  ;;  %v7354_v33 = vld [vmem:[#allocation30_spill] sm:$0xff] }
 0x4d6   : > { %v4920_v38 = vpop.eup %4919 }
 0x4d7   : > { %v1822_v3 = vmul.f32 %v4920_v38, %v4918_v5 }
 0x4d9   : > { %v1833_v4 = vmul.f32 %v1827_v54, %v1822_v3 }
 0x4db   : > { %v6323_v30 = vadd.f32 %v1834_v16, %v1833_v4 }
 0x4dd   : > { %v1837_v23 = vcombine.high %v6323_v30, %v6323_v30  ;;  %v1844_v53 = vrot.slane %v6323_v30, %v6062_v44  ;;  %v1907_v18 = vpack.c.bf16 %v6323_v30, %v6323_v30 }
 0x4df   : > { %v1851_v47 = vrot.slane %v1837_v23, %v6062_v44  ;;  %v1852_v39 = vcombine.high %v1844_v53, %v1844_v53  ;;  %v1860_v17 = vrot.slane %v1844_v53, %v6062_v44  ;;  %4542 = vst.sshfl [vmem:[%s5667_s13 + $0x3] sm:$0x1 pattern:$0x73625140] %v1844_v53  ;;  %1941 = vmatmul.mubr.bf16.vlgmr.msra.gmra.mxu0 %v1907_v18  ;;  %v7355_v53 = vld [vmem:[#allocation31_spill] sm:$0xff] }
 0x4e0   : > { %1982 = vmatmul.mubr.bf16.vlgmr.msra.gmra.mxu1 %v1907_v18  ;;  %2104 = vmatpush1.bf16.msra.mxu0 %v6209_v60 }
 0x4e1   : > { %2145 = vmatpush1.bf16.msra.mxu1 %v6212_v40  ;;  %v1853_v11 = vcombine.high %v1851_v47, %v1851_v47  ;;  %v1867_v61 = vrot.slane %v1851_v47, %v6062_v44  ;;  %v1874_v35 = vrot.slane %v1852_v39, %v6062_v44  ;;  %v1882_v32 = vcombine.high %v1860_v17, %v1860_v17 }
 0x4e2   : > { %4543 = vst.sshfl [vmem:[%s5667_s13 + $0x13] sm:$0x1 pattern:$0x73625140] %v1852_v39  ;;  %2105 = vmatprep.subr.bf16.mxu0 %v6219_v28  ;;  %2146 = vmatprep.subr.bf16.mxu1 %v6222_v41 }
 0x4e3   : > { %4544 = vst.sshfl [vmem:[%s5667_s13 + $0x43] sm:$0x1 pattern:$0x73625140] %v1851_v47  ;;  %2135 = vmatprep.mubr.bf16.mxu0 %v7347_v2  ;;  %v1881_v36 = vrot.slane %v1853_v11, %v6062_v44  ;;  %v1883_v48 = vcombine.high %v1867_v61, %v1867_v61  ;;  %v1884_v42 = vcombine.high %v1874_v35, %v1874_v35  ;;  %1896 = vst [vmem:[%s5667_s13 + $0x23] sm:$0x1] %v1882_v32 }
 0x4e4   : > { %4545 = vst.sshfl [vmem:[%s5667_s13 + $0x53] sm:$0x1 pattern:$0x73625140] %v1853_v11  ;;  %2176 = vmatprep.mubr.bf16.mxu1 %v7347_v2  ;;  %2106 = vmatpush1.bf16.msra.mxu0 %v6230_v46  ;;  %v7356_v47 = vld [vmem:[#allocation29_spill] sm:$0xff] }
 0x4e5   : > { %2147 = vmatpush1.bf16.msra.mxu1 %v6233_v10  ;;  %v1885_v24 = vcombine.high %v1881_v36, %v1881_v36  ;;  %1897 = vst [vmem:[%s5667_s13 + $0x33] sm:$0x1] %v1884_v42  ;;  %1900 = vst [vmem:[%s5667_s13 + $0x63] sm:$0x1] %v1883_v48  ;;  %2107 = vmatprep.subr.bf16.mxu0 %v6238_v50 }
 0x4e6   : > { %2148 = vmatprep.subr.bf16.mxu1 %v6241_v51 }
 0x4e7   : > { %1901 = vst [vmem:[%s5667_s13 + $0x73] sm:$0x1] %v1885_v24 }
 0x4e8   : > { %2108 = vmatpush1.bf16.msra.mxu0 %v6245_v52 }
 0x4e9   : > { %2149 = vmatpush1.bf16.msra.mxu1 %v6248_v56  ;;  %2109 = vmatprep.subr.bf16.mxu0 %v6251_v57 }
 0x4ea   : > { %2150 = vmatprep.subr.bf16.mxu1 %v6254_v58 }
 0x4ec   : > { %2110 = vmatpush1.bf16.msra.mxu0 %v6257_v59 }
 0x4ed   : > { %2151 = vmatpush1.bf16.msra.mxu1 %v6260_v62  ;;  %2111 = vmatprep.subr.bf16.mxu0 %v6263_v63 }
 0x4ee   : > { %2152 = vmatprep.subr.bf16.mxu1 %v6266_v0 }
 0x4f0   : > { %2112 = vmatpush1.bf16.msra.mxu0 %v6269_v1 }
 0x4f1   : > { %2153 = vmatpush1.bf16.msra.mxu1 %v6272_v6  ;;  %2113 = vmatprep.subr.bf16.mxu0 %v6275_v7 }
 0x4f2   : > { %2154 = vmatprep.subr.bf16.mxu1 %v6278_v8 }
 0x4f4   : > { %2114 = vmatpush1.bf16.msra.mxu0 %v6281_v9 }
 0x4f5   : > { %2155 = vmatpush1.bf16.msra.mxu1 %v6284_v12  ;;  %2115 = vmatprep.subr.bf16.mxu0 %v6287_v13 }
 0x4f6   : > { %2156 = vmatprep.subr.bf16.mxu1 %v6290_v14 }
 0x4f8   : > { %2116 = vmatpush1.bf16.msra.mxu0 %v6293_v15 }
 0x4f9   : > { %2157 = vmatpush1.bf16.msra.mxu1 %v6296_v19  ;;  %2117 = vmatprep.subr.bf16.mxu0 %v6299_v20 }
 0x4fa   : > { %2158 = vmatprep.subr.bf16.mxu1 %v6302_v21 }
 0x4fc   : > { %2118 = vmatpush1.bf16.msra.mxu0 %v6305_v22 }
 0x4fd   : > { %2159 = vmatpush1.bf16.msra.mxu1 %v6308_v25  ;;  %2298 = vmatprep.subr.bf16.mxu0 %v6182_v45 }
 0x4fe   : > { %2339 = vmatprep.subr.bf16.mxu1 %v6185_v49 }
 0x59f   : > { %v1942_v26 = vpop.f32.mrf.mxu0 }
 0x5a0   : > { %v1983_v27 = vpop.f32.mrf.mxu1  ;;  %v1990_v54 = vadd.f32 %v1942_v26, %v7353_v43 }
 0x5a1   : > { %v1944_v55 = vpop.f32.mrf.mxu0  ;;  %v1992_v39 = vadd.f32 %v1983_v27, %v7356_v47 }
 0x5a2   : > { %v1985_v37 = vpop.f32.mrf.mxu1  ;;  %v4546_v29 = vmul.f32 -1.442695, %v1990_v54  ;;  %v1991_v5 = vadd.f32 %v1944_v55, %v7354_v33  ;;  %v2022_v54 = vstv %s2021_s18  ;;  %v2025_v55 = vstv %s2024_s26  ;;  %s2606_s18 = scvt.s32.f32 %s2605_s25 }
 0x5a3   : > { %v1946_v38 = vpop.f32.mrf.mxu0  ;;  %v1993_v18 = vadd.f32 %v1985_v37, %v7355_v53  ;;  %v2026_v33 = vmul.f32 %v2025_v55, %v6320_v31  ;;  %s3190_s25 = scalar_select %p3189_p0, 1, 0 }
 0x5a4   : > { %v1987_v3 = vpop.f32.mrf.mxu1  ;;  %4921 = vpow2.f32 %v4546_v29  ;;  %v4547_v4 = vmul.f32 -1.442695, %v1991_v5  ;;  %s2609_s26 = ssub.f32 1.0, %s2606_s18 }
 0x5a5   : > { %v1947_v16 = vpop.f32.mrf.mxu0  ;;  %v4548_v17 = vmul.f32 -1.442695, %v1993_v18 }
 0x5a6   : > { %v1988_v23 = vpop.f32.mrf.mxu1  ;;  %4923 = vpow2.f32 %v4547_v4 }
 0x5a7   : > { %4925 = vtanh.f32 %v1992_v39  ;;  %v2029_v23 = vmul.f32 %v2025_v55, %v6323_v30 }
 0x5a8   : > { %4927 = vpow2.f32 %v4548_v17 }
 0x5b1   : > { %v4922_v11 = vpop.eup %4921 }
 0x5b2   : > { %v1997_v61 = vadd.f32 1.0, %v4922_v11 }
 0x5b3   : > { %v4924_v35 = vpop.eup %4923 }
 0x5b4   : > { %4929 = vrcp.f32 %v1997_v61  ;;  %v2003_v32 = vadd.f32 1.0, %v4924_v35  ;;  %v4926_v36 = vpop.eup %4925 }
 0x5b5   : > { %v4928_v48 = vpop.eup %4927 }
 0x5b6   : > { %4931 = vrcp.f32 %v2003_v32  ;;  %v2010_v27 = vadd.f32 1.0, %v4928_v48 }
 0x5b8   : > { %4933 = vrcp.f32 %v2010_v27 }
 0x5c1   : > { %v4930_v42 = vpop.eup %4929 }
 0x5c2   : > { %v2014_v24 = vmul.f32 %v4930_v42, %v4926_v36 }
 0x5c3   : > { %v4932_v26 = vpop.eup %4931 }
 0x5c4   : > { %v2013_v43 = vmul.f32 %v4932_v26, %v6320_v31 }
 0x5c5   : > { %v4934_v38 = vpop.eup %4933 }
 0x5c6   : > { %v2015_v37 = vadd.f32 %v2014_v24, %v2013_v43  ;;  %v7357_v43 = vld [vmem:[#allocation32_spill] sm:$0xff] }
 0x5c8   : > { %4935 = vtanh.f32 %v2015_v37  ;;  %v2023_v29 = vmul.f32 %v2022_v54, %v2015_v37 }
 0x5ca   : > { %v6385_v5 = vadd.f32 %v2026_v33, %v2023_v29  ;;  %v7358_v33 = vld [vmem:[#allocation34_spill] sm:$0xff] }
 0x5d5   : > { %v4936_v3 = vpop.eup %4935 }
 0x5d6   : > { %v2017_v4 = vmul.f32 %v4936_v3, %v4934_v38 }
 0x5d8   : > { %v2028_v16 = vmul.f32 %v2022_v54, %v2017_v4 }
 0x5da   : > { %v6388_v53 = vadd.f32 %v2029_v23, %v2028_v16 }
 0x5dc   : > { %v2032_v18 = vcombine.high %v6388_v53, %v6388_v53  ;;  %v2039_v47 = vrot.slane %v6388_v53, %v6062_v44  ;;  %v2102_v31 = vpack.c.bf16 %v6388_v53, %v6388_v53 }
 0x5de   : > { %v2046_v39 = vrot.slane %v2032_v18, %v6062_v44  ;;  %v2047_v17 = vcombine.high %v2039_v47, %v2039_v47  ;;  %v2055_v11 = vrot.slane %v2039_v47, %v6062_v44  ;;  %4549 = vst.sshfl [vmem:[%s5667_s13 + $0x4] sm:$0x1 pattern:$0x73625140] %v2039_v47  ;;  %2136 = vmatmul.mubr.bf16.vlgmr.msra.gmra.mxu0 %v2102_v31  ;;  %v7359_v47 = vld [vmem:[#allocation35_spill] sm:$0xff] }
 0x5df   : > { %2177 = vmatmul.mubr.bf16.vlgmr.msra.gmra.mxu1 %v2102_v31  ;;  %2299 = vmatpush1.bf16.msra.mxu0 %v6209_v60 }
 0x5e0   : > { %2340 = vmatpush1.bf16.msra.mxu1 %v6212_v40  ;;  %v2048_v30 = vcombine.high %v2046_v39, %v2046_v39  ;;  %v2062_v61 = vrot.slane %v2046_v39, %v6062_v44  ;;  %v2069_v35 = vrot.slane %v2047_v17, %v6062_v44  ;;  %v2077_v32 = vcombine.high %v2055_v11, %v2055_v11 }
 0x5e1   : > { %4550 = vst.sshfl [vmem:[%s5667_s13 + $0x14] sm:$0x1 pattern:$0x73625140] %v2047_v17  ;;  %2300 = vmatprep.subr.bf16.mxu0 %v6219_v28  ;;  %2341 = vmatprep.subr.bf16.mxu1 %v6222_v41 }
 0x5e2   : > { %4551 = vst.sshfl [vmem:[%s5667_s13 + $0x44] sm:$0x1 pattern:$0x73625140] %v2046_v39  ;;  %2330 = vmatprep.mubr.bf16.mxu0 %v7347_v2  ;;  %v2076_v36 = vrot.slane %v2048_v30, %v6062_v44  ;;  %v2078_v48 = vcombine.high %v2062_v61, %v2062_v61  ;;  %v2079_v42 = vcombine.high %v2069_v35, %v2069_v35  ;;  %2091 = vst [vmem:[%s5667_s13 + $0x24] sm:$0x1] %v2077_v32 }
 0x5e3   : > { %4552 = vst.sshfl [vmem:[%s5667_s13 + $0x54] sm:$0x1 pattern:$0x73625140] %v2048_v30  ;;  %2371 = vmatprep.mubr.bf16.mxu1 %v7347_v2  ;;  %2301 = vmatpush1.bf16.msra.mxu0 %v6230_v46  ;;  %v7360_v39 = vld [vmem:[#allocation33_spill] sm:$0xff] }
 0x5e4   : > { %2342 = vmatpush1.bf16.msra.mxu1 %v6233_v10  ;;  %v2080_v24 = vcombine.high %v2076_v36, %v2076_v36  ;;  %2092 = vst [vmem:[%s5667_s13 + $0x34] sm:$0x1] %v2079_v42  ;;  %2095 = vst [vmem:[%s5667_s13 + $0x64] sm:$0x1] %v2078_v48  ;;  %2302 = vmatprep.subr.bf16.mxu0 %v6238_v50 }
 0x5e5   : > { %2343 = vmatprep.subr.bf16.mxu1 %v6241_v51 }
 0x5e6   : > { %2096 = vst [vmem:[%s5667_s13 + $0x74] sm:$0x1] %v2080_v24 }
 0x5e7   : > { %2303 = vmatpush1.bf16.msra.mxu0 %v6245_v52 }
 0x5e8   : > { %2344 = vmatpush1.bf16.msra.mxu1 %v6248_v56  ;;  %2304 = vmatprep.subr.bf16.mxu0 %v6251_v57 }
 0x5e9   : > { %2345 = vmatprep.subr.bf16.mxu1 %v6254_v58 }
 0x5eb   : > { %2305 = vmatpush1.bf16.msra.mxu0 %v6257_v59 }
 0x5ec   : > { %2346 = vmatpush1.bf16.msra.mxu1 %v6260_v62  ;;  %2306 = vmatprep.subr.bf16.mxu0 %v6263_v63 }
 0x5ed   : > { %2347 = vmatprep.subr.bf16.mxu1 %v6266_v0 }
 0x5ef   : > { %2307 = vmatpush1.bf16.msra.mxu0 %v6269_v1 }
 0x5f0   : > { %2348 = vmatpush1.bf16.msra.mxu1 %v6272_v6  ;;  %2308 = vmatprep.subr.bf16.mxu0 %v6275_v7 }
 0x5f1   : > { %2349 = vmatprep.subr.bf16.mxu1 %v6278_v8 }
 0x5f3   : > { %2309 = vmatpush1.bf16.msra.mxu0 %v6281_v9 }
 0x5f4   : > { %2350 = vmatpush1.bf16.msra.mxu1 %v6284_v12  ;;  %2310 = vmatprep.subr.bf16.mxu0 %v6287_v13 }
 0x5f5   : > { %2351 = vmatprep.subr.bf16.mxu1 %v6290_v14 }
 0x5f7   : > { %2311 = vmatpush1.bf16.msra.mxu0 %v6293_v15 }
 0x5f8   : > { %2352 = vmatpush1.bf16.msra.mxu1 %v6296_v19  ;;  %2312 = vmatprep.subr.bf16.mxu0 %v6299_v20 }
 0x5f9   : > { %2353 = vmatprep.subr.bf16.mxu1 %v6302_v21 }
 0x5fb   : > { %2313 = vmatpush1.bf16.msra.mxu0 %v6305_v22 }
 0x5fc   : > { %2354 = vmatpush1.bf16.msra.mxu1 %v6308_v25  ;;  %2493 = vmatprep.subr.bf16.mxu0 %v6182_v45 }
 0x5fd   : > { %2534 = vmatprep.subr.bf16.mxu1 %v6185_v49 }
 0x69e   : > { %v2137_v26 = vpop.f32.mrf.mxu0 }
 0x69f   : > { %v2178_v27 = vpop.f32.mrf.mxu1  ;;  %v2185_v54 = vadd.f32 %v2137_v26, %v7357_v43 }
 0x6a0   : > { %v2139_v55 = vpop.f32.mrf.mxu0  ;;  %v2187_v17 = vadd.f32 %v2178_v27, %v7360_v39 }
 0x6a1   : > { %v2180_v37 = vpop.f32.mrf.mxu1  ;;  %v4553_v29 = vmul.f32 -1.442695, %v2185_v54  ;;  %v2186_v38 = vadd.f32 %v2139_v55, %v7358_v33  ;;  %v2217_v54 = vstv %s2216_s17  ;;  %v2220_v55 = vstv %s2219_s11  ;;  %s2801_s17 = scvt.s32.f32 %s2800_s19 }
 0x6a2   : > { %v2141_v3 = vpop.f32.mrf.mxu0  ;;  %v2188_v31 = vadd.f32 %v2180_v37, %v7359_v47  ;;  %v2221_v33 = vmul.f32 %v2220_v55, %v6385_v5  ;;  %s3385_s19 = scalar_select %p3384_p8, 1, 0 }
 0x6a3   : > { %v2182_v4 = vpop.f32.mrf.mxu1  ;;  %4937 = vpow2.f32 %v4553_v29  ;;  %v4554_v16 = vmul.f32 -1.442695, %v2186_v38  ;;  %s2804_s11 = ssub.f32 1.0, %s2801_s17 }
 0x6a4   : > { %v2142_v23 = vpop.f32.mrf.mxu0  ;;  %v4555_v11 = vmul.f32 -1.442695, %v2188_v31 }
 0x6a5   : > { %v2183_v18 = vpop.f32.mrf.mxu1  ;;  %4939 = vpow2.f32 %v4554_v16 }
 0x6a6   : > { %4941 = vtanh.f32 %v2187_v17  ;;  %v2224_v18 = vmul.f32 %v2220_v55, %v6388_v53 }
 0x6a7   : > { %4943 = vpow2.f32 %v4555_v11 }
 0x6b0   : > { %v4938_v30 = vpop.eup %4937 }
 0x6b1   : > { %v2192_v61 = vadd.f32 1.0, %v4938_v30 }
 0x6b2   : > { %v4940_v35 = vpop.eup %4939 }
 0x6b3   : > { %4945 = vrcp.f32 %v2192_v61  ;;  %v2198_v32 = vadd.f32 1.0, %v4940_v35  ;;  %v4942_v36 = vpop.eup %4941 }
 0x6b4   : > { %v4944_v48 = vpop.eup %4943 }
 0x6b5   : > { %4947 = vrcp.f32 %v2198_v32  ;;  %v2205_v27 = vadd.f32 1.0, %v4944_v48 }
 0x6b7   : > { %4949 = vrcp.f32 %v2205_v27 }
 0x6c0   : > { %v4946_v42 = vpop.eup %4945 }
 0x6c1   : > { %v2209_v24 = vmul.f32 %v4946_v42, %v4942_v36 }
 0x6c2   : > { %v4948_v26 = vpop.eup %4947 }
 0x6c3   : > { %v2208_v43 = vmul.f32 %v4948_v26, %v6385_v5 }
 0x6c4   : > { %v4950_v3 = vpop.eup %4949 }
 0x6c5   : > { %v2210_v37 = vadd.f32 %v2209_v24, %v2208_v43  ;;  %v7361_v43 = vld [vmem:[#allocation36_spill] sm:$0xff] }
 0x6c7   : > { %4951 = vtanh.f32 %v2210_v37  ;;  %v2218_v29 = vmul.f32 %v2217_v54, %v2210_v37 }
 0x6c9   : > { %v6450_v38 = vadd.f32 %v2221_v33, %v2218_v29  ;;  %v7362_v33 = vld [vmem:[#allocation38_spill] sm:$0xff] }
 0x6d4   : > { %v4952_v4 = vpop.eup %4951 }
 0x6d5   : > { %v2212_v16 = vmul.f32 %v4952_v4, %v4950_v3 }
 0x6d7   : > { %v2223_v23 = vmul.f32 %v2217_v54, %v2212_v16 }
 0x6d9   : > { %v6453_v47 = vadd.f32 %v2224_v18, %v2223_v23 }
 0x6db   : > { %v2227_v31 = vcombine.high %v6453_v47, %v6453_v47  ;;  %v2234_v39 = vrot.slane %v6453_v47, %v6062_v44  ;;  %v2297_v5 = vpack.c.bf16 %v6453_v47, %v6453_v47 }
 0x6dd   : > { %v2241_v17 = vrot.slane %v2227_v31, %v6062_v44  ;;  %v2242_v11 = vcombine.high %v2234_v39, %v2234_v39  ;;  %v2250_v30 = vrot.slane %v2234_v39, %v6062_v44  ;;  %4556 = vst.sshfl [vmem:[%s5667_s13 + $0x5] sm:$0x1 pattern:$0x73625140] %v2234_v39  ;;  %2331 = vmatmul.mubr.bf16.vlgmr.msra.gmra.mxu0 %v2297_v5 }
 0x6de   : > { %2372 = vmatmul.mubr.bf16.vlgmr.msra.gmra.mxu1 %v2297_v5  ;;  %2494 = vmatpush1.bf16.msra.mxu0 %v6209_v60 }
 0x6df   : > { %2535 = vmatpush1.bf16.msra.mxu1 %v6212_v40  ;;  %v2243_v53 = vcombine.high %v2241_v17, %v2241_v17  ;;  %v2257_v61 = vrot.slane %v2241_v17, %v6062_v44  ;;  %v2264_v35 = vrot.slane %v2242_v11, %v6062_v44  ;;  %v2272_v32 = vcombine.high %v2250_v30, %v2250_v30 }
 0x6e0   : > { %4557 = vst.sshfl [vmem:[%s5667_s13 + $0x15] sm:$0x1 pattern:$0x73625140] %v2242_v11  ;;  %2495 = vmatprep.subr.bf16.mxu0 %v6219_v28  ;;  %2536 = vmatprep.subr.bf16.mxu1 %v6222_v41 }
 0x6e1   : > { %4558 = vst.sshfl [vmem:[%s5667_s13 + $0x45] sm:$0x1 pattern:$0x73625140] %v2241_v17  ;;  %2525 = vmatprep.mubr.bf16.mxu0 %v7347_v2  ;;  %v2271_v36 = vrot.slane %v2243_v53, %v6062_v44  ;;  %v2273_v48 = vcombine.high %v2257_v61, %v2257_v61  ;;  %v2274_v42 = vcombine.high %v2264_v35, %v2264_v35  ;;  %2286 = vst [vmem:[%s5667_s13 + $0x25] sm:$0x1] %v2272_v32 }
 0x6e2   : > { %4559 = vst.sshfl [vmem:[%s5667_s13 + $0x55] sm:$0x1 pattern:$0x73625140] %v2243_v53  ;;  %2566 = vmatprep.mubr.bf16.mxu1 %v7347_v2  ;;  %2496 = vmatpush1.bf16.msra.mxu0 %v6230_v46 }
 0x6e3   : > { %2537 = vmatpush1.bf16.msra.mxu1 %v6233_v10  ;;  %v2275_v24 = vcombine.high %v2271_v36, %v2271_v36  ;;  %2287 = vst [vmem:[%s5667_s13 + $0x35] sm:$0x1] %v2274_v42  ;;  %2290 = vst [vmem:[%s5667_s13 + $0x65] sm:$0x1] %v2273_v48  ;;  %2497 = vmatprep.subr.bf16.mxu0 %v6238_v50 }
 0x6e4   : > { %2538 = vmatprep.subr.bf16.mxu1 %v6241_v51 }
 0x6e5   : > { %2291 = vst [vmem:[%s5667_s13 + $0x75] sm:$0x1] %v2275_v24 }
 0x6e6   : > { %2498 = vmatpush1.bf16.msra.mxu0 %v6245_v52 }
 0x6e7   : > { %2539 = vmatpush1.bf16.msra.mxu1 %v6248_v56  ;;  %2499 = vmatprep.subr.bf16.mxu0 %v6251_v57 }
 0x6e8   : > { %2540 = vmatprep.subr.bf16.mxu1 %v6254_v58 }
 0x6ea   : > { %2500 = vmatpush1.bf16.msra.mxu0 %v6257_v59 }
 0x6eb   : > { %2541 = vmatpush1.bf16.msra.mxu1 %v6260_v62  ;;  %2501 = vmatprep.subr.bf16.mxu0 %v6263_v63 }
 0x6ec   : > { %2542 = vmatprep.subr.bf16.mxu1 %v6266_v0 }
 0x6ee   : > { %2502 = vmatpush1.bf16.msra.mxu0 %v6269_v1 }
 0x6ef   : > { %2543 = vmatpush1.bf16.msra.mxu1 %v6272_v6  ;;  %2503 = vmatprep.subr.bf16.mxu0 %v6275_v7 }
 0x6f0   : > { %2544 = vmatprep.subr.bf16.mxu1 %v6278_v8 }
 0x6f2   : > { %2504 = vmatpush1.bf16.msra.mxu0 %v6281_v9 }
 0x6f3   : > { %2545 = vmatpush1.bf16.msra.mxu1 %v6284_v12  ;;  %2505 = vmatprep.subr.bf16.mxu0 %v6287_v13 }
 0x6f4   : > { %2546 = vmatprep.subr.bf16.mxu1 %v6290_v14 }
 0x6f6   : > { %2506 = vmatpush1.bf16.msra.mxu0 %v6293_v15 }
 0x6f7   : > { %2547 = vmatpush1.bf16.msra.mxu1 %v6296_v19  ;;  %2507 = vmatprep.subr.bf16.mxu0 %v6299_v20 }
 0x6f8   : > { %2548 = vmatprep.subr.bf16.mxu1 %v6302_v21 }
 0x6fa   : > { %2508 = vmatpush1.bf16.msra.mxu0 %v6305_v22 }
 0x6fb   : > { %2549 = vmatpush1.bf16.msra.mxu1 %v6308_v25  ;;  %2688 = vmatprep.subr.bf16.mxu0 %v6182_v45  ;;  %v7363_v45 = vld [vmem:[#allocation39_spill] sm:$0xff] }
 0x6fc   : > { %2729 = vmatprep.subr.bf16.mxu1 %v6185_v49  ;;  %v7364_v49 = vld [vmem:[#allocation37_spill] sm:$0xff] }
 0x79d   : > { %v2332_v26 = vpop.f32.mrf.mxu0 }
 0x79e   : > { %v2373_v27 = vpop.f32.mrf.mxu1  ;;  %v2380_v54 = vadd.f32 %v2332_v26, %v7361_v43  ;;  %v2415_v43 = vstv %s2414_s22 }
 0x79f   : > { %v2334_v55 = vpop.f32.mrf.mxu0  ;;  %v2382_v5 = vadd.f32 %v2373_v27, %v7364_v49  ;;  %v2412_v27 = vstv %s2411_s10  ;;  %s2996_s10 = scvt.s32.f32 %s2995_s24 }
 0x7a0   : > { %v2375_v37 = vpop.f32.mrf.mxu1  ;;  %v4560_v29 = vmul.f32 -1.442695, %v2380_v54  ;;  %v2381_v3 = vadd.f32 %v2334_v55, %v7362_v33  ;;  %s3580_s24 = scalar_select %p3579_p1, 1, 0 }
 0x7a1   : > { %v2336_v4 = vpop.f32.mrf.mxu0  ;;  %v2383_v39 = vadd.f32 %v2375_v37, %v7363_v45  ;;  %v2416_v37 = vmul.f32 %v2415_v43, %v6450_v38  ;;  %s2999_s22 = ssub.f32 1.0, %s2996_s10 }
 0x7a2   : > { %v2377_v16 = vpop.f32.mrf.mxu1  ;;  %4953 = vpow2.f32 %v4560_v29  ;;  %v4561_v23 = vmul.f32 -1.442695, %v2381_v3 }
 0x7a3   : > { %v2337_v18 = vpop.f32.mrf.mxu0  ;;  %v4562_v17 = vmul.f32 -1.442695, %v2383_v39 }
 0x7a4   : > { %v2378_v31 = vpop.f32.mrf.mxu1  ;;  %4955 = vpow2.f32 %v4561_v23  ;;  %v2419_v23 = vmul.f32 %v2415_v43, %v6453_v47 }
 0x7a5   : > { %4957 = vtanh.f32 %v2382_v5 }
 0x7a6   : > { %4959 = vpow2.f32 %v4562_v17 }
 0x7af   : > { %v4954_v11 = vpop.eup %4953 }
 0x7b0   : > { %v2387_v30 = vadd.f32 1.0, %v4954_v11 }
 0x7b1   : > { %v4956_v53 = vpop.eup %4955 }
 0x7b2   : > { %4961 = vrcp.f32 %v2387_v30  ;;  %v2393_v61 = vadd.f32 1.0, %v4956_v53  ;;  %v4958_v35 = vpop.eup %4957 }
 0x7b3   : > { %v4960_v32 = vpop.eup %4959 }
 0x7b4   : > { %4963 = vrcp.f32 %v2393_v61  ;;  %v2400_v24 = vadd.f32 1.0, %v4960_v32 }
 0x7b6   : > { %4965 = vrcp.f32 %v2400_v24  ;;  %v2610_v24 = vstv %s2609_s26 }
 0x7bf   : > { %v4962_v36 = vpop.eup %4961 }
 0x7c0   : > { %v2404_v48 = vmul.f32 %v4962_v36, %v4958_v35 }
 0x7c1   : > { %v4964_v42 = vpop.eup %4963 }
 0x7c2   : > { %v2403_v26 = vmul.f32 %v4964_v42, %v6450_v38  ;;  %v2607_v42 = vstv %s2606_s18  ;;  %s3191_s18 = scvt.s32.f32 %s3190_s25 }
 0x7c3   : > { %v4966_v33 = vpop.eup %4965  ;;  %s3775_s25 = scalar_select %p3774_p12, 1, 0 }
 0x7c4   : > { %v2405_v54 = vadd.f32 %v2404_v48, %v2403_v26  ;;  %s3194_s26 = ssub.f32 1.0, %s3191_s18 }
 0x7c6   : > { %4967 = vtanh.f32 %v2405_v54  ;;  %v2413_v55 = vmul.f32 %v2412_v27, %v2405_v54 }
 0x7c8   : > { %v6515_v29 = vadd.f32 %v2416_v37, %v2413_v55 }
 0x7ca   : > { %v2611_v43 = vmul.f32 %v2610_v24, %v6515_v29 }
 0x7d3   : > { %v4968_v3 = vpop.eup %4967 }
 0x7d4   : > { %v2407_v4 = vmul.f32 %v4968_v3, %v4966_v33 }
 0x7d6   : > { %v2418_v16 = vmul.f32 %v2412_v27, %v2407_v4 }
 0x7d8   : > { %v6518_v18 = vadd.f32 %v2419_v23, %v2418_v16 }
 0x7da   : > { %v2422_v31 = vcombine.high %v6518_v18, %v6518_v18  ;;  %v2429_v45 = vrot.slane %v6518_v18, %v6062_v44  ;;  %v2492_v38 = vpack.c.bf16 %v6518_v18, %v6518_v18  ;;  %v2614_v4 = vmul.f32 %v2610_v24, %v6518_v18  ;;  %v6598_v18 = vld [vmem:[#allocation11 + $0xe0] ss:$16 sps:$4 sm:$0xff]  }
 0x7dc   : > { %v2436_v39 = vrot.slane %v2422_v31, %v6062_v44  ;;  %v2437_v49 = vcombine.high %v2429_v45, %v2429_v45  ;;  %v2445_v5 = vrot.slane %v2429_v45, %v6062_v44  ;;  %4563 = vst.sshfl [vmem:[%s5667_s13 + $0x6] sm:$0x1 pattern:$0x73625140] %v2429_v45  ;;  %2526 = vmatmul.mubr.bf16.vlgmr.msra.gmra.mxu0 %v2492_v38 }
 0x7dd   : > { %2567 = vmatmul.mubr.bf16.vlgmr.msra.gmra.mxu1 %v2492_v38  ;;  %2689 = vmatpush1.bf16.msra.mxu0 %v6209_v60 }
 0x7de   : > { %2730 = vmatpush1.bf16.msra.mxu1 %v6212_v40  ;;  %v2438_v47 = vcombine.high %v2436_v39, %v2436_v39  ;;  %v2452_v17 = vrot.slane %v2436_v39, %v6062_v44  ;;  %v2459_v11 = vrot.slane %v2437_v49, %v6062_v44  ;;  %v2467_v30 = vcombine.high %v2445_v5, %v2445_v5 }
 0x7df   : > { %4564 = vst.sshfl [vmem:[%s5667_s13 + $0x16] sm:$0x1 pattern:$0x73625140] %v2437_v49  ;;  %2690 = vmatprep.subr.bf16.mxu0 %v6219_v28  ;;  %2731 = vmatprep.subr.bf16.mxu1 %v6222_v41  ;;  %v6571_v28 = vld [vmem:[#allocation11 + $0xe4] ss:$16 sps:$4 sm:$0xff]  }
 0x7e0   : > { %4565 = vst.sshfl [vmem:[%s5667_s13 + $0x46] sm:$0x1 pattern:$0x73625140] %v2436_v39  ;;  %2720 = vmatprep.mubr.bf16.mxu0 %v7347_v2  ;;  %v2466_v60 = vrot.slane %v2438_v47, %v6062_v44  ;;  %v2468_v40 = vcombine.high %v2452_v17, %v2452_v17  ;;  %v2469_v53 = vcombine.high %v2459_v11, %v2459_v11  ;;  %2481 = vst [vmem:[%s5667_s13 + $0x26] sm:$0x1] %v2467_v30 }
 0x7e1   : > { %4566 = vst.sshfl [vmem:[%s5667_s13 + $0x56] sm:$0x1 pattern:$0x73625140] %v2438_v47  ;;  %2761 = vmatprep.mubr.bf16.mxu1 %v7347_v2  ;;  %2691 = vmatpush1.bf16.msra.mxu0 %v6230_v46  ;;  %v6574_v41 = vld [vmem:[#allocation11 + $0xec] ss:$16 sps:$4 sm:$0xff]  }
 0x7e2   : > { %2732 = vmatpush1.bf16.msra.mxu1 %v6233_v10  ;;  %v2470_v61 = vcombine.high %v2466_v60, %v2466_v60  ;;  %2482 = vst [vmem:[%s5667_s13 + $0x36] sm:$0x1] %v2469_v53  ;;  %2485 = vst [vmem:[%s5667_s13 + $0x66] sm:$0x1] %v2468_v40  ;;  %2692 = vmatprep.subr.bf16.mxu0 %v6238_v50  ;;  %v7365_v50 = vld [vmem:[#allocation40_spill] sm:$0xff] }
 0x7e3   : > { %2733 = vmatprep.subr.bf16.mxu1 %v6241_v51  ;;  %v6601_v49 = vld [vmem:[#allocation11 + $0xe8] ss:$16 sps:$4 sm:$0xff]   ;;  %v6608_v30 = vld [vmem:[#allocation11 + $0xc4] ss:$16 sps:$4 sm:$0xff]   ;;  %v6611_v60 = vld [vmem:[#allocation11 + $0xcc] ss:$16 sps:$4 sm:$0xff]  }
 0x7e4   : > { %2486 = vst [vmem:[%s5667_s13 + $0x76] sm:$0x1] %v2470_v61 }
 0x7e5   : > { %2693 = vmatpush1.bf16.msra.mxu0 %v6245_v52 }
 0x7e6   : > { %2734 = vmatpush1.bf16.msra.mxu1 %v6248_v56  ;;  %2694 = vmatprep.subr.bf16.mxu0 %v6251_v57 }
 0x7e7   : > { %2735 = vmatprep.subr.bf16.mxu1 %v6254_v58  ;;  %v7366_v58 = vld [vmem:[#allocation42_spill] sm:$0xff] }
 0x7e9   : > { %2695 = vmatpush1.bf16.msra.mxu0 %v6257_v59 }
 0x7ea   : > { %2736 = vmatpush1.bf16.msra.mxu1 %v6260_v62  ;;  %2696 = vmatprep.subr.bf16.mxu0 %v6263_v63 }
 0x7eb   : > { %2737 = vmatprep.subr.bf16.mxu1 %v6266_v0 }
 0x7ed   : > { %2697 = vmatpush1.bf16.msra.mxu0 %v6269_v1 }
 0x7ee   : > { %2738 = vmatpush1.bf16.msra.mxu1 %v6272_v6  ;;  %2698 = vmatprep.subr.bf16.mxu0 %v6275_v7  ;;  %v7367_v7 = vld [vmem:[#allocation43_spill] sm:$0xff] }
 0x7ef   : > { %2739 = vmatprep.subr.bf16.mxu1 %v6278_v8 }
 0x7f1   : > { %2699 = vmatpush1.bf16.msra.mxu0 %v6281_v9  ;;  %v7368_v9 = vld [vmem:[#allocation41_spill] sm:$0xff] }
 0x7f2   : > { %2740 = vmatpush1.bf16.msra.mxu1 %v6284_v12  ;;  %2700 = vmatprep.subr.bf16.mxu0 %v6287_v13 }
 0x7f3   : > { %2741 = vmatprep.subr.bf16.mxu1 %v6290_v14 }
 0x7f5   : > { %2701 = vmatpush1.bf16.msra.mxu0 %v6293_v15 }
 0x7f6   : > { %2742 = vmatpush1.bf16.msra.mxu1 %v6296_v19  ;;  %2702 = vmatprep.subr.bf16.mxu0 %v6299_v20 }
 0x7f7   : > { %2743 = vmatprep.subr.bf16.mxu1 %v6302_v21 }
 0x7f9   : > { %2703 = vmatpush1.bf16.msra.mxu0 %v6305_v22 }
 0x7fa   : > { %2744 = vmatpush1.bf16.msra.mxu1 %v6308_v25  ;;  %2883 = vmatprep.subr.bf16.mxu0 %v6571_v28 }
 0x7fb   : > { %2924 = vmatprep.subr.bf16.mxu1 %v6574_v41 }
 0x89c   : > { %v2527_v46 = vpop.f32.mrf.mxu0 }
 0x89d   : > { %v2568_v10 = vpop.f32.mrf.mxu1  ;;  %v2575_v51 = vadd.f32 %v2527_v46, %v7365_v50  ;;  %v6619_v46 = vld [vmem:[#allocation11 + $0xc0] ss:$16 sps:$4 sm:$0xff]  }
 0x89e   : > { %v2529_v52 = vpop.f32.mrf.mxu0  ;;  %v2577_v12 = vadd.f32 %v2568_v10, %v7368_v9  ;;  %v6622_v10 = vld [vmem:[#allocation11 + $0xc8] ss:$16 sps:$4 sm:$0xff]   ;;  %v6667_v9 = vld [vmem:[#allocation11 + $0x4c] ss:$16 sps:$4 sm:$0xff]  }
 0x89f   : > { %v2570_v56 = vpop.f32.mrf.mxu1  ;;  %v4567_v57 = vmul.f32 -1.442695, %v2575_v51  ;;  %v2576_v59 = vadd.f32 %v2529_v52, %v7366_v58  ;;  %v6627_v51 = vld [vmem:[#allocation11 + $0xa4] ss:$16 sps:$4 sm:$0xff]   ;;  %v6630_v52 = vld [vmem:[#allocation11 + $0xac] ss:$16 sps:$4 sm:$0xff]  }
 0x8a0   : > { %v2531_v62 = vpop.f32.mrf.mxu0  ;;  %v2578_v8 = vadd.f32 %v2570_v56, %v7367_v7  ;;  %v6634_v56 = vld [vmem:[#allocation11 + $0xa0] ss:$16 sps:$4 sm:$0xff]   ;;  %v6640_v58 = vld [vmem:[#allocation11 + $0x84] ss:$16 sps:$4 sm:$0xff]   ;;  %v6661_v7 = vld [vmem:[#allocation11 + $0x68] ss:$16 sps:$4 sm:$0xff]  }
 0x8a1   : > { %v2572_v63 = vpop.f32.mrf.mxu1  ;;  %4969 = vpow2.f32 %v4567_v57  ;;  %v4568_v0 = vmul.f32 -1.442695, %v2576_v59  ;;  %v6637_v57 = vld [vmem:[#allocation11 + $0xa8] ss:$16 sps:$4 sm:$0xff]   ;;  %v6643_v59 = vld [vmem:[#allocation11 + $0x8c] ss:$16 sps:$4 sm:$0xff]  }
 0x8a2   : > { %v2532_v1 = vpop.f32.mrf.mxu0  ;;  %v4569_v13 = vmul.f32 -1.442695, %v2578_v8  ;;  %v6646_v62 = vld [vmem:[#allocation11 + $0x80] ss:$16 sps:$4 sm:$0xff]   ;;  %v6649_v63 = vld [vmem:[#allocation11 + $0x88] ss:$16 sps:$4 sm:$0xff]  }
 0x8a3   : > { %v2573_v6 = vpop.f32.mrf.mxu1  ;;  %4971 = vpow2.f32 %v4568_v0  ;;  %v6652_v0 = vld [vmem:[#allocation11 + $0x64] ss:$16 sps:$4 sm:$0xff]   ;;  %v6655_v1 = vld [vmem:[#allocation11 + $0x6c] ss:$16 sps:$4 sm:$0xff]  }
 0x8a4   : > { %4973 = vtanh.f32 %v2577_v12  ;;  %v6658_v6 = vld [vmem:[#allocation11 + $0x60] ss:$16 sps:$4 sm:$0xff]   ;;  %v6664_v8 = vld [vmem:[#allocation11 + $0x44] ss:$16 sps:$4 sm:$0xff]  }
 0x8a5   : > { %4975 = vpow2.f32 %v4569_v13  ;;  %v6670_v12 = vld [vmem:[#allocation11 + $0x40] ss:$16 sps:$4 sm:$0xff]   ;;  %v6673_v13 = vld [vmem:[#allocation11 + $0x48] ss:$16 sps:$4 sm:$0xff]  }
 0x8ae   : > { %v4970_v14 = vpop.eup %4969 }
 0x8af   : > { %v2582_v15 = vadd.f32 1.0, %v4970_v14  ;;  %v6676_v14 = vld [vmem:[#allocation11 + $0x24] ss:$16 sps:$4 sm:$0xff]  }
 0x8b0   : > { %v4972_v19 = vpop.eup %4971 }
 0x8b1   : > { %4977 = vrcp.f32 %v2582_v15  ;;  %v2588_v20 = vadd.f32 1.0, %v4972_v19  ;;  %v4974_v21 = vpop.eup %4973  ;;  %v6679_v15 = vld [vmem:[#allocation11 + $0x2c] ss:$16 sps:$4 sm:$0xff]   ;;  %v6682_v19 = vld [vmem:[#allocation11 + $0x20] ss:$16 sps:$4 sm:$0xff]  }
 0x8b2   : > { %v4976_v22 = vpop.eup %4975 }
 0x8b3   : > { %4979 = vrcp.f32 %v2588_v20  ;;  %v2595_v36 = vadd.f32 1.0, %v4976_v22  ;;  %v6685_v20 = vld [vmem:[#allocation11 + $0x28] ss:$16 sps:$4 sm:$0xff]   ;;  %v6691_v22 = vld [vmem:[#allocation11 + $0xc] ss:$16 sps:$4 sm:$0xff]  }
 0x8b5   : > { %4981 = vrcp.f32 %v2595_v36 }
 0x8be   : > { %v4978_v25 = vpop.eup %4977 }
 0x8bf   : > { %v2599_v35 = vmul.f32 %v4978_v25, %v4974_v21  ;;  %v6688_v21 = vld [vmem:[#allocation11 + $0x4] ss:$16 sps:$4 sm:$0xff]   ;;  %v6694_v25 = vld [vmem:[#allocation11] ss:$16 sps:$4 sm:$0xff]  }
 0x8c0   : > { %v4980_v32 = vpop.eup %4979 }
 0x8c1   : > { %v2598_v48 = vmul.f32 %v4980_v32, %v6515_v29 }
 0x8c2   : > { %v4982_v55 = vpop.eup %4981 }
 0x8c3   : > { %v2600_v26 = vadd.f32 %v2599_v35, %v2598_v48  ;;  %v6697_v35 = vld [vmem:[#allocation11 + $0x8] ss:$16 sps:$4 sm:$0xff]  }
 0x8c4   : > { %v7369_v48 = vld [vmem:[#allocation44_spill] sm:$0xff] }
 0x8c5   : > { %4983 = vtanh.f32 %v2600_v26  ;;  %v2608_v27 = vmul.f32 %v2607_v42, %v2600_v26 }
 0x8c7   : > { %v6584_v54 = vadd.f32 %v2611_v43, %v2608_v27  ;;  %v7370_v43 = vld [vmem:[#allocation46_spill] sm:$0xff] }
 0x8d2   : > { %v4984_v37 = vpop.eup %4983 }
 0x8d3   : > { %v2602_v33 = vmul.f32 %v4984_v37, %v4982_v55 }
 0x8d5   : > { %v2613_v3 = vmul.f32 %v2607_v42, %v2602_v33 }
 0x8d7   : > { %v6587_v16 = vadd.f32 %v2614_v4, %v2613_v3 }
 0x8d9   : > { %v2617_v23 = vcombine.high %v6587_v16, %v6587_v16  ;;  %v2624_v31 = vrot.slane %v6587_v16, %v6062_v44  ;;  %v2687_v29 = vpack.c.bf16 %v6587_v16, %v6587_v16 }
 0x8db   : > { %v2631_v45 = vrot.slane %v2617_v23, %v6062_v44  ;;  %v2632_v38 = vcombine.high %v2624_v31, %v2624_v31  ;;  %v2640_v39 = vrot.slane %v2624_v31, %v6062_v44  ;;  %4570 = vst.sshfl [vmem:[%s5667_s13 + $0x7] sm:$0x1 pattern:$0x73625140] %v2624_v31  ;;  %2721 = vmatmul.mubr.bf16.vlgmr.msra.gmra.mxu0 %v2687_v29  ;;  %v7371_v31 = vld [vmem:[#allocation47_spill] sm:$0xff] }
 0x8dc   : > { %2762 = vmatmul.mubr.bf16.vlgmr.msra.gmra.mxu1 %v2687_v29  ;;  %2884 = vmatpush1.bf16.msra.mxu0 %v6598_v18 }
 0x8dd   : > { %2925 = vmatpush1.bf16.msra.mxu1 %v6601_v49  ;;  %v2633_v5 = vcombine.high %v2631_v45, %v2631_v45  ;;  %v2647_v47 = vrot.slane %v2631_v45, %v6062_v44  ;;  %v2654_v17 = vrot.slane %v2632_v38, %v6062_v44  ;;  %v2662_v11 = vcombine.high %v2640_v39, %v2640_v39 }
 0x8de   : > { %4571 = vst.sshfl [vmem:[%s5667_s13 + $0x17] sm:$0x1 pattern:$0x73625140] %v2632_v38  ;;  %2885 = vmatprep.subr.bf16.mxu0 %v6608_v30  ;;  %2926 = vmatprep.subr.bf16.mxu1 %v6611_v60 }
 0x8df   : > { %4572 = vst.sshfl [vmem:[%s5667_s13 + $0x47] sm:$0x1 pattern:$0x73625140] %v2631_v45  ;;  %2915 = vmatprep.mubr.bf16.mxu0 %v7347_v2  ;;  %v2661_v40 = vrot.slane %v2633_v5, %v6062_v44  ;;  %v2663_v53 = vcombine.high %v2647_v47, %v2647_v47  ;;  %v2664_v61 = vcombine.high %v2654_v17, %v2654_v17  ;;  %2676 = vst [vmem:[%s5667_s13 + $0x27] sm:$0x1] %v2662_v11 }
 0x8e0   : > { %4573 = vst.sshfl [vmem:[%s5667_s13 + $0x57] sm:$0x1 pattern:$0x73625140] %v2633_v5  ;;  %2956 = vmatprep.mubr.bf16.mxu1 %v7347_v2  ;;  %2886 = vmatpush1.bf16.msra.mxu0 %v6619_v46  ;;  %v7372_v45 = vld [vmem:[#allocation45_spill] sm:$0xff] }
 0x8e1   : > { %2927 = vmatpush1.bf16.msra.mxu1 %v6622_v10  ;;  %v2665_v50 = vcombine.high %v2661_v40, %v2661_v40  ;;  %2677 = vst [vmem:[%s5667_s13 + $0x37] sm:$0x1] %v2664_v61  ;;  %2680 = vst [vmem:[%s5667_s13 + $0x67] sm:$0x1] %v2663_v53  ;;  %2887 = vmatprep.subr.bf16.mxu0 %v6627_v51 }
 0x8e2   : > { %2928 = vmatprep.subr.bf16.mxu1 %v6630_v52 }
 0x8e3   : > { %2681 = vst [vmem:[%s5667_s13 + $0x77] sm:$0x1] %v2665_v50 }
 0x8e4   : > { %2888 = vmatpush1.bf16.msra.mxu0 %v6634_v56 }
 0x8e5   : > { %2929 = vmatpush1.bf16.msra.mxu1 %v6637_v57  ;;  %2889 = vmatprep.subr.bf16.mxu0 %v6640_v58 }
 0x8e6   : > { %2930 = vmatprep.subr.bf16.mxu1 %v6643_v59 }
 0x8e8   : > { %2890 = vmatpush1.bf16.msra.mxu0 %v6646_v62 }
 0x8e9   : > { %2931 = vmatpush1.bf16.msra.mxu1 %v6649_v63  ;;  %2891 = vmatprep.subr.bf16.mxu0 %v6652_v0 }
 0x8ea   : > { %2932 = vmatprep.subr.bf16.mxu1 %v6655_v1 }
 0x8ec   : > { %2892 = vmatpush1.bf16.msra.mxu0 %v6658_v6 }
 0x8ed   : > { %2933 = vmatpush1.bf16.msra.mxu1 %v6661_v7  ;;  %2893 = vmatprep.subr.bf16.mxu0 %v6664_v8 }
 0x8ee   : > { %2934 = vmatprep.subr.bf16.mxu1 %v6667_v9 }
 0x8f0   : > { %2894 = vmatpush1.bf16.msra.mxu0 %v6670_v12 }
 0x8f1   : > { %2935 = vmatpush1.bf16.msra.mxu1 %v6673_v13  ;;  %2895 = vmatprep.subr.bf16.mxu0 %v6676_v14 }
 0x8f2   : > { %2936 = vmatprep.subr.bf16.mxu1 %v6679_v15 }
 0x8f4   : > { %2896 = vmatpush1.bf16.msra.mxu0 %v6682_v19 }
 0x8f5   : > { %2937 = vmatpush1.bf16.msra.mxu1 %v6685_v20  ;;  %2897 = vmatprep.subr.bf16.mxu0 %v6688_v21 }
 0x8f6   : > { %2938 = vmatprep.subr.bf16.mxu1 %v6691_v22 }
 0x8f8   : > { %2898 = vmatpush1.bf16.msra.mxu0 %v6694_v25 }
 0x8f9   : > { %2939 = vmatpush1.bf16.msra.mxu1 %v6697_v35  ;;  %3078 = vmatprep.subr.bf16.mxu0 %v6571_v28 }
 0x8fa   : > { %3119 = vmatprep.subr.bf16.mxu1 %v6574_v41 }
 0x99b   : > { %v2722_v32 = vpop.f32.mrf.mxu0 }
 0x99c   : > { %v2763_v36 = vpop.f32.mrf.mxu1  ;;  %v2770_v42 = vadd.f32 %v2722_v32, %v7369_v48 }
 0x99d   : > { %v2724_v24 = vpop.f32.mrf.mxu0  ;;  %v2772_v38 = vadd.f32 %v2763_v36, %v7372_v45 }
 0x99e   : > { %v2765_v26 = vpop.f32.mrf.mxu1  ;;  %v4574_v27 = vmul.f32 -1.442695, %v2770_v42  ;;  %v2771_v55 = vadd.f32 %v2724_v24, %v7370_v43  ;;  %v2802_v42 = vstv %s2801_s17  ;;  %v2805_v24 = vstv %s2804_s11  ;;  %s3386_s17 = scvt.s32.f32 %s3385_s19 }
 0x99f   : > { %v2726_v37 = vpop.f32.mrf.mxu0  ;;  %v2773_v29 = vadd.f32 %v2765_v26, %v7371_v31  ;;  %v2806_v43 = vmul.f32 %v2805_v24, %v6584_v54  ;;  %s3970_s19 = scalar_select %p3969_p2, 1, 0 }
 0x9a0   : > { %v2767_v33 = vpop.f32.mrf.mxu1  ;;  %4985 = vpow2.f32 %v4574_v27  ;;  %v4575_v3 = vmul.f32 -1.442695, %v2771_v55  ;;  %s3389_s11 = ssub.f32 1.0, %s3386_s17 }
 0x9a1   : > { %v2727_v4 = vpop.f32.mrf.mxu0  ;;  %v4576_v39 = vmul.f32 -1.442695, %v2773_v29 }
 0x9a2   : > { %v2768_v23 = vpop.f32.mrf.mxu1  ;;  %4987 = vpow2.f32 %v4575_v3 }
 0x9a3   : > { %4989 = vtanh.f32 %v2772_v38  ;;  %v2809_v23 = vmul.f32 %v2805_v24, %v6587_v16 }
 0x9a4   : > { %4991 = vpow2.f32 %v4576_v39 }
 0x9ad   : > { %v4986_v5 = vpop.eup %4985 }
 0x9ae   : > { %v2777_v47 = vadd.f32 1.0, %v4986_v5 }
 0x9af   : > { %v4988_v17 = vpop.eup %4987 }
 0x9b0   : > { %4993 = vrcp.f32 %v2777_v47  ;;  %v2783_v11 = vadd.f32 1.0, %v4988_v17  ;;  %v4990_v40 = vpop.eup %4989 }
 0x9b1   : > { %v4992_v53 = vpop.eup %4991 }
 0x9b2   : > { %4995 = vrcp.f32 %v2783_v11  ;;  %v2790_v36 = vadd.f32 1.0, %v4992_v53 }
 0x9b4   : > { %4997 = vrcp.f32 %v2790_v36 }
 0x9bd   : > { %v4994_v61 = vpop.eup %4993 }
 0x9be   : > { %v2794_v50 = vmul.f32 %v4994_v61, %v4990_v40 }
 0x9bf   : > { %v4996_v32 = vpop.eup %4995 }
 0x9c0   : > { %v2793_v48 = vmul.f32 %v4996_v32, %v6584_v54 }
 0x9c1   : > { %v4998_v37 = vpop.eup %4997 }
 0x9c2   : > { %v2795_v26 = vadd.f32 %v2794_v50, %v2793_v48  ;;  %v7373_v48 = vld [vmem:[#allocation48_spill] sm:$0xff] }
 0x9c4   : > { %4999 = vtanh.f32 %v2795_v26  ;;  %v2803_v27 = vmul.f32 %v2802_v42, %v2795_v26 }
 0x9c6   : > { %v6709_v55 = vadd.f32 %v2806_v43, %v2803_v27  ;;  %v7374_v43 = vld [vmem:[#allocation50_spill] sm:$0xff] }
 0x9d1   : > { %v5000_v33 = vpop.eup %4999 }
 0x9d2   : > { %v2797_v3 = vmul.f32 %v5000_v33, %v4998_v37 }
 0x9d4   : > { %v2808_v4 = vmul.f32 %v2802_v42, %v2797_v3 }
 0x9d6   : > { %v6712_v31 = vadd.f32 %v2809_v23, %v2808_v4 }
 0x9d8   : > { %v2812_v29 = vcombine.high %v6712_v31, %v6712_v31  ;;  %v2819_v45 = vrot.slane %v6712_v31, %v6062_v44  ;;  %v2882_v54 = vpack.c.bf16 %v6712_v31, %v6712_v31 }
 0x9da   : > { %v2826_v38 = vrot.slane %v2812_v29, %v6062_v44  ;;  %v2827_v39 = vcombine.high %v2819_v45, %v2819_v45  ;;  %v2835_v5 = vrot.slane %v2819_v45, %v6062_v44  ;;  %4577 = vst.sshfl [vmem:[%s5667_s13 + $0x8] sm:$0x1 pattern:$0x73625140] %v2819_v45  ;;  %2916 = vmatmul.mubr.bf16.vlgmr.msra.gmra.mxu0 %v2882_v54  ;;  %v7375_v45 = vld [vmem:[#allocation51_spill] sm:$0xff] }
 0x9db   : > { %2957 = vmatmul.mubr.bf16.vlgmr.msra.gmra.mxu1 %v2882_v54  ;;  %3079 = vmatpush1.bf16.msra.mxu0 %v6598_v18 }
 0x9dc   : > { %3120 = vmatpush1.bf16.msra.mxu1 %v6601_v49  ;;  %v2828_v16 = vcombine.high %v2826_v38, %v2826_v38  ;;  %v2842_v47 = vrot.slane %v2826_v38, %v6062_v44  ;;  %v2849_v17 = vrot.slane %v2827_v39, %v6062_v44  ;;  %v2857_v11 = vcombine.high %v2835_v5, %v2835_v5 }
 0x9dd   : > { %4578 = vst.sshfl [vmem:[%s5667_s13 + $0x18] sm:$0x1 pattern:$0x73625140] %v2827_v39  ;;  %3080 = vmatprep.subr.bf16.mxu0 %v6608_v30  ;;  %3121 = vmatprep.subr.bf16.mxu1 %v6611_v60 }
 0x9de   : > { %4579 = vst.sshfl [vmem:[%s5667_s13 + $0x48] sm:$0x1 pattern:$0x73625140] %v2826_v38  ;;  %3110 = vmatprep.mubr.bf16.mxu0 %v7347_v2  ;;  %v2856_v40 = vrot.slane %v2828_v16, %v6062_v44  ;;  %v2858_v53 = vcombine.high %v2842_v47, %v2842_v47  ;;  %v2859_v61 = vcombine.high %v2849_v17, %v2849_v17  ;;  %2871 = vst [vmem:[%s5667_s13 + $0x28] sm:$0x1] %v2857_v11 }
 0x9df   : > { %4580 = vst.sshfl [vmem:[%s5667_s13 + $0x58] sm:$0x1 pattern:$0x73625140] %v2828_v16  ;;  %3151 = vmatprep.mubr.bf16.mxu1 %v7347_v2  ;;  %3081 = vmatpush1.bf16.msra.mxu0 %v6619_v46  ;;  %v7376_v38 = vld [vmem:[#allocation49_spill] sm:$0xff] }
 0x9e0   : > { %3122 = vmatpush1.bf16.msra.mxu1 %v6622_v10  ;;  %v2860_v50 = vcombine.high %v2856_v40, %v2856_v40  ;;  %2872 = vst [vmem:[%s5667_s13 + $0x38] sm:$0x1] %v2859_v61  ;;  %2875 = vst [vmem:[%s5667_s13 + $0x68] sm:$0x1] %v2858_v53  ;;  %3082 = vmatprep.subr.bf16.mxu0 %v6627_v51 }
 0x9e1   : > { %3123 = vmatprep.subr.bf16.mxu1 %v6630_v52 }
 0x9e2   : > { %2876 = vst [vmem:[%s5667_s13 + $0x78] sm:$0x1] %v2860_v50 }
 0x9e3   : > { %3083 = vmatpush1.bf16.msra.mxu0 %v6634_v56 }
 0x9e4   : > { %3124 = vmatpush1.bf16.msra.mxu1 %v6637_v57  ;;  %3084 = vmatprep.subr.bf16.mxu0 %v6640_v58 }
 0x9e5   : > { %3125 = vmatprep.subr.bf16.mxu1 %v6643_v59 }
 0x9e7   : > { %3085 = vmatpush1.bf16.msra.mxu0 %v6646_v62 }
 0x9e8   : > { %3126 = vmatpush1.bf16.msra.mxu1 %v6649_v63  ;;  %3086 = vmatprep.subr.bf16.mxu0 %v6652_v0 }
 0x9e9   : > { %3127 = vmatprep.subr.bf16.mxu1 %v6655_v1 }
 0x9eb   : > { %3087 = vmatpush1.bf16.msra.mxu0 %v6658_v6 }
 0x9ec   : > { %3128 = vmatpush1.bf16.msra.mxu1 %v6661_v7  ;;  %3088 = vmatprep.subr.bf16.mxu0 %v6664_v8 }
 0x9ed   : > { %3129 = vmatprep.subr.bf16.mxu1 %v6667_v9 }
 0x9ef   : > { %3089 = vmatpush1.bf16.msra.mxu0 %v6670_v12 }
 0x9f0   : > { %3130 = vmatpush1.bf16.msra.mxu1 %v6673_v13  ;;  %3090 = vmatprep.subr.bf16.mxu0 %v6676_v14 }
 0x9f1   : > { %3131 = vmatprep.subr.bf16.mxu1 %v6679_v15 }
 0x9f3   : > { %3091 = vmatpush1.bf16.msra.mxu0 %v6682_v19 }
 0x9f4   : > { %3132 = vmatpush1.bf16.msra.mxu1 %v6685_v20  ;;  %3092 = vmatprep.subr.bf16.mxu0 %v6688_v21 }
 0x9f5   : > { %3133 = vmatprep.subr.bf16.mxu1 %v6691_v22 }
 0x9f7   : > { %3093 = vmatpush1.bf16.msra.mxu0 %v6694_v25 }
 0x9f8   : > { %3134 = vmatpush1.bf16.msra.mxu1 %v6697_v35  ;;  %3273 = vmatprep.subr.bf16.mxu0 %v6571_v28 }
 0x9f9   : > { %3314 = vmatprep.subr.bf16.mxu1 %v6574_v41 }
 0xa9a   : > { %v2917_v32 = vpop.f32.mrf.mxu0 }
 0xa9b   : > { %v2958_v36 = vpop.f32.mrf.mxu1  ;;  %v2965_v42 = vadd.f32 %v2917_v32, %v7373_v48 }
 0xa9c   : > { %v2919_v24 = vpop.f32.mrf.mxu0  ;;  %v2967_v39 = vadd.f32 %v2958_v36, %v7376_v38 }
 0xa9d   : > { %v2960_v26 = vpop.f32.mrf.mxu1  ;;  %v4581_v27 = vmul.f32 -1.442695, %v2965_v42  ;;  %v2966_v37 = vadd.f32 %v2919_v24, %v7374_v43  ;;  %v2997_v42 = vstv %s2996_s10  ;;  %v3000_v24 = vstv %s2999_s22  ;;  %s3581_s10 = scvt.s32.f32 %s3580_s24 }
 0xa9e   : > { %v2921_v33 = vpop.f32.mrf.mxu0  ;;  %v2968_v54 = vadd.f32 %v2960_v26, %v7375_v45  ;;  %v3001_v43 = vmul.f32 %v3000_v24, %v6709_v55  ;;  %s4165_s24 = scalar_select %p4164_p3, 1, 0 }
 0xa9f   : > { %v2962_v3 = vpop.f32.mrf.mxu1  ;;  %5001 = vpow2.f32 %v4581_v27  ;;  %v4582_v4 = vmul.f32 -1.442695, %v2966_v37  ;;  %s3584_s22 = ssub.f32 1.0, %s3581_s10 }
 0xaa0   : > { %v2922_v23 = vpop.f32.mrf.mxu0  ;;  %v4583_v5 = vmul.f32 -1.442695, %v2968_v54 }
 0xaa1   : > { %v2963_v29 = vpop.f32.mrf.mxu1  ;;  %5003 = vpow2.f32 %v4582_v4 }
 0xaa2   : > { %5005 = vtanh.f32 %v2967_v39  ;;  %v3004_v29 = vmul.f32 %v3000_v24, %v6712_v31 }
 0xaa3   : > { %5007 = vpow2.f32 %v4583_v5 }
 0xaac   : > { %v5002_v16 = vpop.eup %5001 }
 0xaad   : > { %v2972_v47 = vadd.f32 1.0, %v5002_v16 }
 0xaae   : > { %v5004_v17 = vpop.eup %5003 }
 0xaaf   : > { %5009 = vrcp.f32 %v2972_v47  ;;  %v2978_v11 = vadd.f32 1.0, %v5004_v17  ;;  %v5006_v40 = vpop.eup %5005 }
 0xab0   : > { %v5008_v53 = vpop.eup %5007 }
 0xab1   : > { %5011 = vrcp.f32 %v2978_v11  ;;  %v2985_v36 = vadd.f32 1.0, %v5008_v53 }
 0xab3   : > { %5013 = vrcp.f32 %v2985_v36 }
 0xabc   : > { %v5010_v61 = vpop.eup %5009 }
 0xabd   : > { %v2989_v50 = vmul.f32 %v5010_v61, %v5006_v40 }
 0xabe   : > { %v5012_v32 = vpop.eup %5011 }
 0xabf   : > { %v2988_v48 = vmul.f32 %v5012_v32, %v6709_v55 }
 0xac0   : > { %v5014_v33 = vpop.eup %5013 }
 0xac1   : > { %v2990_v26 = vadd.f32 %v2989_v50, %v2988_v48  ;;  %v7377_v48 = vld [vmem:[#allocation52_spill] sm:$0xff] }
 0xac3   : > { %5015 = vtanh.f32 %v2990_v26  ;;  %v2998_v27 = vmul.f32 %v2997_v42, %v2990_v26 }
 0xac5   : > { %v6774_v37 = vadd.f32 %v3001_v43, %v2998_v27  ;;  %v7378_v43 = vld [vmem:[#allocation54_spill] sm:$0xff] }
 0xad0   : > { %v5016_v3 = vpop.eup %5015 }
 0xad1   : > { %v2992_v4 = vmul.f32 %v5016_v3, %v5014_v33 }
 0xad3   : > { %v3003_v23 = vmul.f32 %v2997_v42, %v2992_v4 }
 0xad5   : > { %v6777_v45 = vadd.f32 %v3004_v29, %v3003_v23 }
 0xad7   : > { %v3007_v54 = vcombine.high %v6777_v45, %v6777_v45  ;;  %v3014_v38 = vrot.slane %v6777_v45, %v6062_v44  ;;  %v3077_v55 = vpack.c.bf16 %v6777_v45, %v6777_v45 }
 0xad9   : > { %v3021_v39 = vrot.slane %v3007_v54, %v6062_v44  ;;  %v3022_v5 = vcombine.high %v3014_v38, %v3014_v38  ;;  %v3030_v16 = vrot.slane %v3014_v38, %v6062_v44  ;;  %4584 = vst.sshfl [vmem:[%s5667_s13 + $0x9] sm:$0x1 pattern:$0x73625140] %v3014_v38  ;;  %3111 = vmatmul.mubr.bf16.vlgmr.msra.gmra.mxu0 %v3077_v55  ;;  %v7379_v38 = vld [vmem:[#allocation55_spill] sm:$0xff] }
 0xada   : > { %3152 = vmatmul.mubr.bf16.vlgmr.msra.gmra.mxu1 %v3077_v55  ;;  %3274 = vmatpush1.bf16.msra.mxu0 %v6598_v18 }
 0xadb   : > { %3315 = vmatpush1.bf16.msra.mxu1 %v6601_v49  ;;  %v3023_v31 = vcombine.high %v3021_v39, %v3021_v39  ;;  %v3037_v47 = vrot.slane %v3021_v39, %v6062_v44  ;;  %v3044_v17 = vrot.slane %v3022_v5, %v6062_v44  ;;  %v3052_v11 = vcombine.high %v3030_v16, %v3030_v16 }
 0xadc   : > { %4585 = vst.sshfl [vmem:[%s5667_s13 + $0x19] sm:$0x1 pattern:$0x73625140] %v3022_v5  ;;  %3275 = vmatprep.subr.bf16.mxu0 %v6608_v30  ;;  %3316 = vmatprep.subr.bf16.mxu1 %v6611_v60 }
 0xadd   : > { %4586 = vst.sshfl [vmem:[%s5667_s13 + $0x49] sm:$0x1 pattern:$0x73625140] %v3021_v39  ;;  %3305 = vmatprep.mubr.bf16.mxu0 %v7347_v2  ;;  %v3051_v40 = vrot.slane %v3023_v31, %v6062_v44  ;;  %v3053_v53 = vcombine.high %v3037_v47, %v3037_v47  ;;  %v3054_v61 = vcombine.high %v3044_v17, %v3044_v17  ;;  %3066 = vst [vmem:[%s5667_s13 + $0x29] sm:$0x1] %v3052_v11 }
 0xade   : > { %4587 = vst.sshfl [vmem:[%s5667_s13 + $0x59] sm:$0x1 pattern:$0x73625140] %v3023_v31  ;;  %3346 = vmatprep.mubr.bf16.mxu1 %v7347_v2  ;;  %3276 = vmatpush1.bf16.msra.mxu0 %v6619_v46  ;;  %v7380_v39 = vld [vmem:[#allocation53_spill] sm:$0xff] }
 0xadf   : > { %3317 = vmatpush1.bf16.msra.mxu1 %v6622_v10  ;;  %v3055_v50 = vcombine.high %v3051_v40, %v3051_v40  ;;  %3067 = vst [vmem:[%s5667_s13 + $0x39] sm:$0x1] %v3054_v61  ;;  %3070 = vst [vmem:[%s5667_s13 + $0x69] sm:$0x1] %v3053_v53  ;;  %3277 = vmatprep.subr.bf16.mxu0 %v6627_v51 }
 0xae0   : > { %3318 = vmatprep.subr.bf16.mxu1 %v6630_v52 }
 0xae1   : > { %3071 = vst [vmem:[%s5667_s13 + $0x79] sm:$0x1] %v3055_v50 }
 0xae2   : > { %3278 = vmatpush1.bf16.msra.mxu0 %v6634_v56 }
 0xae3   : > { %3319 = vmatpush1.bf16.msra.mxu1 %v6637_v57  ;;  %3279 = vmatprep.subr.bf16.mxu0 %v6640_v58 }
 0xae4   : > { %3320 = vmatprep.subr.bf16.mxu1 %v6643_v59 }
 0xae6   : > { %3280 = vmatpush1.bf16.msra.mxu0 %v6646_v62 }
 0xae7   : > { %3321 = vmatpush1.bf16.msra.mxu1 %v6649_v63  ;;  %3281 = vmatprep.subr.bf16.mxu0 %v6652_v0 }
 0xae8   : > { %3322 = vmatprep.subr.bf16.mxu1 %v6655_v1 }
 0xaea   : > { %3282 = vmatpush1.bf16.msra.mxu0 %v6658_v6 }
 0xaeb   : > { %3323 = vmatpush1.bf16.msra.mxu1 %v6661_v7  ;;  %3283 = vmatprep.subr.bf16.mxu0 %v6664_v8 }
 0xaec   : > { %3324 = vmatprep.subr.bf16.mxu1 %v6667_v9 }
 0xaee   : > { %3284 = vmatpush1.bf16.msra.mxu0 %v6670_v12 }
 0xaef   : > { %3325 = vmatpush1.bf16.msra.mxu1 %v6673_v13  ;;  %3285 = vmatprep.subr.bf16.mxu0 %v6676_v14 }
 0xaf0   : > { %3326 = vmatprep.subr.bf16.mxu1 %v6679_v15 }
 0xaf2   : > { %3286 = vmatpush1.bf16.msra.mxu0 %v6682_v19 }
 0xaf3   : > { %3327 = vmatpush1.bf16.msra.mxu1 %v6685_v20  ;;  %3287 = vmatprep.subr.bf16.mxu0 %v6688_v21 }
 0xaf4   : > { %3328 = vmatprep.subr.bf16.mxu1 %v6691_v22 }
 0xaf6   : > { %3288 = vmatpush1.bf16.msra.mxu0 %v6694_v25 }
 0xaf7   : > { %3329 = vmatpush1.bf16.msra.mxu1 %v6697_v35  ;;  %3468 = vmatprep.subr.bf16.mxu0 %v6571_v28 }
 0xaf8   : > { %3509 = vmatprep.subr.bf16.mxu1 %v6574_v41 }
 0xb99   : > { %v3112_v32 = vpop.f32.mrf.mxu0 }
 0xb9a   : > { %v3153_v36 = vpop.f32.mrf.mxu1  ;;  %v3160_v42 = vadd.f32 %v3112_v32, %v7377_v48 }
 0xb9b   : > { %v3114_v24 = vpop.f32.mrf.mxu0  ;;  %v3162_v5 = vadd.f32 %v3153_v36, %v7380_v39 }
 0xb9c   : > { %v3155_v26 = vpop.f32.mrf.mxu1  ;;  %v4588_v27 = vmul.f32 -1.442695, %v3160_v42  ;;  %v3161_v33 = vadd.f32 %v3114_v24, %v7378_v43  ;;  %v3192_v42 = vstv %s3191_s18  ;;  %v3195_v24 = vstv %s3194_s26  ;;  %s3776_s18 = scvt.s32.f32 %s3775_s25 }
 0xb9d   : > { %v3116_v3 = vpop.f32.mrf.mxu0  ;;  %v3163_v55 = vadd.f32 %v3155_v26, %v7379_v38  ;;  %v3196_v43 = vmul.f32 %v3195_v24, %v6774_v37 }
 0xb9e   : > { %v3157_v4 = vpop.f32.mrf.mxu1  ;;  %5017 = vpow2.f32 %v4588_v27  ;;  %v4589_v23 = vmul.f32 -1.442695, %v3161_v33  ;;  %s3779_s26 = ssub.f32 1.0, %s3776_s18 }
 0xb9f   : > { %v3117_v29 = vpop.f32.mrf.mxu0  ;;  %v4590_v16 = vmul.f32 -1.442695, %v3163_v55 }
 0xba0   : > { %v3158_v54 = vpop.f32.mrf.mxu1  ;;  %5019 = vpow2.f32 %v4589_v23 }
 0xba1   : > { %5021 = vtanh.f32 %v3162_v5  ;;  %v3199_v54 = vmul.f32 %v3195_v24, %v6777_v45 }
 0xba2   : > { %5023 = vpow2.f32 %v4590_v16 }
 0xbab   : > { %v5018_v31 = vpop.eup %5017 }
 0xbac   : > { %v3167_v47 = vadd.f32 1.0, %v5018_v31 }
 0xbad   : > { %v5020_v17 = vpop.eup %5019 }
 0xbae   : > { %5025 = vrcp.f32 %v3167_v47  ;;  %v3173_v11 = vadd.f32 1.0, %v5020_v17  ;;  %v5022_v40 = vpop.eup %5021 }
 0xbaf   : > { %v5024_v53 = vpop.eup %5023 }
 0xbb0   : > { %5027 = vrcp.f32 %v3173_v11  ;;  %v3180_v36 = vadd.f32 1.0, %v5024_v53 }
 0xbb2   : > { %5029 = vrcp.f32 %v3180_v36 }
 0xbbb   : > { %v5026_v61 = vpop.eup %5025 }
 0xbbc   : > { %v3184_v50 = vmul.f32 %v5026_v61, %v5022_v40 }
 0xbbd   : > { %v5028_v32 = vpop.eup %5027 }
 0xbbe   : > { %v3183_v48 = vmul.f32 %v5028_v32, %v6774_v37 }
 0xbbf   : > { %v5030_v3 = vpop.eup %5029 }
 0xbc0   : > { %v3185_v26 = vadd.f32 %v3184_v50, %v3183_v48  ;;  %v7381_v48 = vld [vmem:[#allocation56_spill] sm:$0xff] }
 0xbc2   : > { %5031 = vtanh.f32 %v3185_v26  ;;  %v3193_v27 = vmul.f32 %v3192_v42, %v3185_v26 }
 0xbc4   : > { %v6839_v33 = vadd.f32 %v3196_v43, %v3193_v27  ;;  %v7382_v43 = vld [vmem:[#allocation58_spill] sm:$0xff] }
 0xbcf   : > { %v5032_v4 = vpop.eup %5031 }
 0xbd0   : > { %v3187_v23 = vmul.f32 %v5032_v4, %v5030_v3 }
 0xbd2   : > { %v3198_v29 = vmul.f32 %v3192_v42, %v3187_v23 }
 0xbd4   : > { %v6842_v38 = vadd.f32 %v3199_v54, %v3198_v29 }
 0xbd6   : > { %v3202_v55 = vcombine.high %v6842_v38, %v6842_v38  ;;  %v3209_v39 = vrot.slane %v6842_v38, %v6062_v44  ;;  %v3272_v37 = vpack.c.bf16 %v6842_v38, %v6842_v38 }
 0xbd8   : > { %v3216_v5 = vrot.slane %v3202_v55, %v6062_v44  ;;  %v3217_v16 = vcombine.high %v3209_v39, %v3209_v39  ;;  %v3225_v31 = vrot.slane %v3209_v39, %v6062_v44  ;;  %4591 = vst.sshfl [vmem:[%s5667_s13 + $0xa] sm:$0x1 pattern:$0x73625140] %v3209_v39  ;;  %3306 = vmatmul.mubr.bf16.vlgmr.msra.gmra.mxu0 %v3272_v37 }
 0xbd9   : > { %3347 = vmatmul.mubr.bf16.vlgmr.msra.gmra.mxu1 %v3272_v37  ;;  %3469 = vmatpush1.bf16.msra.mxu0 %v6598_v18 }
 0xbda   : > { %3510 = vmatpush1.bf16.msra.mxu1 %v6601_v49  ;;  %v3218_v45 = vcombine.high %v3216_v5, %v3216_v5  ;;  %v3232_v47 = vrot.slane %v3216_v5, %v6062_v44  ;;  %v3239_v17 = vrot.slane %v3217_v16, %v6062_v44  ;;  %v3247_v11 = vcombine.high %v3225_v31, %v3225_v31 }
 0xbdb   : > { %4592 = vst.sshfl [vmem:[%s5667_s13 + $0x1a] sm:$0x1 pattern:$0x73625140] %v3217_v16  ;;  %3470 = vmatprep.subr.bf16.mxu0 %v6608_v30  ;;  %3511 = vmatprep.subr.bf16.mxu1 %v6611_v60 }
 0xbdc   : > { %4593 = vst.sshfl [vmem:[%s5667_s13 + $0x4a] sm:$0x1 pattern:$0x73625140] %v3216_v5  ;;  %3500 = vmatprep.mubr.bf16.mxu0 %v7347_v2  ;;  %v3246_v40 = vrot.slane %v3218_v45, %v6062_v44  ;;  %v3248_v53 = vcombine.high %v3232_v47, %v3232_v47  ;;  %v3249_v61 = vcombine.high %v3239_v17, %v3239_v17  ;;  %3261 = vst [vmem:[%s5667_s13 + $0x2a] sm:$0x1] %v3247_v11 }
 0xbdd   : > { %4594 = vst.sshfl [vmem:[%s5667_s13 + $0x5a] sm:$0x1 pattern:$0x73625140] %v3218_v45  ;;  %3541 = vmatprep.mubr.bf16.mxu1 %v7347_v2  ;;  %3471 = vmatpush1.bf16.msra.mxu0 %v6619_v46 }
 0xbde   : > { %3512 = vmatpush1.bf16.msra.mxu1 %v6622_v10  ;;  %v3250_v50 = vcombine.high %v3246_v40, %v3246_v40  ;;  %3262 = vst [vmem:[%s5667_s13 + $0x3a] sm:$0x1] %v3249_v61  ;;  %3265 = vst [vmem:[%s5667_s13 + $0x6a] sm:$0x1] %v3248_v53  ;;  %3472 = vmatprep.subr.bf16.mxu0 %v6627_v51 }
 0xbdf   : > { %3513 = vmatprep.subr.bf16.mxu1 %v6630_v52 }
 0xbe0   : > { %3266 = vst [vmem:[%s5667_s13 + $0x7a] sm:$0x1] %v3250_v50 }
 0xbe1   : > { %3473 = vmatpush1.bf16.msra.mxu0 %v6634_v56 }
 0xbe2   : > { %3514 = vmatpush1.bf16.msra.mxu1 %v6637_v57  ;;  %3474 = vmatprep.subr.bf16.mxu0 %v6640_v58 }
 0xbe3   : > { %3515 = vmatprep.subr.bf16.mxu1 %v6643_v59 }
 0xbe5   : > { %3475 = vmatpush1.bf16.msra.mxu0 %v6646_v62 }
 0xbe6   : > { %3516 = vmatpush1.bf16.msra.mxu1 %v6649_v63  ;;  %3476 = vmatprep.subr.bf16.mxu0 %v6652_v0 }
 0xbe7   : > { %3517 = vmatprep.subr.bf16.mxu1 %v6655_v1 }
 0xbe9   : > { %3477 = vmatpush1.bf16.msra.mxu0 %v6658_v6 }
 0xbea   : > { %3518 = vmatpush1.bf16.msra.mxu1 %v6661_v7  ;;  %3478 = vmatprep.subr.bf16.mxu0 %v6664_v8 }
 0xbeb   : > { %3519 = vmatprep.subr.bf16.mxu1 %v6667_v9 }
 0xbed   : > { %3479 = vmatpush1.bf16.msra.mxu0 %v6670_v12 }
 0xbee   : > { %3520 = vmatpush1.bf16.msra.mxu1 %v6673_v13  ;;  %3480 = vmatprep.subr.bf16.mxu0 %v6676_v14 }
 0xbef   : > { %3521 = vmatprep.subr.bf16.mxu1 %v6679_v15 }
 0xbf1   : > { %3481 = vmatpush1.bf16.msra.mxu0 %v6682_v19 }
 0xbf2   : > { %3522 = vmatpush1.bf16.msra.mxu1 %v6685_v20  ;;  %3482 = vmatprep.subr.bf16.mxu0 %v6688_v21 }
 0xbf3   : > { %3523 = vmatprep.subr.bf16.mxu1 %v6691_v22 }
 0xbf5   : > { %3483 = vmatpush1.bf16.msra.mxu0 %v6694_v25 }
 0xbf6   : > { %3524 = vmatpush1.bf16.msra.mxu1 %v6697_v35  ;;  %3663 = vmatprep.subr.bf16.mxu0 %v6571_v28  ;;  %v7383_v28 = vld [vmem:[#allocation59_spill] sm:$0xff] }
 0xbf7   : > { %3704 = vmatprep.subr.bf16.mxu1 %v6574_v41  ;;  %v7384_v41 = vld [vmem:[#allocation57_spill] sm:$0xff] }
 0xc98   : > { %v3307_v32 = vpop.f32.mrf.mxu0 }
 0xc99   : > { %v3348_v36 = vpop.f32.mrf.mxu1  ;;  %v3355_v42 = vadd.f32 %v3307_v32, %v7381_v48  ;;  %v3390_v48 = vstv %s3389_s11 }
 0xc9a   : > { %v3309_v24 = vpop.f32.mrf.mxu0  ;;  %v3357_v37 = vadd.f32 %v3348_v36, %v7384_v41  ;;  %v3387_v36 = vstv %s3386_s17  ;;  %s3971_s17 = scvt.s32.f32 %s3970_s19 }
 0xc9b   : > { %v3350_v26 = vpop.f32.mrf.mxu1  ;;  %v4595_v27 = vmul.f32 -1.442695, %v3355_v42  ;;  %v3356_v3 = vadd.f32 %v3309_v24, %v7382_v43 }
 0xc9c   : > { %v3311_v4 = vpop.f32.mrf.mxu0  ;;  %v3358_v39 = vadd.f32 %v3350_v26, %v7383_v28  ;;  %v3391_v26 = vmul.f32 %v3390_v48, %v6839_v33  ;;  %s3974_s11 = ssub.f32 1.0, %s3971_s17 }
 0xc9d   : > { %v3352_v23 = vpop.f32.mrf.mxu1  ;;  %5033 = vpow2.f32 %v4595_v27  ;;  %v4596_v29 = vmul.f32 -1.442695, %v3356_v3 }
 0xc9e   : > { %v3312_v54 = vpop.f32.mrf.mxu0  ;;  %v4597_v5 = vmul.f32 -1.442695, %v3358_v39 }
 0xc9f   : > { %v3353_v55 = vpop.f32.mrf.mxu1  ;;  %5035 = vpow2.f32 %v4596_v29  ;;  %v3394_v29 = vmul.f32 %v3390_v48, %v6842_v38 }
 0xca0   : > { %5037 = vtanh.f32 %v3357_v37 }
 0xca1   : > { %5039 = vpow2.f32 %v4597_v5 }
 0xcaa   : > { %v5034_v16 = vpop.eup %5033 }
 0xcab   : > { %v3362_v31 = vadd.f32 1.0, %v5034_v16 }
 0xcac   : > { %v5036_v45 = vpop.eup %5035 }
 0xcad   : > { %5041 = vrcp.f32 %v3362_v31  ;;  %v3368_v47 = vadd.f32 1.0, %v5036_v45  ;;  %v5038_v17 = vpop.eup %5037 }
 0xcae   : > { %v5040_v11 = vpop.eup %5039 }
 0xcaf   : > { %5043 = vrcp.f32 %v3368_v47  ;;  %v3375_v50 = vadd.f32 1.0, %v5040_v11 }
 0xcb1   : > { %5045 = vrcp.f32 %v3375_v50  ;;  %v3585_v50 = vstv %s3584_s22 }
 0xcba   : > { %v5042_v40 = vpop.eup %5041 }
 0xcbb   : > { %v3379_v53 = vmul.f32 %v5042_v40, %v5038_v17 }
 0xcbc   : > { %v5044_v61 = vpop.eup %5043 }
 0xcbd   : > { %v3378_v32 = vmul.f32 %v5044_v61, %v6839_v33  ;;  %v3582_v61 = vstv %s3581_s10  ;;  %s4166_s10 = scvt.s32.f32 %s4165_s24 }
 0xcbe   : > { %v5046_v43 = vpop.eup %5045 }
 0xcbf   : > { %v3380_v42 = vadd.f32 %v3379_v53, %v3378_v32  ;;  %s4169_s22 = ssub.f32 1.0, %s4166_s10 }
 0xcc1   : > { %5047 = vtanh.f32 %v3380_v42  ;;  %v3388_v24 = vmul.f32 %v3387_v36, %v3380_v42 }
 0xcc3   : > { %v6904_v27 = vadd.f32 %v3391_v26, %v3388_v24 }
 0xcc5   : > { %v3586_v48 = vmul.f32 %v3585_v50, %v6904_v27 }
 0xcce   : > { %v5048_v3 = vpop.eup %5047 }
 0xccf   : > { %v3382_v4 = vmul.f32 %v5048_v3, %v5046_v43 }
 0xcd1   : > { %v3393_v23 = vmul.f32 %v3387_v36, %v3382_v4 }
 0xcd3   : > { %v6907_v54 = vadd.f32 %v3394_v29, %v3393_v23 }
 0xcd5   : > { %v3397_v55 = vcombine.high %v6907_v54, %v6907_v54  ;;  %v3404_v28 = vrot.slane %v6907_v54, %v6062_v44  ;;  %v3467_v33 = vpack.c.bf16 %v6907_v54, %v6907_v54  ;;  %v3589_v4 = vmul.f32 %v3585_v50, %v6907_v54  ;;  %v6987_v54 = vld [vmem:[#allocation11 + $0xe0] ss:$16 sps:$4 sm:$0xff]  }
 0xcd7   : > { %v3411_v39 = vrot.slane %v3397_v55, %v6062_v44  ;;  %v3412_v41 = vcombine.high %v3404_v28, %v3404_v28  ;;  %v3420_v37 = vrot.slane %v3404_v28, %v6062_v44  ;;  %4598 = vst.sshfl [vmem:[%s5667_s13 + $0xb] sm:$0x1 pattern:$0x73625140] %v3404_v28  ;;  %3501 = vmatmul.mubr.bf16.vlgmr.msra.gmra.mxu0 %v3467_v33 }
 0xcd8   : > { %3542 = vmatmul.mubr.bf16.vlgmr.msra.gmra.mxu1 %v3467_v33  ;;  %3664 = vmatpush1.bf16.msra.mxu0 %v6598_v18 }
 0xcd9   : > { %3705 = vmatpush1.bf16.msra.mxu1 %v6601_v49  ;;  %v3413_v38 = vcombine.high %v3411_v39, %v3411_v39  ;;  %v3427_v5 = vrot.slane %v3411_v39, %v6062_v44  ;;  %v3434_v16 = vrot.slane %v3412_v41, %v6062_v44  ;;  %v3442_v31 = vcombine.high %v3420_v37, %v3420_v37 }
 0xcda   : > { %4599 = vst.sshfl [vmem:[%s5667_s13 + $0x1b] sm:$0x1 pattern:$0x73625140] %v3412_v41  ;;  %3665 = vmatprep.subr.bf16.mxu0 %v6608_v30  ;;  %3706 = vmatprep.subr.bf16.mxu1 %v6611_v60  ;;  %v6960_v30 = vld [vmem:[#allocation11 + $0xe4] ss:$16 sps:$4 sm:$0xff]  }
 0xcdb   : > { %4600 = vst.sshfl [vmem:[%s5667_s13 + $0x4b] sm:$0x1 pattern:$0x73625140] %v3411_v39  ;;  %3695 = vmatprep.mubr.bf16.mxu0 %v7347_v2  ;;  %v3441_v18 = vrot.slane %v3413_v38, %v6062_v44  ;;  %v3443_v49 = vcombine.high %v3427_v5, %v3427_v5  ;;  %v3444_v45 = vcombine.high %v3434_v16, %v3434_v16  ;;  %3456 = vst [vmem:[%s5667_s13 + $0x2b] sm:$0x1] %v3442_v31 }
 0xcdc   : > { %4601 = vst.sshfl [vmem:[%s5667_s13 + $0x5b] sm:$0x1 pattern:$0x73625140] %v3413_v38  ;;  %3736 = vmatprep.mubr.bf16.mxu1 %v7347_v2  ;;  %3666 = vmatpush1.bf16.msra.mxu0 %v6619_v46  ;;  %v6963_v60 = vld [vmem:[#allocation11 + $0xec] ss:$16 sps:$4 sm:$0xff]  }
 0xcdd   : > { %3707 = vmatpush1.bf16.msra.mxu1 %v6622_v10  ;;  %v3445_v47 = vcombine.high %v3441_v18, %v3441_v18  ;;  %3457 = vst [vmem:[%s5667_s13 + $0x3b] sm:$0x1] %v3444_v45  ;;  %3460 = vst [vmem:[%s5667_s13 + $0x6b] sm:$0x1] %v3443_v49  ;;  %3667 = vmatprep.subr.bf16.mxu0 %v6627_v51  ;;  %v7385_v51 = vld [vmem:[#allocation60_spill] sm:$0xff] }
 0xcde   : > { %3708 = vmatprep.subr.bf16.mxu1 %v6630_v52  ;;  %v6990_v41 = vld [vmem:[#allocation11 + $0xe8] ss:$16 sps:$4 sm:$0xff]   ;;  %v6997_v31 = vld [vmem:[#allocation11 + $0xc4] ss:$16 sps:$4 sm:$0xff]   ;;  %v7000_v18 = vld [vmem:[#allocation11 + $0xcc] ss:$16 sps:$4 sm:$0xff]  }
 0xcdf   : > { %3461 = vst [vmem:[%s5667_s13 + $0x7b] sm:$0x1] %v3445_v47 }
 0xce0   : > { %3668 = vmatpush1.bf16.msra.mxu0 %v6634_v56 }
 0xce1   : > { %3709 = vmatpush1.bf16.msra.mxu1 %v6637_v57  ;;  %3669 = vmatprep.subr.bf16.mxu0 %v6640_v58 }
 0xce2   : > { %3710 = vmatprep.subr.bf16.mxu1 %v6643_v59  ;;  %v7386_v59 = vld [vmem:[#allocation62_spill] sm:$0xff] }
 0xce4   : > { %3670 = vmatpush1.bf16.msra.mxu0 %v6646_v62 }
 0xce5   : > { %3711 = vmatpush1.bf16.msra.mxu1 %v6649_v63  ;;  %3671 = vmatprep.subr.bf16.mxu0 %v6652_v0 }
 0xce6   : > { %3712 = vmatprep.subr.bf16.mxu1 %v6655_v1 }
 0xce8   : > { %3672 = vmatpush1.bf16.msra.mxu0 %v6658_v6 }
 0xce9   : > { %3713 = vmatpush1.bf16.msra.mxu1 %v6661_v7  ;;  %3673 = vmatprep.subr.bf16.mxu0 %v6664_v8  ;;  %v7387_v8 = vld [vmem:[#allocation63_spill] sm:$0xff] }
 0xcea   : > { %3714 = vmatprep.subr.bf16.mxu1 %v6667_v9 }
 0xcec   : > { %3674 = vmatpush1.bf16.msra.mxu0 %v6670_v12  ;;  %v7388_v12 = vld [vmem:[#allocation61_spill] sm:$0xff] }
 0xced   : > { %3715 = vmatpush1.bf16.msra.mxu1 %v6673_v13  ;;  %3675 = vmatprep.subr.bf16.mxu0 %v6676_v14 }
 0xcee   : > { %3716 = vmatprep.subr.bf16.mxu1 %v6679_v15 }
 0xcf0   : > { %3676 = vmatpush1.bf16.msra.mxu0 %v6682_v19 }
 0xcf1   : > { %3717 = vmatpush1.bf16.msra.mxu1 %v6685_v20  ;;  %3677 = vmatprep.subr.bf16.mxu0 %v6688_v21 }
 0xcf2   : > { %3718 = vmatprep.subr.bf16.mxu1 %v6691_v22 }
 0xcf4   : > { %3678 = vmatpush1.bf16.msra.mxu0 %v6694_v25 }
 0xcf5   : > { %3719 = vmatpush1.bf16.msra.mxu1 %v6697_v35  ;;  %3858 = vmatprep.subr.bf16.mxu0 %v6960_v30 }
 0xcf6   : > { %3899 = vmatprep.subr.bf16.mxu1 %v6963_v60 }
 0xd97   : > { %v3502_v46 = vpop.f32.mrf.mxu0 }
 0xd98   : > { %v3543_v10 = vpop.f32.mrf.mxu1  ;;  %v3550_v52 = vadd.f32 %v3502_v46, %v7385_v51  ;;  %v7008_v46 = vld [vmem:[#allocation11 + $0xc0] ss:$16 sps:$4 sm:$0xff]  }
 0xd99   : > { %v3504_v56 = vpop.f32.mrf.mxu0  ;;  %v3552_v13 = vadd.f32 %v3543_v10, %v7388_v12  ;;  %v7011_v10 = vld [vmem:[#allocation11 + $0xc8] ss:$16 sps:$4 sm:$0xff]   ;;  %v7056_v12 = vld [vmem:[#allocation11 + $0x4c] ss:$16 sps:$4 sm:$0xff]  }
 0xd9a   : > { %v3545_v57 = vpop.f32.mrf.mxu1  ;;  %v4602_v58 = vmul.f32 -1.442695, %v3550_v52  ;;  %v3551_v62 = vadd.f32 %v3504_v56, %v7386_v59  ;;  %v7016_v52 = vld [vmem:[#allocation11 + $0xa4] ss:$16 sps:$4 sm:$0xff]   ;;  %v7019_v56 = vld [vmem:[#allocation11 + $0xac] ss:$16 sps:$4 sm:$0xff]  }
 0xd9b   : > { %v3506_v63 = vpop.f32.mrf.mxu0  ;;  %v3553_v9 = vadd.f32 %v3545_v57, %v7387_v8  ;;  %v7023_v57 = vld [vmem:[#allocation11 + $0xa0] ss:$16 sps:$4 sm:$0xff]   ;;  %v7029_v59 = vld [vmem:[#allocation11 + $0x84] ss:$16 sps:$4 sm:$0xff]   ;;  %v7050_v8 = vld [vmem:[#allocation11 + $0x68] ss:$16 sps:$4 sm:$0xff]  }
 0xd9c   : > { %v3547_v0 = vpop.f32.mrf.mxu1  ;;  %5049 = vpow2.f32 %v4602_v58  ;;  %v4603_v1 = vmul.f32 -1.442695, %v3551_v62  ;;  %v7026_v58 = vld [vmem:[#allocation11 + $0xa8] ss:$16 sps:$4 sm:$0xff]   ;;  %v7032_v62 = vld [vmem:[#allocation11 + $0x8c] ss:$16 sps:$4 sm:$0xff]  }
 0xd9d   : > { %v3507_v6 = vpop.f32.mrf.mxu0  ;;  %v4604_v14 = vmul.f32 -1.442695, %v3553_v9  ;;  %v7035_v63 = vld [vmem:[#allocation11 + $0x80] ss:$16 sps:$4 sm:$0xff]   ;;  %v7038_v0 = vld [vmem:[#allocation11 + $0x88] ss:$16 sps:$4 sm:$0xff]  }
 0xd9e   : > { %v3548_v7 = vpop.f32.mrf.mxu1  ;;  %5051 = vpow2.f32 %v4603_v1  ;;  %v7041_v1 = vld [vmem:[#allocation11 + $0x64] ss:$16 sps:$4 sm:$0xff]   ;;  %v7044_v6 = vld [vmem:[#allocation11 + $0x6c] ss:$16 sps:$4 sm:$0xff]  }
 0xd9f   : > { %5053 = vtanh.f32 %v3552_v13  ;;  %v7047_v7 = vld [vmem:[#allocation11 + $0x60] ss:$16 sps:$4 sm:$0xff]   ;;  %v7053_v9 = vld [vmem:[#allocation11 + $0x44] ss:$16 sps:$4 sm:$0xff]  }
 0xda0   : > { %5055 = vpow2.f32 %v4604_v14  ;;  %v7059_v13 = vld [vmem:[#allocation11 + $0x40] ss:$16 sps:$4 sm:$0xff]   ;;  %v7062_v14 = vld [vmem:[#allocation11 + $0x48] ss:$16 sps:$4 sm:$0xff]  }
 0xda9   : > { %v5050_v15 = vpop.eup %5049 }
 0xdaa   : > { %v3557_v19 = vadd.f32 1.0, %v5050_v15  ;;  %v7065_v15 = vld [vmem:[#allocation11 + $0x24] ss:$16 sps:$4 sm:$0xff]  }
 0xdab   : > { %v5052_v20 = vpop.eup %5051 }
 0xdac   : > { %5057 = vrcp.f32 %v3557_v19  ;;  %v3563_v21 = vadd.f32 1.0, %v5052_v20  ;;  %v5054_v22 = vpop.eup %5053  ;;  %v7068_v19 = vld [vmem:[#allocation11 + $0x2c] ss:$16 sps:$4 sm:$0xff]   ;;  %v7071_v20 = vld [vmem:[#allocation11 + $0x20] ss:$16 sps:$4 sm:$0xff]  }
 0xdad   : > { %v5056_v25 = vpop.eup %5055 }
 0xdae   : > { %5059 = vrcp.f32 %v3563_v21  ;;  %v3570_v40 = vadd.f32 1.0, %v5056_v25  ;;  %v7074_v21 = vld [vmem:[#allocation11 + $0x28] ss:$16 sps:$4 sm:$0xff]   ;;  %v7080_v25 = vld [vmem:[#allocation11 + $0xc] ss:$16 sps:$4 sm:$0xff]  }
 0xdb0   : > { %5061 = vrcp.f32 %v3570_v40 }
 0xdb9   : > { %v5058_v35 = vpop.eup %5057 }
 0xdba   : > { %v3574_v17 = vmul.f32 %v5058_v35, %v5054_v22  ;;  %v7077_v22 = vld [vmem:[#allocation11 + $0x4] ss:$16 sps:$4 sm:$0xff]   ;;  %v7083_v35 = vld [vmem:[#allocation11] ss:$16 sps:$4 sm:$0xff]  }
 0xdbb   : > { %v5060_v11 = vpop.eup %5059 }
 0xdbc   : > { %v3573_v53 = vmul.f32 %v5060_v11, %v6904_v27 }
 0xdbd   : > { %v5062_v24 = vpop.eup %5061 }
 0xdbe   : > { %v3575_v32 = vadd.f32 %v3574_v17, %v3573_v53  ;;  %v7086_v17 = vld [vmem:[#allocation11 + $0x8] ss:$16 sps:$4 sm:$0xff]  }
 0xdbf   : > { %v7389_v53 = vld [vmem:[#allocation64_spill] sm:$0xff] }
 0xdc0   : > { %5063 = vtanh.f32 %v3575_v32  ;;  %v3583_v36 = vmul.f32 %v3582_v61, %v3575_v32 }
 0xdc2   : > { %v6973_v42 = vadd.f32 %v3586_v48, %v3583_v36  ;;  %v7390_v48 = vld [vmem:[#allocation66_spill] sm:$0xff] }
 0xdcd   : > { %v5064_v26 = vpop.eup %5063 }
 0xdce   : > { %v3577_v43 = vmul.f32 %v5064_v26, %v5062_v24 }
 0xdd0   : > { %v3588_v3 = vmul.f32 %v3582_v61, %v3577_v43 }
 0xdd2   : > { %v6976_v23 = vadd.f32 %v3589_v4, %v3588_v3 }
 0xdd4   : > { %v3592_v29 = vcombine.high %v6976_v23, %v6976_v23  ;;  %v3599_v55 = vrot.slane %v6976_v23, %v6062_v44  ;;  %v3662_v27 = vpack.c.bf16 %v6976_v23, %v6976_v23 }
 0xdd6   : > { %v3606_v28 = vrot.slane %v3592_v29, %v6062_v44  ;;  %v3607_v33 = vcombine.high %v3599_v55, %v3599_v55  ;;  %v3615_v39 = vrot.slane %v3599_v55, %v6062_v44  ;;  %4605 = vst.sshfl [vmem:[%s5667_s13 + $0xc] sm:$0x1 pattern:$0x73625140] %v3599_v55  ;;  %3696 = vmatmul.mubr.bf16.vlgmr.msra.gmra.mxu0 %v3662_v27 }
 0xdd7   : > { %3737 = vmatmul.mubr.bf16.vlgmr.msra.gmra.mxu1 %v3662_v27  ;;  %3859 = vmatpush1.bf16.msra.mxu0 %v6987_v54 }
 0xdd8   : > { %3900 = vmatpush1.bf16.msra.mxu1 %v6990_v41  ;;  %v3608_v37 = vcombine.high %v3606_v28, %v3606_v28  ;;  %v3622_v38 = vrot.slane %v3606_v28, %v6062_v44  ;;  %v3629_v5 = vrot.slane %v3607_v33, %v6062_v44  ;;  %v3637_v16 = vcombine.high %v3615_v39, %v3615_v39 }
 0xdd9   : > { %4606 = vst.sshfl [vmem:[%s5667_s13 + $0x1c] sm:$0x1 pattern:$0x73625140] %v3607_v33  ;;  %3860 = vmatprep.subr.bf16.mxu0 %v6997_v31  ;;  %3901 = vmatprep.subr.bf16.mxu1 %v7000_v18 }
 0xdda   : > { %4607 = vst.sshfl [vmem:[%s5667_s13 + $0x4c] sm:$0x1 pattern:$0x73625140] %v3606_v28  ;;  %3890 = vmatprep.mubr.bf16.mxu0 %v7347_v2  ;;  %v3636_v49 = vrot.slane %v3608_v37, %v6062_v44  ;;  %v3638_v45 = vcombine.high %v3622_v38, %v3622_v38  ;;  %v3639_v47 = vcombine.high %v3629_v5, %v3629_v5  ;;  %3651 = vst [vmem:[%s5667_s13 + $0x2c] sm:$0x1] %v3637_v16 }
 0xddb   : > { %4608 = vst.sshfl [vmem:[%s5667_s13 + $0x5c] sm:$0x1 pattern:$0x73625140] %v3608_v37  ;;  %3931 = vmatprep.mubr.bf16.mxu1 %v7347_v2  ;;  %3861 = vmatpush1.bf16.msra.mxu0 %v7008_v46 }
 0xddc   : > { %3902 = vmatpush1.bf16.msra.mxu1 %v7011_v10  ;;  %v3640_v51 = vcombine.high %v3636_v49, %v3636_v49  ;;  %3652 = vst [vmem:[%s5667_s13 + $0x3c] sm:$0x1] %v3639_v47  ;;  %3655 = vst [vmem:[%s5667_s13 + $0x6c] sm:$0x1] %v3638_v45  ;;  %3862 = vmatprep.subr.bf16.mxu0 %v7016_v52 }
 0xddd   : > { %3903 = vmatprep.subr.bf16.mxu1 %v7019_v56 }
 0xdde   : > { %3656 = vst [vmem:[%s5667_s13 + $0x7c] sm:$0x1] %v3640_v51 }
 0xddf   : > { %3863 = vmatpush1.bf16.msra.mxu0 %v7023_v57 }
 0xde0   : > { %3904 = vmatpush1.bf16.msra.mxu1 %v7026_v58  ;;  %3864 = vmatprep.subr.bf16.mxu0 %v7029_v59 }
 0xde1   : > { %3905 = vmatprep.subr.bf16.mxu1 %v7032_v62 }
 0xde3   : > { %3865 = vmatpush1.bf16.msra.mxu0 %v7035_v63 }
 0xde4   : > { %3906 = vmatpush1.bf16.msra.mxu1 %v7038_v0  ;;  %3866 = vmatprep.subr.bf16.mxu0 %v7041_v1 }
 0xde5   : > { %3907 = vmatprep.subr.bf16.mxu1 %v7044_v6 }
 0xde7   : > { %3867 = vmatpush1.bf16.msra.mxu0 %v7047_v7 }
 0xde8   : > { %3908 = vmatpush1.bf16.msra.mxu1 %v7050_v8  ;;  %3868 = vmatprep.subr.bf16.mxu0 %v7053_v9 }
 0xde9   : > { %3909 = vmatprep.subr.bf16.mxu1 %v7056_v12 }
 0xdeb   : > { %3869 = vmatpush1.bf16.msra.mxu0 %v7059_v13 }
 0xdec   : > { %3910 = vmatpush1.bf16.msra.mxu1 %v7062_v14  ;;  %3870 = vmatprep.subr.bf16.mxu0 %v7065_v15 }
 0xded   : > { %3911 = vmatprep.subr.bf16.mxu1 %v7068_v19 }
 0xdef   : > { %3871 = vmatpush1.bf16.msra.mxu0 %v7071_v20 }
 0xdf0   : > { %3912 = vmatpush1.bf16.msra.mxu1 %v7074_v21  ;;  %3872 = vmatprep.subr.bf16.mxu0 %v7077_v22 }
 0xdf1   : > { %3913 = vmatprep.subr.bf16.mxu1 %v7080_v25 }
 0xdf3   : > { %3873 = vmatpush1.bf16.msra.mxu0 %v7083_v35 }
 0xdf4   : > { %3914 = vmatpush1.bf16.msra.mxu1 %v7086_v17  ;;  %4053 = vmatprep.subr.bf16.mxu0 %v6960_v30  ;;  %v7391_v30 = vld [vmem:[#allocation67_spill] sm:$0xff] }
 0xdf5   : > { %4094 = vmatprep.subr.bf16.mxu1 %v6963_v60  ;;  %v7392_v60 = vld [vmem:[#allocation65_spill] sm:$0xff] }
 0xe96   : > { %v3697_v11 = vpop.f32.mrf.mxu0 }
 0xe97   : > { %v3738_v40 = vpop.f32.mrf.mxu1  ;;  %v3745_v61 = vadd.f32 %v3697_v11, %v7389_v53  ;;  %v3780_v53 = vstv %s3779_s26 }
 0xe98   : > { %v3699_v50 = vpop.f32.mrf.mxu0  ;;  %v3747_v27 = vadd.f32 %v3738_v40, %v7392_v60  ;;  %v3777_v40 = vstv %s3776_s18 }
 0xe99   : > { %v3740_v32 = vpop.f32.mrf.mxu1  ;;  %v4609_v36 = vmul.f32 -1.442695, %v3745_v61  ;;  %v3746_v24 = vadd.f32 %v3699_v50, %v7390_v48 }
 0xe9a   : > { %v3701_v26 = vpop.f32.mrf.mxu0  ;;  %v3748_v55 = vadd.f32 %v3740_v32, %v7391_v30  ;;  %v3781_v32 = vmul.f32 %v3780_v53, %v6973_v42 }
 0xe9b   : > { %v3742_v43 = vpop.f32.mrf.mxu1  ;;  %5065 = vpow2.f32 %v4609_v36  ;;  %v4610_v3 = vmul.f32 -1.442695, %v3746_v24 }
 0xe9c   : > { %v3702_v4 = vpop.f32.mrf.mxu0  ;;  %v4611_v28 = vmul.f32 -1.442695, %v3748_v55 }
 0xe9d   : > { %v3743_v29 = vpop.f32.mrf.mxu1  ;;  %5067 = vpow2.f32 %v4610_v3  ;;  %v3784_v3 = vmul.f32 %v3780_v53, %v6976_v23 }
 0xe9e   : > { %5069 = vtanh.f32 %v3747_v27 }
 0xe9f   : > { %5071 = vpow2.f32 %v4611_v28 }
 0xea8   : > { %v5066_v33 = vpop.eup %5065 }
 0xea9   : > { %v3752_v39 = vadd.f32 1.0, %v5066_v33 }
 0xeaa   : > { %v5068_v37 = vpop.eup %5067 }
 0xeab   : > { %5073 = vrcp.f32 %v3752_v39  ;;  %v3758_v38 = vadd.f32 1.0, %v5068_v37  ;;  %v5070_v5 = vpop.eup %5069 }
 0xeac   : > { %v5072_v16 = vpop.eup %5071 }
 0xead   : > { %5075 = vrcp.f32 %v3758_v38  ;;  %v3765_v51 = vadd.f32 1.0, %v5072_v16  ;;  %v3972_v16 = vstv %s3971_s17 }
 0xeaf   : > { %5077 = vrcp.f32 %v3765_v51 }
 0xeb8   : > { %v5074_v49 = vpop.eup %5073 }
 0xeb9   : > { %v3769_v45 = vmul.f32 %v5074_v49, %v5070_v5  ;;  %v3975_v49 = vstv %s3974_s11 }
 0xeba   : > { %v5076_v47 = vpop.eup %5075 }
 0xebb   : > { %v3768_v11 = vmul.f32 %v5076_v47, %v6973_v42 }
 0xebc   : > { %v5078_v48 = vpop.eup %5077 }
 0xebd   : > { %v3770_v61 = vadd.f32 %v3769_v45, %v3768_v11 }
 0xebf   : > { %5079 = vtanh.f32 %v3770_v61  ;;  %v3778_v50 = vmul.f32 %v3777_v40, %v3770_v61 }
 0xec1   : > { %v7098_v36 = vadd.f32 %v3781_v32, %v3778_v50 }
 0xec3   : > { %v3976_v51 = vmul.f32 %v3975_v49, %v7098_v36 }
 0xecc   : > { %v5080_v24 = vpop.eup %5079 }
 0xecd   : > { %v3772_v26 = vmul.f32 %v5080_v24, %v5078_v48 }
 0xecf   : > { %v3783_v43 = vmul.f32 %v3777_v40, %v3772_v26 }
 0xed1   : > { %v7101_v4 = vadd.f32 %v3784_v3, %v3783_v43 }
 0xed3   : > { %v3787_v29 = vcombine.high %v7101_v4, %v7101_v4  ;;  %v3794_v30 = vrot.slane %v7101_v4, %v6062_v44  ;;  %v3857_v42 = vpack.c.bf16 %v7101_v4, %v7101_v4  ;;  %v3979_v32 = vmul.f32 %v3975_v49, %v7101_v4 }
 0xed5   : > { %v3801_v55 = vrot.slane %v3787_v29, %v6062_v44  ;;  %v3802_v60 = vcombine.high %v3794_v30, %v3794_v30  ;;  %v3810_v27 = vrot.slane %v3794_v30, %v6062_v44  ;;  %4612 = vst.sshfl [vmem:[%s5667_s13 + $0xd] sm:$0x1 pattern:$0x73625140] %v3794_v30  ;;  %3891 = vmatmul.mubr.bf16.vlgmr.msra.gmra.mxu0 %v3857_v42 }
 0xed6   : > { %3932 = vmatmul.mubr.bf16.vlgmr.msra.gmra.mxu1 %v3857_v42  ;;  %4054 = vmatpush1.bf16.msra.mxu0 %v6987_v54 }
 0xed7   : > { %4095 = vmatpush1.bf16.msra.mxu1 %v6990_v41  ;;  %v3803_v23 = vcombine.high %v3801_v55, %v3801_v55  ;;  %v3817_v28 = vrot.slane %v3801_v55, %v6062_v44  ;;  %v3824_v33 = vrot.slane %v3802_v60, %v6062_v44  ;;  %v3832_v39 = vcombine.high %v3810_v27, %v3810_v27 }
 0xed8   : > { %4613 = vst.sshfl [vmem:[%s5667_s13 + $0x1d] sm:$0x1 pattern:$0x73625140] %v3802_v60  ;;  %4055 = vmatprep.subr.bf16.mxu0 %v6997_v31  ;;  %4096 = vmatprep.subr.bf16.mxu1 %v7000_v18  ;;  %v7393_v18 = vld [vmem:[#allocation68_spill] sm:$0xff] }
 0xed9   : > { %4614 = vst.sshfl [vmem:[%s5667_s13 + $0x4d] sm:$0x1 pattern:$0x73625140] %v3801_v55  ;;  %4085 = vmatprep.mubr.bf16.mxu0 %v7347_v2  ;;  %v3831_v54 = vrot.slane %v3803_v23, %v6062_v44  ;;  %v3833_v41 = vcombine.high %v3817_v28, %v3817_v28  ;;  %v3834_v37 = vcombine.high %v3824_v33, %v3824_v33  ;;  %3846 = vst [vmem:[%s5667_s13 + $0x2d] sm:$0x1] %v3832_v39 }
 0xeda   : > { %4615 = vst.sshfl [vmem:[%s5667_s13 + $0x5d] sm:$0x1 pattern:$0x73625140] %v3803_v23  ;;  %4126 = vmatprep.mubr.bf16.mxu1 %v7347_v2  ;;  %4056 = vmatpush1.bf16.msra.mxu0 %v7008_v46 }
 0xedb   : > { %4097 = vmatpush1.bf16.msra.mxu1 %v7011_v10  ;;  %v3835_v38 = vcombine.high %v3831_v54, %v3831_v54  ;;  %3847 = vst [vmem:[%s5667_s13 + $0x3d] sm:$0x1] %v3834_v37  ;;  %3850 = vst [vmem:[%s5667_s13 + $0x6d] sm:$0x1] %v3833_v41  ;;  %4057 = vmatprep.subr.bf16.mxu0 %v7016_v52  ;;  %v7397_v54 = vld [vmem:[#allocation72_spill] sm:$0xff] }
 0xedc   : > { %4098 = vmatprep.subr.bf16.mxu1 %v7019_v56 }
 0xedd   : > { %3851 = vst [vmem:[%s5667_s13 + $0x7d] sm:$0x1] %v3835_v38 }
 0xede   : > { %4058 = vmatpush1.bf16.msra.mxu0 %v7023_v57  ;;  %v7394_v57 = vld [vmem:[#allocation70_spill] sm:$0xff] }
 0xedf   : > { %4099 = vmatpush1.bf16.msra.mxu1 %v7026_v58  ;;  %4059 = vmatprep.subr.bf16.mxu0 %v7029_v59 }
 0xee0   : > { %4100 = vmatprep.subr.bf16.mxu1 %v7032_v62 }
 0xee2   : > { %4060 = vmatpush1.bf16.msra.mxu0 %v7035_v63 }
 0xee3   : > { %4101 = vmatpush1.bf16.msra.mxu1 %v7038_v0  ;;  %4061 = vmatprep.subr.bf16.mxu0 %v7041_v1 }
 0xee4   : > { %4102 = vmatprep.subr.bf16.mxu1 %v7044_v6  ;;  %v7395_v6 = vld [vmem:[#allocation71_spill] sm:$0xff] }
 0xee6   : > { %4062 = vmatpush1.bf16.msra.mxu0 %v7047_v7 }
 0xee7   : > { %4103 = vmatpush1.bf16.msra.mxu1 %v7050_v8  ;;  %4063 = vmatprep.subr.bf16.mxu0 %v7053_v9  ;;  %v7396_v8 = vld [vmem:[#allocation69_spill] sm:$0xff] }
 0xee8   : > { %4104 = vmatprep.subr.bf16.mxu1 %v7056_v12 }
 0xeea   : > { %4064 = vmatpush1.bf16.msra.mxu0 %v7059_v13 }
 0xeeb   : > { %4105 = vmatpush1.bf16.msra.mxu1 %v7062_v14  ;;  %4065 = vmatprep.subr.bf16.mxu0 %v7065_v15 }
 0xeec   : > { %4106 = vmatprep.subr.bf16.mxu1 %v7068_v19 }
 0xeee   : > { %4066 = vmatpush1.bf16.msra.mxu0 %v7071_v20 }
 0xeef   : > { %4107 = vmatpush1.bf16.msra.mxu1 %v7074_v21  ;;  %4067 = vmatprep.subr.bf16.mxu0 %v7077_v22 }
 0xef0   : > { %4108 = vmatprep.subr.bf16.mxu1 %v7080_v25 }
 0xef2   : > { %4068 = vmatpush1.bf16.msra.mxu0 %v7083_v35 }
 0xef3   : > { %4109 = vmatpush1.bf16.msra.mxu1 %v7086_v17 }
 0xf95   : > { %v3892_v2 = vpop.f32.mrf.mxu0 }
 0xf96   : > { %v3933_v31 = vpop.f32.mrf.mxu1  ;;  %v3940_v46 = vadd.f32 %v3892_v2, %v7393_v18 }
 0xf97   : > { %v3894_v10 = vpop.f32.mrf.mxu0  ;;  %v3942_v9 = vadd.f32 %v3933_v31, %v7396_v8 }
 0xf98   : > { %v3935_v52 = vpop.f32.mrf.mxu1  ;;  %v4616_v56 = vmul.f32 -1.442695, %v3940_v46  ;;  %v3941_v58 = vadd.f32 %v3894_v10, %v7394_v57  ;;  %v7398_v57 = vld [vmem:[#allocation74_spill] sm:$0xff] }
 0xf99   : > { %v3896_v59 = vpop.f32.mrf.mxu0  ;;  %v3943_v7 = vadd.f32 %v3935_v52, %v7395_v6 }
 0xf9a   : > { %v3937_v62 = vpop.f32.mrf.mxu1  ;;  %5081 = vpow2.f32 %v4616_v56  ;;  %v4617_v63 = vmul.f32 -1.442695, %v3941_v58  ;;  %v7399_v59 = vld [vmem:[#allocation73_spill] sm:$0xff] }
 0xf9b   : > { %v3897_v0 = vpop.f32.mrf.mxu0  ;;  %v4618_v12 = vmul.f32 -1.442695, %v3943_v7 }
 0xf9c   : > { %v3938_v1 = vpop.f32.mrf.mxu1  ;;  %5083 = vpow2.f32 %v4617_v63 }
 0xf9d   : > { %5085 = vtanh.f32 %v3942_v9 }
 0xf9e   : > { %5087 = vpow2.f32 %v4618_v12 }
 0xfa7   : > { %v5082_v13 = vpop.eup %5081 }
 0xfa8   : > { %v3947_v14 = vadd.f32 1.0, %v5082_v13 }
 0xfa9   : > { %v5084_v15 = vpop.eup %5083 }
 0xfaa   : > { %5089 = vrcp.f32 %v3947_v14  ;;  %v3953_v19 = vadd.f32 1.0, %v5084_v15  ;;  %v5086_v20 = vpop.eup %5085 }
 0xfab   : > { %v5088_v21 = vpop.eup %5087 }
 0xfac   : > { %5091 = vrcp.f32 %v3953_v19  ;;  %v3960_v17 = vadd.f32 1.0, %v5088_v21  ;;  %v4170_v19 = vstv %s4169_s22 }
 0xfae   : > { %5093 = vrcp.f32 %v3960_v17 }
 0xfb7   : > { %v5090_v22 = vpop.eup %5089 }
 0xfb8   : > { %v3964_v25 = vmul.f32 %v5090_v22, %v5086_v20  ;;  %v4167_v20 = vstv %s4166_s10 }
 0xfb9   : > { %v5092_v35 = vpop.eup %5091 }
 0xfba   : > { %v3963_v5 = vmul.f32 %v5092_v35, %v7098_v36 }
 0xfbb   : > { %v5094_v40 = vpop.eup %5093 }
 0xfbc   : > { %v3965_v45 = vadd.f32 %v3964_v25, %v3963_v5 }
 0xfbe   : > { %5095 = vtanh.f32 %v3965_v45  ;;  %v3973_v47 = vmul.f32 %v3972_v16, %v3965_v45 }
 0xfc0   : > { %v7161_v11 = vadd.f32 %v3976_v51, %v3973_v47 }
 0xfc2   : > { %v4171_v22 = vmul.f32 %v4170_v19, %v7161_v11 }
 0xfcb   : > { %v5096_v53 = vpop.eup %5095 }
 0xfcc   : > { %v3967_v61 = vmul.f32 %v5096_v53, %v5094_v40 }
 0xfce   : > { %v3978_v50 = vmul.f32 %v3972_v16, %v3967_v61 }
 0xfd0   : > { %v7164_v48 = vadd.f32 %v3979_v32, %v3978_v50 }
 0xfd2   : > { %v3982_v24 = vcombine.high %v7164_v48, %v7164_v48  ;;  %v3989_v26 = vrot.slane %v7164_v48, %v6062_v44  ;;  %v4052_v36 = vpack.c.bf16 %v7164_v48, %v7164_v48  ;;  %v4174_v49 = vmul.f32 %v4170_v19, %v7164_v48 }
 0xfd4   : > { %v3996_v43 = vrot.slane %v3982_v24, %v6062_v44  ;;  %v3997_v3 = vcombine.high %v3989_v26, %v3989_v26  ;;  %v4005_v29 = vrot.slane %v3989_v26, %v6062_v44  ;;  %4619 = vst.sshfl [vmem:[%s5667_s13 + $0xe] sm:$0x1 pattern:$0x73625140] %v3989_v26  ;;  %4086 = vmatmul.mubr.bf16.vlgmr.msra.gmra.mxu0 %v4052_v36 }
 0xfd5   : > { %4127 = vmatmul.mubr.bf16.vlgmr.msra.gmra.mxu1 %v4052_v36 }
 0xfd6   : > { %v3998_v4 = vcombine.high %v3996_v43, %v3996_v43  ;;  %v4012_v30 = vrot.slane %v3996_v43, %v6062_v44  ;;  %v4019_v42 = vrot.slane %v3997_v3, %v6062_v44  ;;  %v4027_v55 = vcombine.high %v4005_v29, %v4005_v29  ;;  %4620 = vst.sshfl [vmem:[%s5667_s13 + $0x1e] sm:$0x1 pattern:$0x73625140] %v3997_v3 }
 0xfd7   : > { %4621 = vst.sshfl [vmem:[%s5667_s13 + $0x4e] sm:$0x1 pattern:$0x73625140] %v3996_v43 }
 0xfd8   : > { %v4026_v60 = vrot.slane %v3998_v4, %v6062_v44  ;;  %v4028_v27 = vcombine.high %v4012_v30, %v4012_v30  ;;  %v4029_v23 = vcombine.high %v4019_v42, %v4019_v42  ;;  %4041 = vst [vmem:[%s5667_s13 + $0x2e] sm:$0x1] %v4027_v55  ;;  %4622 = vst.sshfl [vmem:[%s5667_s13 + $0x5e] sm:$0x1 pattern:$0x73625140] %v3998_v4 }
 0xfda   : > { %v4030_v28 = vcombine.high %v4026_v60, %v4026_v60  ;;  %4042 = vst [vmem:[%s5667_s13 + $0x3e] sm:$0x1] %v4029_v23  ;;  %4045 = vst [vmem:[%s5667_s13 + $0x6e] sm:$0x1] %v4028_v27 }
 0xfdc   : > { %4046 = vst [vmem:[%s5667_s13 + $0x7e] sm:$0x1] %v4030_v28 }
0x1094   : > { %v4087_v33 = vpop.f32.mrf.mxu0 }
0x1095   : > { %v4128_v39 = vpop.f32.mrf.mxu1  ;;  %v4135_v41 = vadd.f32 %v4087_v33, %v7397_v54 }
0x1096   : > { %v4089_v37 = vpop.f32.mrf.mxu0  ;;  %v4137_v62 = vadd.f32 %v4128_v39, %v7399_v59 }
0x1097   : > { %v4130_v38 = vpop.f32.mrf.mxu1  ;;  %v4623_v2 = vmul.f32 -1.442695, %v4135_v41  ;;  %v4136_v31 = vadd.f32 %v4089_v37, %v6043_v34 }
0x1098   : > { %v4091_v18 = vpop.f32.mrf.mxu0  ;;  %v4138_v58 = vadd.f32 %v4130_v38, %v7398_v57 }
0x1099   : > { %v4132_v46 = vpop.f32.mrf.mxu1  ;;  %5097 = vpow2.f32 %v4623_v2  ;;  %v4624_v10 = vmul.f32 -1.442695, %v4136_v31 }
0x109a   : > { %v4092_v52 = vpop.f32.mrf.mxu0  ;;  %v4625_v63 = vmul.f32 -1.442695, %v4138_v58 }
0x109b   : > { %v4133_v56 = vpop.f32.mrf.mxu1  ;;  %5099 = vpow2.f32 %v4624_v10 }
0x109c   : > { %5101 = vtanh.f32 %v4137_v62 }
0x109d   : > { %5103 = vpow2.f32 %v4625_v63 }
0x10a6   : > { %v5098_v0 = vpop.eup %5097 }
0x10a7   : > { %v4142_v1 = vadd.f32 1.0, %v5098_v0 }
0x10a8   : > { %v5100_v6 = vpop.eup %5099 }
0x10a9   : > { %5105 = vrcp.f32 %v4142_v1  ;;  %v4148_v34 = vadd.f32 1.0, %v5100_v6  ;;  %v5102_v7 = vpop.eup %5101 }
0x10aa   : > { %v5104_v8 = vpop.eup %5103 }
0x10ab   : > { %5107 = vrcp.f32 %v4148_v34  ;;  %v4155_v14 = vadd.f32 1.0, %v5104_v8 }
0x10ad   : > { %5109 = vrcp.f32 %v4155_v14 }
0x10b6   : > { %v5106_v9 = vpop.eup %5105 }
0x10b7   : > { %v4159_v12 = vmul.f32 %v5106_v9, %v5102_v7 }
0x10b8   : > { %v5108_v13 = vpop.eup %5107 }
0x10b9   : > { %v4158_v15 = vmul.f32 %v5108_v13, %v7161_v11 }
0x10ba   : > { %v5110_v17 = vpop.eup %5109 }
0x10bb   : > { %v4160_v21 = vadd.f32 %v4159_v12, %v4158_v15 }
0x10bd   : > { %5111 = vtanh.f32 %v4160_v21  ;;  %v4168_v25 = vmul.f32 %v4167_v20, %v4160_v21 }
0x10bf   : > { %v4172_v35 = vadd.f32 %v4171_v22, %v4168_v25 }
0x10c1   : > { %4243 = vst [vmem:[#allocation15] sm:$0xff] %v4172_v35 }
0x10ca   : > { %v5112_v5 = vpop.eup %5111 }
0x10cb   : > { %v4162_v16 = vmul.f32 %v5112_v5, %v5110_v17 }
0x10cd   : > { %v4173_v45 = vmul.f32 %v4167_v20, %v4162_v16 }
0x10cf   : > { %v4175_v47 = vadd.f32 %v4174_v49, %v4173_v45 }
0x10d1   : > { %v4177_v51 = vcombine.high %v4175_v47, %v4175_v47  ;;  %v4184_v40 = vrot.slane %v4175_v47, %v6062_v44  ;;  %4242 = vst [vmem:[#allocation13] sm:$0xff] %v4175_v47 }
0x10d3   : > { %v4191_v11 = vrot.slane %v4177_v51, %v6062_v44  ;;  %v4192_v53 = vcombine.high %v4184_v40, %v4184_v40  ;;  %v4200_v61 = vrot.slane %v4184_v40, %v6062_v44  ;;  %4626 = vst.sshfl [vmem:[%s5667_s13 + $0xf] sm:$0x1 pattern:$0x73625140] %v4184_v40 }
0x10d5   : > { %v4193_v50 = vcombine.high %v4191_v11, %v4191_v11  ;;  %v4207_v32 = vrot.slane %v4191_v11, %v6062_v44  ;;  %v4214_v48 = vrot.slane %v4192_v53, %v6062_v44  ;;  %v4222_v24 = vcombine.high %v4200_v61, %v4200_v61  ;;  %4627 = vst.sshfl [vmem:[%s5667_s13 + $0x1f] sm:$0x1 pattern:$0x73625140] %v4192_v53 }
0x10d6   : > { %4628 = vst.sshfl [vmem:[%s5667_s13 + $0x4f] sm:$0x1 pattern:$0x73625140] %v4191_v11 }
0x10d7   : > { %v4221_v26 = vrot.slane %v4193_v50, %v6062_v44  ;;  %v4223_v36 = vcombine.high %v4207_v32, %v4207_v32  ;;  %v4224_v43 = vcombine.high %v4214_v48, %v4214_v48  ;;  %4236 = vst [vmem:[%s5667_s13 + $0x2f] sm:$0x1] %v4222_v24  ;;  %4629 = vst.sshfl [vmem:[%s5667_s13 + $0x5f] sm:$0x1 pattern:$0x73625140] %v4193_v50 }
0x10d9   : > { %v4225_v3 = vcombine.high %v4221_v26, %v4221_v26  ;;  %4237 = vst [vmem:[%s5667_s13 + $0x3f] sm:$0x1] %v4224_v43  ;;  %4240 = vst [vmem:[%s5667_s13 + $0x6f] sm:$0x1] %v4223_v36 }
0x10db   : > { %4241 = vst [vmem:[%s5667_s13 + $0x7f] sm:$0x1] %v4225_v3 }
0x10dc   : > { %s4640_s16 = sshll.u32 %s5527_s9, 8  ;;  %s4268_s25 = sshll.u32 %s5667_s13, 4  ;;  %s4269_s25 = int_to_ptr.vmem [resolvable:$true] %s4268_s25 }
0x10dd   : > { %s4257_s2 = scalar_lea.hbm %s7268_s6, %s4640_s16  ;;  %s5452_s19 = smov 256  }
0x10de   : > { %p7400_p5 = scmp.ne.s32.totalorder %s7286_s14, 0  ;;  %s5453_s1 = smov 768  }
0x10df   : > { %s5454_s17 = smov 2   ;;  %s5455_s11 = smov 128  }
0x10e0   : > { %4659 = sst [smem:[#allocation17]] (%p7400_p5), %s5452_s19  ;;  %s5456_s13 = smov 8  }
0x10e1   : > { %4660 = sst [smem:[#allocation17 + $0x1]] (%p7400_p5), %s5453_s1  ;;  %s5457_s21 = smov 131072  }
0x10e2   : > { %4661 = sst [smem:[#allocation17 + $0x2]] (%p7400_p5), %s5454_s17  ;;  %s5458_s24 = smov 0  }
0x10e3   : > { %4662 = sst [smem:[#allocation17 + $0x3]] (%p7400_p5), %s5455_s11  ;;  %s5459_s10 = smov [#allocation13]  }
0x10e4   : > { %4663 = sst [smem:[#allocation17 + $0x4]] (%p7400_p5), %s5455_s11  ;;  %s4295_s22 = sshll.u32 %s5459_s10, 4  ;;  %s4296_s22 = int_to_ptr.vmem [resolvable:$true] %s4295_s22 }
0x10e5   : > { %4664 = sst [smem:[#allocation17 + $0x5]] (%p7400_p5), %s5456_s13  ;;  %s5460_s16 = smov [#allocation15]  }
0x10e6   : > { %4665 = dma.general (%p7400_p5), %s4269_s25, 2048, %s4257_s2, %s4245_s23, %s5457_s21, [#allocation17], %s5458_s24, 0  }
0x10e7   : > { %s4306_s18 = sshll.u32 %s5460_s16, 4  ;;  %s5341_s26 = scalar_lea.vmem %s4296_s22, 128  ;;  %s4307_s18 = int_to_ptr.vmem [resolvable:$true] %s4306_s18 }
0x10e8   : > { %p5342_p6 = scmp.ne.s32.totalorder %s4296_s22, %s5341_s26  ;;  %p7401_p9 = scmp.eq.s32.totalorder %s5527_s9, 2 }
0x10e9   : > { %p5348_p10 = scmp.lt.s32.totalorder %s4296_s22, %s4296_s22  ;;  %p5349_p4 = scmp.lt.s32.totalorder %s5341_s26, %s5341_s26 }
0x10ea   : > { %p5343_p7 = pnand %p5342_p6, %p7401_p9 }
0x10eb   : > { %p5350_p11 = por %p5349_p4, %p5348_p10 }
0x10ec   : > { %p5344_p13 = pneg %p5343_p7 }
0x10ee   : > { %p5351_p0 = pnand %p5350_p11, %p5344_p13 }
0x10f0   : > { %5354 = shalt.err (!%p5351_p0)
}
0x10f1   : > { %p7402_p8 = pmov %p7401_p9  ;;  %s5365_s25 = scalar_lea.vmem %s4307_s18, 128 }
0x10f2   : > { %p5366_p1 = scmp.ne.s32.totalorder %s4307_s18, %s5365_s25  ;;  %p5372_p5 = scmp.lt.s32.totalorder %s4307_s18, %s4307_s18 }
0x10f3   : > { %4667 = dma.vmem_to_hbm [thread:$0]  (%p7402_p8), %s4296_s22, 128, %s7269_s7, [#allocation14]  }
0x10f4   : > { %p7403_p12 = pmov %p7402_p8  ;;  %p5373_p6 = scmp.lt.s32.totalorder %s5365_s25, %s5365_s25 }
0x10f6   : > { %p5367_p2 = pnand %p5366_p1, %p7403_p12  ;;  %p5374_p9 = por %p5373_p6, %p5372_p5 }
0x10f8   : > { %p5368_p3 = pneg %p5367_p2 }
0x10fa   : > { %p5375_p7 = pnand %p5374_p9, %p5368_p3 }
0x10fc   : > { %5378 = shalt.err (!%p5375_p7)
}
0x10fd   : > { %p7404_p13 = pmov %p7402_p8  ;;  %p7405_p10 = pmov %p7402_p8 }
0x10ff   : > { %4669 = dma.vmem_to_hbm [thread:$0]  (%p7404_p13), %s4307_s18, 128, %s7270_s8, [#allocation14]  }
0x1100   : > { %5418 = dma.done.wait (%p7405_p10), [#allocation14], 256   ;;  %p7406_p4 = pmov %p7402_p8 }
0x1102   : > { %5420 = vsyncadd (%p7406_p4), [#allocation14], 4294967040 }
0x1103 PF: > { %p4709_p11 = scmp.ge.s32.totalorder %s5439_s30, 2  ;;  %s4326_s1 = sand.u32 1, %s5427_s27  }
0x1104   : > { %p7407_p0 = scmp.ne.s32.totalorder %s7280_s12, 0  ;;  %s4327_s17 = scalar_lea.sflag [#allocation5], %s4326_s1 }
0x1106   : > { %p4693_p8 = pnand %p4709_p11, %p7407_p0 }
0x1108   : > { %p4694_p1 = pneg %p4693_p8 }
0x110a   : > { %5422 = dma.done.wait (%p4694_p1), %s4327_s17, 2048  }
0x110b   : > { %5424 = vsyncadd (%p4694_p1), %s4327_s17, 4294965248  ;;  %p25_p12 = scmp.ge.s32.totalorder %s5594_s20, 5   ;;  %s7408_s27 = smov %s5431_s28 }
0x110c   : > { %s7409_s28 = smov %s5435_s29  ;;  %s7410_s29 = smov %s5610_s15 }
0x110d   : > { %s7411_s30 = smov %s5594_s20  ;;  %27 = sbr.rel (!%p25_p12) target bundleno = 11 (0xb), region = 145 }
0x1112   :  { %4332 = vsyncpa [#allocation4], 1 }
0x1113   :  { %4334 = vsyncpa [#allocation4 + $0x1], 1 }
0x1114   :  { %4335 = vsyncpa [#allocation7], 1 }
0x1115   :  { %4336 = vsyncpa [#allocation10], 1 }
0x1116   :  { %4337 = vsyncpa [#allocation5], 1 }
0x1117   :  { %4339 = vsyncpa [#allocation5 + $0x1], 1 }
0x1118   :  { %4340 = vsyncpa [#allocation14], 1 }

</bundles_post_ra>
